<compile_context>
chip_gen: v7x
topology: tpu7x:2x2x1
jax: 0.10.0
libtpu: 0.0.40
codegen_flags: <defaults>
</compile_context>

<pallas_src>
import jax
import jax.numpy as jnp
from jax.experimental import pallas as pl
from jax.experimental.pallas import tpu as pltpu


def _round_up(x, m):
    return (x + m - 1) // m * m


def _cdiv(a, b):
    return (a + b - 1) // b


_MAX_TILE_B = 512     # worst-case batch tile assumed for VMEM planning
_MAX_TILE_K = 8192    # K-tile upper bound (amortizes ~0.35us/grid-step overhead)


def _vmem_budget_bytes():
    """Generation-aware usable-VMEM budget: ~96 MiB on v5e/v6e, ~48 MiB on v7x."""
    try:
        cap = int(pltpu.get_tpu_info().vmem_capacity_bytes)
    except Exception:
        cap = 64 << 20                       # conservative fallback (v7x per-TC)
    return min(cap * 3 // 4, 96 << 20)


def _plan(total_pixel, cdim, compute_dtype):
    """Choose the K tiling / padded reduction length for this weight shape."""
    cbytes = jnp.dtype(compute_dtype).itemsize
    budget = _vmem_budget_bytes()

    # VMEM residents: w2 + w3 (single-buffered), biases, output tile (f32,
    # double-buffered, worst-case batch tile).
    resident = 2 * cdim * cdim * cbytes + 3 * cdim * 4
    out_bytes = 2 * _MAX_TILE_B * cdim * 4
    headroom = 2 << 20
    avail = budget - resident - out_bytes - headroom
    # TODO(synk): if the resident w2/w3 alone exceed the budget (cdim >~ 3300
    # on v7x) fall back to N-tiling w2/w3; not needed for basic_channels<=2048.

    per_k = 2 * cbytes * (_MAX_TILE_B + cdim)   # double-buffered x + w1 K-slices
    if avail <= per_k * 128:
        tile_k_max = 128
    else:
        tile_k_max = min((avail // per_k) // 128 * 128, _MAX_TILE_K)

    n_pad = _round_up(max(total_pixel, 1), 128)
    nk = _cdiv(n_pad, tile_k_max)
    tile_k = _round_up(_cdiv(n_pad, nk), 128)
    n_pad = nk * tile_k
    return dict(total_pixel=total_pixel, cdim=cdim, n_pad=n_pad, tile_k=tile_k,
                budget=budget, compute_dtype=compute_dtype)


def prepare_featext(params, *, compute_dtype=jnp.bfloat16):
    """Cast/pad the weights ONCE. Cache the result; do not redo per forward call.

    TODO(synk): optional int8 (v5e/v6e) / fp8 (v7x) weight quantization would
    halve weight DMA bytes again; not implemented (bf16 kept for simplicity).
    """
    w1, b1, w2, b2, w3, b3, alphas = params
    n, cdim = w1.shape
    plan = _plan(n, cdim, compute_dtype)
    w1c = jnp.pad(w1.astype(compute_dtype), ((0, plan["n_pad"] - n), (0, 0)))
    return dict(
        w1=w1c,
        b1=b1.astype(jnp.float32).reshape(1, cdim),
        w2=w2.astype(compute_dtype),
        b2=b2.astype(jnp.float32).reshape(1, cdim),
        w3=w3.astype(compute_dtype),
        b3=b3.astype(jnp.float32).reshape(1, cdim),
        alphas=alphas.astype(jnp.float32),
        plan=plan,
    )


def featext_kernel(x_ref, w1_ref, b1_ref, w2_ref, b2_ref, w3_ref, b3_ref,
                   alpha_ref, o_ref):
    """One (batch-tile, k-tile) grid step of the fused 3-stage 1x1-conv MLP.

    Stage-1 partials accumulate directly into the f32 output block (resident
    across the K axis); the two resident-weight matmuls run at the last k step.
    """
    k = pl.program_id(1)

    @pl.when(k == 0)
    def _init():
        o_ref[...] = jnp.zeros_like(o_ref)

    # Stage-1 partial product over the flattened-pixel (K) axis.
    o_ref[...] += jnp.dot(x_ref[...], w1_ref[...],
                          preferred_element_type=jnp.float32)

    @pl.when(k == pl.num_programs(1) - 1)
    def _finalize():
        def prelu(v, a):
            # PReLU(num_parameters=1): v if v > 0 else a * v
            return jnp.where(v > 0, v, a * v)

        # Stage 1: bias + PReLU (f32).
        h = prelu(o_ref[...] + b1_ref[...], alpha_ref[0])

        # Dropout(p=0.2) is identity in eval mode.
        # TODO(synk): training-mode dropout (pltpu.prng_seed + random mask) not implemented.

        # Stage 2: matmul (bf16 operands, f32 accumulate) + bias + PReLU.
        h = prelu(jnp.dot(h.astype(w2_ref.dtype), w2_ref[...],
                          preferred_element_type=jnp.float32) + b2_ref[...],
                  alpha_ref[1])

        # Stage 3.
        h = prelu(jnp.dot(h.astype(w3_ref.dtype), w3_ref[...],
                          preferred_element_type=jnp.float32) + b3_ref[...],
                  alpha_ref[2])

        o_ref[...] = h


def _resident_spec(shape, index_map):
    """BlockSpec for grid-invariant operands; single-buffered when supported."""
    try:
        return pl.BlockSpec(shape, index_map, pipeline_mode=pl.Buffered(1))
    except Exception:
        return pl.BlockSpec(shape, index_map)


def featext_forward(x, prepared):
    """x: (b, c, w, h) float32. Returns (b, c, 32, 32) float32."""
    plan = prepared["plan"]
    cdim = plan["cdim"]
    n = plan["total_pixel"]
    n_pad = plan["n_pad"]
    tile_k = plan["tile_k"]
    cdt = plan["compute_dtype"]
    cbytes = jnp.dtype(cdt).itemsize

    b, c, w, h = x.shape
    assert c * w * h == n, "conv1 in_channels must equal c*w*h"
    assert cdim == c * 32 * 32, "final reshape requires basic_channels == c*32*32"
    assert cdim % 128 == 0, "basic_channels must be lane-aligned (multiple of 128)"

    # ---------------- batch tiling ----------------
    # bf16 packs two rows per sublane -> round batch to 16; cover the whole
    # padded batch with a single tile whenever it fits so w1 is streamed once.
    b_pad = _round_up(max(b, 1), 16)
    tile_b = min(b_pad, _MAX_TILE_B)
    b_pad = _round_up(b_pad, tile_b)
    grid = (b_pad // tile_b, n_pad // tile_k)
    # NOTE: for b > _MAX_TILE_B w1 is re-streamed once per batch tile.

    # ------------ activation prep (weights are pre-cast in prepare_featext) ------------
    flat = jnp.pad(x.reshape(b, n).astype(cdt),
                   ((0, b_pad - b), (0, n_pad - n)))

    # ------------ VMEM budget from the real footprint ------------
    footprint = (2 * tile_b * tile_k * cbytes        # x tile (double-buffered)
                 + 2 * tile_k * cdim * cbytes        # w1 tile (double-buffered)
                 + 2 * cdim * cdim * cbytes          # w2 + w3 (single-buffered)
                 + 3 * cdim * 4                      # biases
                 + 2 * tile_b * cdim * 4)            # f32 output tile (acc)
    vmem_limit = min(plan["budget"],
                     max(int(footprint * 1.25) + (1 << 20), 16 << 20))

    cost = pl.CostEstimate(
        flops=2 * b_pad * (n_pad * cdim + 2 * cdim * cdim),
        transcendentals=0,
        bytes_accessed=(flat.size * cbytes
                        + grid[0] * prepared["w1"].size * cbytes
                        + prepared["w2"].size * cbytes
                        + prepared["w3"].size * cbytes
                        + 3 * cdim * 4 + b_pad * cdim * 4))

    grid_spec = pltpu.PrefetchScalarGridSpec(
        num_scalar_prefetch=0,
        grid=grid,
        in_specs=[
            pl.BlockSpec((tile_b, tile_k), lambda i, k: (i, k)),   # x (batch/K tiled)
            pl.BlockSpec((tile_k, cdim), lambda i, k: (k, 0)),     # w1 (K tiled)
            _resident_spec((1, cdim), lambda i, k: (0, 0)),        # b1
            _resident_spec((cdim, cdim), lambda i, k: (0, 0)),     # w2
            _resident_spec((1, cdim), lambda i, k: (0, 0)),        # b2
            _resident_spec((cdim, cdim), lambda i, k: (0, 0)),     # w3
            _resident_spec((1, cdim), lambda i, k: (0, 0)),        # b3
            pl.BlockSpec(memory_space=pltpu.MemorySpace.SMEM),     # PReLU alphas
        ],
        out_specs=pl.BlockSpec((tile_b, cdim), lambda i, k: (i, 0)),
    )

    out = pl.pallas_call(
        featext_kernel,
        out_shape=jax.ShapeDtypeStruct((b_pad, cdim), jnp.float32),
        grid_spec=grid_spec,
        compiler_params=pltpu.CompilerParams(
            dimension_semantics=("parallel", "arbitrary"),
            vmem_limit_bytes=vmem_limit),
        cost_estimate=cost,
    )(flat, prepared["w1"], prepared["b1"], prepared["w2"], prepared["b2"],
      prepared["w3"], prepared["b3"], prepared["alphas"])

    return out[:b].reshape(b, c, 32, 32)


def init_params(key, total_pixel, basic_channels):
    """Deterministic synthetic parameters (shapes match the PyTorch module)."""
    ks = jax.random.split(key, 6)
    scale = 0.02
    w1 = scale * jax.random.normal(ks[0], (total_pixel, basic_channels), jnp.float32)
    b1 = scale * jax.random.normal(ks[1], (1, basic_channels), jnp.float32)
    w2 = scale * jax.random.normal(ks[2], (basic_channels, basic_channels), jnp.float32)
    b2 = scale * jax.random.normal(ks[3], (1, basic_channels), jnp.float32)
    w3 = scale * jax.random.normal(ks[4], (basic_channels, basic_channels), jnp.float32)
    b3 = scale * jax.random.normal(ks[5], (1, basic_channels), jnp.float32)
    alphas = jnp.full((3,), 0.25, jnp.float32)   # PReLU default init
    return (w1, b1, w2, b2, w3, b3, alphas)


def featext_reference(x, params, *, compute_dtype=jnp.bfloat16):
    """Pure-JAX reference using the same bf16-operand / f32-accumulate numerics."""
    b, c, w, h = x.shape
    w1, b1, w2, b2, w3, b3, alphas = params

    def prelu(v, a):
        return jnp.where(v > 0, v, a * v)

    v = x.reshape(b, c * w * h).astype(compute_dtype)
    v = jnp.dot(v, w1.astype(compute_dtype),
                preferred_element_type=jnp.float32) + b1.reshape(1, -1)
    v = prelu(v, alphas[0])
    v = jnp.dot(v.astype(compute_dtype), w2.astype(compute_dtype),
                preferred_element_type=jnp.float32) + b2.reshape(1, -1)
    v = prelu(v, alphas[1])
    v = jnp.dot(v.astype(compute_dtype), w3.astype(compute_dtype),
                preferred_element_type=jnp.float32) + b3.reshape(1, -1)
    v = prelu(v, alphas[2])
    return v.reshape(b, c, 32, 32)


if __name__ == "__main__":
    # Small configuration consistent with the module:
    #   in_size = 16 -> total_pixel = 256, input (b=2, c=1, 16, 16)
    #   basic_channels must equal c*32*32 = 1024 for the final reshape.
    in_size = 16
    total_pixel = in_size * in_size
    b, c = 2, 1
    basic_channels = c * 32 * 32

    key = jax.random.PRNGKey(0)
    k_x, k_p = jax.random.split(key)
    x = jax.random.normal(k_x, (b, c, in_size, in_size), jnp.float32)
    params = init_params(k_p, total_pixel, basic_channels)

    # Cast/pad the weights once (would be cached across calls in real use).
    prepared = prepare_featext(params)

    out = featext_forward(x, prepared)
    out = jax.block_until_ready(out)

    ref = featext_reference(x, params)
    assert out.shape == (b, c, 32, 32), out.shape
    assert jnp.allclose(out, ref, atol=1e-2, rtol=1e-2), "mismatch vs reference"

    print("KERNEL_OK")
</pallas_src>

<mosaic_0001>
module attributes {stable_mosaic.version = 11 : i64} {
  func.func @featext_kernel(%arg0: i32, %arg1: i32, %arg2: memref<16x256xbf16, #tpu.memory_space<vmem>>, %arg3: memref<256x1024xbf16, #tpu.memory_space<vmem>>, %arg4: memref<1x1024xf32, #tpu.memory_space<vmem>>, %arg5: memref<1024x1024xbf16, #tpu.memory_space<vmem>>, %arg6: memref<1x1024xf32, #tpu.memory_space<vmem>>, %arg7: memref<1024x1024xbf16, #tpu.memory_space<vmem>>, %arg8: memref<1x1024xf32, #tpu.memory_space<vmem>>, %arg9: memref<3xf32, #tpu.memory_space<smem>>, %arg10: memref<16x1024xf32, #tpu.memory_space<vmem>>) attributes {dimension_semantics = [#tpu.dimension_semantics<parallel>, #tpu.dimension_semantics<arbitrary>], iteration_bounds = array<i64: 1, 1>, scalar_prefetch = 0 : i64, scratch_operands = 0 : i64, tpu.core_type = #tpu.core_type<tc>, window_params = [{transform_indices = @transform_0, window_bounds = array<i64: 16, 256>}, {transform_indices = @transform_1, window_bounds = array<i64: 256, 1024>}, {pipeline_mode = #tpu.pipeline_mode<synchronous>, transform_indices = @transform_2, window_bounds = array<i64: 1, 1024>}, {pipeline_mode = #tpu.pipeline_mode<synchronous>, transform_indices = @transform_3, window_bounds = array<i64: 1024, 1024>}, {pipeline_mode = #tpu.pipeline_mode<synchronous>, transform_indices = @transform_4, window_bounds = array<i64: 1, 1024>}, {pipeline_mode = #tpu.pipeline_mode<synchronous>, transform_indices = @transform_5, window_bounds = array<i64: 1024, 1024>}, {pipeline_mode = #tpu.pipeline_mode<synchronous>, transform_indices = @transform_6, window_bounds = array<i64: 1, 1024>}, {transform_indices = @transform_7, window_bounds = array<i64: 3>}, {transform_indices = @transform_8, window_bounds = array<i64: 16, 1024>}]} {
    %c0_i32 = arith.constant 0 : i32
    %0 = arith.cmpi eq, %arg1, %c0_i32 : i32
    %1 = arith.extui %0 : i1 to i32
    %c0_i32_0 = arith.constant 0 : i32
    %2 = arith.cmpi ne, %1, %c0_i32_0 : i32
    scf.if %2 {
      %cst_10 = arith.constant 0.000000e+00 : f32
      %12 = vector.broadcast %cst_10 : f32 to vector<16x1024xf32>
      %c0_11 = arith.constant 0 : index
      %c0_12 = arith.constant 0 : index
      %13 = vector.load %arg10[%c0_11, %c0_12] : memref<16x1024xf32, #tpu.memory_space<vmem>>, vector<16x1024xf32>
      tpu.vector_store %arg10[%c0_11, %c0_12], %12 {strides = array<i32>} : memref<16x1024xf32, #tpu.memory_space<vmem>>, vector<16x1024xf32>,
    } else {
    }
    %c0 = arith.constant 0 : index
    %c0_1 = arith.constant 0 : index
    %3 = vector.load %arg10[%c0, %c0_1] : memref<16x1024xf32, #tpu.memory_space<vmem>>, vector<16x1024xf32>
    %c0_2 = arith.constant 0 : index
    %c0_3 = arith.constant 0 : index
    %4 = vector.load %arg2[%c0_2, %c0_3] : memref<16x256xbf16, #tpu.memory_space<vmem>>, vector<16x256xbf16>
    %c0_4 = arith.constant 0 : index
    %c0_5 = arith.constant 0 : index
    %5 = vector.load %arg3[%c0_4, %c0_5] : memref<256x1024xbf16, #tpu.memory_space<vmem>>, vector<256x1024xbf16>
    %cst = arith.constant dense<0.000000e+00> : vector<16x1024xf32>
    %6 = tpu.matmul %4, %5, %cst {dimension_numbers = #tpu.dot_dimension_numbers<[1], [0], [0], [1], [0, 0, 1, 1], [], []>} : vector<16x256xbf16>, vector<256x1024xbf16>, vector<16x1024xf32> -> vector<16x1024xf32>
    %7 = arith.addf %3, %6 : vector<16x1024xf32>
    %c0_6 = arith.constant 0 : index
    %c0_7 = arith.constant 0 : index
    %8 = vector.load %arg10[%c0_6, %c0_7] : memref<16x1024xf32, #tpu.memory_space<vmem>>, vector<16x1024xf32>
    tpu.vector_store %arg10[%c0_6, %c0_7], %7 {strides = array<i32>} : memref<16x1024xf32, #tpu.memory_space<vmem>>, vector<16x1024xf32>,
    %c0_i32_8 = arith.constant 0 : i32
    %9 = arith.cmpi eq, %arg1, %c0_i32_8 : i32
    %10 = arith.extui %9 : i1 to i32
    %c0_i32_9 = arith.constant 0 : i32
    %11 = arith.cmpi ne, %10, %c0_i32_9 : i32
    scf.if %11 {
      %c0_10 = arith.constant 0 : index
      %c0_11 = arith.constant 0 : index
      %12 = vector.load %arg10[%c0_10, %c0_11] : memref<16x1024xf32, #tpu.memory_space<vmem>>, vector<16x1024xf32>
      %c0_12 = arith.constant 0 : index
      %c0_13 = arith.constant 0 : index
      %13 = vector.load %arg4[%c0_12, %c0_13] : memref<1x1024xf32, #tpu.memory_space<vmem>>, vector<1x1024xf32>
      %14 = vector.broadcast %13 : vector<1x1024xf32> to vector<16x1024xf32>
      %15 = arith.addf %12, %14 : vector<16x1024xf32>
      %c0_14 = arith.constant 0 : index
      %16 = memref.load %arg9[%c0_14] : memref<3xf32, #tpu.memory_space<smem>>
      %cst_15 = arith.constant 0.000000e+00 : f32
      %17 = vector.broadcast %cst_15 : f32 to vector<16x1024xf32>
      %18 = arith.cmpf ogt, %15, %17 : vector<16x1024xf32>
      %19 = vector.broadcast %16 : f32 to vector<16x1024xf32>
      %20 = arith.mulf %19, %15 : vector<16x1024xf32>
      %21 = arith.select %18, %15, %20 : vector<16x1024xi1>, vector<16x1024xf32>
      %22 = arith.truncf %21 : vector<16x1024xf32> to vector<16x1024xbf16>
      %c0_16 = arith.constant 0 : index
      %c0_17 = arith.constant 0 : index
      %23 = vector.load %arg5[%c0_16, %c0_17] : memref<1024x1024xbf16, #tpu.memory_space<vmem>>, vector<1024x1024xbf16>
      %cst_18 = arith.constant dense<0.000000e+00> : vector<16x1024xf32>
      %24 = tpu.matmul %22, %23, %cst_18 {dimension_numbers = #tpu.dot_dimension_numbers<[1], [0], [0], [1], [0, 0, 1, 1], [], []>} : vector<16x1024xbf16>, vector<1024x1024xbf16>, vector<16x1024xf32> -> vector<16x1024xf32>
      %c0_19 = arith.constant 0 : index
      %c0_20 = arith.constant 0 : index
      %25 = vector.load %arg6[%c0_19, %c0_20] : memref<1x1024xf32, #tpu.memory_space<vmem>>, vector<1x1024xf32>
      %26 = vector.broadcast %25 : vector<1x1024xf32> to vector<16x1024xf32>
      %27 = arith.addf %24, %26 : vector<16x1024xf32>
      %c1 = arith.constant 1 : index
      %28 = memref.load %arg9[%c1] : memref<3xf32, #tpu.memory_space<smem>>
      %cst_21 = arith.constant 0.000000e+00 : f32
      %29 = vector.broadcast %cst_21 : f32 to vector<16x1024xf32>
      %30 = arith.cmpf ogt, %27, %29 : vector<16x1024xf32>
      %31 = vector.broadcast %28 : f32 to vector<16x1024xf32>
      %32 = arith.mulf %31, %27 : vector<16x1024xf32>
      %33 = arith.select %30, %27, %32 : vector<16x1024xi1>, vector<16x1024xf32>
      %34 = arith.truncf %33 : vector<16x1024xf32> to vector<16x1024xbf16>
      %c0_22 = arith.constant 0 : index
      %c0_23 = arith.constant 0 : index
      %35 = vector.load %arg7[%c0_22, %c0_23] : memref<1024x1024xbf16, #tpu.memory_space<vmem>>, vector<1024x1024xbf16>
      %cst_24 = arith.constant dense<0.000000e+00> : vector<16x1024xf32>
      %36 = tpu.matmul %34, %35, %cst_24 {dimension_numbers = #tpu.dot_dimension_numbers<[1], [0], [0], [1], [0, 0, 1, 1], [], []>} : vector<16x1024xbf16>, vector<1024x1024xbf16>, vector<16x1024xf32> -> vector<16x1024xf32>
      %c0_25 = arith.constant 0 : index
      %c0_26 = arith.constant 0 : index
      %37 = vector.load %arg8[%c0_25, %c0_26] : memref<1x1024xf32, #tpu.memory_space<vmem>>, vector<1x1024xf32>
      %38 = vector.broadcast %37 : vector<1x1024xf32> to vector<16x1024xf32>
      %39 = arith.addf %36, %38 : vector<16x1024xf32>
      %c2 = arith.constant 2 : index
      %40 = memref.load %arg9[%c2] : memref<3xf32, #tpu.memory_space<smem>>
      %cst_27 = arith.constant 0.000000e+00 : f32
      %41 = vector.broadcast %cst_27 : f32 to vector<16x1024xf32>
      %42 = arith.cmpf ogt, %39, %41 : vector<16x1024xf32>
      %43 = vector.broadcast %40 : f32 to vector<16x1024xf32>
      %44 = arith.mulf %43, %39 : vector<16x1024xf32>
      %45 = arith.select %42, %39, %44 : vector<16x1024xi1>, vector<16x1024xf32>
      %c0_28 = arith.constant 0 : index
      %c0_29 = arith.constant 0 : index
      %46 = vector.load %arg10[%c0_28, %c0_29] : memref<16x1024xf32, #tpu.memory_space<vmem>>, vector<16x1024xf32>
      tpu.vector_store %arg10[%c0_28, %c0_29], %45 {strides = array<i32>} : memref<16x1024xf32, #tpu.memory_space<vmem>>, vector<16x1024xf32>,
    } else {
    }
    return
  }
  func.func @transform_0(%arg0: i32, %arg1: i32) -> (i32, i32) {
    %c0_i32 = arith.constant 0 : i32
    return %arg0, %arg1 : i32, i32
  }
  func.func @transform_1(%arg0: i32, %arg1: i32) -> (i32, i32) {
    %c0_i32 = arith.constant 0 : i32
    %c0_i32_0 = arith.constant 0 : i32
    return %arg1, %c0_i32 : i32, i32
  }
  func.func @transform_2(%arg0: i32, %arg1: i32) -> (i32, i32) {
    %c0_i32 = arith.constant 0 : i32
    %c0_i32_0 = arith.constant 0 : i32
    %c0_i32_1 = arith.constant 0 : i32
    return %c0_i32, %c0_i32_0 : i32, i32
  }
  func.func @transform_3(%arg0: i32, %arg1: i32) -> (i32, i32) {
    %c0_i32 = arith.constant 0 : i32
    %c0_i32_0 = arith.constant 0 : i32
    %c0_i32_1 = arith.constant 0 : i32
    return %c0_i32, %c0_i32_0 : i32, i32
  }
  func.func @transform_4(%arg0: i32, %arg1: i32) -> (i32, i32) {
    %c0_i32 = arith.constant 0 : i32
    %c0_i32_0 = arith.constant 0 : i32
    %c0_i32_1 = arith.constant 0 : i32
    return %c0_i32, %c0_i32_0 : i32, i32
  }
  func.func @transform_5(%arg0: i32, %arg1: i32) -> (i32, i32) {
    %c0_i32 = arith.constant 0 : i32
    %c0_i32_0 = arith.constant 0 : i32
    %c0_i32_1 = arith.constant 0 : i32
    return %c0_i32, %c0_i32_0 : i32, i32
  }
  func.func @transform_6(%arg0: i32, %arg1: i32) -> (i32, i32) {
    %c0_i32 = arith.constant 0 : i32
    %c0_i32_0 = arith.constant 0 : i32
    %c0_i32_1 = arith.constant 0 : i32
    return %c0_i32, %c0_i32_0 : i32, i32
  }
  func.func @transform_7(%arg0: i32, %arg1: i32) -> i32 {
    %c0_i32 = arith.constant 0 : i32
    %c0_i32_0 = arith.constant 0 : i32
    return %c0_i32 : i32
  }
  func.func @transform_8(%arg0: i32, %arg1: i32) -> (i32, i32) {
    %c0_i32 = arith.constant 0 : i32
    %c0_i32_0 = arith.constant 0 : i32
    return %arg0, %c0_i32 : i32, i32
  }
}

</mosaic_0001>

<bundles_post_ra>
// kernel: tpu_custom_call.1
= control target key start
LH: loop header
LB: loop body
LE: loop exit
PB: predicated region body
PF: predicated region fallthrough
CT: control target
= control target key end

     0   :  { %13 = vsyncpa [#allocation3], 0  ;;  %s11099_s0 = inlined_call_operand.hbm [shape: bf16[16,256], index: 0, kind: input, shape index: {}]   ;;  %s11100_s1 = inlined_call_operand.hbm [shape: bf16[256,1024], index: 1, kind: input, shape index: {}]   ;;  %s11101_s2 = inlined_call_operand.hbm [shape: f32[1,1024], index: 2, kind: input, shape index: {}]   ;;  %s11102_s3 = inlined_call_operand.hbm [shape: bf16[1024,1024], index: 3, kind: input, shape index: {}]   ;;  %s11103_s4 = inlined_call_operand.hbm [shape: f32[1,1024], index: 4, kind: input, shape index: {}]   ;;  %s11104_s5 = inlined_call_operand.hbm [shape: bf16[1024,1024], index: 5, kind: input, shape index: {}]   ;;  %s11105_s6 = inlined_call_operand.hbm [shape: f32[1,1024], index: 6, kind: input, shape index: {}]   ;;  %s11106_s7 = inlined_call_operand.hbm [shape: f32[3], index: 7, kind: input, shape index: {}]   ;;  %s11107_s8 = inlined_call_operand.hbm [shape: f32[16,1024], index: 8, kind: output, shape index: {}]  }
   0x1   :  { %14 = vsyncpa [#allocation7], 0 }
   0x2   :  { %15 = vsyncpa [#allocation10], 0 }
   0x3   :  { %16 = vsyncpa [#allocation13], 0 }
   0x4   :  { %17 = vsyncpa [#allocation5], 0 }
   0x5   :  { %18 = vsyncpa [#allocation4], 0  ;;  %s10536_s27 = smov [#allocation6]   ;;  %s10338_s9 = scalar_lea.hbm %s11100_s1, 16384 }
   0x6   :  { %s36_s28 = sshll.u32 %s10536_s27, 4  ;;  %p10339_p0 = scmp.ne.s32.totalorder %s11100_s1, %s10338_s9  ;;  %s37_s28 = int_to_ptr.vmem [resolvable:$true] %s36_s28 }
   0x7   :  { %p10342_p1 = scmp.lt.u32.totalorder %s10338_s9, %s11100_s1 }
   0x9   :  { %p10344_p2 = pnand %p10342_p1, %p10339_p0 }
   0xb   :  { %10347 = shalt.err (!%p10344_p2)
}
   0xc   :  { %s10348_s14 = scalar_lea.vmem %s37_s28, 16384  ;;  %p10353_p4 = scmp.lt.s32.totalorder %s37_s28, %s37_s28 }
   0xd   :  { %p10349_p3 = scmp.ne.s32.totalorder %s37_s28, %s10348_s14  ;;  %p10354_p5 = scmp.lt.s32.totalorder %s10348_s14, %s10348_s14 }
   0xf   :  { %p10355_p6 = por %p10354_p5, %p10353_p4 }
  0x11   :  { %p10356_p7 = pnand %p10355_p6, %p10349_p3 }
  0x13   :  { %10359 = shalt.err (!%p10356_p7)
}
  0x14   :  { %s10537_s15 = smov 512   ;;  %s10538_s16 = smov 32  }
  0x15   :  { %42 = dma.hbm_to_vmem [thread:$0]  %s11100_s1, 16384, %s37_s28, [#allocation7], %s10537_s15, %s10537_s15, %s10538_s16  }
  0x16   :  { %s10539_s19 = smov [#allocation9]   ;;  %s10540_s21 = smov [#allocation12]  }
  0x17   :  { %s58_s20 = sshll.u32 %s10539_s19, 4  ;;  %s80_s22 = sshll.u32 %s10540_s21, 4  ;;  %s59_s20 = int_to_ptr.vmem [resolvable:$true] %s58_s20  ;;  %s81_s22 = int_to_ptr.vmem [resolvable:$true] %s80_s22 }
  0x18   :  { %s10360_s25 = scalar_lea.hbm %s11102_s3, 65536 }
  0x19   :  { %p10361_p8 = scmp.ne.s32.totalorder %s11102_s3, %s10360_s25  ;;  %p10364_p9 = scmp.lt.u32.totalorder %s10360_s25, %s11102_s3 }
  0x1b   :  { %p10366_p10 = pnand %p10364_p9, %p10361_p8 }
  0x1d   :  { %10369 = shalt.err (!%p10366_p10)
}
  0x1e   :  { %s10370_s1 = scalar_lea.vmem %s59_s20, 65536  ;;  %p10375_p12 = scmp.lt.s32.totalorder %s59_s20, %s59_s20 }
  0x1f   :  { %p10371_p11 = scmp.ne.s32.totalorder %s59_s20, %s10370_s1  ;;  %p10376_p13 = scmp.lt.s32.totalorder %s10370_s1, %s10370_s1 }
  0x21   :  { %p10377_p0 = por %p10376_p13, %p10375_p12 }
  0x23   :  { %p10378_p1 = pnand %p10377_p0, %p10371_p11 }
  0x25   :  { %10381 = shalt.err (!%p10378_p1)
}
  0x26   :  { %64 = dma.hbm_to_vmem [thread:$0]  %s11102_s3, 65536, %s59_s20, [#allocation10], %s10537_s15, %s10537_s15, %s10538_s16  }
  0x27   :  { %s10382_s12 = scalar_lea.hbm %s11104_s5, 65536 }
  0x28   :  { %p10383_p2 = scmp.ne.s32.totalorder %s11104_s5, %s10382_s12  ;;  %p10386_p3 = scmp.lt.u32.totalorder %s10382_s12, %s11104_s5 }
  0x2a   :  { %p10388_p4 = pnand %p10386_p3, %p10383_p2 }
  0x2c   :  { %10391 = shalt.err (!%p10388_p4)
}
  0x2d   :  { %s10392_s19 = scalar_lea.vmem %s81_s22, 65536  ;;  %p10397_p6 = scmp.lt.s32.totalorder %s81_s22, %s81_s22 }
  0x2e   :  { %p10393_p5 = scmp.ne.s32.totalorder %s81_s22, %s10392_s19  ;;  %p10398_p7 = scmp.lt.s32.totalorder %s10392_s19, %s10392_s19 }
  0x30   :  { %p10399_p8 = por %p10398_p7, %p10397_p6 }
  0x32   :  { %p10400_p9 = pnand %p10399_p8, %p10393_p5 }
  0x34   :  { %10403 = shalt.err (!%p10400_p9)
}
  0x35   :  { %86 = dma.hbm_to_vmem [thread:$0]  %s11104_s5, 65536, %s81_s22, [#allocation13], %s10537_s15, %s10537_s15, %s10538_s16  }
  0x36   :  { %s10541_s21 = smov [#allocation2]   ;;  %s10404_s26 = scalar_lea.hbm %s11099_s0, 256 }
  0x37   :  { %s24_s23 = sshll.u32 %s10541_s21, 4  ;;  %p10405_p10 = scmp.ne.s32.totalorder %s11099_s0, %s10404_s26  ;;  %s25_s23 = int_to_ptr.vmem [resolvable:$true] %s24_s23 }
  0x38   :  { %p10408_p11 = scmp.lt.u32.totalorder %s10404_s26, %s11099_s0 }
  0x3a   :  { %p10410_p12 = pnand %p10408_p11, %p10405_p10 }
  0x3c   :  { %10413 = shalt.err (!%p10410_p12)
}
  0x3d   :  { %s10414_s28 = scalar_lea.vmem %s25_s23, 256  ;;  %p10419_p0 = scmp.lt.s32.totalorder %s25_s23, %s25_s23 }
  0x3e   :  { %p10415_p13 = scmp.ne.s32.totalorder %s25_s23, %s10414_s28  ;;  %p10420_p1 = scmp.lt.s32.totalorder %s10414_s28, %s10414_s28 }
  0x40   :  { %p10421_p2 = por %p10420_p1, %p10419_p0 }
  0x42   :  { %p10422_p3 = pnand %p10421_p2, %p10415_p13 }
  0x44   :  { %10425 = shalt.err (!%p10422_p3)
}
  0x45   :  { %s10542_s5 = smov 128   ;;  %s10543_s15 = smov 8  }
  0x46   :  { %30 = dma.hbm_to_vmem [thread:$0]  %s11099_s0, 256, %s25_s23, [#allocation3], %s10542_s5, %s10542_s5, %s10543_s15  }
  0x47   :  { %s10544_s9 = smov [#allocation8]   ;;  %s10545_s11 = smov [#allocation11]  }
  0x48   :  { %s49_s10 = sshll.u32 %s10544_s9, 4  ;;  %s71_s12 = sshll.u32 %s10545_s11, 4  ;;  %s50_s10 = int_to_ptr.vmem [resolvable:$true] %s49_s10  ;;  %s72_s12 = int_to_ptr.vmem [resolvable:$true] %s71_s12 }
  0x49   :  { %s10426_s17 = scalar_lea.hbm %s11101_s2, 128 }
  0x4a   :  { %p10427_p4 = scmp.ne.s32.totalorder %s11101_s2, %s10426_s17  ;;  %p10430_p5 = scmp.lt.u32.totalorder %s10426_s17, %s11101_s2 }
  0x4c   :  { %p10432_p6 = pnand %p10430_p5, %p10427_p4 }
  0x4e   :  { %10435 = shalt.err (!%p10432_p6)
}
  0x4f   :  { %s10436_s0 = scalar_lea.vmem %s50_s10, 128  ;;  %p10441_p8 = scmp.lt.s32.totalorder %s50_s10, %s50_s10 }
  0x50   :  { %p10437_p7 = scmp.ne.s32.totalorder %s50_s10, %s10436_s0  ;;  %p10442_p9 = scmp.lt.s32.totalorder %s10436_s0, %s10436_s0 }
  0x52   :  { %p10443_p10 = por %p10442_p9, %p10441_p8 }
  0x54   :  { %p10444_p11 = pnand %p10443_p10, %p10437_p7 }
  0x56   :  { %10447 = shalt.err (!%p10444_p11)
}
  0x57   :  { %52 = dma.hbm_to_vmem [thread:$0]  %s11101_s2, 128, %s50_s10, [#allocation7]  }
  0x58   :  { %s10448_s26 = scalar_lea.hbm %s11103_s4, 128 }
  0x59   :  { %p10449_p12 = scmp.ne.s32.totalorder %s11103_s4, %s10448_s26  ;;  %p10452_p13 = scmp.lt.u32.totalorder %s10448_s26, %s11103_s4 }
  0x5b   :  { %p10454_p0 = pnand %p10452_p13, %p10449_p12 }
  0x5d   :  { %10457 = shalt.err (!%p10454_p0)
}
  0x5e   :  { %s10458_s28 = scalar_lea.vmem %s72_s12, 128  ;;  %p10463_p2 = scmp.lt.s32.totalorder %s72_s12, %s72_s12 }
  0x5f   :  { %p10459_p1 = scmp.ne.s32.totalorder %s72_s12, %s10458_s28  ;;  %p10464_p3 = scmp.lt.s32.totalorder %s10458_s28, %s10458_s28 }
  0x61   :  { %p10465_p4 = por %p10464_p3, %p10463_p2 }
  0x63   :  { %p10466_p5 = pnand %p10465_p4, %p10459_p1 }
  0x65   :  { %10469 = shalt.err (!%p10466_p5)
}
  0x66   :  { %74 = dma.hbm_to_vmem [thread:$0]  %s11103_s4, 128, %s72_s12, [#allocation10]  }
  0x67   :  { %s10546_s15 = smov [#allocation14]   ;;  %s10470_s10 = scalar_lea.hbm %s11105_s6, 128 }
  0x68   :  { %s93_s16 = sshll.u32 %s10546_s15, 4  ;;  %p10471_p6 = scmp.ne.s32.totalorder %s11105_s6, %s10470_s10  ;;  %s94_s16 = int_to_ptr.vmem [resolvable:$true] %s93_s16 }
  0x69   :  { %p10474_p7 = scmp.lt.u32.totalorder %s10470_s10, %s11105_s6 }
  0x6b   :  { %p10476_p8 = pnand %p10474_p7, %p10471_p6 }
  0x6d   :  { %10479 = shalt.err (!%p10476_p8)
}
  0x6e   :  { %s10480_s18 = scalar_lea.vmem %s94_s16, 128  ;;  %p10485_p10 = scmp.lt.s32.totalorder %s94_s16, %s94_s16 }
  0x6f   :  { %p10481_p9 = scmp.ne.s32.totalorder %s94_s16, %s10480_s18  ;;  %p10486_p11 = scmp.lt.s32.totalorder %s10480_s18, %s10480_s18 }
  0x71   :  { %p10487_p12 = por %p10486_p11, %p10485_p10 }
  0x73   :  { %p10488_p13 = pnand %p10487_p12, %p10481_p9 }
  0x75   :  { %10491 = shalt.err (!%p10488_p13)
}
  0x76   :  { %96 = dma.hbm_to_vmem [thread:$0]  %s11105_s6, 128, %s94_s16, [#allocation13]  }
  0x77   :  { %s10492_s20 = scalar_lea.hbm %s11106_s7, 16 }
  0x78   :  { %p10493_p0 = scmp.ne.s32.totalorder %s11106_s7, %s10492_s20  ;;  %p10496_p1 = scmp.lt.u32.totalorder %s10492_s20, %s11106_s7 }
  0x7a   :  { %p10498_p2 = pnand %p10496_p1, %p10493_p0 }
  0x7c   :  { %10501 = shalt.err (!%p10498_p2)
}
  0x7d   :  { %s10547_s25 = smov [#allocation15]  }
  0x7e   :  { %104 = dma.hbm_to_smem %s11106_s7, 16, %s10547_s25, [#allocation5]  }
  0x7f   :  { %10524 = dma.done.wait [#allocation3], 256  }
  0x80   :  { %10525 = vsyncadd [#allocation3], 4294967040 }
  0x81   :  { %10526 = dma.done.wait [#allocation7], 16512  }
  0x82   :  { %10527 = vsyncadd [#allocation7], 4294950784 }
  0x83   :  { %10528 = dma.done.wait [#allocation10], 65664  }
  0x84   :  { %10529 = vsyncadd [#allocation10], 4294901632 }
  0x85   :  { %10530 = dma.done.wait [#allocation13], 65664  }
  0x86   :  { %10531 = vsyncadd [#allocation13], 4294901632 }
  0x87   :  { %10532 = dma.done.wait [#allocation5], 16  }
  0x88   :  { %10533 = vsyncadd [#allocation5], 4294967280 }
  0x89   :  { %129 = sfence }
  0x8a   :  { %v168_v0 = vld [vmem:[#allocation6] sm:$0xff]  ;;  %v169_v17 = vld [vmem:[#allocation6 + $0x8] sm:$0xff]  ;;  %v10701_v22 = vld [vmem:[#allocation2 + $0x4] ss:$8 sps:$4 sm:$0xff]   ;;  %s1227_s6 = sld [smem:[#allocation15]]  ;;  %s10844_s7 = sld [smem:[#allocation15 + $0x1]] }
  0x8b   :  { %v172_v1 = vld [vmem:[#allocation6 + $0x20] sm:$0xff]  ;;  %v173_v18 = vld [vmem:[#allocation6 + $0x28] sm:$0xff]  ;;  %978 = vmatprep.mubr.bf16.mxu0 %v10701_v22  ;;  %1021 = vmatprep.mubr.bf16.mxu1 %v10701_v22  ;;  %s10995_s29 = sld [smem:[#allocation15 + $0x2]]  ;;  %s10548_s30 = smov [#allocation16]  }
  0x8c   :  { %v176_v2 = vld [vmem:[#allocation6 + $0x40] sm:$0xff]  ;;  %v9037_v3 = vcombine.high %v168_v0, %v172_v1  ;;  %v9036_v4 = vcombine.low %v168_v0, %v172_v1  ;;  %v9039_v19 = vcombine.high %v169_v17, %v173_v18  ;;  %v9038_v20 = vcombine.low %v169_v17, %v173_v18  ;;  %v177_v23 = vld [vmem:[#allocation6 + $0x48] sm:$0xff]  ;;  %s9018_s1 = sshll.u32 %s10548_s30, 4  ;;  %s9019_s1 = int_to_ptr.vmem [resolvable:$true] %s9018_s1 }
  0x8d   :  { %v180_v5 = vld [vmem:[#allocation6 + $0x60] sm:$0xff]  ;;  %v181_v24 = vld [vmem:[#allocation6 + $0x68] sm:$0xff]  ;;  %s10502_s28 = scalar_lea.vmem %s9019_s1, 2048  ;;  %p10507_p4 = scmp.lt.s32.totalorder %s9019_s1, %s9019_s1 }
  0x8e   :  { %v9045_v6 = vcombine.high %v176_v2, %v180_v5  ;;  %v184_v7 = vld [vmem:[#allocation6 + $0x80] sm:$0xff]  ;;  %946 = vmatprep.subr.bf16.mxu0 %v9037_v3  ;;  %v9044_v9 = vcombine.low %v176_v2, %v180_v5  ;;  %989 = vmatprep.subr.bf16.mxu1 %v9039_v19  ;;  %v9047_v26 = vcombine.high %v177_v23, %v181_v24  ;;  %v185_v27 = vld [vmem:[#allocation6 + $0x88] sm:$0xff]  ;;  %p10503_p3 = scmp.ne.s32.totalorder %s9019_s1, %s10502_s28  ;;  %p10508_p5 = scmp.lt.s32.totalorder %s10502_s28, %s10502_s28 }
  0x8f   :  { %v188_v8 = vld [vmem:[#allocation6 + $0xa0] sm:$0xff]  ;;  %947 = vmatpush1.bf16.msra.mxu0 %v9036_v4  ;;  %v189_v28 = vld [vmem:[#allocation6 + $0xa8] sm:$0xff]  ;;  %990 = vmatpush1.bf16.msra.mxu1 %v9038_v20  ;;  %v9046_v31 = vcombine.low %v177_v23, %v181_v24 }
  0x90   :  { %948 = vmatprep.subr.bf16.mxu0 %v9045_v6  ;;  %v9053_v10 = vcombine.high %v184_v7, %v188_v8  ;;  %v192_v11 = vld [vmem:[#allocation6 + $0xc0] sm:$0xff]  ;;  %v9052_v13 = vcombine.low %v184_v7, %v188_v8  ;;  %991 = vmatprep.subr.bf16.mxu1 %v9047_v26  ;;  %v9055_v32 = vcombine.high %v185_v27, %v189_v28  ;;  %v193_v34 = vld [vmem:[#allocation6 + $0xc8] sm:$0xff]  ;;  %p10509_p6 = por %p10508_p5, %p10507_p4 }
  0x91   :  { %v196_v12 = vld [vmem:[#allocation6 + $0xe0] sm:$0xff]  ;;  %v197_v35 = vld [vmem:[#allocation6 + $0xe8] sm:$0xff]  ;;  %v9054_v39 = vcombine.low %v185_v27, %v189_v28 }
  0x92   :  { %v9061_v14 = vcombine.high %v192_v11, %v196_v12  ;;  %v200_v15 = vld [vmem:[#allocation6 + $0x100] sm:$0xff]  ;;  %v9060_v21 = vcombine.low %v192_v11, %v196_v12  ;;  %v9063_v40 = vcombine.high %v193_v34, %v197_v35  ;;  %v201_v42 = vld [vmem:[#allocation6 + $0x108] sm:$0xff]  ;;  %v9062_v47 = vcombine.low %v193_v34, %v197_v35  ;;  %p10510_p7 = pnand %p10509_p6, %p10503_p3 }
  0x93   :  { %949 = vmatpush1.bf16.msra.mxu0 %v9044_v9  ;;  %v204_v16 = vld [vmem:[#allocation6 + $0x120] sm:$0xff]  ;;  %992 = vmatpush1.bf16.msra.mxu1 %v9046_v31  ;;  %v205_v43 = vld [vmem:[#allocation6 + $0x128] sm:$0xff] }
  0x94   :  { %950 = vmatprep.subr.bf16.mxu0 %v9053_v10  ;;  %v9069_v25 = vcombine.high %v200_v15, %v204_v16  ;;  %v208_v29 = vld [vmem:[#allocation6 + $0x140] sm:$0xff]  ;;  %v9068_v33 = vcombine.low %v200_v15, %v204_v16  ;;  %993 = vmatprep.subr.bf16.mxu1 %v9055_v32  ;;  %v9071_v48 = vcombine.high %v201_v42, %v205_v43  ;;  %v209_v50 = vld [vmem:[#allocation6 + $0x148] sm:$0xff] }
  0x95   :  { %v212_v30 = vld [vmem:[#allocation6 + $0x160] sm:$0xff]  ;;  %v213_v51 = vld [vmem:[#allocation6 + $0x168] sm:$0xff]  ;;  %v9070_v55 = vcombine.low %v201_v42, %v205_v43 }
  0x96   :  { %v9077_v36 = vcombine.high %v208_v29, %v212_v30  ;;  %v216_v37 = vld [vmem:[#allocation6 + $0x180] sm:$0xff]  ;;  %v9076_v41 = vcombine.low %v208_v29, %v212_v30  ;;  %v9079_v56 = vcombine.high %v209_v50, %v213_v51  ;;  %v217_v58 = vld [vmem:[#allocation6 + $0x188] sm:$0xff]  ;;  %v9078_v63 = vcombine.low %v209_v50, %v213_v51 }
  0x97   :  { %951 = vmatpush1.bf16.msra.mxu0 %v9052_v13  ;;  %v220_v38 = vld [vmem:[#allocation6 + $0x1a0] sm:$0xff]  ;;  %994 = vmatpush1.bf16.msra.mxu1 %v9054_v39  ;;  %v221_v59 = vld [vmem:[#allocation6 + $0x1a8] sm:$0xff] }
  0x98   :  { %952 = vmatprep.subr.bf16.mxu0 %v9061_v14  ;;  %v9085_v44 = vcombine.high %v216_v37, %v220_v38  ;;  %v224_v45 = vld [vmem:[#allocation6 + $0x1c0] sm:$0xff]  ;;  %995 = vmatprep.subr.bf16.mxu1 %v9063_v40  ;;  %v9084_v49 = vcombine.low %v216_v37, %v220_v38  ;;  %v9087_v0 = vcombine.high %v217_v58, %v221_v59  ;;  %v225_v2 = vld [vmem:[#allocation6 + $0x1c8] sm:$0xff] }
  0x99   :  { %v228_v46 = vld [vmem:[#allocation6 + $0x1e0] sm:$0xff]  ;;  %v229_v3 = vld [vmem:[#allocation6 + $0x1e8] sm:$0xff]  ;;  %v9086_v7 = vcombine.low %v217_v58, %v221_v59 }
  0x9a   :  { %v9093_v52 = vcombine.high %v224_v45, %v228_v46  ;;  %v232_v53 = vld [vmem:[#allocation6 + $0x200] sm:$0xff]  ;;  %v9092_v57 = vcombine.low %v224_v45, %v228_v46  ;;  %v9095_v8 = vcombine.high %v225_v2, %v229_v3  ;;  %v233_v10 = vld [vmem:[#allocation6 + $0x208] sm:$0xff]  ;;  %v9094_v15 = vcombine.low %v225_v2, %v229_v3 }
  0x9b   :  { %953 = vmatpush1.bf16.msra.mxu0 %v9060_v21  ;;  %v236_v54 = vld [vmem:[#allocation6 + $0x220] sm:$0xff]  ;;  %996 = vmatpush1.bf16.msra.mxu1 %v9062_v47  ;;  %v237_v11 = vld [vmem:[#allocation6 + $0x228] sm:$0xff] }
  0x9c   :  { %954 = vmatprep.subr.bf16.mxu0 %v9069_v25  ;;  %997 = vmatprep.subr.bf16.mxu1 %v9071_v48  ;;  %v9101_v60 = vcombine.high %v232_v53, %v236_v54  ;;  %v240_v61 = vld [vmem:[#allocation6 + $0x240] sm:$0xff]  ;;  %v9100_v1 = vcombine.low %v232_v53, %v236_v54  ;;  %v9103_v16 = vcombine.high %v233_v10, %v237_v11  ;;  %v241_v18 = vld [vmem:[#allocation6 + $0x248] sm:$0xff] }
  0x9d   :  { %v244_v62 = vld [vmem:[#allocation6 + $0x260] sm:$0xff]  ;;  %v245_v19 = vld [vmem:[#allocation6 + $0x268] sm:$0xff]  ;;  %v9102_v24 = vcombine.low %v233_v10, %v237_v11 }
  0x9e   :  { %v9109_v4 = vcombine.high %v240_v61, %v244_v62  ;;  %v248_v5 = vld [vmem:[#allocation6 + $0x280] sm:$0xff]  ;;  %v9108_v9 = vcombine.low %v240_v61, %v244_v62  ;;  %v9111_v25 = vcombine.high %v241_v18, %v245_v19  ;;  %v249_v27 = vld [vmem:[#allocation6 + $0x288] sm:$0xff]  ;;  %v9110_v32 = vcombine.low %v241_v18, %v245_v19 }
  0x9f   :  { %955 = vmatpush1.bf16.msra.mxu0 %v9068_v33  ;;  %998 = vmatpush1.bf16.msra.mxu1 %v9070_v55  ;;  %v252_v6 = vld [vmem:[#allocation6 + $0x2a0] sm:$0xff]  ;;  %v253_v28 = vld [vmem:[#allocation6 + $0x2a8] sm:$0xff]  ;;  %v170_v55 = vld [vmem:[#allocation6 + $0x10] sm:$0xff] }
  0xa0   :  { %956 = vmatprep.subr.bf16.mxu0 %v9077_v36  ;;  %999 = vmatprep.subr.bf16.mxu1 %v9079_v56  ;;  %v9117_v12 = vcombine.high %v248_v5, %v252_v6  ;;  %v256_v13 = vld [vmem:[#allocation6 + $0x2c0] sm:$0xff]  ;;  %v9116_v17 = vcombine.low %v248_v5, %v252_v6  ;;  %v9119_v33 = vcombine.high %v249_v27, %v253_v28  ;;  %v257_v35 = vld [vmem:[#allocation6 + $0x2c8] sm:$0xff]  ;;  %v174_v56 = vld [vmem:[#allocation6 + $0x30] sm:$0xff] }
  0xa1   :  { %v260_v14 = vld [vmem:[#allocation6 + $0x2e0] sm:$0xff]  ;;  %v261_v36 = vld [vmem:[#allocation6 + $0x2e8] sm:$0xff]  ;;  %v9118_v40 = vcombine.low %v249_v27, %v253_v28  ;;  %v9041_v61 = vcombine.high %v170_v55, %v174_v56  ;;  %v9040_v5 = vcombine.low %v170_v55, %v174_v56  ;;  %v234_v55 = vld [vmem:[#allocation6 + $0x210] sm:$0xff] }
  0xa2   :  { %v9125_v20 = vcombine.high %v256_v13, %v260_v14  ;;  %v264_v21 = vld [vmem:[#allocation6 + $0x300] sm:$0xff]  ;;  %v9124_v26 = vcombine.low %v256_v13, %v260_v14  ;;  %v265_v43 = vld [vmem:[#allocation6 + $0x308] sm:$0xff]  ;;  %v9126_v48 = vcombine.low %v257_v35, %v261_v36  ;;  %v175_v13 = vld [vmem:[#allocation6 + $0x38] sm:$0xff] }
  0xa3   :  { %957 = vmatpush1.bf16.msra.mxu0 %v9076_v41  ;;  %1000 = vmatpush1.bf16.msra.mxu1 %v9078_v63  ;;  %v268_v23 = vld [vmem:[#allocation6 + $0x320] sm:$0xff]  ;;  %v9127_v41 = vcombine.high %v257_v35, %v261_v36  ;;  %v273_v51 = vld [vmem:[#allocation6 + $0x348] sm:$0xff]  ;;  %v178_v63 = vld [vmem:[#allocation6 + $0x50] sm:$0xff] }
  0xa4   :  { %958 = vmatprep.subr.bf16.mxu0 %v9085_v44  ;;  %1001 = vmatprep.subr.bf16.mxu1 %v9087_v0  ;;  %v9133_v29 = vcombine.high %v264_v21, %v268_v23  ;;  %v272_v30 = vld [vmem:[#allocation6 + $0x340] sm:$0xff]  ;;  %v9132_v34 = vcombine.low %v264_v21, %v268_v23  ;;  %v269_v44 = vld [vmem:[#allocation6 + $0x328] sm:$0xff]  ;;  %v182_v0 = vld [vmem:[#allocation6 + $0x70] sm:$0xff] }
  0xa5   :  { %v276_v31 = vld [vmem:[#allocation6 + $0x360] sm:$0xff]  ;;  %v9134_v54 = vcombine.low %v265_v43, %v269_v44  ;;  %v281_v59 = vld [vmem:[#allocation6 + $0x388] sm:$0xff]  ;;  %v9049_v6 = vcombine.high %v178_v63, %v182_v0  ;;  %v9048_v11 = vcombine.low %v178_v63, %v182_v0  ;;  %v183_v21 = vld [vmem:[#allocation6 + $0x78] sm:$0xff] }
  0xa6   :  { %v9141_v37 = vcombine.high %v272_v30, %v276_v31  ;;  %v280_v38 = vld [vmem:[#allocation6 + $0x380] sm:$0xff]  ;;  %v9140_v42 = vcombine.low %v272_v30, %v276_v31  ;;  %v289_v3 = vld [vmem:[#allocation6 + $0x3c8] sm:$0xff]  ;;  %v191_v30 = vld [vmem:[#allocation6 + $0xb8] sm:$0xff] }
  0xa7   :  { %959 = vmatpush1.bf16.msra.mxu0 %v9084_v49  ;;  %1002 = vmatpush1.bf16.msra.mxu1 %v9086_v7  ;;  %v284_v39 = vld [vmem:[#allocation6 + $0x3a0] sm:$0xff]  ;;  %v9135_v49 = vcombine.high %v265_v43, %v269_v44  ;;  %v238_v56 = vld [vmem:[#allocation6 + $0x230] sm:$0xff] }
  0xa8   :  { %960 = vmatprep.subr.bf16.mxu0 %v9093_v52  ;;  %1003 = vmatprep.subr.bf16.mxu1 %v9095_v8  ;;  %v9149_v45 = vcombine.high %v280_v38, %v284_v39  ;;  %v288_v46 = vld [vmem:[#allocation6 + $0x3c0] sm:$0xff]  ;;  %v9148_v50 = vcombine.low %v280_v38, %v284_v39  ;;  %v277_v52 = vld [vmem:[#allocation6 + $0x368] sm:$0xff]  ;;  %v186_v8 = vld [vmem:[#allocation6 + $0x90] sm:$0xff] }
  0xa9   :  { %v292_v47 = vld [vmem:[#allocation6 + $0x3e0] sm:$0xff]  ;;  %v9142_v62 = vcombine.low %v273_v51, %v277_v52  ;;  %v199_v38 = vld [vmem:[#allocation6 + $0xf8] sm:$0xff]  ;;  %v242_v63 = vld [vmem:[#allocation6 + $0x250] sm:$0xff] }
  0xaa   :  { %v9157_v53 = vcombine.high %v288_v46, %v292_v47  ;;  %v9156_v58 = vcombine.low %v288_v46, %v292_v47  ;;  %v207_v46 = vld [vmem:[#allocation6 + $0x138] sm:$0xff]  ;;  %v226_v47 = vld [vmem:[#allocation6 + $0x1d0] sm:$0xff] }
  0xab   :  { %961 = vmatpush1.bf16.msra.mxu0 %v9092_v57  ;;  %1004 = vmatpush1.bf16.msra.mxu1 %v9094_v15  ;;  %v9143_v57 = vcombine.high %v273_v51, %v277_v52  ;;  %v211_v52 = vld [vmem:[#allocation6 + $0x158] sm:$0xff]  ;;  %v246_v0 = vld [vmem:[#allocation6 + $0x270] sm:$0xff] }
  0xac   :  { %962 = vmatprep.subr.bf16.mxu0 %v9101_v60  ;;  %1005 = vmatprep.subr.bf16.mxu1 %v9103_v16  ;;  %v285_v60 = vld [vmem:[#allocation6 + $0x3a8] sm:$0xff]  ;;  %v194_v16 = vld [vmem:[#allocation6 + $0xd0] sm:$0xff] }
  0xad   :  { %v9151_v2 = vcombine.high %v281_v59, %v285_v60  ;;  %v9150_v7 = vcombine.low %v281_v59, %v285_v60  ;;  %v219_v60 = vld [vmem:[#allocation6 + $0x198] sm:$0xff] }
  0xaf   :  { %963 = vmatpush1.bf16.msra.mxu0 %v9100_v1  ;;  %1006 = vmatpush1.bf16.msra.mxu1 %v9102_v24  ;;  %v10705_v1 = vld [vmem:[#allocation2] ss:$8 sps:$4 sm:$0xff]  }
  0xb0   :  { %964 = vmatprep.subr.bf16.mxu0 %v9109_v4  ;;  %1007 = vmatprep.subr.bf16.mxu1 %v9111_v25  ;;  %v293_v4 = vld [vmem:[#allocation6 + $0x3e8] sm:$0xff]  ;;  %v202_v24 = vld [vmem:[#allocation6 + $0x110] sm:$0xff] }
  0xb1   :  { %v9159_v10 = vcombine.high %v289_v3, %v293_v4  ;;  %v9158_v15 = vcombine.low %v289_v3, %v293_v4  ;;  %v206_v25 = vld [vmem:[#allocation6 + $0x130] sm:$0xff]  ;;  %v9104_v4 = vcombine.low %v234_v55, %v238_v56 }
  0xb2   :  { %v9073_v31 = vcombine.high %v202_v24, %v206_v25  ;;  %v9072_v36 = vcombine.low %v202_v24, %v206_v25  ;;  %v266_v25 = vld [vmem:[#allocation6 + $0x310] sm:$0xff] }
  0xb3   :  { %965 = vmatpush1.bf16.msra.mxu0 %v9108_v9  ;;  %1008 = vmatpush1.bf16.msra.mxu1 %v9110_v32  ;;  %v190_v9 = vld [vmem:[#allocation6 + $0xb0] sm:$0xff] }
  0xb4   :  { %966 = vmatprep.subr.bf16.mxu0 %v9117_v12  ;;  %1009 = vmatprep.subr.bf16.mxu1 %v9119_v33  ;;  %v171_v12 = vld [vmem:[#allocation6 + $0x18] sm:$0xff]  ;;  %v9057_v14 = vcombine.high %v186_v8, %v190_v9  ;;  %v9056_v19 = vcombine.low %v186_v8, %v190_v9  ;;  %v210_v32 = vld [vmem:[#allocation6 + $0x150] sm:$0xff] }
  0xb5   :  { %v9043_v18 = vcombine.high %v171_v12, %v175_v13  ;;  %v214_v33 = vld [vmem:[#allocation6 + $0x170] sm:$0xff] }
  0xb6   :  { %v9081_v39 = vcombine.high %v210_v32, %v214_v33  ;;  %v9080_v44 = vcombine.low %v210_v32, %v214_v33  ;;  %v250_v8 = vld [vmem:[#allocation6 + $0x290] sm:$0xff] }
  0xb7   :  { %967 = vmatpush1.bf16.msra.mxu0 %v9116_v17  ;;  %1010 = vmatpush1.bf16.msra.mxu1 %v9118_v40  ;;  %v198_v17 = vld [vmem:[#allocation6 + $0xf0] sm:$0xff] }
  0xb8   :  { %968 = vmatprep.subr.bf16.mxu0 %v9125_v20  ;;  %1011 = vmatprep.subr.bf16.mxu1 %v9127_v41  ;;  %v179_v20 = vld [vmem:[#allocation6 + $0x58] sm:$0xff]  ;;  %v9065_v23 = vcombine.high %v194_v16, %v198_v17  ;;  %v9064_v28 = vcombine.low %v194_v16, %v198_v17  ;;  %v218_v40 = vld [vmem:[#allocation6 + $0x190] sm:$0xff] }
  0xb9   :  { %v9051_v27 = vcombine.high %v179_v20, %v183_v21  ;;  %v222_v41 = vld [vmem:[#allocation6 + $0x1b0] sm:$0xff] }
  0xba   :  { %v9088_v51 = vcombine.low %v218_v40, %v222_v41  ;;  %v254_v9 = vld [vmem:[#allocation6 + $0x2b0] sm:$0xff] }
  0xbb   :  { %969 = vmatpush1.bf16.msra.mxu0 %v9124_v26  ;;  %1012 = vmatpush1.bf16.msra.mxu1 %v9126_v48  ;;  %v9042_v26 = vcombine.low %v171_v12, %v175_v13  ;;  %v230_v48 = vld [vmem:[#allocation6 + $0x1f0] sm:$0xff]  ;;  %v9112_v12 = vcombine.low %v242_v63, %v246_v0  ;;  %v235_v13 = vld [vmem:[#allocation6 + $0x218] sm:$0xff] }
  0xbc   :  { %970 = vmatprep.subr.bf16.mxu0 %v9133_v29  ;;  %1013 = vmatprep.subr.bf16.mxu1 %v9135_v49  ;;  %v187_v29 = vld [vmem:[#allocation6 + $0x98] sm:$0xff]  ;;  %v9096_v59 = vcombine.low %v226_v47, %v230_v48  ;;  %v258_v16 = vld [vmem:[#allocation6 + $0x2d0] sm:$0xff] }
  0xbd   :  { %v9059_v35 = vcombine.high %v187_v29, %v191_v30  ;;  %v262_v17 = vld [vmem:[#allocation6 + $0x2f0] sm:$0xff] }
  0xbe   :  { %v9129_v24 = vcombine.high %v258_v16, %v262_v17  ;;  %v274_v33 = vld [vmem:[#allocation6 + $0x350] sm:$0xff] }
  0xbf   :  { %971 = vmatpush1.bf16.msra.mxu0 %v9132_v34  ;;  %1014 = vmatpush1.bf16.msra.mxu1 %v9134_v54  ;;  %v9050_v34 = vcombine.low %v179_v20, %v183_v21  ;;  %v9097_v54 = vcombine.high %v226_v47, %v230_v48  ;;  %v9120_v20 = vcombine.low %v250_v8, %v254_v9  ;;  %v243_v21 = vld [vmem:[#allocation6 + $0x258] sm:$0xff]  ;;  %v290_v48 = vld [vmem:[#allocation6 + $0x3d0] sm:$0xff] }
  0xc0   :  { %972 = vmatprep.subr.bf16.mxu0 %v9141_v37  ;;  %1015 = vmatprep.subr.bf16.mxu1 %v9143_v57  ;;  %v195_v37 = vld [vmem:[#allocation6 + $0xd8] sm:$0xff] }
  0xc1   :  { %v9067_v43 = vcombine.high %v195_v37, %v199_v38  ;;  %v9066_v49 = vcombine.low %v195_v37, %v199_v38  ;;  %v259_v38 = vld [vmem:[#allocation6 + $0x2d8] sm:$0xff] }
  0xc3   :  { %973 = vmatpush1.bf16.msra.mxu0 %v9140_v42  ;;  %1016 = vmatpush1.bf16.msra.mxu1 %v9142_v62  ;;  %v9058_v42 = vcombine.low %v187_v29, %v191_v30  ;;  %v9105_v62 = vcombine.high %v234_v55, %v238_v56  ;;  %v9128_v29 = vcombine.low %v258_v16, %v262_v17  ;;  %v251_v30 = vld [vmem:[#allocation6 + $0x298] sm:$0xff] }
  0xc4   :  { %974 = vmatprep.subr.bf16.mxu0 %v9149_v45  ;;  %1017 = vmatprep.subr.bf16.mxu1 %v9151_v2  ;;  %v203_v45 = vld [vmem:[#allocation6 + $0x118] sm:$0xff] }
  0xc5   :  { %v9074_v57 = vcombine.low %v203_v45, %v207_v46 }
  0xc7   :  { %975 = vmatpush1.bf16.msra.mxu0 %v9148_v50  ;;  %1018 = vmatpush1.bf16.msra.mxu1 %v9150_v7  ;;  %v9075_v50 = vcombine.high %v203_v45, %v207_v46  ;;  %v9113_v7 = vcombine.high %v242_v63, %v246_v0  ;;  %v267_v46 = vld [vmem:[#allocation6 + $0x318] sm:$0xff] }
  0xc8   :  { %976 = vmatprep.subr.bf16.mxu0 %v9157_v53  ;;  %1019 = vmatprep.subr.bf16.mxu1 %v9159_v10  ;;  %v215_v53 = vld [vmem:[#allocation6 + $0x178] sm:$0xff] }
  0xc9   :  { %v9082_v2 = vcombine.low %v211_v52, %v215_v53 }
  0xcb   :  { %977 = vmatpush1.bf16.msra.mxu0 %v9156_v58  ;;  %1020 = vmatpush1.bf16.msra.mxu1 %v9158_v15  ;;  %v9083_v58 = vcombine.high %v211_v52, %v215_v53  ;;  %v9121_v15 = vcombine.high %v250_v8, %v254_v9  ;;  %v275_v53 = vld [vmem:[#allocation6 + $0x358] sm:$0xff] }
  0xcc   :  { %1032 = vmatprep.subr.bf16.mxu0 %v9041_v61  ;;  %1075 = vmatprep.subr.bf16.mxu1 %v9043_v18  ;;  %v223_v61 = vld [vmem:[#allocation6 + $0x1b8] sm:$0xff] }
  0xcd   :  { %v9091_v3 = vcombine.high %v219_v60, %v223_v61  ;;  %v9090_v10 = vcombine.low %v219_v60, %v223_v61  ;;  %v283_v61 = vld [vmem:[#allocation6 + $0x398] sm:$0xff] }
  0xce   :  { %979 = vmatmul.mubr.bf16.vlgmr.msra.gmra.mrb[0].mxu0 %v10705_v1  ;;  %1022 = vmatmul.mubr.bf16.vlgmr.msra.gmra.mrb[0].mxu1 %v10705_v1 }
  0xcf   :  { %1033 = vmatpush1.bf16.msra.mxu0 %v9040_v5  ;;  %1064 = vmatprep.mubr.bf16.mxu0 %v10701_v22  ;;  %v227_v5 = vld [vmem:[#allocation6 + $0x1d8] sm:$0xff] }
  0xd0   :  { %1034 = vmatprep.subr.bf16.mxu0 %v9049_v6  ;;  %1076 = vmatpush1.bf16.msra.mxu1 %v9042_v26  ;;  %v231_v6 = vld [vmem:[#allocation6 + $0x1f8] sm:$0xff]  ;;  %v270_v26 = vld [vmem:[#allocation6 + $0x330] sm:$0xff] }
  0xd1   :  { %1107 = vmatprep.mubr.bf16.mxu1 %v10701_v22  ;;  %1077 = vmatprep.subr.bf16.mxu1 %v9051_v27  ;;  %v9089_v22 = vcombine.high %v218_v40, %v222_v41  ;;  %v9098_v18 = vcombine.low %v227_v5, %v231_v6  ;;  %v9137_v32 = vcombine.high %v266_v25, %v270_v26  ;;  %v282_v41 = vld [vmem:[#allocation6 + $0x390] sm:$0xff] }
  0xd2   :  { %v9136_v37 = vcombine.low %v266_v25, %v270_v26 }
  0xd3   :  { %1035 = vmatpush1.bf16.msra.mxu0 %v9048_v11  ;;  %v9099_v11 = vcombine.high %v227_v5, %v231_v6  ;;  %v291_v5 = vld [vmem:[#allocation6 + $0x3d8] sm:$0xff] }
  0xd4   :  { %1036 = vmatprep.subr.bf16.mxu0 %v9057_v14  ;;  %1078 = vmatpush1.bf16.msra.mxu1 %v9050_v34  ;;  %v239_v14 = vld [vmem:[#allocation6 + $0x238] sm:$0xff]  ;;  %v278_v34 = vld [vmem:[#allocation6 + $0x370] sm:$0xff] }
  0xd5   :  { %1079 = vmatprep.subr.bf16.mxu1 %v9059_v35  ;;  %v9106_v27 = vcombine.low %v235_v13, %v239_v14  ;;  %v9145_v40 = vcombine.high %v274_v33, %v278_v34  ;;  %v9144_v45 = vcombine.low %v274_v33, %v278_v34  ;;  %v295_v6 = vld [vmem:[#allocation6 + $0x3f8] sm:$0xff] }
  0xd6   :  { %v9162_v17 = vcombine.low %v291_v5, %v295_v6 }
  0xd7   :  { %1037 = vmatpush1.bf16.msra.mxu0 %v9056_v19  ;;  %v9107_v19 = vcombine.high %v235_v13, %v239_v14  ;;  %v1286_v13 = vld [vmem:[#allocation9 + $0x8] sm:$0xff] }
  0xd8   :  { %1038 = vmatprep.subr.bf16.mxu0 %v9065_v23  ;;  %1080 = vmatpush1.bf16.msra.mxu1 %v9058_v42  ;;  %v247_v23 = vld [vmem:[#allocation6 + $0x278] sm:$0xff]  ;;  %v286_v42 = vld [vmem:[#allocation6 + $0x3b0] sm:$0xff] }
  0xd9   :  { %1081 = vmatprep.subr.bf16.mxu1 %v9067_v43  ;;  %v9114_v35 = vcombine.low %v243_v21, %v247_v23  ;;  %v9153_v47 = vcombine.high %v282_v41, %v286_v42  ;;  %v9152_v52 = vcombine.low %v282_v41, %v286_v42  ;;  %v1290_v14 = vld [vmem:[#allocation9 + $0x28] sm:$0xff] }
  0xda   :  { %v9166_v26 = vcombine.low %v1286_v13, %v1290_v14 }
  0xdb   :  { %1039 = vmatpush1.bf16.msra.mxu0 %v9064_v28  ;;  %v9115_v28 = vcombine.high %v243_v21, %v247_v23  ;;  %v1294_v21 = vld [vmem:[#allocation9 + $0x48] sm:$0xff] }
  0xdc   :  { %1040 = vmatprep.subr.bf16.mxu0 %v9073_v31  ;;  %1082 = vmatpush1.bf16.msra.mxu1 %v9066_v49  ;;  %v255_v31 = vld [vmem:[#allocation6 + $0x2b8] sm:$0xff]  ;;  %v294_v49 = vld [vmem:[#allocation6 + $0x3f0] sm:$0xff] }
  0xdd   :  { %1083 = vmatprep.subr.bf16.mxu1 %v9075_v50  ;;  %v9122_v43 = vcombine.low %v251_v30, %v255_v31  ;;  %v9161_v55 = vcombine.high %v290_v48, %v294_v49  ;;  %v9160_v60 = vcombine.low %v290_v48, %v294_v49  ;;  %v1298_v23 = vld [vmem:[#allocation9 + $0x68] sm:$0xff]  ;;  %v1341_v49 = vld [vmem:[#allocation9 + $0x1c0] sm:$0xff] }
  0xde   :  { %v9174_v34 = vcombine.low %v1294_v21, %v1298_v23 }
  0xdf   :  { %1041 = vmatpush1.bf16.msra.mxu0 %v9072_v36  ;;  %v9123_v36 = vcombine.high %v251_v30, %v255_v31  ;;  %v1302_v30 = vld [vmem:[#allocation9 + $0x88] sm:$0xff] }
  0xe0   :  { %1042 = vmatprep.subr.bf16.mxu0 %v9081_v39  ;;  %1084 = vmatpush1.bf16.msra.mxu1 %v9074_v57  ;;  %v263_v39 = vld [vmem:[#allocation6 + $0x2f8] sm:$0xff]  ;;  %v1285_v57 = vld [vmem:[#allocation9] sm:$0xff]  ;;  %v1306_v31 = vld [vmem:[#allocation9 + $0xa8] sm:$0xff] }
  0xe1   :  { %1085 = vmatprep.subr.bf16.mxu1 %v9083_v58  ;;  %v9130_v50 = vcombine.low %v259_v38, %v263_v39  ;;  %v1289_v58 = vld [vmem:[#allocation9 + $0x20] sm:$0xff]  ;;  %v9182_v42 = vcombine.low %v1302_v30, %v1306_v31 }
  0xe2   :  { %v9165_v63 = vcombine.high %v1285_v57, %v1289_v58 }
  0xe3   :  { %1043 = vmatpush1.bf16.msra.mxu0 %v9080_v44  ;;  %v9131_v44 = vcombine.high %v259_v38, %v263_v39  ;;  %v1310_v38 = vld [vmem:[#allocation9 + $0xc8] sm:$0xff] }
  0xe4   :  { %1044 = vmatprep.subr.bf16.mxu0 %v9089_v22  ;;  %1086 = vmatpush1.bf16.msra.mxu1 %v9082_v2  ;;  %v271_v22 = vld [vmem:[#allocation6 + $0x338] sm:$0xff]  ;;  %v1293_v2 = vld [vmem:[#allocation9 + $0x40] sm:$0xff]  ;;  %v1314_v39 = vld [vmem:[#allocation9 + $0xe8] sm:$0xff] }
  0xe5   :  { %1087 = vmatprep.subr.bf16.mxu1 %v9091_v3  ;;  %v9138_v56 = vcombine.low %v267_v46, %v271_v22  ;;  %v1297_v3 = vld [vmem:[#allocation9 + $0x60] sm:$0xff]  ;;  %v9190_v48 = vcombine.low %v1310_v38, %v1314_v39 }
  0xe6   :  { %v9173_v8 = vcombine.high %v1293_v2, %v1297_v3 }
  0xe7   :  { %1045 = vmatpush1.bf16.msra.mxu0 %v9088_v51  ;;  %v9139_v51 = vcombine.high %v267_v46, %v271_v22  ;;  %v1322_v46 = vld [vmem:[#allocation9 + $0x128] sm:$0xff] }
  0xe8   :  { %1046 = vmatprep.subr.bf16.mxu0 %v9097_v54  ;;  %1088 = vmatpush1.bf16.msra.mxu1 %v9090_v10  ;;  %v279_v54 = vld [vmem:[#allocation6 + $0x378] sm:$0xff]  ;;  %v1301_v10 = vld [vmem:[#allocation9 + $0x80] sm:$0xff] }
  0xe9   :  { %1089 = vmatprep.subr.bf16.mxu1 %v9099_v11  ;;  %v9146_v0 = vcombine.low %v275_v53, %v279_v54  ;;  %v1305_v11 = vld [vmem:[#allocation9 + $0xa0] sm:$0xff] }
  0xea   :  { %v9181_v16 = vcombine.high %v1301_v10, %v1305_v11 }
  0xeb   :  { %1047 = vmatpush1.bf16.msra.mxu0 %v9096_v59  ;;  %v9147_v59 = vcombine.high %v275_v53, %v279_v54  ;;  %v1330_v53 = vld [vmem:[#allocation9 + $0x168] sm:$0xff] }
  0xec   :  { %1048 = vmatprep.subr.bf16.mxu0 %v9105_v62  ;;  %1090 = vmatpush1.bf16.msra.mxu1 %v9098_v18  ;;  %v287_v62 = vld [vmem:[#allocation6 + $0x3b8] sm:$0xff]  ;;  %v1309_v18 = vld [vmem:[#allocation9 + $0xc0] sm:$0xff] }
  0xed   :  { %1091 = vmatprep.subr.bf16.mxu1 %v9107_v19  ;;  %v9154_v9 = vcombine.low %v283_v61, %v287_v62  ;;  %v1313_v19 = vld [vmem:[#allocation9 + $0xe0] sm:$0xff] }
  0xee   :  { %v9189_v25 = vcombine.high %v1309_v18, %v1313_v19 }
  0xef   :  { %1049 = vmatpush1.bf16.msra.mxu0 %v9104_v4  ;;  %v9155_v4 = vcombine.high %v283_v61, %v287_v62  ;;  %v1338_v61 = vld [vmem:[#allocation9 + $0x1a8] sm:$0xff] }
  0xf0   :  { %1050 = vmatprep.subr.bf16.mxu0 %v9113_v7  ;;  %1092 = vmatpush1.bf16.msra.mxu1 %v9106_v27  ;;  %v9164_v7 = vcombine.low %v1285_v57, %v1289_v58  ;;  %v1317_v27 = vld [vmem:[#allocation9 + $0x100] sm:$0xff] }
  0xf1   :  { %1093 = vmatprep.subr.bf16.mxu1 %v9115_v28  ;;  %v1321_v28 = vld [vmem:[#allocation9 + $0x120] sm:$0xff] }
  0xf2   :  { %v9197_v33 = vcombine.high %v1317_v27, %v1321_v28  ;;  %v1349_v57 = vld [vmem:[#allocation9 + $0x200] sm:$0xff] }
  0xf3   :  { %1051 = vmatpush1.bf16.msra.mxu0 %v9112_v12  ;;  %v9163_v12 = vcombine.high %v291_v5, %v295_v6  ;;  %v1353_v58 = vld [vmem:[#allocation9 + $0x220] sm:$0xff]  ;;  %v1342_v5 = vld [vmem:[#allocation9 + $0x1c8] sm:$0xff] }
  0xf4   :  { %1052 = vmatprep.subr.bf16.mxu0 %v9121_v15  ;;  %1094 = vmatpush1.bf16.msra.mxu1 %v9114_v35  ;;  %v9172_v15 = vcombine.low %v1293_v2, %v1297_v3  ;;  %v1325_v35 = vld [vmem:[#allocation9 + $0x140] sm:$0xff]  ;;  %v1346_v6 = vld [vmem:[#allocation9 + $0x1e8] sm:$0xff] }
  0xf5   :  { %1095 = vmatprep.subr.bf16.mxu1 %v9123_v36  ;;  %v1329_v36 = vld [vmem:[#allocation9 + $0x160] sm:$0xff] }
  0xf6   :  { %v9205_v41 = vcombine.high %v1325_v35, %v1329_v36  ;;  %v9204_v22 = vcombine.low %v1325_v35, %v1329_v36  ;;  %v1357_v2 = vld [vmem:[#allocation9 + $0x240] sm:$0xff]  ;;  %v1366_v36 = vld [vmem:[#allocation9 + $0x288] sm:$0xff] }
  0xf7   :  { %1053 = vmatpush1.bf16.msra.mxu0 %v9120_v20  ;;  %v9167_v20 = vcombine.high %v1286_v13, %v1290_v14  ;;  %v1361_v3 = vld [vmem:[#allocation9 + $0x260] sm:$0xff] }
  0xf8   :  { %1054 = vmatprep.subr.bf16.mxu0 %v9129_v24  ;;  %1096 = vmatpush1.bf16.msra.mxu1 %v9122_v43  ;;  %v9180_v24 = vcombine.low %v1301_v10, %v1305_v11  ;;  %v1333_v43 = vld [vmem:[#allocation9 + $0x180] sm:$0xff]  ;;  %v10717_v10 = vld [vmem:[#allocation9 + $0x408] sm:$0xff]  ;;  %v9237_v11 = vcombine.high %v1357_v2, %v1361_v3 }
  0xf9   :  { %1097 = vmatprep.subr.bf16.mxu1 %v9131_v44  ;;  %v1337_v44 = vld [vmem:[#allocation9 + $0x1a0] sm:$0xff] }
  0xfa   :  { %v9212_v54 = vcombine.low %v1333_v43, %v1337_v44  ;;  %v1365_v14 = vld [vmem:[#allocation9 + $0x280] sm:$0xff] }
  0xfb   :  { %1055 = vmatpush1.bf16.msra.mxu0 %v9128_v29  ;;  %v9175_v29 = vcombine.high %v1294_v21, %v1298_v23  ;;  %v9236_v21 = vcombine.low %v1357_v2, %v1361_v3  ;;  %v1402_v2 = vld [vmem:[#allocation9 + $0x3a8] sm:$0xff] }
  0xfc   :  { %1056 = vmatprep.subr.bf16.mxu0 %v9137_v32  ;;  %1098 = vmatpush1.bf16.msra.mxu1 %v9130_v50  ;;  %v9188_v32 = vcombine.low %v1309_v18, %v1313_v19  ;;  %v1345_v50 = vld [vmem:[#allocation9 + $0x1e0] sm:$0xff]  ;;  %v9223_v18 = vcombine.high %v1342_v5, %v1346_v6  ;;  %v1350_v19 = vld [vmem:[#allocation9 + $0x208] sm:$0xff] }
  0xfd   :  { %1099 = vmatprep.subr.bf16.mxu1 %v9139_v51  ;;  %v9220_v62 = vcombine.low %v1341_v49, %v1345_v50 }
  0xff   :  { %1057 = vmatpush1.bf16.msra.mxu0 %v9136_v37  ;;  %v9183_v37 = vcombine.high %v1302_v30, %v1306_v31 }
 0x100   :  { %1058 = vmatprep.subr.bf16.mxu0 %v9145_v40  ;;  %1100 = vmatpush1.bf16.msra.mxu1 %v9138_v56  ;;  %v9196_v40 = vcombine.low %v1317_v27, %v1321_v28  ;;  %v1358_v28 = vld [vmem:[#allocation9 + $0x248] sm:$0xff] }
 0x101   :  { %1101 = vmatprep.subr.bf16.mxu1 %v9147_v59 }
 0x103   :  { %1059 = vmatpush1.bf16.msra.mxu0 %v9144_v45  ;;  %v1318_v45 = vld [vmem:[#allocation9 + $0x108] sm:$0xff] }
 0x104   :  { %1060 = vmatprep.subr.bf16.mxu0 %v9153_v47  ;;  %1102 = vmatpush1.bf16.msra.mxu1 %v9146_v0  ;;  %v9213_v47 = vcombine.high %v1333_v43, %v1337_v44  ;;  %v9199_v51 = vcombine.high %v1318_v45, %v1322_v46  ;;  %v9198_v56 = vcombine.low %v1318_v45, %v1322_v46  ;;  %v1374_v44 = vld [vmem:[#allocation9 + $0x2c8] sm:$0xff] }
 0x105   :  { %1103 = vmatprep.subr.bf16.mxu1 %v9155_v4 }
 0x107   :  { %1061 = vmatpush1.bf16.msra.mxu0 %v9152_v52  ;;  %v1326_v52 = vld [vmem:[#allocation9 + $0x148] sm:$0xff] }
 0x108   :  { %1062 = vmatprep.subr.bf16.mxu0 %v9161_v55  ;;  %1104 = vmatpush1.bf16.msra.mxu1 %v9154_v9  ;;  %v9221_v55 = vcombine.high %v1341_v49, %v1345_v50  ;;  %v9207_v59 = vcombine.high %v1326_v52, %v1330_v53  ;;  %v9206_v0 = vcombine.low %v1326_v52, %v1330_v53  ;;  %v10715_v9 = vld [vmem:[#allocation9 + $0x420] sm:$0xff]  ;;  %v1382_v50 = vld [vmem:[#allocation9 + $0x308] sm:$0xff] }
 0x109   :  { %1105 = vmatprep.subr.bf16.mxu1 %v9163_v12  ;;  %v10719_v12 = vld [vmem:[#allocation9 + $0x428] sm:$0xff] }
 0x10b   :  { %1063 = vmatpush1.bf16.msra.mxu0 %v9160_v60  ;;  %v1334_v60 = vld [vmem:[#allocation9 + $0x188] sm:$0xff] }
 0x10c   :  { %4399 = vmatprep.subr.bf16.mxu0 %v9165_v63  ;;  %1106 = vmatpush1.bf16.msra.mxu1 %v9162_v17  ;;  %v9229_v63 = vcombine.high %v1349_v57, %v1353_v58  ;;  %v9215_v4 = vcombine.high %v1334_v60, %v1338_v61  ;;  %v9214_v13 = vcombine.low %v1334_v60, %v1338_v61 }
 0x10d   :  { %4571 = vmatprep.subr.bf16.mxu1 %v9167_v20  ;;  %v9294_v17 = vcombine.low %v10717_v10, %v10719_v12  ;;  %v1354_v20 = vld [vmem:[#allocation9 + $0x228] sm:$0xff] }
 0x10e   :  { %1065 = vmatmul.mubr.bf16.vlgmr.msra.gmra.mrb[4].mxu0 %v10705_v1  ;;  %v9231_v27 = vcombine.high %v1350_v19, %v1354_v20 }
 0x10f   :  { %4400 = vmatpush1.bf16.msra.mxu0 %v9164_v7  ;;  %1108 = vmatmul.mubr.bf16.vlgmr.msra.gmra.mrb[4].mxu1 %v10705_v1  ;;  %v9191_v1 = vcombine.high %v1310_v38, %v1314_v39  ;;  %v9228_v7 = vcombine.low %v1349_v57, %v1353_v58  ;;  %v1390_v58 = vld [vmem:[#allocation9 + $0x348] sm:$0xff] }
 0x110   :  { %4401 = vmatprep.subr.bf16.mxu0 %v9173_v8  ;;  %4572 = vmatpush1.bf16.msra.mxu1 %v9166_v26  ;;  %v10713_v8 = vld [vmem:[#allocation9 + $0x400] sm:$0xff] }
 0x111   :  { %4573 = vmatprep.subr.bf16.mxu1 %v9175_v29  ;;  %v1377_v26 = vld [vmem:[#allocation9 + $0x2e0] sm:$0xff]  ;;  %v1362_v29 = vld [vmem:[#allocation9 + $0x268] sm:$0xff] }
 0x112   :  { %v9239_v35 = vcombine.high %v1358_v28, %v1362_v29 }
 0x113   :  { %4402 = vmatpush1.bf16.msra.mxu0 %v9172_v15  ;;  %v1369_v15 = vld [vmem:[#allocation9 + $0x2a0] sm:$0xff] }
 0x114   :  { %4403 = vmatprep.subr.bf16.mxu0 %v9181_v16  ;;  %4574 = vmatpush1.bf16.msra.mxu1 %v9174_v34  ;;  %v9292_v16 = vcombine.low %v10713_v8, %v10715_v9  ;;  %v9245_v23 = vcombine.high %v1365_v14, %v1369_v15  ;;  %v9244_v30 = vcombine.low %v1365_v14, %v1369_v15  ;;  %v1385_v34 = vld [vmem:[#allocation9 + $0x320] sm:$0xff] }
 0x115   :  { %4575 = vmatprep.subr.bf16.mxu1 %v9183_v37  ;;  %v1370_v37 = vld [vmem:[#allocation9 + $0x2a8] sm:$0xff] }
 0x116   :  { %v9247_v43 = vcombine.high %v1366_v36, %v1370_v37 }
 0x117   :  { %4404 = vmatpush1.bf16.msra.mxu0 %v9180_v24  ;;  %v9222_v24 = vcombine.low %v1342_v5, %v1346_v6 }
 0x118   :  { %4405 = vmatprep.subr.bf16.mxu0 %v9189_v25  ;;  %4576 = vmatpush1.bf16.msra.mxu1 %v9182_v42  ;;  %v1373_v25 = vld [vmem:[#allocation9 + $0x2c0] sm:$0xff] }
 0x119   :  { %4577 = vmatprep.subr.bf16.mxu1 %v9191_v1  ;;  %v9253_v31 = vcombine.high %v1373_v25, %v1377_v26  ;;  %v9252_v38 = vcombine.low %v1373_v25, %v1377_v26  ;;  %v1393_v42 = vld [vmem:[#allocation9 + $0x360] sm:$0xff]  ;;  %v1378_v1 = vld [vmem:[#allocation9 + $0x2e8] sm:$0xff] }
 0x11a   :  { %v9255_v49 = vcombine.high %v1374_v44, %v1378_v1 }
 0x11b   :  { %4406 = vmatpush1.bf16.msra.mxu0 %v9188_v32  ;;  %v9230_v32 = vcombine.low %v1350_v19, %v1354_v20  ;;  %v1171_v19 = vlaneseq }
 0x11c   :  { %4407 = vmatprep.subr.bf16.mxu0 %v9197_v33  ;;  %4578 = vmatpush1.bf16.msra.mxu1 %v9190_v48  ;;  %v1381_v33 = vld [vmem:[#allocation9 + $0x300] sm:$0xff] }
 0x11d   :  { %4579 = vmatprep.subr.bf16.mxu1 %v9199_v51  ;;  %v9261_v39 = vcombine.high %v1381_v33, %v1385_v34  ;;  %v9260_v45 = vcombine.low %v1381_v33, %v1385_v34  ;;  %v1401_v48 = vld [vmem:[#allocation9 + $0x3a0] sm:$0xff]  ;;  %v1386_v51 = vld [vmem:[#allocation9 + $0x328] sm:$0xff]  ;;  %v10729_v20 = vshrl.u32 %v1171_v19, 7 }
 0x11e   :  { %v9263_v57 = vcombine.high %v1382_v50, %v1386_v51 }
 0x11f   :  { %4408 = vmatpush1.bf16.msra.mxu0 %v9196_v40  ;;  %v9238_v40 = vcombine.low %v1358_v28, %v1362_v29 }
 0x120   :  { %4409 = vmatprep.subr.bf16.mxu0 %v9205_v41  ;;  %4580 = vmatpush1.bf16.msra.mxu1 %v9198_v56  ;;  %v1389_v41 = vld [vmem:[#allocation9 + $0x340] sm:$0xff] }
 0x121   :  { %4581 = vmatprep.subr.bf16.mxu1 %v9207_v59  ;;  %v9269_v46 = vcombine.high %v1389_v41, %v1393_v42  ;;  %v9268_v52 = vcombine.low %v1389_v41, %v1393_v42  ;;  %v1409_v56 = vld [vmem:[#allocation9 + $0x3e0] sm:$0xff]  ;;  %v1394_v59 = vld [vmem:[#allocation9 + $0x368] sm:$0xff] }
 0x122   :  { %v9270_v5 = vcombine.low %v1390_v58, %v1394_v59  ;;  %v1421_v42 = vld [vmem:[#allocation9 + $0x440] sm:$0xff] }
 0x123   :  { %4410 = vmatpush1.bf16.msra.mxu0 %v9204_v22  ;;  %v9246_v22 = vcombine.low %v1366_v36, %v1370_v37  ;;  %v10747_v36 = vsub.s32 2, %v10729_v20 }
 0x124   :  { %4411 = vmatprep.subr.bf16.mxu0 %v9213_v47  ;;  %4582 = vmatpush1.bf16.msra.mxu1 %v9206_v0  ;;  %v1397_v47 = vld [vmem:[#allocation9 + $0x380] sm:$0xff]  ;;  %v1398_v0 = vld [vmem:[#allocation9 + $0x388] sm:$0xff] }
 0x125   :  { %4583 = vmatprep.subr.bf16.mxu1 %v9215_v4  ;;  %v9277_v53 = vcombine.high %v1397_v47, %v1401_v48  ;;  %v9276_v60 = vcombine.low %v1397_v47, %v1401_v48  ;;  %v9293_v4 = vcombine.high %v10713_v8, %v10715_v9  ;;  %v9279_v6 = vcombine.high %v1398_v0, %v1402_v2  ;;  %v1438_v8 = vld [vmem:[#allocation9 + $0x4c8] sm:$0xff] }
 0x126   :  { %v1442_v9 = vld [vmem:[#allocation9 + $0x4e8] sm:$0xff] }
 0x127   :  { %4412 = vmatpush1.bf16.msra.mxu0 %v9212_v54  ;;  %v9254_v54 = vcombine.low %v1374_v44, %v1378_v1  ;;  %v1425_v1 = vld [vmem:[#allocation9 + $0x460] sm:$0xff] }
 0x128   :  { %4413 = vmatprep.subr.bf16.mxu0 %v9221_v55  ;;  %4584 = vmatpush1.bf16.msra.mxu1 %v9214_v13  ;;  %v1405_v55 = vld [vmem:[#allocation9 + $0x3c0] sm:$0xff]  ;;  %v9278_v13 = vcombine.low %v1398_v0, %v1402_v2 }
 0x129   :  { %4585 = vmatprep.subr.bf16.mxu1 %v9223_v18  ;;  %v9285_v61 = vcombine.high %v1405_v55, %v1409_v56  ;;  %v9284_v3 = vcombine.low %v1405_v55, %v1409_v56  ;;  %v9295_v18 = vcombine.high %v10717_v10, %v10719_v12  ;;  %v1429_v56 = vld [vmem:[#allocation9 + $0x480] sm:$0xff] }
 0x12b   :  { %4414 = vmatpush1.bf16.msra.mxu0 %v9220_v62  ;;  %v9262_v62 = vcombine.low %v1382_v50, %v1386_v51 }
 0x12c   :  { %4415 = vmatprep.subr.bf16.mxu0 %v9229_v63  ;;  %4586 = vmatpush1.bf16.msra.mxu1 %v9222_v24  ;;  %v9271_v63 = vcombine.high %v1390_v58, %v1394_v59  ;;  %v10737_v24 = vsub.s32 1, %v10729_v20  ;;  %v9300_v59 = vcombine.low %v1421_v42, %v1425_v1 }
 0x12d   :  { %4587 = vmatprep.subr.bf16.mxu1 %v9231_v27 }
 0x12f   :  { %4416 = vmatpush1.bf16.msra.mxu0 %v9228_v7  ;;  %v1406_v7 = vld [vmem:[#allocation9 + $0x3c8] sm:$0xff] }
 0x130   :  { %4417 = vmatprep.subr.bf16.mxu0 %v9237_v11  ;;  %4588 = vmatpush1.bf16.msra.mxu1 %v9230_v32  ;;  %v1410_v11 = vld [vmem:[#allocation9 + $0x3e8] sm:$0xff] }
 0x131   :  { %4589 = vmatprep.subr.bf16.mxu1 %v9239_v35  ;;  %v9287_v14 = vcombine.high %v1406_v7, %v1410_v11  ;;  %v9286_v15 = vcombine.low %v1406_v7, %v1410_v11  ;;  %v1437_v7 = vld [vmem:[#allocation9 + $0x4c0] sm:$0xff] }
 0x132   :  { %v1441_v11 = vld [vmem:[#allocation9 + $0x4e0] sm:$0xff] }
 0x133   :  { %4418 = vmatpush1.bf16.msra.mxu0 %v9236_v21  ;;  %v10732_v21 = vsub.s32 0, %v10729_v20  ;;  %v9317_v19 = vcombine.high %v1437_v7, %v1441_v11 }
 0x134   :  { %4419 = vmatprep.subr.bf16.mxu0 %v9245_v23  ;;  %4590 = vmatpush1.bf16.msra.mxu1 %v9238_v40  ;;  %v10734_v23 = vld [vmem:[#allocation8] sm:$0xff] }
 0x135   :  { %4591 = vmatprep.subr.bf16.mxu1 %v9247_v43  ;;  %v1174_v25 = vrot.slane %v10734_v23, %v10732_v21  ;;  %v1178_v27 = vrot.slane %v10734_v23, %v10737_v24 }
 0x137   :  { %4420 = vmatpush1.bf16.msra.mxu0 %v9244_v30  ;;  %v10743_v30 = vstv %s1227_s6 }
 0x138   :  { %4421 = vmatprep.subr.bf16.mxu0 %v9253_v31  ;;  %4592 = vmatpush1.bf16.msra.mxu1 %v9246_v22  ;;  %v1182_v22 = vrot.slane %v10734_v23, %v10747_v36 }
 0x139   :  { %4593 = vmatprep.subr.bf16.mxu1 %v9255_v49 }
 0x13b   :  { %4422 = vmatpush1.bf16.msra.mxu0 %v9252_v38 }
 0x13c   :  { %4423 = vmatprep.subr.bf16.mxu0 %v9261_v39  ;;  %4594 = vmatpush1.bf16.msra.mxu1 %v9254_v54  ;;  %v10751_v39 = vsub.s32 3, %v10729_v20  ;;  %v9301_v54 = vcombine.high %v1421_v42, %v1425_v1  ;;  %v1457_v42 = vld [vmem:[#allocation9 + $0x560] sm:$0xff] }
 0x13d   :  { %4595 = vmatprep.subr.bf16.mxu1 %v9263_v57  ;;  %v1433_v57 = vld [vmem:[#allocation9 + $0x4a0] sm:$0xff] }
 0x13e   :  { %v1186_v51 = vrot.slane %v10734_v23, %v10751_v39 }
 0x13f   :  { %4424 = vmatpush1.bf16.msra.mxu0 %v9260_v45  ;;  %v1422_v45 = vld [vmem:[#allocation9 + $0x448] sm:$0xff] }
 0x140   :  { %4425 = vmatprep.subr.bf16.mxu0 %v9269_v46  ;;  %4596 = vmatpush1.bf16.msra.mxu1 %v9262_v62  ;;  %v1426_v46 = vld [vmem:[#allocation9 + $0x468] sm:$0xff] }
 0x141   :  { %4597 = vmatprep.subr.bf16.mxu1 %v9271_v63  ;;  %v9303_v55 = vcombine.high %v1422_v45, %v1426_v46  ;;  %v9302_v0 = vcombine.low %v1422_v45, %v1426_v46 }
 0x143   :  { %4426 = vmatpush1.bf16.msra.mxu0 %v9268_v52 }
 0x144   :  { %4427 = vmatprep.subr.bf16.mxu0 %v9277_v53  ;;  %4598 = vmatpush1.bf16.msra.mxu1 %v9270_v5 }
 0x145   :  { %4599 = vmatprep.subr.bf16.mxu1 %v9279_v6 }
 0x147   :  { %4428 = vmatpush1.bf16.msra.mxu0 %v9276_v60  ;;  %v1430_v60 = vld [vmem:[#allocation9 + $0x488] sm:$0xff] }
 0x148   :  { %4429 = vmatprep.subr.bf16.mxu0 %v9285_v61  ;;  %4600 = vmatpush1.bf16.msra.mxu1 %v9278_v13  ;;  %v1434_v61 = vld [vmem:[#allocation9 + $0x4a8] sm:$0xff] }
 0x149   :  { %4601 = vmatprep.subr.bf16.mxu1 %v9287_v14  ;;  %v9311_v6 = vcombine.high %v1430_v60, %v1434_v61 }
 0x14b   :  { %4430 = vmatpush1.bf16.msra.mxu0 %v9284_v3  ;;  %v9309_v3 = vcombine.high %v1429_v56, %v1433_v57 }
 0x14c   :  { %4442 = vmatprep.subr.bf16.mxu0 %v9293_v4  ;;  %4602 = vmatpush1.bf16.msra.mxu1 %v9286_v15 }
 0x14d   :  { %4614 = vmatprep.subr.bf16.mxu1 %v9295_v18  ;;  %v9310_v18 = vcombine.low %v1430_v60, %v1434_v61  ;;  %v1474_v60 = vld [vmem:[#allocation9 + $0x5e8] sm:$0xff] }
 0x1a1   :  { %v980_v26 = vpop.f32.mrb[0].mxu0  ;;  %v1023_v50 = vpop.f32.mrb[0].mxu1 }
 0x1a2   :  { %v982_v28 = vpop.f32.mrb[1].mxu0  ;;  %v1211_v32 = vadd.f32 %v1174_v25, %v980_v26  ;;  %v1025_v53 = vpop.f32.mrb[1].mxu1  ;;  %v1213_v63 = vadd.f32 %v1182_v22, %v1023_v50  ;;  %v9319_v26 = vcombine.high %v1438_v8, %v1442_v9  ;;  %v1462_v50 = vld [vmem:[#allocation9 + $0x588] sm:$0xff] }
 0x1a3   :  { %v984_v29 = vpop.f32.mrb[2].mxu0  ;;  %v1212_v33 = vadd.f32 %v1178_v27, %v982_v28  ;;  %v1027_v58 = vpop.f32.mrb[2].mxu1  ;;  %v1214_v2 = vadd.f32 %v1186_v51, %v1025_v53 }
 0x1a4   :  { %v986_v31 = vpop.f32.mrb[3].mxu0  ;;  %v1219_v34 = vadd.f32 %v1174_v25, %v984_v29  ;;  %v1245_v35 = vmul.f32 %v10743_v30, %v1211_v32  ;;  %vm1228_vm0 = vcmp.gt.f32.partialorder %v1211_v32, 0.0  ;;  %v1029_v62 = vpop.f32.mrb[3].mxu1  ;;  %v1221_v4 = vadd.f32 %v1182_v22, %v1027_v58  ;;  %v1473_v58 = vld [vmem:[#allocation9 + $0x5e0] sm:$0xff] }
 0x1a5   :  { %v1220_v37 = vadd.f32 %v1178_v27, %v986_v31  ;;  %v1246_v38 = vmul.f32 %v10743_v30, %v1212_v33  ;;  %vm1229_vm1 = vcmp.gt.f32.partialorder %v1212_v33, 0.0  ;;  %vm1230_vm4 = vcmp.gt.f32.partialorder %v1213_v63, 0.0  ;;  %v1445_v27 = vld [vmem:[#allocation9 + $0x500] sm:$0xff] }
 0x1a6   :  { %vm1236_vm2 = vcmp.gt.f32.partialorder %v1219_v34, 0.0  ;;  %v1253_v40 = vmul.f32 %v10743_v30, %v1219_v34  ;;  %v1261_v43 = vsel %vm1228_vm0, %v1211_v32, %v1245_v35  ;;  %v1247_v5 = vmul.f32 %v10743_v30, %v1213_v63  ;;  %v1449_v31 = vld [vmem:[#allocation9 + $0x520] sm:$0xff]  ;;  %v1446_v32 = vld [vmem:[#allocation9 + $0x508] sm:$0xff] }
 0x1a7   :  { %vm1237_vm3 = vcmp.gt.f32.partialorder %v1220_v37, 0.0  ;;  %v1254_v41 = vmul.f32 %v10743_v30, %v1220_v37  ;;  %v1262_v47 = vsel %vm1229_vm1, %v1212_v33, %v1246_v38  ;;  %v1222_v13 = vadd.f32 %v1186_v51, %v1029_v62  ;;  %v1450_v33 = vld [vmem:[#allocation9 + $0x528] sm:$0xff] }
 0x1a8   :  { %v1269_v44 = vsel %vm1236_vm2, %v1219_v34, %v1253_v40  ;;  %vm1231_vm5 = vcmp.gt.f32.partialorder %v1214_v2, 0.0  ;;  %v1248_v14 = vmul.f32 %v10743_v30, %v1214_v2  ;;  %vm1238_vm6 = vcmp.gt.f32.partialorder %v1221_v4, 0.0  ;;  %v1466_v51 = vld [vmem:[#allocation9 + $0x5a8] sm:$0xff] }
 0x1a9   :  { %v1270_v48 = vsel %vm1237_vm3, %v1220_v37, %v1254_v41  ;;  %v10757_v49 = vpack.c.bf16 %v1269_v44, %v1261_v43  ;;  %v1255_v10 = vmul.f32 %v10743_v30, %v1221_v4  ;;  %v1263_v12 = vsel %vm1230_vm4, %v1213_v63, %v1247_v5  ;;  %v1453_v41 = vld [vmem:[#allocation9 + $0x540] sm:$0xff]  ;;  %v1454_v43 = vld [vmem:[#allocation9 + $0x548] sm:$0xff] }
 0x1aa   :  { %v10761_v52 = vpack.c.bf16 %v1270_v48, %v1262_v47  ;;  %vm1239_vm7 = vcmp.gt.f32.partialorder %v1222_v13, 0.0  ;;  %v1264_v15 = vsel %vm1231_vm5, %v1214_v2, %v1248_v14  ;;  %v9316_v35 = vcombine.low %v1437_v7, %v1441_v11  ;;  %v1458_v44 = vld [vmem:[#allocation9 + $0x568] sm:$0xff]  ;;  %v1461_v47 = vld [vmem:[#allocation9 + $0x580] sm:$0xff] }
 0x1ab   :  { %v1271_v25 = vsel %vm1238_vm6, %v1221_v4, %v1255_v10  ;;  %v9318_v37 = vcombine.low %v1438_v8, %v1442_v9  ;;  %v9325_v38 = vcombine.high %v1445_v27, %v1449_v31  ;;  %v9327_v40 = vcombine.high %v1446_v32, %v1450_v33  ;;  %v1465_v48 = vld [vmem:[#allocation9 + $0x5a0] sm:$0xff]  ;;  %v1478_v4 = vld [vmem:[#allocation9 + $0x608] sm:$0xff] }
 0x1ac   :  { %4431 = vmatprep.mubr.bf16.mxu0 %v10761_v52  ;;  %4603 = vmatprep.mubr.bf16.mxu1 %v10761_v52  ;;  %v10777_v29 = vpack.c.bf16 %v1271_v25, %v1263_v12  ;;  %v9324_v1 = vcombine.low %v1445_v27, %v1449_v31  ;;  %v9326_v45 = vcombine.low %v1446_v32, %v1450_v33  ;;  %v1477_v2 = vld [vmem:[#allocation9 + $0x600] sm:$0xff]  ;;  %v1482_v5 = vld [vmem:[#allocation9 + $0x628] sm:$0xff] }
 0x1ad   :  { %4432 = vmatmul.mubr.bf16.vlgmr.msra.gmra.mrb[8].mxu0 %v10757_v49  ;;  %4604 = vmatmul.mubr.bf16.vlgmr.msra.gmra.mrb[8].mxu1 %v10757_v49  ;;  %v9333_v46 = vcombine.high %v1453_v41, %v1457_v42  ;;  %v9335_v22 = vcombine.high %v1454_v43, %v1458_v44  ;;  %v9332_v53 = vcombine.low %v1453_v41, %v1457_v42  ;;  %v1485_v14 = vld [vmem:[#allocation9 + $0x640] sm:$0xff]  ;;  %v1486_v9 = vld [vmem:[#allocation9 + $0x648] sm:$0xff] }
 0x1ae   :  { %4443 = vmatpush1.bf16.msra.mxu0 %v9292_v16  ;;  %4615 = vmatpush1.bf16.msra.mxu1 %v9294_v17  ;;  %v9308_v16 = vcombine.low %v1429_v56, %v1433_v57  ;;  %v1256_v17 = vmul.f32 %v10743_v30, %v1222_v13  ;;  %v9343_v56 = vcombine.high %v1462_v50, %v1466_v51  ;;  %v1469_v57 = vld [vmem:[#allocation9 + $0x5c0] sm:$0xff]  ;;  %v1490_v10 = vld [vmem:[#allocation9 + $0x668] sm:$0xff] }
 0x1af   :  { %4444 = vmatprep.subr.bf16.mxu0 %v9301_v54  ;;  %4616 = vmatprep.subr.bf16.mxu1 %v9303_v55  ;;  %v9334_v54 = vcombine.low %v1454_v43, %v1458_v44  ;;  %v9341_v55 = vcombine.high %v1461_v47, %v1465_v48  ;;  %v9340_v61 = vcombine.low %v1461_v47, %v1465_v48  ;;  %v1489_v8 = vld [vmem:[#allocation9 + $0x660] sm:$0xff]  ;;  %v1494_v25 = vld [vmem:[#allocation9 + $0x688] sm:$0xff] }
 0x1b0   :  { %v1272_v28 = vsel %vm1239_vm7, %v1222_v13, %v1256_v17  ;;  %v9342_v62 = vcombine.low %v1462_v50, %v1466_v51  ;;  %v9349_v63 = vcombine.high %v1469_v57, %v1473_v58  ;;  %v9359_v13 = vcombine.high %v1478_v4, %v1482_v5  ;;  %v1501_v33 = vld [vmem:[#allocation9 + $0x6c0] sm:$0xff] }
 0x1b1   :  { %v10779_v34 = vpack.c.bf16 %v1272_v28, %v1264_v15  ;;  %v9365_v17 = vcombine.high %v1485_v14, %v1489_v8  ;;  %v9367_v15 = vcombine.high %v1486_v9, %v1490_v10  ;;  %v9364_v27 = vcombine.low %v1485_v14, %v1489_v8  ;;  %v1509_v44 = vld [vmem:[#allocation9 + $0x700] sm:$0xff]  ;;  %v1534_v14 = vld [vmem:[#allocation9 + $0x7c8] sm:$0xff] }
 0x1b2   :  { %4445 = vmatpush1.bf16.msra.mxu0 %v9300_v59  ;;  %4617 = vmatpush1.bf16.msra.mxu1 %v9302_v0  ;;  %v1470_v59 = vld [vmem:[#allocation9 + $0x5c8] sm:$0xff]  ;;  %v9366_v28 = vcombine.low %v1486_v9, %v1490_v10  ;;  %v1517_v51 = vld [vmem:[#allocation9 + $0x740] sm:$0xff] }
 0x1b3   :  { %4446 = vmatprep.subr.bf16.mxu0 %v9309_v3  ;;  %4618 = vmatprep.subr.bf16.mxu1 %v9311_v6  ;;  %v9351_v0 = vcombine.high %v1470_v59, %v1474_v60  ;;  %v1481_v3 = vld [vmem:[#allocation9 + $0x620] sm:$0xff]  ;;  %v9348_v6 = vcombine.low %v1469_v57, %v1473_v58  ;;  %v9350_v7 = vcombine.low %v1470_v59, %v1474_v60  ;;  %v10784_v58 = vsub.s32 4, %v10729_v20  ;;  %v1538_v8 = vld [vmem:[#allocation9 + $0x7e8] sm:$0xff] }
 0x1b4   :  { %4474 = vmatprep.mubr.bf16.mxu0 %v10779_v34  ;;  %4646 = vmatprep.mubr.bf16.mxu1 %v10779_v34  ;;  %v9357_v11 = vcombine.high %v1477_v2, %v1481_v3  ;;  %v9356_v12 = vcombine.low %v1477_v2, %v1481_v3  ;;  %v1530_v2 = vld [vmem:[#allocation9 + $0x7a8] sm:$0xff] }
 0x1b6   :  { %4447 = vmatpush1.bf16.msra.mxu0 %v9308_v16  ;;  %4619 = vmatpush1.bf16.msra.mxu1 %v9310_v18  ;;  %v9358_v16 = vcombine.low %v1478_v4, %v1482_v5  ;;  %v1493_v18 = vld [vmem:[#allocation9 + $0x680] sm:$0xff] }
 0x1b7   :  { %4448 = vmatprep.subr.bf16.mxu0 %v9317_v19  ;;  %4620 = vmatprep.subr.bf16.mxu1 %v9319_v26  ;;  %v1497_v19 = vld [vmem:[#allocation9 + $0x6a0] sm:$0xff]  ;;  %v1498_v26 = vld [vmem:[#allocation9 + $0x6a8] sm:$0xff] }
 0x1b8   :  { %v9373_v31 = vcombine.high %v1493_v18, %v1497_v19  ;;  %v9375_v32 = vcombine.high %v1494_v25, %v1498_v26  ;;  %v9374_v41 = vcombine.low %v1494_v25, %v1498_v26  ;;  %v1533_v5 = vld [vmem:[#allocation9 + $0x7c0] sm:$0xff]  ;;  %v9414_v25 = vcombine.low %v1534_v14, %v1538_v8 }
 0x1ba   :  { %4449 = vmatpush1.bf16.msra.mxu0 %v9316_v35  ;;  %4621 = vmatpush1.bf16.msra.mxu1 %v9318_v37  ;;  %v1505_v35 = vld [vmem:[#allocation9 + $0x6e0] sm:$0xff]  ;;  %v1502_v37 = vld [vmem:[#allocation9 + $0x6c8] sm:$0xff] }
 0x1bb   :  { %4450 = vmatprep.subr.bf16.mxu0 %v9325_v38  ;;  %4622 = vmatprep.subr.bf16.mxu1 %v9327_v40  ;;  %v1506_v38 = vld [vmem:[#allocation9 + $0x6e8] sm:$0xff]  ;;  %v9372_v40 = vcombine.low %v1493_v18, %v1497_v19  ;;  %v9381_v42 = vcombine.high %v1501_v33, %v1505_v35 }
 0x1bc   :  { %v9383_v43 = vcombine.high %v1502_v37, %v1506_v38  ;;  %v9382_v47 = vcombine.low %v1502_v37, %v1506_v38  ;;  %v1546_v37 = vld [vmem:[#allocation9 + $0x828] sm:$0xff] }
 0x1be   :  { %4451 = vmatpush1.bf16.msra.mxu0 %v9324_v1  ;;  %4623 = vmatpush1.bf16.msra.mxu1 %v9326_v45  ;;  %v1513_v1 = vld [vmem:[#allocation9 + $0x720] sm:$0xff]  ;;  %v1510_v45 = vld [vmem:[#allocation9 + $0x708] sm:$0xff] }
 0x1bf   :  { %4452 = vmatprep.subr.bf16.mxu0 %v9333_v46  ;;  %4624 = vmatprep.subr.bf16.mxu1 %v9335_v22  ;;  %v1514_v46 = vld [vmem:[#allocation9 + $0x728] sm:$0xff]  ;;  %v9380_v22 = vcombine.low %v1501_v33, %v1505_v35  ;;  %v9389_v48 = vcombine.high %v1509_v44, %v1513_v1 }
 0x1c0   :  { %v9391_v50 = vcombine.high %v1510_v45, %v1514_v46  ;;  %v9390_v57 = vcombine.low %v1510_v45, %v1514_v46  ;;  %v1542_v35 = vld [vmem:[#allocation9 + $0x808] sm:$0xff] }
 0x1c2   :  { %4453 = vmatpush1.bf16.msra.mxu0 %v9332_v53  ;;  %4625 = vmatpush1.bf16.msra.mxu1 %v9334_v54  ;;  %v1521_v53 = vld [vmem:[#allocation9 + $0x760] sm:$0xff]  ;;  %v1518_v54 = vld [vmem:[#allocation9 + $0x748] sm:$0xff] }
 0x1c3   :  { %4454 = vmatprep.subr.bf16.mxu0 %v9341_v55  ;;  %4626 = vmatprep.subr.bf16.mxu1 %v9343_v56  ;;  %v1522_v55 = vld [vmem:[#allocation9 + $0x768] sm:$0xff]  ;;  %v9388_v56 = vcombine.low %v1509_v44, %v1513_v1  ;;  %v9397_v59 = vcombine.high %v1517_v51, %v1521_v53  ;;  %v9396_v3 = vcombine.low %v1517_v51, %v1521_v53  ;;  %v10799_v44 = vsub.s32 7, %v10729_v20  ;;  %v1553_v51 = vld [vmem:[#allocation9 + $0x860] sm:$0xff] }
 0x1c4   :  { %v9399_v60 = vcombine.high %v1518_v54, %v1522_v55  ;;  %v9398_v4 = vcombine.low %v1518_v54, %v1522_v55  ;;  %v1550_v53 = vld [vmem:[#allocation9 + $0x848] sm:$0xff] }
 0x1c5   :  { %v1554_v54 = vld [vmem:[#allocation9 + $0x868] sm:$0xff] }
 0x1c6   :  { %4455 = vmatpush1.bf16.msra.mxu0 %v9340_v61  ;;  %4627 = vmatpush1.bf16.msra.mxu1 %v9342_v62  ;;  %v1525_v61 = vld [vmem:[#allocation9 + $0x780] sm:$0xff]  ;;  %v10787_v62 = vsub.s32 5, %v10729_v20 }
 0x1c7   :  { %4456 = vmatprep.subr.bf16.mxu0 %v9349_v63  ;;  %4628 = vmatprep.subr.bf16.mxu1 %v9351_v0  ;;  %v1529_v63 = vld [vmem:[#allocation9 + $0x7a0] sm:$0xff]  ;;  %v1526_v0 = vld [vmem:[#allocation9 + $0x788] sm:$0xff] }
 0x1c8   :  { %v1194_v10 = vrot.slane %v10734_v23, %v10787_v62 }
 0x1ca   :  { %4457 = vmatpush1.bf16.msra.mxu0 %v9348_v6  ;;  %4629 = vmatpush1.bf16.msra.mxu1 %v9350_v7  ;;  %v1537_v6 = vld [vmem:[#allocation9 + $0x7e0] sm:$0xff]  ;;  %v1190_v7 = vrot.slane %v10734_v23, %v10784_v58 }
 0x1cb   :  { %4458 = vmatprep.subr.bf16.mxu0 %v9357_v11  ;;  %4630 = vmatprep.subr.bf16.mxu1 %v9359_v13  ;;  %v9405_v11 = vcombine.high %v1525_v61, %v1529_v63  ;;  %v9407_v13 = vcombine.high %v1526_v0, %v1530_v2  ;;  %v9413_v18 = vcombine.high %v1533_v5, %v1537_v6 }
 0x1ce   :  { %4459 = vmatpush1.bf16.msra.mxu0 %v9356_v12  ;;  %4631 = vmatpush1.bf16.msra.mxu1 %v9358_v16  ;;  %v9404_v12 = vcombine.low %v1525_v61, %v1529_v63  ;;  %v1202_v61 = vrot.slane %v10734_v23, %v10799_v44  ;;  %v9422_v63 = vcombine.low %v1542_v35, %v1546_v37 }
 0x1cf   :  { %4460 = vmatprep.subr.bf16.mxu0 %v9365_v17  ;;  %4632 = vmatprep.subr.bf16.mxu1 %v9367_v15  ;;  %v9406_v17 = vcombine.low %v1526_v0, %v1530_v2  ;;  %v9412_v15 = vcombine.low %v1533_v5, %v1537_v6  ;;  %v1557_v5 = vld [vmem:[#allocation9 + $0x880] sm:$0xff] }
 0x1d0   :  { %v1561_v6 = vld [vmem:[#allocation9 + $0x8a0] sm:$0xff] }
 0x1d2   :  { %4461 = vmatpush1.bf16.msra.mxu0 %v9364_v27  ;;  %4633 = vmatpush1.bf16.msra.mxu1 %v9366_v28  ;;  %v9415_v28 = vcombine.high %v1534_v14, %v1538_v8  ;;  %v1562_v14 = vld [vmem:[#allocation9 + $0x8a8] sm:$0xff] }
 0x1d3   :  { %4462 = vmatprep.subr.bf16.mxu0 %v9373_v31  ;;  %4634 = vmatprep.subr.bf16.mxu1 %v9375_v32  ;;  %v1541_v31 = vld [vmem:[#allocation9 + $0x800] sm:$0xff] }
 0x1d4   :  { %v1545_v32 = vld [vmem:[#allocation9 + $0x820] sm:$0xff] }
 0x1d5   :  { %v9421_v1 = vcombine.high %v1541_v31, %v1545_v32 }
 0x1d6   :  { %4463 = vmatpush1.bf16.msra.mxu0 %v9372_v40  ;;  %4635 = vmatpush1.bf16.msra.mxu1 %v9374_v41  ;;  %v10795_v41 = vsub.s32 6, %v10729_v20 }
 0x1d7   :  { %4464 = vmatprep.subr.bf16.mxu0 %v9381_v42  ;;  %4636 = vmatprep.subr.bf16.mxu1 %v9383_v43 }
 0x1d8   :  { %v1198_v55 = vrot.slane %v10734_v23, %v10795_v41  ;;  %v9430_v23 = vcombine.low %v1550_v53, %v1554_v54 }
 0x1da   :  { %4465 = vmatpush1.bf16.msra.mxu0 %v9380_v22  ;;  %4637 = vmatpush1.bf16.msra.mxu1 %v9382_v47  ;;  %v9423_v22 = vcombine.high %v1542_v35, %v1546_v37  ;;  %v1549_v47 = vld [vmem:[#allocation9 + $0x840] sm:$0xff] }
 0x1db   :  { %4466 = vmatprep.subr.bf16.mxu0 %v9389_v48  ;;  %4638 = vmatprep.subr.bf16.mxu1 %v9391_v50 }
 0x1de   :  { %4467 = vmatpush1.bf16.msra.mxu0 %v9388_v56  ;;  %4639 = vmatpush1.bf16.msra.mxu1 %v9390_v57  ;;  %v9420_v56 = vcombine.low %v1541_v31, %v1545_v32 }
 0x1df   :  { %4468 = vmatprep.subr.bf16.mxu0 %v9397_v59  ;;  %4640 = vmatprep.subr.bf16.mxu1 %v9399_v60 }
 0x1e1   :  { %v1066_v9 = vpop.f32.mrb[4].mxu0 }
 0x1e2   :  { %v1068_v16 = vpop.f32.mrb[5].mxu0  ;;  %4469 = vmatpush1.bf16.msra.mxu0 %v9396_v3  ;;  %4641 = vmatpush1.bf16.msra.mxu1 %v9398_v4  ;;  %v1215_v27 = vadd.f32 %v1190_v7, %v1066_v9  ;;  %v1109_v60 = vpop.f32.mrb[4].mxu1  ;;  %v9429_v3 = vcombine.high %v1549_v47, %v1553_v51  ;;  %v9431_v4 = vcombine.high %v1550_v53, %v1554_v54 }
 0x1e3   :  { %v1070_v19 = vpop.f32.mrb[6].mxu0  ;;  %4470 = vmatprep.subr.bf16.mxu0 %v9405_v11  ;;  %4642 = vmatprep.subr.bf16.mxu1 %v9407_v13  ;;  %v1216_v33 = vadd.f32 %v1194_v10, %v1068_v16  ;;  %v1111_v2 = vpop.f32.mrb[5].mxu1  ;;  %v9428_v11 = vcombine.low %v1549_v47, %v1553_v51  ;;  %v1558_v13 = vld [vmem:[#allocation9 + $0x888] sm:$0xff]  ;;  %v1217_v9 = vadd.f32 %v1198_v55, %v1109_v60 }
 0x1e4   :  { %v1072_v26 = vpop.f32.mrb[7].mxu0  ;;  %v1223_v38 = vadd.f32 %v1190_v7, %v1070_v19  ;;  %vm1232_vm8 = vcmp.gt.f32.partialorder %v1215_v27, 0.0  ;;  %v1249_v40 = vmul.f32 %v10743_v30, %v1215_v27  ;;  %v1113_v7 = vpop.f32.mrb[6].mxu1  ;;  %v1569_v19 = vld [vmem:[#allocation9 + $0x8e0] sm:$0xff]  ;;  %v1574_v47 = vld [vmem:[#allocation9 + $0x908] sm:$0xff] }
 0x1e5   :  { %v1224_v42 = vadd.f32 %v1194_v10, %v1072_v26  ;;  %vm1233_vm9 = vcmp.gt.f32.partialorder %v1216_v33, 0.0  ;;  %v1250_v43 = vmul.f32 %v10743_v30, %v1216_v33  ;;  %v1115_v8 = vpop.f32.mrb[7].mxu1  ;;  %v1218_v10 = vadd.f32 %v1202_v61, %v1111_v2 }
 0x1e6   :  { %4471 = vmatpush1.bf16.msra.mxu0 %v9404_v12  ;;  %4643 = vmatpush1.bf16.msra.mxu1 %v9406_v17  ;;  %vm1240_vm10 = vcmp.gt.f32.partialorder %v1223_v38, 0.0  ;;  %v1257_v45 = vmul.f32 %v10743_v30, %v1223_v38  ;;  %v1265_v46 = vsel %vm1232_vm8, %v1215_v27, %v1249_v40  ;;  %v9437_v12 = vcombine.high %v1557_v5, %v1561_v6  ;;  %v1566_v27 = vld [vmem:[#allocation9 + $0x8c8] sm:$0xff] }
 0x1e7   :  { %4472 = vmatprep.subr.bf16.mxu0 %v9413_v18  ;;  %4644 = vmatprep.subr.bf16.mxu1 %v9415_v28  ;;  %vm1241_vm11 = vcmp.gt.f32.partialorder %v1224_v42, 0.0  ;;  %v1258_v48 = vmul.f32 %v10743_v30, %v1224_v42  ;;  %v1266_v50 = vsel %vm1233_vm9, %v1216_v33, %v1250_v43  ;;  %v1225_v16 = vadd.f32 %v1198_v55, %v1113_v7  ;;  %v1565_v18 = vld [vmem:[#allocation9 + $0x8c0] sm:$0xff]  ;;  %v1570_v28 = vld [vmem:[#allocation9 + $0x8e8] sm:$0xff] }
 0x1e8   :  { %v1273_v20 = vsel %vm1240_vm10, %v1223_v38, %v1257_v45  ;;  %vm1234_vm12 = vcmp.gt.f32.partialorder %v1217_v9, 0.0  ;;  %v1251_v17 = vmul.f32 %v10743_v30, %v1217_v9  ;;  %vm1235_vm13 = vcmp.gt.f32.partialorder %v1218_v10, 0.0  ;;  %v1585_v55 = vld [vmem:[#allocation9 + $0x960] sm:$0xff] }
 0x1e9   :  { %v1274_v57 = vsel %vm1241_vm11, %v1224_v42, %v1258_v48  ;;  %v10805_v59 = vpack.c.bf16 %v1273_v20, %v1265_v46  ;;  %v1252_v26 = vmul.f32 %v10743_v30, %v1218_v10  ;;  %vm1242_vm14 = vcmp.gt.f32.partialorder %v1225_v16, 0.0  ;;  %v1578_v48 = vld [vmem:[#allocation9 + $0x928] sm:$0xff]  ;;  %v1581_v20 = vld [vmem:[#allocation9 + $0x940] sm:$0xff] }
 0x1ea   :  { %4473 = vmatpush1.bf16.msra.mxu0 %v9412_v15  ;;  %4645 = vmatpush1.bf16.msra.mxu1 %v9414_v25  ;;  %v10809_v0 = vpack.c.bf16 %v1274_v57, %v1266_v50  ;;  %v9439_v15 = vcombine.high %v1558_v13, %v1562_v14  ;;  %v1226_v25 = vadd.f32 %v1202_v61, %v1115_v8  ;;  %v1586_v57 = vld [vmem:[#allocation9 + $0x968] sm:$0xff]  ;;  %v1597_v8 = vld [vmem:[#allocation9 + $0x9c0] sm:$0xff] }
 0x1eb   :  { %4485 = vmatprep.subr.bf16.mxu0 %v9421_v1  ;;  %4657 = vmatprep.subr.bf16.mxu1 %v9423_v22  ;;  %v1259_v31 = vmul.f32 %v10743_v30, %v1225_v16  ;;  %v1267_v32 = vsel %vm1234_vm12, %v1217_v9, %v1251_v17  ;;  %v9436_v33 = vcombine.low %v1557_v5, %v1561_v6  ;;  %v1573_v1 = vld [vmem:[#allocation9 + $0x900] sm:$0xff]  ;;  %v1590_v5 = vld [vmem:[#allocation9 + $0x988] sm:$0xff] }
 0x1ec   :  { %vm1243_vm15 = vcmp.gt.f32.partialorder %v1226_v25, 0.0  ;;  %v1260_v35 = vmul.f32 %v10743_v30, %v1226_v25  ;;  %v1268_v37 = vsel %vm1235_vm13, %v1218_v10, %v1252_v26  ;;  %v9438_v38 = vcombine.low %v1558_v13, %v1562_v14  ;;  %v1577_v22 = vld [vmem:[#allocation9 + $0x920] sm:$0xff]  ;;  %v1594_v6 = vld [vmem:[#allocation9 + $0x9a8] sm:$0xff] }
 0x1ed   :  { %4475 = vmatmul.mubr.bf16.vlgmr.msra.gmra.mrb[8].mxu0 %v10777_v29  ;;  %4647 = vmatmul.mubr.bf16.vlgmr.msra.gmra.mrb[8].mxu1 %v10777_v29  ;;  %v9445_v40 = vcombine.high %v1565_v18, %v1569_v19  ;;  %v1275_v42 = vsel %vm1242_vm14, %v1225_v16, %v1259_v31  ;;  %v9447_v43 = vcombine.high %v1566_v27, %v1570_v28  ;;  %v1601_v9 = vld [vmem:[#allocation9 + $0x9e0] sm:$0xff]  ;;  %v1602_v10 = vld [vmem:[#allocation9 + $0x9e8] sm:$0xff] }
 0x1ee   :  { %4486 = vmatpush1.bf16.msra.mxu0 %v9420_v56  ;;  %4658 = vmatpush1.bf16.msra.mxu1 %v9422_v63  ;;  %v1276_v45 = vsel %vm1243_vm15, %v1226_v25, %v1260_v35  ;;  %v10820_v46 = vpack.c.bf16 %v1275_v42, %v1267_v32  ;;  %v9444_v30 = vcombine.low %v1565_v18, %v1569_v19  ;;  %v1582_v56 = vld [vmem:[#allocation9 + $0x948] sm:$0xff]  ;;  %v1605_v18 = vld [vmem:[#allocation9 + $0xa00] sm:$0xff] }
 0x1ef   :  { %4487 = vmatprep.subr.bf16.mxu0 %v9429_v3  ;;  %4659 = vmatprep.subr.bf16.mxu1 %v9431_v4  ;;  %v10822_v50 = vpack.c.bf16 %v1276_v45, %v1268_v37  ;;  %v9446_v51 = vcombine.low %v1566_v27, %v1570_v28  ;;  %v9453_v53 = vcombine.high %v1573_v1, %v1577_v22  ;;  %v1589_v3 = vld [vmem:[#allocation9 + $0x980] sm:$0xff]  ;;  %v1606_v25 = vld [vmem:[#allocation9 + $0xa08] sm:$0xff] }
 0x1f0   :  { %4517 = vmatprep.mubr.bf16.mxu0 %v10809_v0  ;;  %4689 = vmatprep.mubr.bf16.mxu1 %v10809_v0  ;;  %v9455_v54 = vcombine.high %v1574_v47, %v1578_v48  ;;  %v9452_v60 = vcombine.low %v1573_v1, %v1577_v22  ;;  %v9454_v61 = vcombine.low %v1574_v47, %v1578_v48  ;;  %v1593_v4 = vld [vmem:[#allocation9 + $0x9a0] sm:$0xff]  ;;  %v1610_v26 = vld [vmem:[#allocation9 + $0xa28] sm:$0xff] }
 0x1f1   :  { %v9461_v63 = vcombine.high %v1581_v20, %v1585_v55  ;;  %v9463_v2 = vcombine.high %v1582_v56, %v1586_v57  ;;  %v9460_v7 = vcombine.low %v1581_v20, %v1585_v55  ;;  %v9469_v13 = vcombine.high %v1589_v3, %v1593_v4  ;;  %v1609_v19 = vld [vmem:[#allocation9 + $0xa20] sm:$0xff]  ;;  %v1614_v37 = vld [vmem:[#allocation9 + $0xa48] sm:$0xff] }
 0x1f2   :  { %4488 = vmatpush1.bf16.msra.mxu0 %v9428_v11  ;;  %4660 = vmatpush1.bf16.msra.mxu1 %v9430_v23  ;;  %v9462_v11 = vcombine.low %v1582_v56, %v1586_v57  ;;  %v9471_v14 = vcombine.high %v1590_v5, %v1594_v6  ;;  %v1598_v23 = vld [vmem:[#allocation9 + $0x9c8] sm:$0xff]  ;;  %v9470_v16 = vcombine.low %v1590_v5, %v1594_v6  ;;  %v1617_v35 = vld [vmem:[#allocation9 + $0xa60] sm:$0xff] }
 0x1f3   :  { %4489 = vmatprep.subr.bf16.mxu0 %v9437_v12  ;;  %4661 = vmatprep.subr.bf16.mxu1 %v9439_v15  ;;  %v9468_v12 = vcombine.low %v1589_v3, %v1593_v4  ;;  %v9477_v17 = vcombine.high %v1597_v8, %v1601_v9  ;;  %v9479_v15 = vcombine.high %v1598_v23, %v1602_v10  ;;  %v1621_v45 = vld [vmem:[#allocation9 + $0xa80] sm:$0xff]  ;;  %v1622_v47 = vld [vmem:[#allocation9 + $0xa88] sm:$0xff] }
 0x1f4   :  { %v9476_v27 = vcombine.low %v1597_v8, %v1601_v9  ;;  %v9478_v28 = vcombine.low %v1598_v23, %v1602_v10  ;;  %v9485_v31 = vcombine.high %v1605_v18, %v1609_v19  ;;  %v9487_v32 = vcombine.high %v1606_v25, %v1610_v26  ;;  %v1625_v22 = vld [vmem:[#allocation9 + $0xaa0] sm:$0xff]  ;;  %v1626_v48 = vld [vmem:[#allocation9 + $0xaa8] sm:$0xff] }
 0x1f5   :  { %v9486_v42 = vcombine.low %v1606_v25, %v1610_v26  ;;  %v1629_v20 = vld [vmem:[#allocation9 + $0xac0] sm:$0xff]  ;;  %v1630_v56 = vld [vmem:[#allocation9 + $0xac8] sm:$0xff] }
 0x1f6   :  { %4490 = vmatpush1.bf16.msra.mxu0 %v9436_v33  ;;  %4662 = vmatpush1.bf16.msra.mxu1 %v9438_v38  ;;  %v1613_v33 = vld [vmem:[#allocation9 + $0xa40] sm:$0xff]  ;;  %v1618_v38 = vld [vmem:[#allocation9 + $0xa68] sm:$0xff] }
 0x1f7   :  { %4491 = vmatprep.subr.bf16.mxu0 %v9445_v40  ;;  %4663 = vmatprep.subr.bf16.mxu1 %v9447_v43  ;;  %v9484_v40 = vcombine.low %v1605_v18, %v1609_v19  ;;  %v9493_v43 = vcombine.high %v1613_v33, %v1617_v35  ;;  %v9495_v1 = vcombine.high %v1614_v37, %v1618_v38  ;;  %v1633_v55 = vld [vmem:[#allocation9 + $0xae0] sm:$0xff]  ;;  %v1634_v57 = vld [vmem:[#allocation9 + $0xae8] sm:$0xff] }
 0x1f8   :  { %v1637_v3 = vld [vmem:[#allocation9 + $0xb00] sm:$0xff]  ;;  %v1638_v5 = vld [vmem:[#allocation9 + $0xb08] sm:$0xff] }
 0x1f9   :  { %v1641_v4 = vld [vmem:[#allocation9 + $0xb20] sm:$0xff]  ;;  %v1642_v6 = vld [vmem:[#allocation9 + $0xb28] sm:$0xff] }
 0x1fa   :  { %4492 = vmatpush1.bf16.msra.mxu0 %v9444_v30  ;;  %4664 = vmatpush1.bf16.msra.mxu1 %v9446_v51  ;;  %v9492_v30 = vcombine.low %v1613_v33, %v1617_v35  ;;  %v9494_v51 = vcombine.low %v1614_v37, %v1618_v38  ;;  %v1645_v8 = vld [vmem:[#allocation9 + $0xb40] sm:$0xff]  ;;  %v1646_v23 = vld [vmem:[#allocation9 + $0xb48] sm:$0xff] }
 0x1fb   :  { %4493 = vmatprep.subr.bf16.mxu0 %v9453_v53  ;;  %4665 = vmatprep.subr.bf16.mxu1 %v9455_v54  ;;  %v9501_v53 = vcombine.high %v1621_v45, %v1625_v22  ;;  %v9503_v54 = vcombine.high %v1622_v47, %v1626_v48  ;;  %v1649_v9 = vld [vmem:[#allocation9 + $0xb60] sm:$0xff]  ;;  %v1650_v10 = vld [vmem:[#allocation9 + $0xb68] sm:$0xff] }
 0x1fc   :  { %v1653_v18 = vld [vmem:[#allocation9 + $0xb80] sm:$0xff]  ;;  %v1654_v25 = vld [vmem:[#allocation9 + $0xb88] sm:$0xff] }
 0x1fd   :  { %v1657_v19 = vld [vmem:[#allocation9 + $0xba0] sm:$0xff]  ;;  %v1658_v26 = vld [vmem:[#allocation9 + $0xba8] sm:$0xff] }
 0x1fe   :  { %4494 = vmatpush1.bf16.msra.mxu0 %v9452_v60  ;;  %4666 = vmatpush1.bf16.msra.mxu1 %v9454_v61  ;;  %v9500_v60 = vcombine.low %v1621_v45, %v1625_v22  ;;  %v9502_v61 = vcombine.low %v1622_v47, %v1626_v48  ;;  %v1661_v33 = vld [vmem:[#allocation9 + $0xbc0] sm:$0xff]  ;;  %v1662_v37 = vld [vmem:[#allocation9 + $0xbc8] sm:$0xff] }
 0x1ff   :  { %4495 = vmatprep.subr.bf16.mxu0 %v9461_v63  ;;  %4667 = vmatprep.subr.bf16.mxu1 %v9463_v2  ;;  %v9509_v63 = vcombine.high %v1629_v20, %v1633_v55  ;;  %v9511_v2 = vcombine.high %v1630_v56, %v1634_v57  ;;  %v1665_v35 = vld [vmem:[#allocation9 + $0xbe0] sm:$0xff]  ;;  %v1666_v38 = vld [vmem:[#allocation9 + $0xbe8] sm:$0xff] }
 0x200   :  { %v1669_v45 = vld [vmem:[#allocation9 + $0xc00] sm:$0xff]  ;;  %v1670_v47 = vld [vmem:[#allocation9 + $0xc08] sm:$0xff] }
 0x201   :  { %v1673_v22 = vld [vmem:[#allocation9 + $0xc20] sm:$0xff]  ;;  %v1674_v48 = vld [vmem:[#allocation9 + $0xc28] sm:$0xff] }
 0x202   :  { %4496 = vmatpush1.bf16.msra.mxu0 %v9460_v7  ;;  %4668 = vmatpush1.bf16.msra.mxu1 %v9462_v11  ;;  %v9508_v7 = vcombine.low %v1629_v20, %v1633_v55  ;;  %v9510_v11 = vcombine.low %v1630_v56, %v1634_v57  ;;  %v1677_v20 = vld [vmem:[#allocation9 + $0xc40] sm:$0xff]  ;;  %v1678_v56 = vld [vmem:[#allocation9 + $0xc48] sm:$0xff] }
 0x203   :  { %4497 = vmatprep.subr.bf16.mxu0 %v9469_v13  ;;  %4669 = vmatprep.subr.bf16.mxu1 %v9471_v14  ;;  %v9517_v13 = vcombine.high %v1637_v3, %v1641_v4  ;;  %v9519_v14 = vcombine.high %v1638_v5, %v1642_v6  ;;  %v1681_v55 = vld [vmem:[#allocation9 + $0xc60] sm:$0xff]  ;;  %v1682_v57 = vld [vmem:[#allocation9 + $0xc68] sm:$0xff] }
 0x206   :  { %4498 = vmatpush1.bf16.msra.mxu0 %v9468_v12  ;;  %4670 = vmatpush1.bf16.msra.mxu1 %v9470_v16  ;;  %v9516_v12 = vcombine.low %v1637_v3, %v1641_v4  ;;  %v9518_v16 = vcombine.low %v1638_v5, %v1642_v6  ;;  %v1685_v3 = vld [vmem:[#allocation9 + $0xc80] sm:$0xff]  ;;  %v1686_v5 = vld [vmem:[#allocation9 + $0xc88] sm:$0xff] }
 0x207   :  { %4499 = vmatprep.subr.bf16.mxu0 %v9477_v17  ;;  %4671 = vmatprep.subr.bf16.mxu1 %v9479_v15  ;;  %v9525_v17 = vcombine.high %v1645_v8, %v1649_v9  ;;  %v9527_v15 = vcombine.high %v1646_v23, %v1650_v10  ;;  %v1689_v4 = vld [vmem:[#allocation9 + $0xca0] sm:$0xff]  ;;  %v1690_v6 = vld [vmem:[#allocation9 + $0xca8] sm:$0xff] }
 0x20a   :  { %4500 = vmatpush1.bf16.msra.mxu0 %v9476_v27  ;;  %4672 = vmatpush1.bf16.msra.mxu1 %v9478_v28  ;;  %v9524_v27 = vcombine.low %v1645_v8, %v1649_v9  ;;  %v9526_v28 = vcombine.low %v1646_v23, %v1650_v10  ;;  %v1693_v8 = vld [vmem:[#allocation9 + $0xcc0] sm:$0xff]  ;;  %v1694_v23 = vld [vmem:[#allocation9 + $0xcc8] sm:$0xff] }
 0x20b   :  { %4501 = vmatprep.subr.bf16.mxu0 %v9485_v31  ;;  %4673 = vmatprep.subr.bf16.mxu1 %v9487_v32  ;;  %v9533_v31 = vcombine.high %v1653_v18, %v1657_v19  ;;  %v9535_v32 = vcombine.high %v1654_v25, %v1658_v26  ;;  %v1697_v9 = vld [vmem:[#allocation9 + $0xce0] sm:$0xff]  ;;  %v1698_v10 = vld [vmem:[#allocation9 + $0xce8] sm:$0xff] }
 0x20e   :  { %4502 = vmatpush1.bf16.msra.mxu0 %v9484_v40  ;;  %4674 = vmatpush1.bf16.msra.mxu1 %v9486_v42  ;;  %v9532_v40 = vcombine.low %v1653_v18, %v1657_v19  ;;  %v9534_v42 = vcombine.low %v1654_v25, %v1658_v26  ;;  %v1701_v18 = vld [vmem:[#allocation9 + $0xd00] sm:$0xff]  ;;  %v1702_v25 = vld [vmem:[#allocation9 + $0xd08] sm:$0xff] }
 0x20f   :  { %4503 = vmatprep.subr.bf16.mxu0 %v9493_v43  ;;  %4675 = vmatprep.subr.bf16.mxu1 %v9495_v1  ;;  %v9541_v43 = vcombine.high %v1661_v33, %v1665_v35  ;;  %v9543_v1 = vcombine.high %v1662_v37, %v1666_v38  ;;  %v1705_v19 = vld [vmem:[#allocation9 + $0xd20] sm:$0xff]  ;;  %v1706_v26 = vld [vmem:[#allocation9 + $0xd28] sm:$0xff] }
 0x212   :  { %4504 = vmatpush1.bf16.msra.mxu0 %v9492_v30  ;;  %4676 = vmatpush1.bf16.msra.mxu1 %v9494_v51  ;;  %v9540_v30 = vcombine.low %v1661_v33, %v1665_v35  ;;  %v9542_v51 = vcombine.low %v1662_v37, %v1666_v38  ;;  %v1709_v33 = vld [vmem:[#allocation9 + $0xd40] sm:$0xff]  ;;  %v1710_v37 = vld [vmem:[#allocation9 + $0xd48] sm:$0xff] }
 0x213   :  { %4505 = vmatprep.subr.bf16.mxu0 %v9501_v53  ;;  %4677 = vmatprep.subr.bf16.mxu1 %v9503_v54  ;;  %v9549_v53 = vcombine.high %v1669_v45, %v1673_v22  ;;  %v9551_v54 = vcombine.high %v1670_v47, %v1674_v48  ;;  %v1713_v35 = vld [vmem:[#allocation9 + $0xd60] sm:$0xff]  ;;  %v1714_v38 = vld [vmem:[#allocation9 + $0xd68] sm:$0xff] }
 0x216   :  { %4506 = vmatpush1.bf16.msra.mxu0 %v9500_v60  ;;  %4678 = vmatpush1.bf16.msra.mxu1 %v9502_v61  ;;  %v9548_v60 = vcombine.low %v1669_v45, %v1673_v22  ;;  %v9550_v61 = vcombine.low %v1670_v47, %v1674_v48  ;;  %v1717_v45 = vld [vmem:[#allocation9 + $0xd80] sm:$0xff]  ;;  %v1718_v47 = vld [vmem:[#allocation9 + $0xd88] sm:$0xff] }
 0x217   :  { %4507 = vmatprep.subr.bf16.mxu0 %v9509_v63  ;;  %4679 = vmatprep.subr.bf16.mxu1 %v9511_v2  ;;  %v9557_v63 = vcombine.high %v1677_v20, %v1681_v55  ;;  %v9559_v2 = vcombine.high %v1678_v56, %v1682_v57  ;;  %v1721_v22 = vld [vmem:[#allocation9 + $0xda0] sm:$0xff]  ;;  %v1722_v48 = vld [vmem:[#allocation9 + $0xda8] sm:$0xff] }
 0x21a   :  { %4508 = vmatpush1.bf16.msra.mxu0 %v9508_v7  ;;  %4680 = vmatpush1.bf16.msra.mxu1 %v9510_v11  ;;  %v9556_v7 = vcombine.low %v1677_v20, %v1681_v55  ;;  %v9558_v11 = vcombine.low %v1678_v56, %v1682_v57  ;;  %v1725_v20 = vld [vmem:[#allocation9 + $0xdc0] sm:$0xff]  ;;  %v1726_v56 = vld [vmem:[#allocation9 + $0xdc8] sm:$0xff] }
 0x21b   :  { %4509 = vmatprep.subr.bf16.mxu0 %v9517_v13  ;;  %4681 = vmatprep.subr.bf16.mxu1 %v9519_v14  ;;  %v9565_v13 = vcombine.high %v1685_v3, %v1689_v4  ;;  %v9567_v14 = vcombine.high %v1686_v5, %v1690_v6  ;;  %v1729_v55 = vld [vmem:[#allocation9 + $0xde0] sm:$0xff]  ;;  %v1730_v57 = vld [vmem:[#allocation9 + $0xde8] sm:$0xff] }
 0x21e   :  { %4510 = vmatpush1.bf16.msra.mxu0 %v9516_v12  ;;  %4682 = vmatpush1.bf16.msra.mxu1 %v9518_v16  ;;  %v9564_v12 = vcombine.low %v1685_v3, %v1689_v4  ;;  %v9566_v16 = vcombine.low %v1686_v5, %v1690_v6  ;;  %v1733_v3 = vld [vmem:[#allocation9 + $0xe00] sm:$0xff]  ;;  %v1734_v5 = vld [vmem:[#allocation9 + $0xe08] sm:$0xff] }
 0x21f   :  { %4511 = vmatprep.subr.bf16.mxu0 %v9525_v17  ;;  %4683 = vmatprep.subr.bf16.mxu1 %v9527_v15  ;;  %v9573_v17 = vcombine.high %v1693_v8, %v1697_v9  ;;  %v9575_v15 = vcombine.high %v1694_v23, %v1698_v10  ;;  %v1737_v4 = vld [vmem:[#allocation9 + $0xe20] sm:$0xff]  ;;  %v1738_v6 = vld [vmem:[#allocation9 + $0xe28] sm:$0xff] }
 0x222   :  { %4512 = vmatpush1.bf16.msra.mxu0 %v9524_v27  ;;  %4684 = vmatpush1.bf16.msra.mxu1 %v9526_v28  ;;  %v9572_v27 = vcombine.low %v1693_v8, %v1697_v9  ;;  %v9574_v28 = vcombine.low %v1694_v23, %v1698_v10  ;;  %v1741_v8 = vld [vmem:[#allocation9 + $0xe40] sm:$0xff]  ;;  %v1742_v23 = vld [vmem:[#allocation9 + $0xe48] sm:$0xff] }
 0x223   :  { %4513 = vmatprep.subr.bf16.mxu0 %v9533_v31  ;;  %4685 = vmatprep.subr.bf16.mxu1 %v9535_v32  ;;  %v9581_v31 = vcombine.high %v1701_v18, %v1705_v19  ;;  %v9583_v32 = vcombine.high %v1702_v25, %v1706_v26  ;;  %v1745_v9 = vld [vmem:[#allocation9 + $0xe60] sm:$0xff]  ;;  %v1746_v10 = vld [vmem:[#allocation9 + $0xe68] sm:$0xff] }
 0x226   :  { %4514 = vmatpush1.bf16.msra.mxu0 %v9532_v40  ;;  %4686 = vmatpush1.bf16.msra.mxu1 %v9534_v42  ;;  %v9580_v40 = vcombine.low %v1701_v18, %v1705_v19  ;;  %v9582_v42 = vcombine.low %v1702_v25, %v1706_v26  ;;  %v1749_v18 = vld [vmem:[#allocation9 + $0xe80] sm:$0xff]  ;;  %v1750_v25 = vld [vmem:[#allocation9 + $0xe88] sm:$0xff] }
 0x227   :  { %4515 = vmatprep.subr.bf16.mxu0 %v9541_v43  ;;  %4687 = vmatprep.subr.bf16.mxu1 %v9543_v1  ;;  %v9589_v43 = vcombine.high %v1709_v33, %v1713_v35  ;;  %v9591_v1 = vcombine.high %v1710_v37, %v1714_v38  ;;  %v1753_v19 = vld [vmem:[#allocation9 + $0xea0] sm:$0xff]  ;;  %v1754_v26 = vld [vmem:[#allocation9 + $0xea8] sm:$0xff] }
 0x22a   :  { %4516 = vmatpush1.bf16.msra.mxu0 %v9540_v30  ;;  %4688 = vmatpush1.bf16.msra.mxu1 %v9542_v51  ;;  %v9588_v30 = vcombine.low %v1709_v33, %v1713_v35  ;;  %v9590_v51 = vcombine.low %v1710_v37, %v1714_v38  ;;  %v1757_v33 = vld [vmem:[#allocation9 + $0xec0] sm:$0xff]  ;;  %v1758_v37 = vld [vmem:[#allocation9 + $0xec8] sm:$0xff] }
 0x22b   :  { %4528 = vmatprep.subr.bf16.mxu0 %v9549_v53  ;;  %4700 = vmatprep.subr.bf16.mxu1 %v9551_v54  ;;  %v9597_v53 = vcombine.high %v1717_v45, %v1721_v22  ;;  %v9599_v54 = vcombine.high %v1718_v47, %v1722_v48  ;;  %v1761_v35 = vld [vmem:[#allocation9 + $0xee0] sm:$0xff]  ;;  %v1762_v38 = vld [vmem:[#allocation9 + $0xee8] sm:$0xff] }
 0x22d   :  { %4518 = vmatmul.mubr.bf16.vlgmr.msra.gmra.mrb[8].mxu0 %v10805_v59  ;;  %4690 = vmatmul.mubr.bf16.vlgmr.msra.gmra.mrb[8].mxu1 %v10805_v59 }
 0x22e   :  { %4529 = vmatpush1.bf16.msra.mxu0 %v9548_v60  ;;  %4701 = vmatpush1.bf16.msra.mxu1 %v9550_v61  ;;  %v9596_v60 = vcombine.low %v1717_v45, %v1721_v22  ;;  %v9598_v61 = vcombine.low %v1718_v47, %v1722_v48  ;;  %v1765_v45 = vld [vmem:[#allocation9 + $0xf00] sm:$0xff]  ;;  %v1766_v47 = vld [vmem:[#allocation9 + $0xf08] sm:$0xff] }
 0x22f   :  { %4530 = vmatprep.subr.bf16.mxu0 %v9557_v63  ;;  %4702 = vmatprep.subr.bf16.mxu1 %v9559_v2  ;;  %v9605_v63 = vcombine.high %v1725_v20, %v1729_v55  ;;  %v9607_v2 = vcombine.high %v1726_v56, %v1730_v57  ;;  %v1769_v22 = vld [vmem:[#allocation9 + $0xf20] sm:$0xff]  ;;  %v1770_v48 = vld [vmem:[#allocation9 + $0xf28] sm:$0xff] }
 0x230   :  { %4560 = vmatprep.mubr.bf16.mxu0 %v10822_v50  ;;  %4732 = vmatprep.mubr.bf16.mxu1 %v10822_v50 }
 0x232   :  { %4531 = vmatpush1.bf16.msra.mxu0 %v9556_v7  ;;  %4703 = vmatpush1.bf16.msra.mxu1 %v9558_v11  ;;  %v9604_v7 = vcombine.low %v1725_v20, %v1729_v55  ;;  %v9606_v11 = vcombine.low %v1726_v56, %v1730_v57  ;;  %v1773_v20 = vld [vmem:[#allocation9 + $0xf40] sm:$0xff]  ;;  %v1774_v56 = vld [vmem:[#allocation9 + $0xf48] sm:$0xff] }
 0x233   :  { %4532 = vmatprep.subr.bf16.mxu0 %v9565_v13  ;;  %4704 = vmatprep.subr.bf16.mxu1 %v9567_v14  ;;  %v9613_v13 = vcombine.high %v1733_v3, %v1737_v4  ;;  %v9615_v14 = vcombine.high %v1734_v5, %v1738_v6  ;;  %v1777_v55 = vld [vmem:[#allocation9 + $0xf60] sm:$0xff]  ;;  %v1778_v57 = vld [vmem:[#allocation9 + $0xf68] sm:$0xff] }
 0x236   :  { %4533 = vmatpush1.bf16.msra.mxu0 %v9564_v12  ;;  %4705 = vmatpush1.bf16.msra.mxu1 %v9566_v16  ;;  %v9612_v12 = vcombine.low %v1733_v3, %v1737_v4  ;;  %v9614_v16 = vcombine.low %v1734_v5, %v1738_v6  ;;  %v1781_v3 = vld [vmem:[#allocation9 + $0xf80] sm:$0xff]  ;;  %v1782_v5 = vld [vmem:[#allocation9 + $0xf88] sm:$0xff] }
 0x237   :  { %4534 = vmatprep.subr.bf16.mxu0 %v9573_v17  ;;  %4706 = vmatprep.subr.bf16.mxu1 %v9575_v15  ;;  %v9621_v17 = vcombine.high %v1741_v8, %v1745_v9  ;;  %v9623_v15 = vcombine.high %v1742_v23, %v1746_v10  ;;  %v1785_v4 = vld [vmem:[#allocation9 + $0xfa0] sm:$0xff]  ;;  %v1786_v6 = vld [vmem:[#allocation9 + $0xfa8] sm:$0xff] }
 0x23a   :  { %4535 = vmatpush1.bf16.msra.mxu0 %v9572_v27  ;;  %4707 = vmatpush1.bf16.msra.mxu1 %v9574_v28  ;;  %v9620_v27 = vcombine.low %v1741_v8, %v1745_v9  ;;  %v9622_v28 = vcombine.low %v1742_v23, %v1746_v10  ;;  %v1789_v8 = vld [vmem:[#allocation9 + $0xfc0] sm:$0xff]  ;;  %v1790_v23 = vld [vmem:[#allocation9 + $0xfc8] sm:$0xff] }
 0x23b   :  { %4536 = vmatprep.subr.bf16.mxu0 %v9581_v31  ;;  %4708 = vmatprep.subr.bf16.mxu1 %v9583_v32  ;;  %v9629_v31 = vcombine.high %v1749_v18, %v1753_v19  ;;  %v9631_v32 = vcombine.high %v1750_v25, %v1754_v26  ;;  %v1793_v9 = vld [vmem:[#allocation9 + $0xfe0] sm:$0xff]  ;;  %v1794_v10 = vld [vmem:[#allocation9 + $0xfe8] sm:$0xff] }
 0x23e   :  { %4537 = vmatpush1.bf16.msra.mxu0 %v9580_v40  ;;  %4709 = vmatpush1.bf16.msra.mxu1 %v9582_v42  ;;  %v9628_v40 = vcombine.low %v1749_v18, %v1753_v19  ;;  %v9630_v42 = vcombine.low %v1750_v25, %v1754_v26  ;;  %v1287_v18 = vld [vmem:[#allocation9 + $0x10] sm:$0xff]  ;;  %v1288_v25 = vld [vmem:[#allocation9 + $0x18] sm:$0xff] }
 0x23f   :  { %4538 = vmatprep.subr.bf16.mxu0 %v9589_v43  ;;  %4710 = vmatprep.subr.bf16.mxu1 %v9591_v1  ;;  %v9637_v43 = vcombine.high %v1757_v33, %v1761_v35  ;;  %v9639_v1 = vcombine.high %v1758_v37, %v1762_v38  ;;  %v1291_v19 = vld [vmem:[#allocation9 + $0x30] sm:$0xff]  ;;  %v1292_v26 = vld [vmem:[#allocation9 + $0x38] sm:$0xff] }
 0x242   :  { %4539 = vmatpush1.bf16.msra.mxu0 %v9588_v30  ;;  %4711 = vmatpush1.bf16.msra.mxu1 %v9590_v51  ;;  %v9636_v30 = vcombine.low %v1757_v33, %v1761_v35  ;;  %v9638_v51 = vcombine.low %v1758_v37, %v1762_v38  ;;  %v1295_v33 = vld [vmem:[#allocation9 + $0x50] sm:$0xff]  ;;  %v1296_v37 = vld [vmem:[#allocation9 + $0x58] sm:$0xff] }
 0x243   :  { %4540 = vmatprep.subr.bf16.mxu0 %v9597_v53  ;;  %4712 = vmatprep.subr.bf16.mxu1 %v9599_v54  ;;  %v9645_v53 = vcombine.high %v1765_v45, %v1769_v22  ;;  %v9647_v54 = vcombine.high %v1766_v47, %v1770_v48  ;;  %v1299_v35 = vld [vmem:[#allocation9 + $0x70] sm:$0xff]  ;;  %v1300_v38 = vld [vmem:[#allocation9 + $0x78] sm:$0xff] }
 0x246   :  { %4541 = vmatpush1.bf16.msra.mxu0 %v9596_v60  ;;  %4713 = vmatpush1.bf16.msra.mxu1 %v9598_v61  ;;  %v9644_v60 = vcombine.low %v1765_v45, %v1769_v22  ;;  %v9646_v61 = vcombine.low %v1766_v47, %v1770_v48  ;;  %v1303_v45 = vld [vmem:[#allocation9 + $0x90] sm:$0xff]  ;;  %v1304_v47 = vld [vmem:[#allocation9 + $0x98] sm:$0xff] }
 0x247   :  { %4542 = vmatprep.subr.bf16.mxu0 %v9605_v63  ;;  %4714 = vmatprep.subr.bf16.mxu1 %v9607_v2  ;;  %v9653_v63 = vcombine.high %v1773_v20, %v1777_v55  ;;  %v9655_v2 = vcombine.high %v1774_v56, %v1778_v57  ;;  %v1307_v22 = vld [vmem:[#allocation9 + $0xb0] sm:$0xff]  ;;  %v1308_v48 = vld [vmem:[#allocation9 + $0xb8] sm:$0xff] }
 0x24a   :  { %4543 = vmatpush1.bf16.msra.mxu0 %v9604_v7  ;;  %4715 = vmatpush1.bf16.msra.mxu1 %v9606_v11  ;;  %v9652_v7 = vcombine.low %v1773_v20, %v1777_v55  ;;  %v9654_v11 = vcombine.low %v1774_v56, %v1778_v57  ;;  %v1311_v20 = vld [vmem:[#allocation9 + $0xd0] sm:$0xff]  ;;  %v1312_v56 = vld [vmem:[#allocation9 + $0xd8] sm:$0xff] }
 0x24b   :  { %4544 = vmatprep.subr.bf16.mxu0 %v9613_v13  ;;  %4716 = vmatprep.subr.bf16.mxu1 %v9615_v14  ;;  %v9661_v13 = vcombine.high %v1781_v3, %v1785_v4  ;;  %v9663_v14 = vcombine.high %v1782_v5, %v1786_v6  ;;  %v1315_v55 = vld [vmem:[#allocation9 + $0xf0] sm:$0xff]  ;;  %v1316_v57 = vld [vmem:[#allocation9 + $0xf8] sm:$0xff] }
 0x24e   :  { %4545 = vmatpush1.bf16.msra.mxu0 %v9612_v12  ;;  %4717 = vmatpush1.bf16.msra.mxu1 %v9614_v16  ;;  %v9660_v12 = vcombine.low %v1781_v3, %v1785_v4  ;;  %v9662_v16 = vcombine.low %v1782_v5, %v1786_v6  ;;  %v1319_v3 = vld [vmem:[#allocation9 + $0x110] sm:$0xff]  ;;  %v1324_v5 = vld [vmem:[#allocation9 + $0x138] sm:$0xff]  ;;  %v9192_v6 = vcombine.low %v1311_v20, %v1315_v55 }
 0x24f   :  { %4546 = vmatprep.subr.bf16.mxu0 %v9621_v17  ;;  %4718 = vmatprep.subr.bf16.mxu1 %v9623_v15  ;;  %v9669_v17 = vcombine.high %v1789_v8, %v1793_v9  ;;  %v9671_v15 = vcombine.high %v1790_v23, %v1794_v10  ;;  %v1323_v4 = vld [vmem:[#allocation9 + $0x130] sm:$0xff] }
 0x252   :  { %4547 = vmatpush1.bf16.msra.mxu0 %v9620_v27  ;;  %4719 = vmatpush1.bf16.msra.mxu1 %v9622_v28  ;;  %v9668_v27 = vcombine.low %v1789_v8, %v1793_v9  ;;  %v9670_v28 = vcombine.low %v1790_v23, %v1794_v10  ;;  %v1331_v8 = vld [vmem:[#allocation9 + $0x170] sm:$0xff]  ;;  %v1328_v9 = vld [vmem:[#allocation9 + $0x158] sm:$0xff]  ;;  %v9200_v10 = vcombine.low %v1319_v3, %v1323_v4 }
 0x253   :  { %4548 = vmatprep.subr.bf16.mxu0 %v9629_v31  ;;  %4720 = vmatprep.subr.bf16.mxu1 %v9631_v32  ;;  %v9169_v31 = vcombine.high %v1287_v18, %v1291_v19  ;;  %v9171_v32 = vcombine.high %v1288_v25, %v1292_v26  ;;  %v1332_v23 = vld [vmem:[#allocation9 + $0x178] sm:$0xff] }
 0x256   :  { %4549 = vmatpush1.bf16.msra.mxu0 %v9628_v40  ;;  %4721 = vmatpush1.bf16.msra.mxu1 %v9630_v42  ;;  %v9168_v40 = vcombine.low %v1287_v18, %v1291_v19  ;;  %v9170_v42 = vcombine.low %v1288_v25, %v1292_v26  ;;  %v1339_v18 = vld [vmem:[#allocation9 + $0x1b0] sm:$0xff]  ;;  %v1336_v19 = vld [vmem:[#allocation9 + $0x198] sm:$0xff] }
 0x257   :  { %4550 = vmatprep.subr.bf16.mxu0 %v9637_v43  ;;  %4722 = vmatprep.subr.bf16.mxu1 %v9639_v1  ;;  %v9177_v43 = vcombine.high %v1295_v33, %v1299_v35  ;;  %v9179_v1 = vcombine.high %v1296_v37, %v1300_v38  ;;  %v1340_v25 = vld [vmem:[#allocation9 + $0x1b8] sm:$0xff] }
 0x25a   :  { %4551 = vmatpush1.bf16.msra.mxu0 %v9636_v30  ;;  %4723 = vmatpush1.bf16.msra.mxu1 %v9638_v51  ;;  %v9176_v30 = vcombine.low %v1295_v33, %v1299_v35  ;;  %v9178_v51 = vcombine.low %v1296_v37, %v1300_v38  ;;  %v1347_v33 = vld [vmem:[#allocation9 + $0x1f0] sm:$0xff]  ;;  %v1344_v35 = vld [vmem:[#allocation9 + $0x1d8] sm:$0xff] }
 0x25b   :  { %4552 = vmatprep.subr.bf16.mxu0 %v9645_v53  ;;  %4724 = vmatprep.subr.bf16.mxu1 %v9647_v54  ;;  %v9185_v53 = vcombine.high %v1303_v45, %v1307_v22  ;;  %v9187_v54 = vcombine.high %v1304_v47, %v1308_v48  ;;  %v1348_v37 = vld [vmem:[#allocation9 + $0x1f8] sm:$0xff] }
 0x25e   :  { %4553 = vmatpush1.bf16.msra.mxu0 %v9644_v60  ;;  %4725 = vmatpush1.bf16.msra.mxu1 %v9646_v61  ;;  %v9184_v60 = vcombine.low %v1303_v45, %v1307_v22  ;;  %v9186_v61 = vcombine.low %v1304_v47, %v1308_v48  ;;  %v1355_v45 = vld [vmem:[#allocation9 + $0x230] sm:$0xff]  ;;  %v1352_v22 = vld [vmem:[#allocation9 + $0x218] sm:$0xff] }
 0x25f   :  { %4554 = vmatprep.subr.bf16.mxu0 %v9653_v63  ;;  %4726 = vmatprep.subr.bf16.mxu1 %v9655_v2  ;;  %v9193_v63 = vcombine.high %v1311_v20, %v1315_v55  ;;  %v9195_v2 = vcombine.high %v1312_v56, %v1316_v57  ;;  %v1356_v47 = vld [vmem:[#allocation9 + $0x238] sm:$0xff]  ;;  %v1363_v20 = vld [vmem:[#allocation9 + $0x270] sm:$0xff] }
 0x260   :  { %v1360_v55 = vld [vmem:[#allocation9 + $0x258] sm:$0xff] }
 0x262   :  { %4555 = vmatpush1.bf16.msra.mxu0 %v9652_v7  ;;  %4727 = vmatpush1.bf16.msra.mxu1 %v9654_v11  ;;  %v9194_v7 = vcombine.low %v1312_v56, %v1316_v57  ;;  %v9201_v11 = vcombine.high %v1319_v3, %v1323_v4  ;;  %v1364_v56 = vld [vmem:[#allocation9 + $0x278] sm:$0xff]  ;;  %v1371_v3 = vld [vmem:[#allocation9 + $0x2b0] sm:$0xff] }
 0x263   :  { %4556 = vmatprep.subr.bf16.mxu0 %v9661_v13  ;;  %4728 = vmatprep.subr.bf16.mxu1 %v9663_v14  ;;  %v1327_v14 = vld [vmem:[#allocation9 + $0x150] sm:$0xff]  ;;  %v1368_v4 = vld [vmem:[#allocation9 + $0x298] sm:$0xff] }
 0x264   :  { %v9208_v26 = vcombine.low %v1327_v14, %v1331_v8 }
 0x266   :  { %4557 = vmatpush1.bf16.msra.mxu0 %v9660_v12  ;;  %4729 = vmatpush1.bf16.msra.mxu1 %v9662_v16  ;;  %v9209_v16 = vcombine.high %v1327_v14, %v1331_v8  ;;  %v1379_v14 = vld [vmem:[#allocation9 + $0x2f0] sm:$0xff]  ;;  %v1376_v8 = vld [vmem:[#allocation9 + $0x2d8] sm:$0xff] }
 0x267   :  { %4558 = vmatprep.subr.bf16.mxu0 %v9669_v17  ;;  %4730 = vmatprep.subr.bf16.mxu1 %v9671_v15  ;;  %v9211_v17 = vcombine.high %v1328_v9, %v1332_v23  ;;  %v1335_v15 = vld [vmem:[#allocation9 + $0x190] sm:$0xff] }
 0x268   :  { %v9216_v38 = vcombine.low %v1335_v15, %v1339_v18 }
 0x26a   :  { %4559 = vmatpush1.bf16.msra.mxu0 %v9668_v27  ;;  %4731 = vmatpush1.bf16.msra.mxu1 %v9670_v28  ;;  %v9210_v27 = vcombine.low %v1328_v9, %v1332_v23  ;;  %v9217_v28 = vcombine.high %v1335_v15, %v1339_v18  ;;  %v1380_v9 = vld [vmem:[#allocation9 + $0x2f8] sm:$0xff]  ;;  %v1387_v15 = vld [vmem:[#allocation9 + $0x330] sm:$0xff] }
 0x26b   :  { %4743 = vmatprep.subr.bf16.mxu0 %v9169_v31  ;;  %4915 = vmatprep.subr.bf16.mxu1 %v9171_v32  ;;  %v9219_v31 = vcombine.high %v1336_v19, %v1340_v25  ;;  %v1343_v32 = vld [vmem:[#allocation9 + $0x1d0] sm:$0xff]  ;;  %v1384_v18 = vld [vmem:[#allocation9 + $0x318] sm:$0xff] }
 0x26c   :  { %v9224_v48 = vcombine.low %v1343_v32, %v1347_v33 }
 0x26d   :  { %4561 = vmatmul.mubr.bf16.vlgmr.msra.gmra.mrb[8].mxu0 %v10820_v46  ;;  %4733 = vmatmul.mubr.bf16.vlgmr.msra.gmra.mrb[8].mxu1 %v10820_v46 }
 0x26e   :  { %4744 = vmatpush1.bf16.msra.mxu0 %v9168_v40  ;;  %4775 = vmatprep.mubr.bf16.mxu0 %v10761_v52  ;;  %v9218_v40 = vcombine.low %v1336_v19, %v1340_v25  ;;  %v1388_v19 = vld [vmem:[#allocation9 + $0x338] sm:$0xff] }
 0x26f   :  { %4916 = vmatpush1.bf16.msra.mxu1 %v9170_v42  ;;  %4947 = vmatprep.mubr.bf16.mxu1 %v10761_v52  ;;  %v1320_v52 = vld [vmem:[#allocation9 + $0x118] sm:$0xff]  ;;  %v9225_v42 = vcombine.high %v1343_v32, %v1347_v33  ;;  %v1395_v32 = vld [vmem:[#allocation9 + $0x370] sm:$0xff] }
 0x270   :  { %4745 = vmatprep.subr.bf16.mxu0 %v9177_v43  ;;  %4917 = vmatprep.subr.bf16.mxu1 %v9179_v1  ;;  %v9203_v13 = vcombine.high %v1320_v52, %v1324_v5  ;;  %v9202_v12 = vcombine.low %v1320_v52, %v1324_v5  ;;  %v9227_v43 = vcombine.high %v1344_v35, %v1348_v37  ;;  %v1351_v1 = vld [vmem:[#allocation9 + $0x210] sm:$0xff]  ;;  %v1372_v52 = vld [vmem:[#allocation9 + $0x2b8] sm:$0xff] }
 0x271   :  { %v9232_v57 = vcombine.low %v1351_v1, %v1355_v45  ;;  %v1392_v33 = vld [vmem:[#allocation9 + $0x358] sm:$0xff] }
 0x272   :  { %4746 = vmatpush1.bf16.msra.mxu0 %v9176_v30  ;;  %v9226_v30 = vcombine.low %v1344_v35, %v1348_v37  ;;  %v1396_v35 = vld [vmem:[#allocation9 + $0x378] sm:$0xff] }
 0x273   :  { %4918 = vmatpush1.bf16.msra.mxu1 %v9178_v51  ;;  %4747 = vmatprep.subr.bf16.mxu0 %v9185_v53  ;;  %v9233_v51 = vcombine.high %v1351_v1, %v1355_v45  ;;  %v9235_v53 = vcombine.high %v1352_v22, %v1356_v47  ;;  %v1403_v1 = vld [vmem:[#allocation9 + $0x3b0] sm:$0xff]  ;;  %v1400_v45 = vld [vmem:[#allocation9 + $0x398] sm:$0xff] }
 0x274   :  { %4919 = vmatprep.subr.bf16.mxu1 %v9187_v54  ;;  %v1359_v54 = vld [vmem:[#allocation9 + $0x250] sm:$0xff] }
 0x275   :  { %v9240_v5 = vcombine.low %v1359_v54, %v1363_v20 }
 0x276   :  { %4748 = vmatpush1.bf16.msra.mxu0 %v9184_v60  ;;  %v9234_v60 = vcombine.low %v1352_v22, %v1356_v47  ;;  %v1404_v22 = vld [vmem:[#allocation9 + $0x3b8] sm:$0xff] }
 0x277   :  { %4920 = vmatpush1.bf16.msra.mxu1 %v9186_v61  ;;  %4749 = vmatprep.subr.bf16.mxu0 %v9193_v63  ;;  %v9241_v61 = vcombine.high %v1359_v54, %v1363_v20  ;;  %v9243_v63 = vcombine.high %v1360_v55, %v1364_v56  ;;  %v1411_v54 = vld [vmem:[#allocation9 + $0x3f0] sm:$0xff]  ;;  %v1408_v20 = vld [vmem:[#allocation9 + $0x3d8] sm:$0xff] }
 0x278   :  { %4921 = vmatprep.subr.bf16.mxu1 %v9195_v2  ;;  %v1367_v2 = vld [vmem:[#allocation9 + $0x290] sm:$0xff] }
 0x279   :  { %v9248_v23 = vcombine.low %v1367_v2, %v1371_v3 }
 0x27a   :  { %4750 = vmatpush1.bf16.msra.mxu0 %v9192_v6  ;;  %v9242_v6 = vcombine.low %v1360_v55, %v1364_v56  ;;  %v1412_v55 = vld [vmem:[#allocation9 + $0x3f8] sm:$0xff] }
 0x27b   :  { %4922 = vmatpush1.bf16.msra.mxu1 %v9194_v7  ;;  %4751 = vmatprep.subr.bf16.mxu0 %v9201_v11  ;;  %v9249_v7 = vcombine.high %v1367_v2, %v1371_v3  ;;  %v9251_v11 = vcombine.high %v1368_v4, %v1372_v52  ;;  %v1419_v2 = vld [vmem:[#allocation9 + $0x430] sm:$0xff]  ;;  %v1416_v3 = vld [vmem:[#allocation9 + $0x418] sm:$0xff] }
 0x27c   :  { %4923 = vmatprep.subr.bf16.mxu1 %v9203_v13  ;;  %v1375_v13 = vld [vmem:[#allocation9 + $0x2d0] sm:$0xff] }
 0x27d   :  { %v9256_v25 = vcombine.low %v1375_v13, %v1379_v14 }
 0x27e   :  { %4752 = vmatpush1.bf16.msra.mxu0 %v9200_v10  ;;  %v9250_v10 = vcombine.low %v1368_v4, %v1372_v52  ;;  %v1420_v4 = vld [vmem:[#allocation9 + $0x438] sm:$0xff] }
 0x27f   :  { %4924 = vmatpush1.bf16.msra.mxu1 %v9202_v12  ;;  %4753 = vmatprep.subr.bf16.mxu0 %v9209_v16  ;;  %v9257_v12 = vcombine.high %v1375_v13, %v1379_v14  ;;  %v9259_v16 = vcombine.high %v1376_v8, %v1380_v9  ;;  %v1427_v13 = vld [vmem:[#allocation9 + $0x470] sm:$0xff] }
 0x280   :  { %4925 = vmatprep.subr.bf16.mxu1 %v9211_v17  ;;  %v1383_v17 = vld [vmem:[#allocation9 + $0x310] sm:$0xff] }
 0x281   :  { %v9264_v37 = vcombine.low %v1383_v17, %v1387_v15 }
 0x282   :  { %4754 = vmatpush1.bf16.msra.mxu0 %v9208_v26  ;;  %v9258_v26 = vcombine.low %v1376_v8, %v1380_v9  ;;  %v1424_v8 = vld [vmem:[#allocation9 + $0x458] sm:$0xff] }
 0x283   :  { %4926 = vmatpush1.bf16.msra.mxu1 %v9210_v27  ;;  %4755 = vmatprep.subr.bf16.mxu0 %v9217_v28  ;;  %v9265_v27 = vcombine.high %v1383_v17, %v1387_v15  ;;  %v9267_v28 = vcombine.high %v1384_v18, %v1388_v19  ;;  %v1428_v9 = vld [vmem:[#allocation9 + $0x478] sm:$0xff] }
 0x284   :  { %4927 = vmatprep.subr.bf16.mxu1 %v9219_v31  ;;  %v1391_v31 = vld [vmem:[#allocation9 + $0x350] sm:$0xff]  ;;  %v9307_v17 = vcombine.high %v1424_v8, %v1428_v9  ;;  %v1432_v15 = vld [vmem:[#allocation9 + $0x498] sm:$0xff] }
 0x285   :  { %v9272_v47 = vcombine.low %v1391_v31, %v1395_v32 }
 0x286   :  { %4756 = vmatpush1.bf16.msra.mxu0 %v9216_v38  ;;  %v9266_v38 = vcombine.low %v1384_v18, %v1388_v19  ;;  %v1436_v18 = vld [vmem:[#allocation9 + $0x4b8] sm:$0xff] }
 0x287   :  { %4928 = vmatpush1.bf16.msra.mxu1 %v9218_v40  ;;  %4757 = vmatprep.subr.bf16.mxu0 %v9225_v42  ;;  %v9273_v40 = vcombine.high %v1391_v31, %v1395_v32  ;;  %v9275_v42 = vcombine.high %v1392_v33, %v1396_v35  ;;  %v1443_v31 = vld [vmem:[#allocation9 + $0x4f0] sm:$0xff]  ;;  %v1440_v32 = vld [vmem:[#allocation9 + $0x4d8] sm:$0xff] }
 0x288   :  { %4929 = vmatprep.subr.bf16.mxu1 %v9227_v43  ;;  %v1399_v43 = vld [vmem:[#allocation9 + $0x390] sm:$0xff] }
 0x289   :  { %v9280_v56 = vcombine.low %v1399_v43, %v1403_v1 }
 0x28a   :  { %4758 = vmatpush1.bf16.msra.mxu0 %v9224_v48  ;;  %v9274_v48 = vcombine.low %v1392_v33, %v1396_v35  ;;  %v1444_v33 = vld [vmem:[#allocation9 + $0x4f8] sm:$0xff] }
 0x28b   :  { %4930 = vmatpush1.bf16.msra.mxu1 %v9226_v30  ;;  %4759 = vmatprep.subr.bf16.mxu0 %v9233_v51  ;;  %v9281_v30 = vcombine.high %v1399_v43, %v1403_v1  ;;  %v9283_v51 = vcombine.high %v1400_v45, %v1404_v22  ;;  %v1448_v43 = vld [vmem:[#allocation9 + $0x518] sm:$0xff] }
 0x28c   :  { %4931 = vmatprep.subr.bf16.mxu1 %v9235_v53  ;;  %v1407_v53 = vld [vmem:[#allocation9 + $0x3d0] sm:$0xff]  ;;  %v1452_v1 = vld [vmem:[#allocation9 + $0x538] sm:$0xff] }
 0x28d   :  { %v9288_v52 = vcombine.low %v1407_v53, %v1411_v54 }
 0x28e   :  { %4760 = vmatpush1.bf16.msra.mxu0 %v9232_v57  ;;  %v9282_v57 = vcombine.low %v1400_v45, %v1404_v22  ;;  %v9322_v45 = vcombine.low %v1440_v32, %v1444_v33 }
 0x28f   :  { %4932 = vmatpush1.bf16.msra.mxu1 %v9234_v60  ;;  %4761 = vmatprep.subr.bf16.mxu0 %v9241_v61  ;;  %v9289_v60 = vcombine.high %v1407_v53, %v1411_v54  ;;  %v9291_v61 = vcombine.high %v1408_v20, %v1412_v55  ;;  %v1460_v53 = vld [vmem:[#allocation9 + $0x578] sm:$0xff] }
 0x290   :  { %4933 = vmatprep.subr.bf16.mxu1 %v9243_v63  ;;  %v1415_v63 = vld [vmem:[#allocation9 + $0x410] sm:$0xff] }
 0x291   :  { %v9296_v14 = vcombine.low %v1415_v63, %v1419_v2 }
 0x292   :  { %4762 = vmatpush1.bf16.msra.mxu0 %v9240_v5  ;;  %v9290_v5 = vcombine.low %v1408_v20, %v1412_v55  ;;  %v9330_v20 = vcombine.low %v1448_v43, %v1452_v1 }
 0x293   :  { %4934 = vmatpush1.bf16.msra.mxu1 %v9242_v6  ;;  %4763 = vmatprep.subr.bf16.mxu0 %v9249_v7  ;;  %v9297_v6 = vcombine.high %v1415_v63, %v1419_v2  ;;  %v9299_v7 = vcombine.high %v1416_v3, %v1420_v4  ;;  %v1468_v63 = vld [vmem:[#allocation9 + $0x5b8] sm:$0xff] }
 0x294   :  { %4935 = vmatprep.subr.bf16.mxu1 %v9251_v11  ;;  %v1423_v11 = vld [vmem:[#allocation9 + $0x450] sm:$0xff] }
 0x295   :  { %v9304_v19 = vcombine.low %v1423_v11, %v1427_v13 }
 0x296   :  { %4764 = vmatpush1.bf16.msra.mxu0 %v9248_v23  ;;  %v9298_v23 = vcombine.low %v1416_v3, %v1420_v4 }
 0x297   :  { %4936 = vmatpush1.bf16.msra.mxu1 %v9250_v10  ;;  %4765 = vmatprep.subr.bf16.mxu0 %v9257_v12  ;;  %v9305_v10 = vcombine.high %v1423_v11, %v1427_v13  ;;  %v1431_v12 = vld [vmem:[#allocation9 + $0x490] sm:$0xff]  ;;  %v1476_v11 = vld [vmem:[#allocation9 + $0x5f8] sm:$0xff] }
 0x298   :  { %4937 = vmatprep.subr.bf16.mxu1 %v9259_v16  ;;  %v1435_v16 = vld [vmem:[#allocation9 + $0x4b0] sm:$0xff] }
 0x299   :  { %v9312_v35 = vcombine.low %v1431_v12, %v1435_v16 }
 0x29a   :  { %4766 = vmatpush1.bf16.msra.mxu0 %v9256_v25  ;;  %v9306_v25 = vcombine.low %v1424_v8, %v1428_v9 }
 0x29b   :  { %4938 = vmatpush1.bf16.msra.mxu1 %v9258_v26  ;;  %4767 = vmatprep.subr.bf16.mxu0 %v9265_v27  ;;  %v9313_v26 = vcombine.high %v1431_v12, %v1435_v16  ;;  %v9315_v27 = vcombine.high %v1432_v15, %v1436_v18  ;;  %v1480_v12 = vld [vmem:[#allocation9 + $0x618] sm:$0xff] }
 0x29c   :  { %4939 = vmatprep.subr.bf16.mxu1 %v9267_v28  ;;  %v1439_v28 = vld [vmem:[#allocation9 + $0x4d0] sm:$0xff]  ;;  %v1484_v16 = vld [vmem:[#allocation9 + $0x638] sm:$0xff] }
 0x29e   :  { %4768 = vmatpush1.bf16.msra.mxu0 %v9264_v37  ;;  %v9321_v37 = vcombine.high %v1439_v28, %v1443_v31 }
 0x29f   :  { %4940 = vmatpush1.bf16.msra.mxu1 %v9266_v38  ;;  %4769 = vmatprep.subr.bf16.mxu0 %v9273_v40  ;;  %v9323_v38 = vcombine.high %v1440_v32, %v1444_v33  ;;  %v1447_v40 = vld [vmem:[#allocation9 + $0x510] sm:$0xff]  ;;  %v9362_v32 = vcombine.low %v1480_v12, %v1484_v16 }
 0x2a0   :  { %4941 = vmatprep.subr.bf16.mxu1 %v9275_v42  ;;  %v1451_v42 = vld [vmem:[#allocation9 + $0x530] sm:$0xff] }
 0x2a1   :  { %v9329_v22 = vcombine.high %v1447_v40, %v1451_v42  ;;  %v9328_v54 = vcombine.low %v1447_v40, %v1451_v42  ;;  %v1500_v40 = vld [vmem:[#allocation9 + $0x6b8] sm:$0xff] }
 0x2a2   :  { %4770 = vmatpush1.bf16.msra.mxu0 %v9272_v47  ;;  %v9331_v47 = vcombine.high %v1448_v43, %v1452_v1 }
 0x2a3   :  { %4942 = vmatpush1.bf16.msra.mxu1 %v9274_v48  ;;  %4771 = vmatprep.subr.bf16.mxu0 %v9281_v30  ;;  %v1455_v48 = vld [vmem:[#allocation9 + $0x550] sm:$0xff] }
 0x2a4   :  { %4943 = vmatprep.subr.bf16.mxu1 %v9283_v51  ;;  %v1459_v30 = vld [vmem:[#allocation9 + $0x570] sm:$0xff]  ;;  %v1456_v51 = vld [vmem:[#allocation9 + $0x558] sm:$0xff] }
 0x2a5   :  { %v9337_v55 = vcombine.high %v1455_v48, %v1459_v30  ;;  %v9336_v2 = vcombine.low %v1455_v48, %v1459_v30  ;;  %v9338_v3 = vcombine.low %v1456_v51, %v1460_v53  ;;  %v1508_v48 = vld [vmem:[#allocation9 + $0x6f8] sm:$0xff] }
 0x2a6   :  { %4772 = vmatpush1.bf16.msra.mxu0 %v9280_v56  ;;  %v9339_v56 = vcombine.high %v1456_v51, %v1460_v53 }
 0x2a7   :  { %4944 = vmatpush1.bf16.msra.mxu1 %v9282_v57  ;;  %4773 = vmatprep.subr.bf16.mxu0 %v9289_v60  ;;  %v1463_v57 = vld [vmem:[#allocation9 + $0x590] sm:$0xff] }
 0x2a8   :  { %4945 = vmatprep.subr.bf16.mxu1 %v9291_v61  ;;  %v1467_v60 = vld [vmem:[#allocation9 + $0x5b0] sm:$0xff]  ;;  %v1464_v61 = vld [vmem:[#allocation9 + $0x598] sm:$0xff] }
 0x2a9   :  { %v9345_v4 = vcombine.high %v1463_v57, %v1467_v60  ;;  %v9344_v13 = vcombine.low %v1463_v57, %v1467_v60  ;;  %v1516_v57 = vld [vmem:[#allocation9 + $0x738] sm:$0xff] }
 0x2aa   :  { %4774 = vmatpush1.bf16.msra.mxu0 %v9288_v52  ;;  %v9347_v52 = vcombine.high %v1464_v61, %v1468_v63 }
 0x2ab   :  { %4946 = vmatpush1.bf16.msra.mxu1 %v9290_v5  ;;  %4786 = vmatprep.subr.bf16.mxu0 %v9297_v6  ;;  %v1471_v5 = vld [vmem:[#allocation9 + $0x5d0] sm:$0xff] }
 0x2ac   :  { %4958 = vmatprep.subr.bf16.mxu1 %v9299_v7  ;;  %v1475_v6 = vld [vmem:[#allocation9 + $0x5f0] sm:$0xff]  ;;  %v1472_v7 = vld [vmem:[#allocation9 + $0x5d8] sm:$0xff] }
 0x2ad   :  { %4776 = vmatmul.mubr.bf16.vlgmr.msra.gmra.mrb[12].mxu0 %v10757_v49  ;;  %v9353_v8 = vcombine.high %v1471_v5, %v1475_v6  ;;  %v9355_v9 = vcombine.high %v1472_v7, %v1476_v11 }
 0x2ae   :  { %4948 = vmatmul.mubr.bf16.vlgmr.msra.gmra.mrb[12].mxu1 %v10757_v49  ;;  %4787 = vmatpush1.bf16.msra.mxu0 %v9296_v14  ;;  %v9314_v49 = vcombine.low %v1432_v15, %v1436_v18  ;;  %v9346_v14 = vcombine.low %v1464_v61, %v1468_v63  ;;  %v9354_v15 = vcombine.low %v1472_v7, %v1476_v11 }
 0x2af   :  { %4818 = vmatprep.mubr.bf16.mxu0 %v10779_v34  ;;  %4959 = vmatpush1.bf16.msra.mxu1 %v9298_v23  ;;  %v1479_v23 = vld [vmem:[#allocation9 + $0x610] sm:$0xff] }
 0x2b0   :  { %4990 = vmatprep.mubr.bf16.mxu1 %v10779_v34  ;;  %4788 = vmatprep.subr.bf16.mxu0 %v9305_v10  ;;  %v9320_v34 = vcombine.low %v1439_v28, %v1443_v31  ;;  %v1483_v10 = vld [vmem:[#allocation9 + $0x630] sm:$0xff]  ;;  %v1492_v28 = vld [vmem:[#allocation9 + $0x678] sm:$0xff] }
 0x2b1   :  { %4960 = vmatprep.subr.bf16.mxu1 %v9307_v17  ;;  %v9352_v17 = vcombine.low %v1471_v5, %v1475_v6  ;;  %v9361_v18 = vcombine.high %v1479_v23, %v1483_v10  ;;  %v9360_v31 = vcombine.low %v1479_v23, %v1483_v10  ;;  %v1524_v5 = vld [vmem:[#allocation9 + $0x778] sm:$0xff] }
 0x2b2   :  { %4789 = vmatpush1.bf16.msra.mxu0 %v9304_v19  ;;  %v9363_v19 = vcombine.high %v1480_v12, %v1484_v16  ;;  %v1532_v23 = vld [vmem:[#allocation9 + $0x7b8] sm:$0xff] }
 0x2b3   :  { %4961 = vmatpush1.bf16.msra.mxu1 %v9306_v25  ;;  %4790 = vmatprep.subr.bf16.mxu0 %v9313_v26  ;;  %v1487_v25 = vld [vmem:[#allocation9 + $0x650] sm:$0xff] }
 0x2b4   :  { %4962 = vmatprep.subr.bf16.mxu1 %v9315_v27  ;;  %v1491_v26 = vld [vmem:[#allocation9 + $0x670] sm:$0xff]  ;;  %v1488_v27 = vld [vmem:[#allocation9 + $0x658] sm:$0xff] }
 0x2b5   :  { %v9369_v33 = vcombine.high %v1487_v25, %v1491_v26  ;;  %v9368_v42 = vcombine.low %v1487_v25, %v1491_v26  ;;  %v9370_v43 = vcombine.low %v1488_v27, %v1492_v28  ;;  %v1540_v25 = vld [vmem:[#allocation9 + $0x7f8] sm:$0xff] }
 0x2b6   :  { %4791 = vmatpush1.bf16.msra.mxu0 %v9312_v35  ;;  %v9371_v35 = vcombine.high %v1488_v27, %v1492_v28 }
 0x2b7   :  { %4963 = vmatpush1.bf16.msra.mxu1 %v9314_v49  ;;  %4792 = vmatprep.subr.bf16.mxu0 %v9321_v37  ;;  %v1495_v49 = vld [vmem:[#allocation9 + $0x690] sm:$0xff] }
 0x2b8   :  { %4964 = vmatprep.subr.bf16.mxu1 %v9323_v38  ;;  %v1499_v37 = vld [vmem:[#allocation9 + $0x6b0] sm:$0xff]  ;;  %v1496_v38 = vld [vmem:[#allocation9 + $0x698] sm:$0xff] }
 0x2b9   :  { %v9377_v1 = vcombine.high %v1495_v49, %v1499_v37  ;;  %v9376_v30 = vcombine.low %v1495_v49, %v1499_v37  ;;  %v9378_v51 = vcombine.low %v1496_v38, %v1500_v40  ;;  %v1548_v49 = vld [vmem:[#allocation9 + $0x838] sm:$0xff] }
 0x2ba   :  { %4793 = vmatpush1.bf16.msra.mxu0 %v9320_v34  ;;  %v9379_v34 = vcombine.high %v1496_v38, %v1500_v40 }
 0x2bb   :  { %4965 = vmatpush1.bf16.msra.mxu1 %v9322_v45  ;;  %4794 = vmatprep.subr.bf16.mxu0 %v9329_v22  ;;  %v1503_v45 = vld [vmem:[#allocation9 + $0x6d0] sm:$0xff] }
 0x2bc   :  { %4966 = vmatprep.subr.bf16.mxu1 %v9331_v47  ;;  %v1507_v22 = vld [vmem:[#allocation9 + $0x6f0] sm:$0xff]  ;;  %v1504_v47 = vld [vmem:[#allocation9 + $0x6d8] sm:$0xff] }
 0x2bd   :  { %v9385_v53 = vcombine.high %v1503_v45, %v1507_v22  ;;  %v9384_v60 = vcombine.low %v1503_v45, %v1507_v22  ;;  %v9386_v61 = vcombine.low %v1504_v47, %v1508_v48  ;;  %v1552_v45 = vld [vmem:[#allocation9 + $0x858] sm:$0xff] }
 0x2be   :  { %4795 = vmatpush1.bf16.msra.mxu0 %v9328_v54  ;;  %v9387_v54 = vcombine.high %v1504_v47, %v1508_v48  ;;  %v1556_v22 = vld [vmem:[#allocation9 + $0x878] sm:$0xff] }
 0x2bf   :  { %4967 = vmatpush1.bf16.msra.mxu1 %v9330_v20  ;;  %4796 = vmatprep.subr.bf16.mxu0 %v9337_v55  ;;  %v1511_v20 = vld [vmem:[#allocation9 + $0x710] sm:$0xff] }
 0x2c0   :  { %4968 = vmatprep.subr.bf16.mxu1 %v9339_v56  ;;  %v1515_v55 = vld [vmem:[#allocation9 + $0x730] sm:$0xff]  ;;  %v1512_v56 = vld [vmem:[#allocation9 + $0x718] sm:$0xff] }
 0x2c1   :  { %v9393_v63 = vcombine.high %v1511_v20, %v1515_v55  ;;  %v9392_v6 = vcombine.low %v1511_v20, %v1515_v55  ;;  %v9394_v7 = vcombine.low %v1512_v56, %v1516_v57  ;;  %v1564_v20 = vld [vmem:[#allocation9 + $0x8b8] sm:$0xff] }
 0x2c2   :  { %4797 = vmatpush1.bf16.msra.mxu0 %v9336_v2  ;;  %v9395_v2 = vcombine.high %v1512_v56, %v1516_v57  ;;  %v9434_v56 = vcombine.low %v1552_v45, %v1556_v22 }
 0x2c3   :  { %4969 = vmatpush1.bf16.msra.mxu1 %v9338_v3  ;;  %4798 = vmatprep.subr.bf16.mxu0 %v9345_v4  ;;  %v1519_v3 = vld [vmem:[#allocation9 + $0x750] sm:$0xff] }
 0x2c4   :  { %4970 = vmatprep.subr.bf16.mxu1 %v9347_v52  ;;  %v1523_v4 = vld [vmem:[#allocation9 + $0x770] sm:$0xff]  ;;  %v1520_v52 = vld [vmem:[#allocation9 + $0x758] sm:$0xff] }
 0x2c5   :  { %v9401_v11 = vcombine.high %v1519_v3, %v1523_v4  ;;  %v9400_v10 = vcombine.low %v1519_v3, %v1523_v4  ;;  %v9402_v12 = vcombine.low %v1520_v52, %v1524_v5  ;;  %v1572_v3 = vld [vmem:[#allocation9 + $0x8f8] sm:$0xff] }
 0x2c6   :  { %4799 = vmatpush1.bf16.msra.mxu0 %v9344_v13  ;;  %v9403_v13 = vcombine.high %v1520_v52, %v1524_v5 }
 0x2c7   :  { %4971 = vmatpush1.bf16.msra.mxu1 %v9346_v14  ;;  %4800 = vmatprep.subr.bf16.mxu0 %v9353_v8  ;;  %v1527_v14 = vld [vmem:[#allocation9 + $0x790] sm:$0xff] }
 0x2c8   :  { %4972 = vmatprep.subr.bf16.mxu1 %v9355_v9  ;;  %v1531_v8 = vld [vmem:[#allocation9 + $0x7b0] sm:$0xff]  ;;  %v1528_v9 = vld [vmem:[#allocation9 + $0x798] sm:$0xff] }
 0x2c9   :  { %v9409_v16 = vcombine.high %v1527_v14, %v1531_v8  ;;  %v9408_v26 = vcombine.low %v1527_v14, %v1531_v8  ;;  %v9410_v27 = vcombine.low %v1528_v9, %v1532_v23 }
 0x2ca   :  { %4801 = vmatpush1.bf16.msra.mxu0 %v9352_v17  ;;  %v9411_v17 = vcombine.high %v1528_v9, %v1532_v23  ;;  %v1583_v23 = vld [vmem:[#allocation9 + $0x950] sm:$0xff] }
 0x2cb   :  { %4973 = vmatpush1.bf16.msra.mxu1 %v9354_v15  ;;  %4802 = vmatprep.subr.bf16.mxu0 %v9361_v18  ;;  %v1535_v15 = vld [vmem:[#allocation9 + $0x7d0] sm:$0xff] }
 0x2cc   :  { %4974 = vmatprep.subr.bf16.mxu1 %v9363_v19  ;;  %v1539_v18 = vld [vmem:[#allocation9 + $0x7f0] sm:$0xff]  ;;  %v1536_v19 = vld [vmem:[#allocation9 + $0x7d8] sm:$0xff] }
 0x2cd   :  { %v9417_v28 = vcombine.high %v1535_v15, %v1539_v18  ;;  %v9416_v37 = vcombine.low %v1535_v15, %v1539_v18  ;;  %v9418_v38 = vcombine.low %v1536_v19, %v1540_v25 }
 0x2ce   :  { %4803 = vmatpush1.bf16.msra.mxu0 %v9360_v31  ;;  %v9419_v31 = vcombine.high %v1536_v19, %v1540_v25  ;;  %v1591_v25 = vld [vmem:[#allocation9 + $0x990] sm:$0xff] }
 0x2cf   :  { %4975 = vmatpush1.bf16.msra.mxu1 %v9362_v32  ;;  %4804 = vmatprep.subr.bf16.mxu0 %v9369_v33  ;;  %v1543_v32 = vld [vmem:[#allocation9 + $0x810] sm:$0xff] }
 0x2d0   :  { %4976 = vmatprep.subr.bf16.mxu1 %v9371_v35  ;;  %v1547_v33 = vld [vmem:[#allocation9 + $0x830] sm:$0xff]  ;;  %v1544_v35 = vld [vmem:[#allocation9 + $0x818] sm:$0xff] }
 0x2d1   :  { %v9425_v40 = vcombine.high %v1543_v32, %v1547_v33  ;;  %v9426_v47 = vcombine.low %v1544_v35, %v1548_v49 }
 0x2d2   :  { %4805 = vmatpush1.bf16.msra.mxu0 %v9368_v42  ;;  %v9427_v42 = vcombine.high %v1544_v35, %v1548_v49  ;;  %v1599_v49 = vld [vmem:[#allocation9 + $0x9d0] sm:$0xff] }
 0x2d3   :  { %4977 = vmatpush1.bf16.msra.mxu1 %v9370_v43  ;;  %4806 = vmatprep.subr.bf16.mxu0 %v9377_v1  ;;  %v1551_v43 = vld [vmem:[#allocation9 + $0x850] sm:$0xff] }
 0x2d4   :  { %4978 = vmatprep.subr.bf16.mxu1 %v9379_v34  ;;  %v1555_v1 = vld [vmem:[#allocation9 + $0x870] sm:$0xff]  ;;  %v9424_v34 = vcombine.low %v1543_v32, %v1547_v33 }
 0x2d5   :  { %v9433_v48 = vcombine.high %v1551_v43, %v1555_v1  ;;  %v9432_v55 = vcombine.low %v1551_v43, %v1555_v1 }
 0x2d6   :  { %4807 = vmatpush1.bf16.msra.mxu0 %v9376_v30  ;;  %v1559_v30 = vld [vmem:[#allocation9 + $0x890] sm:$0xff] }
 0x2d7   :  { %4979 = vmatpush1.bf16.msra.mxu1 %v9378_v51  ;;  %4808 = vmatprep.subr.bf16.mxu0 %v9385_v53  ;;  %v1563_v51 = vld [vmem:[#allocation9 + $0x8b0] sm:$0xff]  ;;  %v9435_v53 = vcombine.high %v1552_v45, %v1556_v22 }
 0x2d8   :  { %4980 = vmatprep.subr.bf16.mxu1 %v9387_v54  ;;  %v1560_v54 = vld [vmem:[#allocation9 + $0x898] sm:$0xff]  ;;  %v9441_v57 = vcombine.high %v1559_v30, %v1563_v51  ;;  %v9440_v4 = vcombine.low %v1559_v30, %v1563_v51  ;;  %v1607_v45 = vld [vmem:[#allocation9 + $0xa10] sm:$0xff] }
 0x2d9   :  { %v1611_v22 = vld [vmem:[#allocation9 + $0xa30] sm:$0xff] }
 0x2da   :  { %4809 = vmatpush1.bf16.msra.mxu0 %v9384_v60  ;;  %v9443_v60 = vcombine.high %v1560_v54, %v1564_v20 }
 0x2db   :  { %4981 = vmatpush1.bf16.msra.mxu1 %v9386_v61  ;;  %4810 = vmatprep.subr.bf16.mxu0 %v9393_v63  ;;  %v1567_v61 = vld [vmem:[#allocation9 + $0x8d0] sm:$0xff] }
 0x2dc   :  { %4982 = vmatprep.subr.bf16.mxu1 %v9395_v2  ;;  %v1571_v63 = vld [vmem:[#allocation9 + $0x8f0] sm:$0xff]  ;;  %v1568_v2 = vld [vmem:[#allocation9 + $0x8d8] sm:$0xff] }
 0x2dd   :  { %v9449_v52 = vcombine.high %v1567_v61, %v1571_v63  ;;  %v9451_v5 = vcombine.high %v1568_v2, %v1572_v3  ;;  %v9450_v14 = vcombine.low %v1568_v2, %v1572_v3  ;;  %v1623_v3 = vld [vmem:[#allocation9 + $0xa90] sm:$0xff] }
 0x2de   :  { %4811 = vmatpush1.bf16.msra.mxu0 %v9392_v6  ;;  %v1575_v6 = vld [vmem:[#allocation9 + $0x910] sm:$0xff] }
 0x2df   :  { %4983 = vmatpush1.bf16.msra.mxu1 %v9394_v7  ;;  %4812 = vmatprep.subr.bf16.mxu0 %v9401_v11  ;;  %v1579_v7 = vld [vmem:[#allocation9 + $0x930] sm:$0xff]  ;;  %v1576_v11 = vld [vmem:[#allocation9 + $0x918] sm:$0xff] }
 0x2e0   :  { %4984 = vmatprep.subr.bf16.mxu1 %v9403_v13  ;;  %v1580_v13 = vld [vmem:[#allocation9 + $0x938] sm:$0xff]  ;;  %v9457_v8 = vcombine.high %v1575_v6, %v1579_v7 }
 0x2e1   :  { %v9459_v9 = vcombine.high %v1576_v11, %v1580_v13  ;;  %v9458_v15 = vcombine.low %v1576_v11, %v1580_v13  ;;  %v1631_v13 = vld [vmem:[#allocation9 + $0xad0] sm:$0xff] }
 0x2e2   :  { %4813 = vmatpush1.bf16.msra.mxu0 %v9400_v10  ;;  %v1587_v10 = vld [vmem:[#allocation9 + $0x970] sm:$0xff] }
 0x2e3   :  { %4985 = vmatpush1.bf16.msra.mxu1 %v9402_v12  ;;  %4814 = vmatprep.subr.bf16.mxu0 %v9409_v16  ;;  %v1584_v12 = vld [vmem:[#allocation9 + $0x958] sm:$0xff]  ;;  %v9465_v18 = vcombine.high %v1583_v23, %v1587_v10 }
 0x2e4   :  { %4986 = vmatprep.subr.bf16.mxu1 %v9411_v17  ;;  %v1588_v16 = vld [vmem:[#allocation9 + $0x978] sm:$0xff]  ;;  %v9456_v17 = vcombine.low %v1575_v6, %v1579_v7 }
 0x2e5   :  { %v9467_v19 = vcombine.high %v1584_v12, %v1588_v16  ;;  %v9466_v32 = vcombine.low %v1584_v12, %v1588_v16  ;;  %v1639_v16 = vld [vmem:[#allocation9 + $0xb10] sm:$0xff] }
 0x2e6   :  { %4815 = vmatpush1.bf16.msra.mxu0 %v9408_v26  ;;  %v1595_v26 = vld [vmem:[#allocation9 + $0x9b0] sm:$0xff] }
 0x2e7   :  { %4987 = vmatpush1.bf16.msra.mxu1 %v9410_v27  ;;  %4816 = vmatprep.subr.bf16.mxu0 %v9417_v28  ;;  %v1592_v27 = vld [vmem:[#allocation9 + $0x998] sm:$0xff]  ;;  %v9473_v33 = vcombine.high %v1591_v25, %v1595_v26 }
 0x2e8   :  { %4988 = vmatprep.subr.bf16.mxu1 %v9419_v31  ;;  %v1596_v28 = vld [vmem:[#allocation9 + $0x9b8] sm:$0xff]  ;;  %v9464_v31 = vcombine.low %v1583_v23, %v1587_v10 }
 0x2e9   :  { %v9475_v35 = vcombine.high %v1592_v27, %v1596_v28  ;;  %v9474_v43 = vcombine.low %v1592_v27, %v1596_v28  ;;  %v1647_v28 = vld [vmem:[#allocation9 + $0xb50] sm:$0xff] }
 0x2ea   :  { %4817 = vmatpush1.bf16.msra.mxu0 %v9416_v37  ;;  %v1603_v37 = vld [vmem:[#allocation9 + $0x9f0] sm:$0xff] }
 0x2eb   :  { %4989 = vmatpush1.bf16.msra.mxu1 %v9418_v38  ;;  %4829 = vmatprep.subr.bf16.mxu0 %v9425_v40  ;;  %v1600_v38 = vld [vmem:[#allocation9 + $0x9d8] sm:$0xff]  ;;  %v9481_v1 = vcombine.high %v1599_v49, %v1603_v37  ;;  %v9480_v30 = vcombine.low %v1599_v49, %v1603_v37 }
 0x2ec   :  { %5001 = vmatprep.subr.bf16.mxu1 %v9427_v42  ;;  %v1604_v40 = vld [vmem:[#allocation9 + $0x9f8] sm:$0xff]  ;;  %v9472_v42 = vcombine.low %v1591_v25, %v1595_v26 }
 0x2ed   :  { %4819 = vmatmul.mubr.bf16.vlgmr.msra.gmra.mrb[12].mxu0 %v10777_v29  ;;  %v9482_v51 = vcombine.low %v1600_v38, %v1604_v40 }
 0x2ee   :  { %4991 = vmatmul.mubr.bf16.vlgmr.msra.gmra.mrb[12].mxu1 %v10777_v29  ;;  %4830 = vmatpush1.bf16.msra.mxu0 %v9424_v34  ;;  %v9442_v29 = vcombine.low %v1560_v54, %v1564_v20  ;;  %v9483_v34 = vcombine.high %v1600_v38, %v1604_v40  ;;  %v1615_v20 = vld [vmem:[#allocation9 + $0xa50] sm:$0xff] }
 0x2ef   :  { %4861 = vmatprep.mubr.bf16.mxu0 %v10809_v0  ;;  %5002 = vmatpush1.bf16.msra.mxu1 %v9426_v47  ;;  %v1608_v47 = vld [vmem:[#allocation9 + $0xa18] sm:$0xff]  ;;  %v1655_v40 = vld [vmem:[#allocation9 + $0xb90] sm:$0xff] }
 0x2f0   :  { %5033 = vmatprep.mubr.bf16.mxu1 %v10809_v0  ;;  %4831 = vmatprep.subr.bf16.mxu0 %v9433_v48  ;;  %v9448_v0 = vcombine.low %v1567_v61, %v1571_v63  ;;  %v1612_v48 = vld [vmem:[#allocation9 + $0xa38] sm:$0xff] }
 0x2f1   :  { %5003 = vmatprep.subr.bf16.mxu1 %v9435_v53  ;;  %v9489_v53 = vcombine.high %v1607_v45, %v1611_v22  ;;  %v9491_v54 = vcombine.high %v1608_v47, %v1612_v48  ;;  %v9490_v61 = vcombine.low %v1608_v47, %v1612_v48  ;;  %v1663_v48 = vld [vmem:[#allocation9 + $0xbd0] sm:$0xff] }
 0x2f2   :  { %4832 = vmatpush1.bf16.msra.mxu0 %v9432_v55  ;;  %v1619_v55 = vld [vmem:[#allocation9 + $0xa70] sm:$0xff] }
 0x2f3   :  { %5004 = vmatpush1.bf16.msra.mxu1 %v9434_v56  ;;  %4833 = vmatprep.subr.bf16.mxu0 %v9441_v57  ;;  %v1616_v56 = vld [vmem:[#allocation9 + $0xa58] sm:$0xff]  ;;  %v9497_v63 = vcombine.high %v1615_v20, %v1619_v55 }
 0x2f4   :  { %5005 = vmatprep.subr.bf16.mxu1 %v9443_v60  ;;  %v1620_v57 = vld [vmem:[#allocation9 + $0xa78] sm:$0xff]  ;;  %v9488_v60 = vcombine.low %v1607_v45, %v1611_v22 }
 0x2f5   :  { %v9499_v2 = vcombine.high %v1616_v56, %v1620_v57  ;;  %v9498_v6 = vcombine.low %v1616_v56, %v1620_v57  ;;  %v1671_v57 = vld [vmem:[#allocation9 + $0xc10] sm:$0xff] }
 0x2f6   :  { %4834 = vmatpush1.bf16.msra.mxu0 %v9440_v4  ;;  %v1627_v4 = vld [vmem:[#allocation9 + $0xab0] sm:$0xff] }
 0x2f7   :  { %5006 = vmatpush1.bf16.msra.mxu1 %v9442_v29  ;;  %4835 = vmatprep.subr.bf16.mxu0 %v9449_v52  ;;  %v1624_v29 = vld [vmem:[#allocation9 + $0xa98] sm:$0xff]  ;;  %v9505_v7 = vcombine.high %v1623_v3, %v1627_v4 }
 0x2f8   :  { %5007 = vmatprep.subr.bf16.mxu1 %v9451_v5  ;;  %v1628_v52 = vld [vmem:[#allocation9 + $0xab8] sm:$0xff]  ;;  %v9496_v5 = vcombine.low %v1615_v20, %v1619_v55 }
 0x2f9   :  { %v9507_v11 = vcombine.high %v1624_v29, %v1628_v52  ;;  %v9506_v23 = vcombine.low %v1624_v29, %v1628_v52  ;;  %v1679_v52 = vld [vmem:[#allocation9 + $0xc50] sm:$0xff] }
 0x2fa   :  { %4836 = vmatpush1.bf16.msra.mxu0 %v9448_v0  ;;  %v1635_v0 = vld [vmem:[#allocation9 + $0xaf0] sm:$0xff] }
 0x2fb   :  { %5008 = vmatpush1.bf16.msra.mxu1 %v9450_v14  ;;  %4837 = vmatprep.subr.bf16.mxu0 %v9457_v8  ;;  %v1632_v14 = vld [vmem:[#allocation9 + $0xad8] sm:$0xff]  ;;  %v9513_v10 = vcombine.high %v1631_v13, %v1635_v0 }
 0x2fc   :  { %5009 = vmatprep.subr.bf16.mxu1 %v9459_v9  ;;  %v1636_v8 = vld [vmem:[#allocation9 + $0xaf8] sm:$0xff]  ;;  %v9504_v9 = vcombine.low %v1623_v3, %v1627_v4 }
 0x2fd   :  { %v9515_v12 = vcombine.high %v1632_v14, %v1636_v8  ;;  %v9514_v25 = vcombine.low %v1632_v14, %v1636_v8  ;;  %v1687_v14 = vld [vmem:[#allocation9 + $0xc90] sm:$0xff] }
 0x2fe   :  { %4838 = vmatpush1.bf16.msra.mxu0 %v9456_v17  ;;  %v1643_v17 = vld [vmem:[#allocation9 + $0xb30] sm:$0xff] }
 0x2ff   :  { %5010 = vmatpush1.bf16.msra.mxu1 %v9458_v15  ;;  %4839 = vmatprep.subr.bf16.mxu0 %v9465_v18  ;;  %v1640_v15 = vld [vmem:[#allocation9 + $0xb18] sm:$0xff]  ;;  %v9521_v26 = vcombine.high %v1639_v16, %v1643_v17  ;;  %v1691_v8 = vld [vmem:[#allocation9 + $0xcb0] sm:$0xff] }
 0x300   :  { %5011 = vmatprep.subr.bf16.mxu1 %v9467_v19  ;;  %v1644_v18 = vld [vmem:[#allocation9 + $0xb38] sm:$0xff]  ;;  %v9512_v19 = vcombine.low %v1631_v13, %v1635_v0 }
 0x301   :  { %v9523_v27 = vcombine.high %v1640_v15, %v1644_v18  ;;  %v9522_v49 = vcombine.low %v1640_v15, %v1644_v18  ;;  %v1695_v18 = vld [vmem:[#allocation9 + $0xcd0] sm:$0xff] }
 0x302   :  { %4840 = vmatpush1.bf16.msra.mxu0 %v9464_v31  ;;  %v1651_v31 = vld [vmem:[#allocation9 + $0xb70] sm:$0xff] }
 0x303   :  { %5012 = vmatpush1.bf16.msra.mxu1 %v9466_v32  ;;  %4841 = vmatprep.subr.bf16.mxu0 %v9473_v33  ;;  %v1648_v32 = vld [vmem:[#allocation9 + $0xb58] sm:$0xff]  ;;  %v9529_v37 = vcombine.high %v1647_v28, %v1651_v31 }
 0x304   :  { %5013 = vmatprep.subr.bf16.mxu1 %v9475_v35  ;;  %v1652_v33 = vld [vmem:[#allocation9 + $0xb78] sm:$0xff]  ;;  %v9520_v35 = vcombine.low %v1639_v16, %v1643_v17  ;;  %v9569_v17 = vcombine.high %v1687_v14, %v1691_v8 }
 0x305   :  { %v9531_v38 = vcombine.high %v1648_v32, %v1652_v33  ;;  %v9530_v45 = vcombine.low %v1648_v32, %v1652_v33  ;;  %v1703_v32 = vld [vmem:[#allocation9 + $0xd10] sm:$0xff] }
 0x306   :  { %4842 = vmatpush1.bf16.msra.mxu0 %v9472_v42  ;;  %v1659_v42 = vld [vmem:[#allocation9 + $0xbb0] sm:$0xff] }
 0x307   :  { %5014 = vmatpush1.bf16.msra.mxu1 %v9474_v43  ;;  %4843 = vmatprep.subr.bf16.mxu0 %v9481_v1  ;;  %v1656_v43 = vld [vmem:[#allocation9 + $0xb98] sm:$0xff]  ;;  %v9537_v22 = vcombine.high %v1655_v40, %v1659_v42  ;;  %v1707_v33 = vld [vmem:[#allocation9 + $0xd30] sm:$0xff] }
 0x308   :  { %5015 = vmatprep.subr.bf16.mxu1 %v9483_v34  ;;  %v1660_v1 = vld [vmem:[#allocation9 + $0xbb8] sm:$0xff]  ;;  %v9528_v34 = vcombine.low %v1647_v28, %v1651_v31 }
 0x309   :  { %v9539_v47 = vcombine.high %v1656_v43, %v1660_v1  ;;  %v9538_v20 = vcombine.low %v1656_v43, %v1660_v1  ;;  %v1715_v43 = vld [vmem:[#allocation9 + $0xd70] sm:$0xff]  ;;  %v1712_v1 = vld [vmem:[#allocation9 + $0xd58] sm:$0xff] }
 0x30a   :  { %4844 = vmatpush1.bf16.msra.mxu0 %v9480_v30  ;;  %v1667_v30 = vld [vmem:[#allocation9 + $0xbf0] sm:$0xff] }
 0x30b   :  { %5016 = vmatpush1.bf16.msra.mxu1 %v9482_v51  ;;  %4845 = vmatprep.subr.bf16.mxu0 %v9489_v53  ;;  %v1664_v51 = vld [vmem:[#allocation9 + $0xbd8] sm:$0xff]  ;;  %v9545_v55 = vcombine.high %v1663_v48, %v1667_v30 }
 0x30c   :  { %5017 = vmatprep.subr.bf16.mxu1 %v9491_v54  ;;  %v1668_v53 = vld [vmem:[#allocation9 + $0xbf8] sm:$0xff]  ;;  %v9536_v54 = vcombine.low %v1655_v40, %v1659_v42  ;;  %v1711_v42 = vld [vmem:[#allocation9 + $0xd50] sm:$0xff] }
 0x30d   :  { %v9547_v56 = vcombine.high %v1664_v51, %v1668_v53  ;;  %v9546_v3 = vcombine.low %v1664_v51, %v1668_v53  ;;  %v10846_v51 = vld [vmem:[#allocation9 + $0xd90] sm:$0xff] }
 0x30e   :  { %4846 = vmatpush1.bf16.msra.mxu0 %v9488_v60  ;;  %v1675_v60 = vld [vmem:[#allocation9 + $0xc30] sm:$0xff] }
 0x30f   :  { %5018 = vmatpush1.bf16.msra.mxu1 %v9490_v61  ;;  %4847 = vmatprep.subr.bf16.mxu0 %v9497_v63  ;;  %v1672_v61 = vld [vmem:[#allocation9 + $0xc18] sm:$0xff]  ;;  %v9553_v4 = vcombine.high %v1671_v57, %v1675_v60  ;;  %v10848_v53 = vld [vmem:[#allocation9 + $0xdb0] sm:$0xff] }
 0x310   :  { %5019 = vmatprep.subr.bf16.mxu1 %v9499_v2  ;;  %v1676_v63 = vld [vmem:[#allocation9 + $0xc38] sm:$0xff]  ;;  %v9544_v2 = vcombine.low %v1663_v48, %v1667_v30  ;;  %v9593_v48 = vcombine.high %v1711_v42, %v1715_v43 }
 0x311   :  { %v9555_v29 = vcombine.high %v1672_v61, %v1676_v63  ;;  %v9554_v13 = vcombine.low %v1672_v61, %v1676_v63 }
 0x312   :  { %4848 = vmatpush1.bf16.msra.mxu0 %v9496_v5  ;;  %v1683_v5 = vld [vmem:[#allocation9 + $0xc70] sm:$0xff] }
 0x313   :  { %5020 = vmatpush1.bf16.msra.mxu1 %v9498_v6  ;;  %4849 = vmatprep.subr.bf16.mxu0 %v9505_v7  ;;  %v9552_v6 = vcombine.low %v1671_v57, %v1675_v60  ;;  %v1680_v7 = vld [vmem:[#allocation9 + $0xc58] sm:$0xff]  ;;  %v9561_v0 = vcombine.high %v1679_v52, %v1683_v5  ;;  %v10856_v57 = vld [vmem:[#allocation9 + $0xdd0] sm:$0xff] }
 0x314   :  { %5021 = vmatprep.subr.bf16.mxu1 %v9507_v11  ;;  %v1684_v11 = vld [vmem:[#allocation9 + $0xc78] sm:$0xff]  ;;  %v10858_v60 = vld [vmem:[#allocation9 + $0xdf0] sm:$0xff] }
 0x315   :  { %v9562_v16 = vcombine.low %v1680_v7, %v1684_v11 }
 0x316   :  { %4850 = vmatpush1.bf16.msra.mxu0 %v9504_v9  ;;  %v9563_v9 = vcombine.high %v1680_v7, %v1684_v11  ;;  %v10873_v7 = vld [vmem:[#allocation9 + $0xe10] sm:$0xff] }
 0x317   :  { %5022 = vmatpush1.bf16.msra.mxu1 %v9506_v23  ;;  %4851 = vmatprep.subr.bf16.mxu0 %v9513_v10  ;;  %v1688_v23 = vld [vmem:[#allocation9 + $0xc98] sm:$0xff]  ;;  %v10875_v11 = vld [vmem:[#allocation9 + $0xe30] sm:$0xff] }
 0x318   :  { %5023 = vmatprep.subr.bf16.mxu1 %v9515_v12  ;;  %v1692_v10 = vld [vmem:[#allocation9 + $0xcb8] sm:$0xff]  ;;  %v9560_v12 = vcombine.low %v1679_v52, %v1683_v5  ;;  %v9600_v5 = vcombine.low %v10846_v51, %v10848_v53 }
 0x319   :  { %v9571_v15 = vcombine.high %v1688_v23, %v1692_v10 }
 0x31a   :  { %4852 = vmatpush1.bf16.msra.mxu0 %v9512_v19  ;;  %v1699_v19 = vld [vmem:[#allocation9 + $0xcf0] sm:$0xff] }
 0x31b   :  { %5024 = vmatpush1.bf16.msra.mxu1 %v9514_v25  ;;  %4853 = vmatprep.subr.bf16.mxu0 %v9521_v26  ;;  %v1696_v25 = vld [vmem:[#allocation9 + $0xcd8] sm:$0xff]  ;;  %v9577_v28 = vcombine.high %v1695_v18, %v1699_v19 }
 0x31c   :  { %5025 = vmatprep.subr.bf16.mxu1 %v9523_v27  ;;  %v1700_v26 = vld [vmem:[#allocation9 + $0xcf8] sm:$0xff]  ;;  %v9568_v27 = vcombine.low %v1687_v14, %v1691_v8 }
 0x31d   :  { %v9579_v31 = vcombine.high %v1696_v25, %v1700_v26 }
 0x31e   :  { %4854 = vmatpush1.bf16.msra.mxu0 %v9520_v35  ;;  %v1704_v35 = vld [vmem:[#allocation9 + $0xd18] sm:$0xff] }
 0x31f   :  { %5026 = vmatpush1.bf16.msra.mxu1 %v9522_v49  ;;  %4855 = vmatprep.subr.bf16.mxu0 %v9529_v37  ;;  %v1708_v49 = vld [vmem:[#allocation9 + $0xd38] sm:$0xff]  ;;  %v9578_v37 = vcombine.low %v1696_v25, %v1700_v26 }
 0x320   :  { %5027 = vmatprep.subr.bf16.mxu1 %v9531_v38  ;;  %v9585_v38 = vcombine.high %v1703_v32, %v1707_v33  ;;  %v9587_v40 = vcombine.high %v1704_v35, %v1708_v49  ;;  %v10891_v25 = vld [vmem:[#allocation9 + $0xe38] sm:$0xff] }
 0x322   :  { %4856 = vmatpush1.bf16.msra.mxu0 %v9528_v34  ;;  %v1716_v34 = vld [vmem:[#allocation9 + $0xd78] sm:$0xff] }
 0x323   :  { %5028 = vmatpush1.bf16.msra.mxu1 %v9530_v45  ;;  %4857 = vmatprep.subr.bf16.mxu0 %v9537_v22  ;;  %v9584_v45 = vcombine.low %v1703_v32, %v1707_v33  ;;  %v1797_v22 = vld [vmem:[#allocation11] sm:$0xff]  ;;  %v9595_v30 = vcombine.high %v1712_v1, %v1716_v34  ;;  %v9594_v52 = vcombine.low %v1712_v1, %v1716_v34 }
 0x324   :  { %5029 = vmatprep.subr.bf16.mxu1 %v9539_v47  ;;  %v9586_v47 = vcombine.low %v1704_v35, %v1708_v49  ;;  %v1806_v61 = vrot.slane %v1797_v22, %v10737_v24  ;;  %v1814_v63 = vrot.slane %v1797_v22, %v10751_v39  ;;  %v9617_v32 = vcombine.high %v10873_v7, %v10875_v11 }
 0x326   :  { %4858 = vmatpush1.bf16.msra.mxu0 %v9536_v54  ;;  %v10850_v54 = vld [vmem:[#allocation9 + $0xd98] sm:$0xff] }
 0x327   :  { %5030 = vmatpush1.bf16.msra.mxu1 %v9538_v20  ;;  %4859 = vmatprep.subr.bf16.mxu0 %v9545_v55  ;;  %v1802_v20 = vrot.slane %v1797_v22, %v10732_v21  ;;  %v1810_v55 = vrot.slane %v1797_v22, %v10747_v36 }
 0x328   :  { %5031 = vmatprep.subr.bf16.mxu1 %v9547_v56  ;;  %v10854_v56 = vld [vmem:[#allocation9 + $0xdb8] sm:$0xff] }
 0x329   :  { %v9602_v14 = vcombine.low %v10850_v54, %v10854_v56  ;;  %v9603_v8 = vcombine.high %v10850_v54, %v10854_v56  ;;  %v1743_v54 = vld [vmem:[#allocation9 + $0xe50] sm:$0xff] }
 0x32a   :  { %4860 = vmatpush1.bf16.msra.mxu0 %v9544_v2  ;;  %v9592_v2 = vcombine.low %v1711_v42, %v1715_v43 }
 0x32b   :  { %5032 = vmatpush1.bf16.msra.mxu1 %v9546_v3  ;;  %4872 = vmatprep.subr.bf16.mxu0 %v9553_v4  ;;  %v10862_v3 = vld [vmem:[#allocation9 + $0xdd8] sm:$0xff] }
 0x32c   :  { %5044 = vmatprep.subr.bf16.mxu1 %v9555_v29  ;;  %v10864_v4 = vld [vmem:[#allocation9 + $0xdf8] sm:$0xff]  ;;  %v10867_v29 = vstv %s10844_s7 }
 0x32d   :  { %4862 = vmatmul.mubr.bf16.vlgmr.msra.gmra.mrb[12].mxu0 %v10805_v59 }
 0x32e   :  { %5034 = vmatmul.mubr.bf16.vlgmr.msra.gmra.mrb[12].mxu1 %v10805_v59  ;;  %4873 = vmatpush1.bf16.msra.mxu0 %v9552_v6  ;;  %v9570_v59 = vcombine.low %v1688_v23, %v1692_v10  ;;  %v9601_v6 = vcombine.high %v10846_v51, %v10848_v53  ;;  %v9609_v23 = vcombine.high %v10856_v57, %v10858_v60 }
 0x32f   :  { %4904 = vmatprep.mubr.bf16.mxu0 %v10822_v50  ;;  %5045 = vmatpush1.bf16.msra.mxu1 %v9554_v13 }
 0x330   :  { %5076 = vmatprep.mubr.bf16.mxu1 %v10822_v50  ;;  %4874 = vmatprep.subr.bf16.mxu0 %v9561_v0  ;;  %v9576_v50 = vcombine.low %v1695_v18, %v1699_v19  ;;  %v9611_v18 = vcombine.high %v10862_v3, %v10864_v4  ;;  %v10889_v19 = vld [vmem:[#allocation9 + $0xe18] sm:$0xff] }
 0x331   :  { %5046 = vmatprep.subr.bf16.mxu1 %v9563_v9  ;;  %v9608_v9 = vcombine.low %v10856_v57, %v10858_v60 }
 0x332   :  { %4875 = vmatpush1.bf16.msra.mxu0 %v9560_v12 }
 0x333   :  { %5047 = vmatpush1.bf16.msra.mxu1 %v9562_v16  ;;  %4876 = vmatprep.subr.bf16.mxu0 %v9569_v17 }
 0x334   :  { %5048 = vmatprep.subr.bf16.mxu1 %v9571_v15  ;;  %v9610_v15 = vcombine.low %v10862_v3, %v10864_v4  ;;  %v1748_v3 = vld [vmem:[#allocation9 + $0xe78] sm:$0xff] }
 0x336   :  { %4877 = vmatpush1.bf16.msra.mxu0 %v9568_v27 }
 0x337   :  { %5049 = vmatpush1.bf16.msra.mxu1 %v9570_v59  ;;  %4878 = vmatprep.subr.bf16.mxu0 %v9577_v28 }
 0x338   :  { %5050 = vmatprep.subr.bf16.mxu1 %v9579_v31  ;;  %v9616_v31 = vcombine.low %v10873_v7, %v10875_v11 }
 0x33a   :  { %4879 = vmatpush1.bf16.msra.mxu0 %v9576_v50 }
 0x33b   :  { %5051 = vmatpush1.bf16.msra.mxu1 %v9578_v37  ;;  %4880 = vmatprep.subr.bf16.mxu0 %v9585_v38  ;;  %v9618_v38 = vcombine.low %v10889_v19, %v10891_v25 }
 0x33c   :  { %5052 = vmatprep.subr.bf16.mxu1 %v9587_v40  ;;  %v9619_v40 = vcombine.high %v10889_v19, %v10891_v25 }
 0x33e   :  { %4881 = vmatpush1.bf16.msra.mxu0 %v9584_v45 }
 0x33f   :  { %5053 = vmatpush1.bf16.msra.mxu1 %v9586_v47  ;;  %4882 = vmatprep.subr.bf16.mxu0 %v9593_v48 }
 0x340   :  { %v4562_v13 = vpop.f32.mrb[8].mxu0  ;;  %v4734_v0 = vpop.f32.mrb[8].mxu1  ;;  %5054 = vmatprep.subr.bf16.mxu1 %v9595_v30 }
 0x341   :  { %v10190_v10 = vadd.f32 %v4562_v13, %v1802_v20  ;;  %v10194_v12 = vadd.f32 %v4734_v0, %v1810_v55  ;;  %v4564_v16 = vpop.f32.mrb[9].mxu0  ;;  %v4736_v17 = vpop.f32.mrb[9].mxu1 }
 0x342   :  { %v10191_v26 = vadd.f32 %v4564_v16, %v1806_v61  ;;  %v10195_v27 = vadd.f32 %v4736_v17, %v1814_v63  ;;  %v4566_v59 = vpop.f32.mrb[10].mxu0  ;;  %v4738_v28 = vpop.f32.mrb[10].mxu1  ;;  %4883 = vmatpush1.bf16.msra.mxu0 %v9592_v2  ;;  %v1744_v2 = vld [vmem:[#allocation9 + $0xe58] sm:$0xff]  ;;  %v1763_v17 = vld [vmem:[#allocation9 + $0xef0] sm:$0xff] }
 0x343   :  { %vm5088_vm0 = vcmp.gt.f32.partialorder %v10190_v10, 0.0  ;;  %v5105_v33 = vmul.f32 %v10190_v10, %v10867_v29  ;;  %vm5090_vm1 = vcmp.gt.f32.partialorder %v10194_v12, 0.0  ;;  %v5107_v35 = vmul.f32 %v10194_v12, %v10867_v29  ;;  %5055 = vmatpush1.bf16.msra.mxu1 %v9594_v52  ;;  %v4568_v49 = vpop.f32.mrb[11].mxu0  ;;  %v4740_v50 = vpop.f32.mrb[11].mxu1  ;;  %4884 = vmatprep.subr.bf16.mxu0 %v9601_v6 }
 0x344   :  { %vm5089_vm2 = vcmp.gt.f32.partialorder %v10191_v26, 0.0  ;;  %v5106_v37 = vmul.f32 %v10191_v26, %v10867_v29  ;;  %5056 = vmatprep.subr.bf16.mxu1 %v9603_v8  ;;  %vm5091_vm3 = vcmp.gt.f32.partialorder %v10195_v27, 0.0  ;;  %v5108_v42 = vmul.f32 %v10195_v27, %v10867_v29  ;;  %v1755_v8 = vld [vmem:[#allocation9 + $0xeb0] sm:$0xff] }
 0x345   :  { %v10192_v43 = vadd.f32 %v4566_v59, %v1802_v20  ;;  %v10196_v1 = vadd.f32 %v4738_v28, %v1810_v55  ;;  %v5121_v34 = vsel %vm5088_vm0, %v10190_v10, %v5105_v33  ;;  %v5123_v45 = vsel %vm5090_vm1, %v10194_v12, %v5107_v35  ;;  %v1747_v20 = vld [vmem:[#allocation9 + $0xe70] sm:$0xff]  ;;  %v1756_v10 = vld [vmem:[#allocation9 + $0xeb8] sm:$0xff] }
 0x346   :  { %v10193_v22 = vadd.f32 %v4568_v49, %v1806_v61  ;;  %v10197_v47 = vadd.f32 %v4740_v50, %v1814_v63  ;;  %4885 = vmatpush1.bf16.msra.mxu0 %v9600_v5  ;;  %v5122_v55 = vsel %vm5089_vm2, %v10191_v26, %v5106_v37  ;;  %v5124_v56 = vsel %vm5091_vm3, %v10195_v27, %v5108_v42  ;;  %v1767_v59 = vld [vmem:[#allocation9 + $0xf10] sm:$0xff]  ;;  %v1780_v42 = vld [vmem:[#allocation9 + $0xf78] sm:$0xff] }
 0x347   :  { %vm5096_vm4 = vcmp.gt.f32.partialorder %v10192_v43, 0.0  ;;  %v5113_v48 = vmul.f32 %v10192_v43, %v10867_v29  ;;  %vm5098_vm5 = vcmp.gt.f32.partialorder %v10196_v1, 0.0  ;;  %v5115_v30 = vmul.f32 %v10196_v1, %v10867_v29  ;;  %5057 = vmatpush1.bf16.msra.mxu1 %v9602_v14  ;;  %4886 = vmatprep.subr.bf16.mxu0 %v9609_v23  ;;  %v1751_v14 = vld [vmem:[#allocation9 + $0xe90] sm:$0xff]  ;;  %v1752_v23 = vld [vmem:[#allocation9 + $0xe98] sm:$0xff] }
 0x348   :  { %vm5097_vm6 = vcmp.gt.f32.partialorder %v10193_v22, 0.0  ;;  %v5114_v51 = vmul.f32 %v10193_v22, %v10867_v29  ;;  %vm5099_vm7 = vcmp.gt.f32.partialorder %v10197_v47, 0.0  ;;  %v5116_v53 = vmul.f32 %v10197_v47, %v10867_v29  ;;  %5058 = vmatprep.subr.bf16.mxu1 %v9611_v18  ;;  %v1760_v18 = vld [vmem:[#allocation9 + $0xed8] sm:$0xff]  ;;  %v1771_v28 = vld [vmem:[#allocation9 + $0xf30] sm:$0xff] }
 0x349   :  { %v5129_v61 = vsel %vm5096_vm4, %v10192_v43, %v5113_v48  ;;  %v5131_v63 = vsel %vm5098_vm5, %v10196_v1, %v5115_v30  ;;  %v9625_v13 = vcombine.high %v1743_v54, %v1747_v20  ;;  %v9627_v0 = vcombine.high %v1744_v2, %v1748_v3  ;;  %v1775_v37 = vld [vmem:[#allocation9 + $0xf50] sm:$0xff]  ;;  %v1784_v48 = vld [vmem:[#allocation9 + $0xf98] sm:$0xff] }
 0x34a   :  { %v10913_v4 = vpack.c.bf16 %v5129_v61, %v5121_v34  ;;  %v10915_v52 = vpack.c.bf16 %v5131_v63, %v5123_v45  ;;  %v5130_v5 = vsel %vm5097_vm6, %v10193_v22, %v5114_v51  ;;  %v5132_v6 = vsel %vm5099_vm7, %v10197_v47, %v5116_v53  ;;  %4887 = vmatpush1.bf16.msra.mxu0 %v9608_v9  ;;  %v1759_v9 = vld [vmem:[#allocation9 + $0xed0] sm:$0xff]  ;;  %v1788_v30 = vld [vmem:[#allocation9 + $0xfb8] sm:$0xff] }
 0x34b   :  { %v10920_v7 = vpack.c.bf16 %v5130_v5, %v5122_v55  ;;  %v10922_v11 = vpack.c.bf16 %v5132_v6, %v5124_v56  ;;  %5059 = vmatpush1.bf16.msra.mxu1 %v9610_v15  ;;  %4888 = vmatprep.subr.bf16.mxu0 %v9617_v32  ;;  %v9624_v12 = vcombine.low %v1743_v54, %v1747_v20  ;;  %v1764_v15 = vld [vmem:[#allocation9 + $0xef8] sm:$0xff]  ;;  %v1783_v22 = vld [vmem:[#allocation9 + $0xf90] sm:$0xff] }
 0x34c   :  { %5060 = vmatprep.subr.bf16.mxu1 %v9619_v40  ;;  %v9626_v16 = vcombine.low %v1744_v2, %v1748_v3  ;;  %v9633_v57 = vcombine.high %v1751_v14, %v1755_v8  ;;  %v9635_v60 = vcombine.high %v1752_v23, %v1756_v10  ;;  %v9632_v19 = vcombine.low %v1751_v14, %v1755_v8  ;;  %v1772_v32 = vld [vmem:[#allocation9 + $0xf38] sm:$0xff]  ;;  %v1787_v47 = vld [vmem:[#allocation9 + $0xfb0] sm:$0xff] }
 0x34d   :  { %v9634_v25 = vcombine.low %v1752_v23, %v1756_v10  ;;  %v9641_v26 = vcombine.high %v1759_v9, %v1763_v17  ;;  %v9643_v27 = vcombine.high %v1760_v18, %v1764_v15  ;;  %v9640_v33 = vcombine.low %v1759_v9, %v1763_v17  ;;  %v1776_v40 = vld [vmem:[#allocation9 + $0xf58] sm:$0xff]  ;;  %v1791_v55 = vld [vmem:[#allocation9 + $0xfd0] sm:$0xff] }
 0x34e   :  { %4889 = vmatpush1.bf16.msra.mxu0 %v9616_v31  ;;  %v1768_v31 = vld [vmem:[#allocation9 + $0xf18] sm:$0xff]  ;;  %v9642_v35 = vcombine.low %v1760_v18, %v1764_v15  ;;  %v9649_v49 = vcombine.high %v1767_v59, %v1771_v28  ;;  %v9648_v43 = vcombine.low %v1767_v59, %v1771_v28  ;;  %v9659_v45 = vcombine.high %v1776_v40, %v1780_v42  ;;  %v1795_v56 = vld [vmem:[#allocation9 + $0xff0] sm:$0xff] }
 0x34f   :  { %5061 = vmatpush1.bf16.msra.mxu1 %v9618_v38  ;;  %4890 = vmatprep.subr.bf16.mxu0 %v9625_v13  ;;  %v9651_v50 = vcombine.high %v1768_v31, %v1772_v32  ;;  %v1779_v38 = vld [vmem:[#allocation9 + $0xf70] sm:$0xff]  ;;  %v9650_v1 = vcombine.low %v1768_v31, %v1772_v32  ;;  %v9658_v53 = vcombine.low %v1776_v40, %v1780_v42  ;;  %v1792_v61 = vld [vmem:[#allocation9 + $0xfd8] sm:$0xff]  ;;  %v5145_v13 = vld [vmem:[#allocation12] sm:$0xff] }
 0x350   :  { %5062 = vmatprep.subr.bf16.mxu1 %v9627_v0  ;;  %v9657_v34 = vcombine.high %v1775_v37, %v1779_v38  ;;  %v9656_v51 = vcombine.low %v1775_v37, %v1779_v38  ;;  %v9665_v54 = vcombine.high %v1783_v22, %v1787_v47  ;;  %v9667_v20 = vcombine.high %v1784_v48, %v1788_v30  ;;  %v1796_v63 = vld [vmem:[#allocation9 + $0xff8] sm:$0xff]  ;;  %v5149_v0 = vld [vmem:[#allocation12 + $0x20] sm:$0xff]  ;;  %v5146_v14 = vld [vmem:[#allocation12 + $0x8] sm:$0xff] }
 0x351   :  { %v9664_v2 = vcombine.low %v1783_v22, %v1787_v47  ;;  %v9666_v3 = vcombine.low %v1784_v48, %v1788_v30  ;;  %v9673_v5 = vcombine.high %v1791_v55, %v1795_v56  ;;  %v9675_v6 = vcombine.high %v1792_v61, %v1796_v63  ;;  %v5150_v8 = vld [vmem:[#allocation12 + $0x28] sm:$0xff] }
 0x352   :  { %4891 = vmatpush1.bf16.msra.mxu0 %v9624_v12  ;;  %v9672_v23 = vcombine.low %v1791_v55, %v1795_v56  ;;  %v9674_v10 = vcombine.low %v1792_v61, %v1796_v63  ;;  %v9678_v12 = vcombine.high %v5145_v13, %v5149_v0  ;;  %v9677_v9 = vcombine.low %v5145_v13, %v5149_v0  ;;  %v5154_v17 = vld [vmem:[#allocation12 + $0x48] sm:$0xff] }
 0x353   :  { %5063 = vmatpush1.bf16.msra.mxu1 %v9626_v16  ;;  %4892 = vmatprep.subr.bf16.mxu0 %v9633_v57  ;;  %v9680_v16 = vcombine.high %v5146_v14, %v5150_v8  ;;  %v5153_v57 = vld [vmem:[#allocation12 + $0x40] sm:$0xff]  ;;  %v5158_v18 = vld [vmem:[#allocation12 + $0x68] sm:$0xff]  ;;  %v9679_v15 = vcombine.low %v5146_v14, %v5150_v8 }
 0x354   :  { %5064 = vmatprep.subr.bf16.mxu1 %v9635_v60  ;;  %v5157_v60 = vld [vmem:[#allocation12 + $0x60] sm:$0xff]  ;;  %v5162_v59 = vld [vmem:[#allocation12 + $0x88] sm:$0xff]  ;;  %v9687_v32 = vcombine.low %v5154_v17, %v5158_v18 }
 0x355   :  { %v5166_v28 = vld [vmem:[#allocation12 + $0xa8] sm:$0xff]  ;;  %v9685_v31 = vcombine.low %v5153_v57, %v5157_v60 }
 0x356   :  { %4893 = vmatpush1.bf16.msra.mxu0 %v9632_v19  ;;  %v9686_v19 = vcombine.high %v5153_v57, %v5157_v60  ;;  %v5170_v37 = vld [vmem:[#allocation12 + $0xc8] sm:$0xff] }
 0x357   :  { %5065 = vmatpush1.bf16.msra.mxu1 %v9634_v25  ;;  %4894 = vmatprep.subr.bf16.mxu0 %v9641_v26  ;;  %v5161_v25 = vld [vmem:[#allocation12 + $0x80] sm:$0xff]  ;;  %v5174_v38 = vld [vmem:[#allocation12 + $0xe8] sm:$0xff] }
 0x358   :  { %5066 = vmatprep.subr.bf16.mxu1 %v9643_v27  ;;  %v5165_v26 = vld [vmem:[#allocation12 + $0xa0] sm:$0xff]  ;;  %v9688_v27 = vcombine.high %v5154_v17, %v5158_v18  ;;  %v5182_v22 = vld [vmem:[#allocation12 + $0x128] sm:$0xff]  ;;  %v9703_v48 = vcombine.low %v5170_v37, %v5174_v38 }
 0x359   :  { %v9693_v40 = vcombine.low %v5161_v25, %v5165_v26  ;;  %v5190_v55 = vld [vmem:[#allocation12 + $0x168] sm:$0xff] }
 0x35a   :  { %4895 = vmatpush1.bf16.msra.mxu0 %v9640_v33  ;;  %v9694_v33 = vcombine.high %v5161_v25, %v5165_v26  ;;  %v5198_v13 = vld [vmem:[#allocation12 + $0x1a8] sm:$0xff] }
 0x35b   :  { %5067 = vmatpush1.bf16.msra.mxu1 %v9642_v35  ;;  %4896 = vmatprep.subr.bf16.mxu0 %v9649_v49  ;;  %v9696_v35 = vcombine.high %v5162_v59, %v5166_v28  ;;  %v5169_v49 = vld [vmem:[#allocation12 + $0xc0] sm:$0xff]  ;;  %v5206_v57 = vld [vmem:[#allocation12 + $0x1e8] sm:$0xff] }
 0x35c   :  { %5068 = vmatprep.subr.bf16.mxu1 %v9651_v50  ;;  %v5173_v50 = vld [vmem:[#allocation12 + $0xe0] sm:$0xff]  ;;  %v5210_v25 = vld [vmem:[#allocation12 + $0x208] sm:$0xff] }
 0x35d   :  { %v9702_v42 = vcombine.high %v5169_v49, %v5173_v50  ;;  %v9701_v47 = vcombine.low %v5169_v49, %v5173_v50  ;;  %v5214_v26 = vld [vmem:[#allocation12 + $0x228] sm:$0xff] }
 0x35e   :  { %4897 = vmatpush1.bf16.msra.mxu0 %v9648_v43  ;;  %v9704_v43 = vcombine.high %v5170_v37, %v5174_v38  ;;  %v5222_v49 = vld [vmem:[#allocation12 + $0x268] sm:$0xff]  ;;  %v9743_v37 = vcombine.low %v5210_v25, %v5214_v26 }
 0x35f   :  { %5069 = vmatpush1.bf16.msra.mxu1 %v9650_v1  ;;  %4898 = vmatprep.subr.bf16.mxu0 %v9657_v34  ;;  %v5177_v1 = vld [vmem:[#allocation12 + $0x100] sm:$0xff] }
 0x360   :  { %5070 = vmatprep.subr.bf16.mxu1 %v9659_v45  ;;  %v5181_v34 = vld [vmem:[#allocation12 + $0x120] sm:$0xff]  ;;  %v5178_v45 = vld [vmem:[#allocation12 + $0x108] sm:$0xff] }
 0x361   :  { %v9710_v30 = vcombine.high %v5177_v1, %v5181_v34  ;;  %v9709_v56 = vcombine.low %v5177_v1, %v5181_v34  ;;  %v9711_v61 = vcombine.low %v5178_v45, %v5182_v22  ;;  %v5230_v1 = vld [vmem:[#allocation12 + $0x2a8] sm:$0xff] }
 0x362   :  { %4899 = vmatpush1.bf16.msra.mxu0 %v9656_v51  ;;  %v9712_v51 = vcombine.high %v5178_v45, %v5182_v22 }
 0x363   :  { %5071 = vmatpush1.bf16.msra.mxu1 %v9658_v53  ;;  %4900 = vmatprep.subr.bf16.mxu0 %v9665_v54  ;;  %v5185_v53 = vld [vmem:[#allocation12 + $0x140] sm:$0xff] }
 0x364   :  { %5072 = vmatprep.subr.bf16.mxu1 %v9667_v20  ;;  %v5189_v54 = vld [vmem:[#allocation12 + $0x160] sm:$0xff]  ;;  %v5186_v20 = vld [vmem:[#allocation12 + $0x148] sm:$0xff] }
 0x365   :  { %v9718_v63 = vcombine.high %v5185_v53, %v5189_v54  ;;  %v9717_v0 = vcombine.low %v5185_v53, %v5189_v54  ;;  %v9719_v14 = vcombine.low %v5186_v20, %v5190_v55  ;;  %v5238_v53 = vld [vmem:[#allocation12 + $0x2e8] sm:$0xff] }
 0x366   :  { %4901 = vmatpush1.bf16.msra.mxu0 %v9664_v2  ;;  %v9720_v2 = vcombine.high %v5186_v20, %v5190_v55 }
 0x367   :  { %5073 = vmatpush1.bf16.msra.mxu1 %v9666_v3  ;;  %4902 = vmatprep.subr.bf16.mxu0 %v9673_v5  ;;  %v5193_v3 = vld [vmem:[#allocation12 + $0x180] sm:$0xff] }
 0x368   :  { %5074 = vmatprep.subr.bf16.mxu1 %v9675_v6  ;;  %v5197_v5 = vld [vmem:[#allocation12 + $0x1a0] sm:$0xff]  ;;  %v5194_v6 = vld [vmem:[#allocation12 + $0x188] sm:$0xff] }
 0x369   :  { %v9726_v8 = vcombine.high %v5193_v3, %v5197_v5  ;;  %v9725_v60 = vcombine.low %v5193_v3, %v5197_v5  ;;  %v5246_v3 = vld [vmem:[#allocation12 + $0x328] sm:$0xff] }
 0x36a   :  { %4903 = vmatpush1.bf16.msra.mxu0 %v9672_v23  ;;  %v9728_v23 = vcombine.high %v5194_v6, %v5198_v13 }
 0x36b   :  { %5075 = vmatpush1.bf16.msra.mxu1 %v9674_v10  ;;  %8259 = vmatprep.subr.bf16.mxu0 %v9678_v12  ;;  %v5201_v10 = vld [vmem:[#allocation12 + $0x1c0] sm:$0xff] }
 0x36c   :  { %8431 = vmatprep.subr.bf16.mxu1 %v9680_v16  ;;  %v5205_v12 = vld [vmem:[#allocation12 + $0x1e0] sm:$0xff]  ;;  %v5202_v16 = vld [vmem:[#allocation12 + $0x1c8] sm:$0xff] }
 0x36d   :  { %4905 = vmatmul.mubr.bf16.vlgmr.msra.gmra.mrb[12].mxu0 %v10820_v46  ;;  %v9734_v17 = vcombine.high %v5201_v10, %v5205_v12  ;;  %v9736_v18 = vcombine.high %v5202_v16, %v5206_v57 }
 0x36e   :  { %5077 = vmatmul.mubr.bf16.vlgmr.msra.gmra.mrb[12].mxu1 %v10820_v46  ;;  %8260 = vmatpush1.bf16.msra.mxu0 %v9677_v9  ;;  %v9695_v46 = vcombine.low %v5162_v59, %v5166_v28  ;;  %v9727_v9 = vcombine.low %v5194_v6, %v5198_v13  ;;  %v9735_v59 = vcombine.low %v5202_v16, %v5206_v57 }
 0x36f   :  { %8291 = vmatprep.mubr.bf16.mxu0 %v10920_v7  ;;  %8432 = vmatpush1.bf16.msra.mxu1 %v9679_v15  ;;  %v5209_v15 = vld [vmem:[#allocation12 + $0x200] sm:$0xff] }
 0x370   :  { %8463 = vmatprep.mubr.bf16.mxu1 %v10920_v7  ;;  %8261 = vmatprep.subr.bf16.mxu0 %v9686_v19  ;;  %v5213_v19 = vld [vmem:[#allocation12 + $0x220] sm:$0xff] }
 0x371   :  { %8433 = vmatprep.subr.bf16.mxu1 %v9688_v27  ;;  %v9733_v27 = vcombine.low %v5201_v10, %v5205_v12  ;;  %v9742_v28 = vcombine.high %v5209_v15, %v5213_v19  ;;  %v9741_v50 = vcombine.low %v5209_v15, %v5213_v19  ;;  %v5254_v10 = vld [vmem:[#allocation12 + $0x368] sm:$0xff] }
 0x372   :  { %8262 = vmatpush1.bf16.msra.mxu0 %v9685_v31  ;;  %v9744_v31 = vcombine.high %v5210_v25, %v5214_v26  ;;  %v5262_v15 = vld [vmem:[#allocation12 + $0x3a8] sm:$0xff] }
 0x373   :  { %8434 = vmatpush1.bf16.msra.mxu1 %v9687_v32  ;;  %8263 = vmatprep.subr.bf16.mxu0 %v9694_v33  ;;  %v5217_v32 = vld [vmem:[#allocation12 + $0x240] sm:$0xff] }
 0x374   :  { %8435 = vmatprep.subr.bf16.mxu1 %v9696_v35  ;;  %v5221_v33 = vld [vmem:[#allocation12 + $0x260] sm:$0xff]  ;;  %v5218_v35 = vld [vmem:[#allocation12 + $0x248] sm:$0xff] }
 0x375   :  { %v9750_v38 = vcombine.high %v5217_v32, %v5221_v33  ;;  %v9749_v34 = vcombine.low %v5217_v32, %v5221_v33  ;;  %v9751_v45 = vcombine.low %v5218_v35, %v5222_v49  ;;  %v5270_v32 = vld [vmem:[#allocation12 + $0x3e8] sm:$0xff] }
 0x376   :  { %8264 = vmatpush1.bf16.msra.mxu0 %v9693_v40  ;;  %v9752_v40 = vcombine.high %v5218_v35, %v5222_v49 }
 0x377   :  { %8436 = vmatpush1.bf16.msra.mxu1 %v9695_v46  ;;  %8265 = vmatprep.subr.bf16.mxu0 %v9702_v42  ;;  %v5225_v46 = vld [vmem:[#allocation12 + $0x280] sm:$0xff] }
 0x378   :  { %8437 = vmatprep.subr.bf16.mxu1 %v9704_v43  ;;  %v5229_v42 = vld [vmem:[#allocation12 + $0x2a0] sm:$0xff]  ;;  %v5226_v43 = vld [vmem:[#allocation12 + $0x288] sm:$0xff] }
 0x379   :  { %v9758_v22 = vcombine.high %v5225_v46, %v5229_v42  ;;  %v9757_v54 = vcombine.low %v5225_v46, %v5229_v42  ;;  %v9759_v20 = vcombine.low %v5226_v43, %v5230_v1  ;;  %v5278_v46 = vld [vmem:[#allocation12 + $0x428] sm:$0xff] }
 0x37a   :  { %8266 = vmatpush1.bf16.msra.mxu0 %v9701_v47  ;;  %v9760_v47 = vcombine.high %v5226_v43, %v5230_v1 }
 0x37b   :  { %8438 = vmatpush1.bf16.msra.mxu1 %v9703_v48  ;;  %8267 = vmatprep.subr.bf16.mxu0 %v9710_v30  ;;  %v5233_v48 = vld [vmem:[#allocation12 + $0x2c0] sm:$0xff] }
 0x37c   :  { %8439 = vmatprep.subr.bf16.mxu1 %v9712_v51  ;;  %v5237_v30 = vld [vmem:[#allocation12 + $0x2e0] sm:$0xff]  ;;  %v5234_v51 = vld [vmem:[#allocation12 + $0x2c8] sm:$0xff] }
 0x37d   :  { %v9766_v55 = vcombine.high %v5233_v48, %v5237_v30  ;;  %v9765_v5 = vcombine.low %v5233_v48, %v5237_v30  ;;  %v9767_v6 = vcombine.low %v5234_v51, %v5238_v53  ;;  %v5282_v48 = vld [vmem:[#allocation12 + $0x448] sm:$0xff] }
 0x37e   :  { %8268 = vmatpush1.bf16.msra.mxu0 %v9709_v56  ;;  %v9768_v56 = vcombine.high %v5234_v51, %v5238_v53  ;;  %v5286_v30 = vld [vmem:[#allocation12 + $0x468] sm:$0xff] }
 0x37f   :  { %8440 = vmatpush1.bf16.msra.mxu1 %v9711_v61  ;;  %8269 = vmatprep.subr.bf16.mxu0 %v9718_v63  ;;  %v5241_v61 = vld [vmem:[#allocation12 + $0x300] sm:$0xff] }
 0x380   :  { %8441 = vmatprep.subr.bf16.mxu1 %v9720_v2  ;;  %v5245_v63 = vld [vmem:[#allocation12 + $0x320] sm:$0xff]  ;;  %v5242_v2 = vld [vmem:[#allocation12 + $0x308] sm:$0xff] }
 0x381   :  { %v9774_v13 = vcombine.high %v5241_v61, %v5245_v63  ;;  %v9773_v12 = vcombine.low %v5241_v61, %v5245_v63  ;;  %v9775_v16 = vcombine.low %v5242_v2, %v5246_v3  ;;  %v5294_v61 = vld [vmem:[#allocation12 + $0x4a8] sm:$0xff] }
 0x382   :  { %8270 = vmatpush1.bf16.msra.mxu0 %v9717_v0  ;;  %v9776_v0 = vcombine.high %v5242_v2, %v5246_v3  ;;  %v9815_v2 = vcombine.low %v5282_v48, %v5286_v30 }
 0x383   :  { %8442 = vmatpush1.bf16.msra.mxu1 %v9719_v14  ;;  %8271 = vmatprep.subr.bf16.mxu0 %v9726_v8  ;;  %v5249_v14 = vld [vmem:[#allocation12 + $0x340] sm:$0xff] }
 0x384   :  { %8443 = vmatprep.subr.bf16.mxu1 %v9728_v23  ;;  %v5253_v8 = vld [vmem:[#allocation12 + $0x360] sm:$0xff]  ;;  %v5250_v23 = vld [vmem:[#allocation12 + $0x348] sm:$0xff] }
 0x385   :  { %v9782_v57 = vcombine.high %v5249_v14, %v5253_v8  ;;  %v9781_v19 = vcombine.low %v5249_v14, %v5253_v8  ;;  %v9783_v25 = vcombine.low %v5250_v23, %v5254_v10  ;;  %v5302_v14 = vld [vmem:[#allocation12 + $0x4e8] sm:$0xff] }
 0x386   :  { %8272 = vmatpush1.bf16.msra.mxu0 %v9725_v60  ;;  %v9784_v60 = vcombine.high %v5250_v23, %v5254_v10 }
 0x387   :  { %8444 = vmatpush1.bf16.msra.mxu1 %v9727_v9  ;;  %8273 = vmatprep.subr.bf16.mxu0 %v9734_v17  ;;  %v5257_v9 = vld [vmem:[#allocation12 + $0x380] sm:$0xff] }
 0x388   :  { %8445 = vmatprep.subr.bf16.mxu1 %v9736_v18  ;;  %v5261_v17 = vld [vmem:[#allocation12 + $0x3a0] sm:$0xff]  ;;  %v5258_v18 = vld [vmem:[#allocation12 + $0x388] sm:$0xff] }
 0x389   :  { %v9790_v26 = vcombine.high %v5257_v9, %v5261_v17  ;;  %v9789_v33 = vcombine.low %v5257_v9, %v5261_v17  ;;  %v9791_v35 = vcombine.low %v5258_v18, %v5262_v15  ;;  %v5310_v9 = vld [vmem:[#allocation12 + $0x528] sm:$0xff] }
 0x38a   :  { %8274 = vmatpush1.bf16.msra.mxu0 %v9733_v27  ;;  %v9792_v27 = vcombine.high %v5258_v18, %v5262_v15 }
 0x38b   :  { %8446 = vmatpush1.bf16.msra.mxu1 %v9735_v59  ;;  %8275 = vmatprep.subr.bf16.mxu0 %v9742_v28  ;;  %v5265_v59 = vld [vmem:[#allocation12 + $0x3c0] sm:$0xff] }
 0x38c   :  { %8447 = vmatprep.subr.bf16.mxu1 %v9744_v31  ;;  %v5269_v28 = vld [vmem:[#allocation12 + $0x3e0] sm:$0xff]  ;;  %v5266_v31 = vld [vmem:[#allocation12 + $0x3c8] sm:$0xff] }
 0x38d   :  { %v9798_v49 = vcombine.high %v5265_v59, %v5269_v28  ;;  %v9797_v42 = vcombine.low %v5265_v59, %v5269_v28  ;;  %v9799_v43 = vcombine.low %v5266_v31, %v5270_v32  ;;  %v5318_v59 = vld [vmem:[#allocation12 + $0x568] sm:$0xff] }
 0x38e   :  { %8276 = vmatpush1.bf16.msra.mxu0 %v9741_v50  ;;  %v9800_v50 = vcombine.high %v5266_v31, %v5270_v32 }
 0x38f   :  { %8448 = vmatpush1.bf16.msra.mxu1 %v9743_v37  ;;  %8277 = vmatprep.subr.bf16.mxu0 %v9750_v38  ;;  %v5273_v37 = vld [vmem:[#allocation12 + $0x400] sm:$0xff] }
 0x390   :  { %8449 = vmatprep.subr.bf16.mxu1 %v9752_v40  ;;  %v5277_v38 = vld [vmem:[#allocation12 + $0x420] sm:$0xff]  ;;  %v5274_v40 = vld [vmem:[#allocation12 + $0x408] sm:$0xff] }
 0x391   :  { %v9806_v1 = vcombine.high %v5273_v37, %v5277_v38  ;;  %v9807_v51 = vcombine.low %v5274_v40, %v5278_v46 }
 0x392   :  { %8278 = vmatpush1.bf16.msra.mxu0 %v9749_v34  ;;  %v9808_v34 = vcombine.high %v5274_v40, %v5278_v46 }
 0x393   :  { %8450 = vmatpush1.bf16.msra.mxu1 %v9751_v45  ;;  %8279 = vmatprep.subr.bf16.mxu0 %v9758_v22  ;;  %v5281_v45 = vld [vmem:[#allocation12 + $0x440] sm:$0xff] }
 0x394   :  { %8451 = vmatprep.subr.bf16.mxu1 %v9760_v47  ;;  %v5285_v22 = vld [vmem:[#allocation12 + $0x460] sm:$0xff]  ;;  %v9805_v47 = vcombine.low %v5273_v37, %v5277_v38  ;;  %v5326_v37 = vld [vmem:[#allocation12 + $0x5a8] sm:$0xff] }
 0x395   :  { %v9814_v53 = vcombine.high %v5281_v45, %v5285_v22  ;;  %v9813_v63 = vcombine.low %v5281_v45, %v5285_v22  ;;  %v5334_v45 = vld [vmem:[#allocation12 + $0x5e8] sm:$0xff] }
 0x396   :  { %8280 = vmatpush1.bf16.msra.mxu0 %v9757_v54  ;;  %v5289_v54 = vld [vmem:[#allocation12 + $0x480] sm:$0xff] }
 0x397   :  { %8452 = vmatpush1.bf16.msra.mxu1 %v9759_v20  ;;  %8281 = vmatprep.subr.bf16.mxu0 %v9766_v55  ;;  %v5293_v20 = vld [vmem:[#allocation12 + $0x4a0] sm:$0xff]  ;;  %v9816_v55 = vcombine.high %v5282_v48, %v5286_v30 }
 0x398   :  { %8453 = vmatprep.subr.bf16.mxu1 %v9768_v56  ;;  %v5290_v56 = vld [vmem:[#allocation12 + $0x488] sm:$0xff]  ;;  %v9822_v3 = vcombine.high %v5289_v54, %v5293_v20  ;;  %v9821_v8 = vcombine.low %v5289_v54, %v5293_v20 }
 0x399   :  { %v9823_v23 = vcombine.low %v5290_v56, %v5294_v61  ;;  %v5338_v54 = vld [vmem:[#allocation12 + $0x608] sm:$0xff] }
 0x39a   :  { %8282 = vmatpush1.bf16.msra.mxu0 %v9765_v5  ;;  %v9824_v5 = vcombine.high %v5290_v56, %v5294_v61  ;;  %v5342_v20 = vld [vmem:[#allocation12 + $0x628] sm:$0xff] }
 0x39b   :  { %8454 = vmatpush1.bf16.msra.mxu1 %v9767_v6  ;;  %8283 = vmatprep.subr.bf16.mxu0 %v9774_v13  ;;  %v5297_v6 = vld [vmem:[#allocation12 + $0x4c0] sm:$0xff] }
 0x39c   :  { %8455 = vmatprep.subr.bf16.mxu1 %v9776_v0  ;;  %v5301_v13 = vld [vmem:[#allocation12 + $0x4e0] sm:$0xff]  ;;  %v5298_v0 = vld [vmem:[#allocation12 + $0x4c8] sm:$0xff] }
 0x39d   :  { %v9830_v10 = vcombine.high %v5297_v6, %v5301_v13  ;;  %v9829_v17 = vcombine.low %v5297_v6, %v5301_v13  ;;  %v9831_v18 = vcombine.low %v5298_v0, %v5302_v14  ;;  %v5350_v6 = vld [vmem:[#allocation12 + $0x668] sm:$0xff] }
 0x39e   :  { %8284 = vmatpush1.bf16.msra.mxu0 %v9773_v12  ;;  %v9832_v12 = vcombine.high %v5298_v0, %v5302_v14  ;;  %v9871_v0 = vcombine.low %v5338_v54, %v5342_v20 }
 0x39f   :  { %8456 = vmatpush1.bf16.msra.mxu1 %v9775_v16  ;;  %8285 = vmatprep.subr.bf16.mxu0 %v9782_v57  ;;  %v5305_v16 = vld [vmem:[#allocation12 + $0x500] sm:$0xff] }
 0x3a0   :  { %8457 = vmatprep.subr.bf16.mxu1 %v9784_v60  ;;  %v5309_v57 = vld [vmem:[#allocation12 + $0x520] sm:$0xff]  ;;  %v5306_v60 = vld [vmem:[#allocation12 + $0x508] sm:$0xff] }
 0x3a1   :  { %v9838_v15 = vcombine.high %v5305_v16, %v5309_v57  ;;  %v9837_v28 = vcombine.low %v5305_v16, %v5309_v57  ;;  %v9839_v31 = vcombine.low %v5306_v60, %v5310_v9  ;;  %v5358_v16 = vld [vmem:[#allocation12 + $0x6a8] sm:$0xff] }
 0x3a2   :  { %8286 = vmatpush1.bf16.msra.mxu0 %v9781_v19  ;;  %v9840_v19 = vcombine.high %v5306_v60, %v5310_v9 }
 0x3a3   :  { %8458 = vmatpush1.bf16.msra.mxu1 %v9783_v25  ;;  %8287 = vmatprep.subr.bf16.mxu0 %v9790_v26  ;;  %v5313_v25 = vld [vmem:[#allocation12 + $0x540] sm:$0xff] }
 0x3a4   :  { %8459 = vmatprep.subr.bf16.mxu1 %v9792_v27  ;;  %v5317_v26 = vld [vmem:[#allocation12 + $0x560] sm:$0xff]  ;;  %v5314_v27 = vld [vmem:[#allocation12 + $0x548] sm:$0xff] }
 0x3a5   :  { %v9846_v32 = vcombine.high %v5313_v25, %v5317_v26  ;;  %v9845_v38 = vcombine.low %v5313_v25, %v5317_v26  ;;  %v9847_v40 = vcombine.low %v5314_v27, %v5318_v59  ;;  %v5366_v25 = vld [vmem:[#allocation12 + $0x6e8] sm:$0xff] }
 0x3a6   :  { %8288 = vmatpush1.bf16.msra.mxu0 %v9789_v33  ;;  %v9848_v33 = vcombine.high %v5314_v27, %v5318_v59 }
 0x3a7   :  { %8460 = vmatpush1.bf16.msra.mxu1 %v9791_v35  ;;  %8289 = vmatprep.subr.bf16.mxu0 %v9798_v49  ;;  %v5321_v35 = vld [vmem:[#allocation12 + $0x580] sm:$0xff] }
 0x3a8   :  { %8461 = vmatprep.subr.bf16.mxu1 %v9800_v50  ;;  %v5325_v49 = vld [vmem:[#allocation12 + $0x5a0] sm:$0xff]  ;;  %v5322_v50 = vld [vmem:[#allocation12 + $0x588] sm:$0xff] }
 0x3a9   :  { %v9854_v46 = vcombine.high %v5321_v35, %v5325_v49  ;;  %v9853_v22 = vcombine.low %v5321_v35, %v5325_v49  ;;  %v5374_v35 = vld [vmem:[#allocation12 + $0x728] sm:$0xff] }
 0x3aa   :  { %8290 = vmatpush1.bf16.msra.mxu0 %v9797_v42  ;;  %v9856_v42 = vcombine.high %v5322_v50, %v5326_v37 }
 0x3ab   :  { %8462 = vmatpush1.bf16.msra.mxu1 %v9799_v43  ;;  %8302 = vmatprep.subr.bf16.mxu0 %v9806_v1  ;;  %v5329_v43 = vld [vmem:[#allocation12 + $0x5c0] sm:$0xff] }
 0x3ac   :  { %8474 = vmatprep.subr.bf16.mxu1 %v9808_v34  ;;  %v5333_v1 = vld [vmem:[#allocation12 + $0x5e0] sm:$0xff]  ;;  %v5330_v34 = vld [vmem:[#allocation12 + $0x5c8] sm:$0xff] }
 0x3ad   :  { %8292 = vmatmul.mubr.bf16.vlgmr.msra.gmra.mrb[16].mxu0 %v10913_v4  ;;  %v9862_v48 = vcombine.high %v5329_v43, %v5333_v1  ;;  %v9864_v30 = vcombine.high %v5330_v34, %v5334_v45  ;;  %v9863_v56 = vcombine.low %v5330_v34, %v5334_v45 }
 0x3ae   :  { %8464 = vmatmul.mubr.bf16.vlgmr.msra.gmra.mrb[16].mxu1 %v10913_v4  ;;  %8303 = vmatpush1.bf16.msra.mxu0 %v9805_v47  ;;  %v9855_v47 = vcombine.low %v5322_v50, %v5326_v37 }
 0x3af   :  { %8334 = vmatprep.mubr.bf16.mxu0 %v10922_v11  ;;  %8475 = vmatpush1.bf16.msra.mxu1 %v9807_v51  ;;  %v5337_v51 = vld [vmem:[#allocation12 + $0x600] sm:$0xff] }
 0x3b0   :  { %8506 = vmatprep.mubr.bf16.mxu1 %v10922_v11  ;;  %8304 = vmatprep.subr.bf16.mxu0 %v9814_v53  ;;  %v5341_v53 = vld [vmem:[#allocation12 + $0x620] sm:$0xff] }
 0x3b1   :  { %8476 = vmatprep.subr.bf16.mxu1 %v9816_v55  ;;  %v9861_v55 = vcombine.low %v5329_v43, %v5333_v1  ;;  %v9870_v61 = vcombine.high %v5337_v51, %v5341_v53  ;;  %v9869_v13 = vcombine.low %v5337_v51, %v5341_v53  ;;  %v5382_v43 = vld [vmem:[#allocation12 + $0x768] sm:$0xff] }
 0x3b2   :  { %8305 = vmatpush1.bf16.msra.mxu0 %v9813_v63  ;;  %v9872_v63 = vcombine.high %v5338_v54, %v5342_v20  ;;  %v5390_v51 = vld [vmem:[#allocation12 + $0x7a8] sm:$0xff] }
 0x3b3   :  { %8477 = vmatpush1.bf16.msra.mxu1 %v9815_v2  ;;  %8306 = vmatprep.subr.bf16.mxu0 %v9822_v3  ;;  %v5345_v2 = vld [vmem:[#allocation12 + $0x640] sm:$0xff] }
 0x3b4   :  { %8478 = vmatprep.subr.bf16.mxu1 %v9824_v5  ;;  %v5349_v3 = vld [vmem:[#allocation12 + $0x660] sm:$0xff]  ;;  %v5346_v5 = vld [vmem:[#allocation12 + $0x648] sm:$0xff] }
 0x3b5   :  { %v9878_v14 = vcombine.high %v5345_v2, %v5349_v3  ;;  %v9877_v57 = vcombine.low %v5345_v2, %v5349_v3  ;;  %v9879_v60 = vcombine.low %v5346_v5, %v5350_v6  ;;  %v5398_v2 = vld [vmem:[#allocation12 + $0x7e8] sm:$0xff] }
 0x3b6   :  { %8307 = vmatpush1.bf16.msra.mxu0 %v9821_v8  ;;  %v9880_v8 = vcombine.high %v5346_v5, %v5350_v6 }
 0x3b7   :  { %8479 = vmatpush1.bf16.msra.mxu1 %v9823_v23  ;;  %8308 = vmatprep.subr.bf16.mxu0 %v9830_v10  ;;  %v5353_v23 = vld [vmem:[#allocation12 + $0x680] sm:$0xff] }
 0x3b8   :  { %8480 = vmatprep.subr.bf16.mxu1 %v9832_v12  ;;  %v5357_v10 = vld [vmem:[#allocation12 + $0x6a0] sm:$0xff]  ;;  %v5354_v12 = vld [vmem:[#allocation12 + $0x688] sm:$0xff] }
 0x3b9   :  { %v9886_v9 = vcombine.high %v5353_v23, %v5357_v10  ;;  %v9885_v26 = vcombine.low %v5353_v23, %v5357_v10  ;;  %v9887_v27 = vcombine.low %v5354_v12, %v5358_v16  ;;  %v5406_v23 = vld [vmem:[#allocation12 + $0x828] sm:$0xff] }
 0x3ba   :  { %8309 = vmatpush1.bf16.msra.mxu0 %v9829_v17  ;;  %v9888_v17 = vcombine.high %v5354_v12, %v5358_v16 }
 0x3bb   :  { %8481 = vmatpush1.bf16.msra.mxu1 %v9831_v18  ;;  %8310 = vmatprep.subr.bf16.mxu0 %v9838_v15  ;;  %v5361_v18 = vld [vmem:[#allocation12 + $0x6c0] sm:$0xff] }
 0x3bc   :  { %8482 = vmatprep.subr.bf16.mxu1 %v9840_v19  ;;  %v5365_v15 = vld [vmem:[#allocation12 + $0x6e0] sm:$0xff]  ;;  %v5362_v19 = vld [vmem:[#allocation12 + $0x6c8] sm:$0xff] }
 0x3bd   :  { %v9894_v59 = vcombine.high %v5361_v18, %v5365_v15  ;;  %v9893_v49 = vcombine.low %v5361_v18, %v5365_v15  ;;  %v9895_v50 = vcombine.low %v5362_v19, %v5366_v25  ;;  %v5414_v18 = vld [vmem:[#allocation12 + $0x868] sm:$0xff] }
 0x3be   :  { %8311 = vmatpush1.bf16.msra.mxu0 %v9837_v28  ;;  %v9896_v28 = vcombine.high %v5362_v19, %v5366_v25 }
 0x3bf   :  { %8483 = vmatpush1.bf16.msra.mxu1 %v9839_v31  ;;  %8312 = vmatprep.subr.bf16.mxu0 %v9846_v32  ;;  %v5369_v31 = vld [vmem:[#allocation12 + $0x700] sm:$0xff] }
 0x3c0   :  { %8484 = vmatprep.subr.bf16.mxu1 %v9848_v33  ;;  %v5373_v32 = vld [vmem:[#allocation12 + $0x720] sm:$0xff]  ;;  %v5370_v33 = vld [vmem:[#allocation12 + $0x708] sm:$0xff] }
 0x3c1   :  { %v9902_v37 = vcombine.high %v5369_v31, %v5373_v32  ;;  %v9901_v1 = vcombine.low %v5369_v31, %v5373_v32  ;;  %v9903_v34 = vcombine.low %v5370_v33, %v5374_v35  ;;  %v5422_v31 = vld [vmem:[#allocation12 + $0x8a8] sm:$0xff] }
 0x3c2   :  { %8313 = vmatpush1.bf16.msra.mxu0 %v9845_v38  ;;  %v9904_v38 = vcombine.high %v5370_v33, %v5374_v35 }
 0x3c3   :  { %8485 = vmatpush1.bf16.msra.mxu1 %v9847_v40  ;;  %8314 = vmatprep.subr.bf16.mxu0 %v9854_v46  ;;  %v5377_v40 = vld [vmem:[#allocation12 + $0x740] sm:$0xff] }
 0x3c4   :  { %8486 = vmatprep.subr.bf16.mxu1 %v9856_v42  ;;  %v5381_v46 = vld [vmem:[#allocation12 + $0x760] sm:$0xff]  ;;  %v5378_v42 = vld [vmem:[#allocation12 + $0x748] sm:$0xff] }
 0x3c5   :  { %v9910_v45 = vcombine.high %v5377_v40, %v5381_v46  ;;  %v9909_v53 = vcombine.low %v5377_v40, %v5381_v46  ;;  %v9911_v54 = vcombine.low %v5378_v42, %v5382_v43  ;;  %v5430_v40 = vld [vmem:[#allocation12 + $0x8e8] sm:$0xff] }
 0x3c6   :  { %8315 = vmatpush1.bf16.msra.mxu0 %v9853_v22  ;;  %v9912_v22 = vcombine.high %v5378_v42, %v5382_v43 }
 0x3c7   :  { %8487 = vmatpush1.bf16.msra.mxu1 %v9855_v47  ;;  %8316 = vmatprep.subr.bf16.mxu0 %v9862_v48  ;;  %v5385_v47 = vld [vmem:[#allocation12 + $0x780] sm:$0xff] }
 0x3c8   :  { %8488 = vmatprep.subr.bf16.mxu1 %v9864_v30  ;;  %v5389_v48 = vld [vmem:[#allocation12 + $0x7a0] sm:$0xff]  ;;  %v5386_v30 = vld [vmem:[#allocation12 + $0x788] sm:$0xff] }
 0x3c9   :  { %v9918_v20 = vcombine.high %v5385_v47, %v5389_v48  ;;  %v9917_v3 = vcombine.low %v5385_v47, %v5389_v48  ;;  %v9919_v5 = vcombine.low %v5386_v30, %v5390_v51  ;;  %v5438_v47 = vld [vmem:[#allocation12 + $0x928] sm:$0xff] }
 0x3ca   :  { %8317 = vmatpush1.bf16.msra.mxu0 %v9861_v55  ;;  %v9920_v55 = vcombine.high %v5386_v30, %v5390_v51 }
 0x3cb   :  { %8489 = vmatpush1.bf16.msra.mxu1 %v9863_v56  ;;  %8318 = vmatprep.subr.bf16.mxu0 %v9870_v61  ;;  %v5393_v56 = vld [vmem:[#allocation12 + $0x7c0] sm:$0xff] }
 0x3cc   :  { %8490 = vmatprep.subr.bf16.mxu1 %v9872_v63  ;;  %v5397_v61 = vld [vmem:[#allocation12 + $0x7e0] sm:$0xff]  ;;  %v5394_v63 = vld [vmem:[#allocation12 + $0x7c8] sm:$0xff] }
 0x3cd   :  { %v9926_v6 = vcombine.high %v5393_v56, %v5397_v61  ;;  %v9925_v10 = vcombine.low %v5393_v56, %v5397_v61  ;;  %v9927_v12 = vcombine.low %v5394_v63, %v5398_v2  ;;  %v5446_v56 = vld [vmem:[#allocation12 + $0x968] sm:$0xff] }
 0x3ce   :  { %8319 = vmatpush1.bf16.msra.mxu0 %v9869_v13  ;;  %v9928_v13 = vcombine.high %v5394_v63, %v5398_v2 }
 0x3cf   :  { %8491 = vmatpush1.bf16.msra.mxu1 %v9871_v0  ;;  %8320 = vmatprep.subr.bf16.mxu0 %v9878_v14  ;;  %v5401_v0 = vld [vmem:[#allocation12 + $0x800] sm:$0xff] }
 0x3d0   :  { %8492 = vmatprep.subr.bf16.mxu1 %v9880_v8  ;;  %v5405_v14 = vld [vmem:[#allocation12 + $0x820] sm:$0xff]  ;;  %v5402_v8 = vld [vmem:[#allocation12 + $0x808] sm:$0xff] }
 0x3d1   :  { %v9934_v16 = vcombine.high %v5401_v0, %v5405_v14  ;;  %v9933_v15 = vcombine.low %v5401_v0, %v5405_v14  ;;  %v9935_v19 = vcombine.low %v5402_v8, %v5406_v23  ;;  %v5454_v0 = vld [vmem:[#allocation12 + $0x9a8] sm:$0xff] }
 0x3d2   :  { %8321 = vmatpush1.bf16.msra.mxu0 %v9877_v57  ;;  %v9936_v57 = vcombine.high %v5402_v8, %v5406_v23 }
 0x3d3   :  { %8493 = vmatpush1.bf16.msra.mxu1 %v9879_v60  ;;  %8322 = vmatprep.subr.bf16.mxu0 %v9886_v9  ;;  %v5409_v60 = vld [vmem:[#allocation12 + $0x840] sm:$0xff] }
 0x3d4   :  { %8494 = vmatprep.subr.bf16.mxu1 %v9888_v17  ;;  %v5413_v9 = vld [vmem:[#allocation12 + $0x860] sm:$0xff]  ;;  %v5410_v17 = vld [vmem:[#allocation12 + $0x848] sm:$0xff] }
 0x3d5   :  { %v9942_v25 = vcombine.high %v5409_v60, %v5413_v9  ;;  %v9941_v32 = vcombine.low %v5409_v60, %v5413_v9  ;;  %v9943_v33 = vcombine.low %v5410_v17, %v5414_v18  ;;  %v5462_v60 = vld [vmem:[#allocation12 + $0x9e8] sm:$0xff] }
 0x3d6   :  { %8323 = vmatpush1.bf16.msra.mxu0 %v9885_v26  ;;  %v9944_v26 = vcombine.high %v5410_v17, %v5414_v18 }
 0x3d7   :  { %8495 = vmatpush1.bf16.msra.mxu1 %v9887_v27  ;;  %8324 = vmatprep.subr.bf16.mxu0 %v9894_v59  ;;  %v5417_v27 = vld [vmem:[#allocation12 + $0x880] sm:$0xff] }
 0x3d8   :  { %8496 = vmatprep.subr.bf16.mxu1 %v9896_v28  ;;  %v5421_v59 = vld [vmem:[#allocation12 + $0x8a0] sm:$0xff]  ;;  %v5418_v28 = vld [vmem:[#allocation12 + $0x888] sm:$0xff] }
 0x3d9   :  { %v9950_v35 = vcombine.high %v5417_v27, %v5421_v59  ;;  %v9949_v46 = vcombine.low %v5417_v27, %v5421_v59  ;;  %v9951_v42 = vcombine.low %v5418_v28, %v5422_v31  ;;  %v5470_v27 = vld [vmem:[#allocation12 + $0xa28] sm:$0xff] }
 0x3da   :  { %8325 = vmatpush1.bf16.msra.mxu0 %v9893_v49  ;;  %v9952_v49 = vcombine.high %v5418_v28, %v5422_v31 }
 0x3db   :  { %8497 = vmatpush1.bf16.msra.mxu1 %v9895_v50  ;;  %8326 = vmatprep.subr.bf16.mxu0 %v9902_v37  ;;  %v5425_v50 = vld [vmem:[#allocation12 + $0x8c0] sm:$0xff] }
 0x3dc   :  { %8498 = vmatprep.subr.bf16.mxu1 %v9904_v38  ;;  %v5429_v37 = vld [vmem:[#allocation12 + $0x8e0] sm:$0xff]  ;;  %v5426_v38 = vld [vmem:[#allocation12 + $0x8c8] sm:$0xff] }
 0x3dd   :  { %v9958_v43 = vcombine.high %v5425_v50, %v5429_v37  ;;  %v9957_v48 = vcombine.low %v5425_v50, %v5429_v37  ;;  %v9959_v30 = vcombine.low %v5426_v38, %v5430_v40  ;;  %v5478_v50 = vld [vmem:[#allocation12 + $0xa68] sm:$0xff] }
 0x3de   :  { %8327 = vmatpush1.bf16.msra.mxu0 %v9901_v1  ;;  %v9960_v1 = vcombine.high %v5426_v38, %v5430_v40 }
 0x3df   :  { %8499 = vmatpush1.bf16.msra.mxu1 %v9903_v34  ;;  %8328 = vmatprep.subr.bf16.mxu0 %v9910_v45  ;;  %v5433_v34 = vld [vmem:[#allocation12 + $0x900] sm:$0xff] }
 0x3e0   :  { %8500 = vmatprep.subr.bf16.mxu1 %v9912_v22  ;;  %v5437_v45 = vld [vmem:[#allocation12 + $0x920] sm:$0xff]  ;;  %v5434_v22 = vld [vmem:[#allocation12 + $0x908] sm:$0xff] }
 0x3e1   :  { %v9966_v51 = vcombine.high %v5433_v34, %v5437_v45  ;;  %v9965_v61 = vcombine.low %v5433_v34, %v5437_v45  ;;  %v9967_v63 = vcombine.low %v5434_v22, %v5438_v47  ;;  %v5486_v34 = vld [vmem:[#allocation12 + $0xaa8] sm:$0xff] }
 0x3e2   :  { %8329 = vmatpush1.bf16.msra.mxu0 %v9909_v53  ;;  %v9968_v53 = vcombine.high %v5434_v22, %v5438_v47 }
 0x3e3   :  { %8501 = vmatpush1.bf16.msra.mxu1 %v9911_v54  ;;  %8330 = vmatprep.subr.bf16.mxu0 %v9918_v20  ;;  %v5441_v54 = vld [vmem:[#allocation12 + $0x940] sm:$0xff] }
 0x3e4   :  { %8502 = vmatprep.subr.bf16.mxu1 %v9920_v55  ;;  %v5445_v20 = vld [vmem:[#allocation12 + $0x960] sm:$0xff]  ;;  %v5442_v55 = vld [vmem:[#allocation12 + $0x948] sm:$0xff] }
 0x3e5   :  { %v9974_v2 = vcombine.high %v5441_v54, %v5445_v20  ;;  %v9973_v14 = vcombine.low %v5441_v54, %v5445_v20  ;;  %v9975_v8 = vcombine.low %v5442_v55, %v5446_v56  ;;  %v5494_v54 = vld [vmem:[#allocation12 + $0xae8] sm:$0xff] }
 0x3e6   :  { %8331 = vmatpush1.bf16.msra.mxu0 %v9917_v3  ;;  %v9976_v3 = vcombine.high %v5442_v55, %v5446_v56 }
 0x3e7   :  { %8503 = vmatpush1.bf16.msra.mxu1 %v9919_v5  ;;  %8332 = vmatprep.subr.bf16.mxu0 %v9926_v6  ;;  %v5449_v5 = vld [vmem:[#allocation12 + $0x980] sm:$0xff] }
 0x3e8   :  { %8504 = vmatprep.subr.bf16.mxu1 %v9928_v13  ;;  %v5453_v6 = vld [vmem:[#allocation12 + $0x9a0] sm:$0xff]  ;;  %v5450_v13 = vld [vmem:[#allocation12 + $0x988] sm:$0xff] }
 0x3e9   :  { %v9982_v23 = vcombine.high %v5449_v5, %v5453_v6  ;;  %v9981_v9 = vcombine.low %v5449_v5, %v5453_v6  ;;  %v9983_v17 = vcombine.low %v5450_v13, %v5454_v0  ;;  %v5502_v5 = vld [vmem:[#allocation12 + $0xb28] sm:$0xff] }
 0x3ea   :  { %8333 = vmatpush1.bf16.msra.mxu0 %v9925_v10  ;;  %v9984_v10 = vcombine.high %v5450_v13, %v5454_v0 }
 0x3eb   :  { %8505 = vmatpush1.bf16.msra.mxu1 %v9927_v12  ;;  %8345 = vmatprep.subr.bf16.mxu0 %v9934_v16  ;;  %v5457_v12 = vld [vmem:[#allocation12 + $0x9c0] sm:$0xff] }
 0x3ec   :  { %8517 = vmatprep.subr.bf16.mxu1 %v9936_v57  ;;  %v5461_v16 = vld [vmem:[#allocation12 + $0x9e0] sm:$0xff]  ;;  %v5458_v57 = vld [vmem:[#allocation12 + $0x9c8] sm:$0xff] }
 0x3ed   :  { %8335 = vmatmul.mubr.bf16.vlgmr.msra.gmra.mrb[16].mxu0 %v10915_v52  ;;  %v9990_v18 = vcombine.high %v5457_v12, %v5461_v16  ;;  %v9989_v59 = vcombine.low %v5457_v12, %v5461_v16  ;;  %v9991_v28 = vcombine.low %v5458_v57, %v5462_v60  ;;  %v5510_v12 = vld [vmem:[#allocation12 + $0xb68] sm:$0xff] }
 0x3ee   :  { %8507 = vmatmul.mubr.bf16.vlgmr.msra.gmra.mrb[16].mxu1 %v10915_v52  ;;  %8346 = vmatpush1.bf16.msra.mxu0 %v9933_v15  ;;  %v9992_v15 = vcombine.high %v5458_v57, %v5462_v60 }
 0x3ef   :  { %8518 = vmatpush1.bf16.msra.mxu1 %v9935_v19  ;;  %8347 = vmatprep.subr.bf16.mxu0 %v9942_v25  ;;  %v5465_v19 = vld [vmem:[#allocation12 + $0xa00] sm:$0xff] }
 0x3f0   :  { %8519 = vmatprep.subr.bf16.mxu1 %v9944_v26  ;;  %v5469_v25 = vld [vmem:[#allocation12 + $0xa20] sm:$0xff]  ;;  %v5466_v26 = vld [vmem:[#allocation12 + $0xa08] sm:$0xff] }
 0x3f1   :  { %v9998_v31 = vcombine.high %v5465_v19, %v5469_v25  ;;  %v9997_v37 = vcombine.low %v5465_v19, %v5469_v25  ;;  %v9999_v38 = vcombine.low %v5466_v26, %v5470_v27  ;;  %v5518_v19 = vld [vmem:[#allocation12 + $0xba8] sm:$0xff] }
 0x3f2   :  { %8348 = vmatpush1.bf16.msra.mxu0 %v9941_v32  ;;  %v10000_v32 = vcombine.high %v5466_v26, %v5470_v27 }
 0x3f3   :  { %8520 = vmatpush1.bf16.msra.mxu1 %v9943_v33  ;;  %8349 = vmatprep.subr.bf16.mxu0 %v9950_v35  ;;  %v5473_v33 = vld [vmem:[#allocation12 + $0xa40] sm:$0xff] }
 0x3f4   :  { %8521 = vmatprep.subr.bf16.mxu1 %v9952_v49  ;;  %v5477_v35 = vld [vmem:[#allocation12 + $0xa60] sm:$0xff]  ;;  %v5474_v49 = vld [vmem:[#allocation12 + $0xa48] sm:$0xff] }
 0x3f5   :  { %v10006_v40 = vcombine.high %v5473_v33, %v5477_v35  ;;  %v10005_v45 = vcombine.low %v5473_v33, %v5477_v35  ;;  %v10007_v22 = vcombine.low %v5474_v49, %v5478_v50  ;;  %v5526_v33 = vld [vmem:[#allocation12 + $0xbe8] sm:$0xff] }
 0x3f6   :  { %8350 = vmatpush1.bf16.msra.mxu0 %v9949_v46  ;;  %v10008_v46 = vcombine.high %v5474_v49, %v5478_v50 }
 0x3f7   :  { %8522 = vmatpush1.bf16.msra.mxu1 %v9951_v42  ;;  %8351 = vmatprep.subr.bf16.mxu0 %v9958_v43  ;;  %v5481_v42 = vld [vmem:[#allocation12 + $0xa80] sm:$0xff] }
 0x3f8   :  { %8523 = vmatprep.subr.bf16.mxu1 %v9960_v1  ;;  %v5485_v43 = vld [vmem:[#allocation12 + $0xaa0] sm:$0xff]  ;;  %v5482_v1 = vld [vmem:[#allocation12 + $0xa88] sm:$0xff] }
 0x3f9   :  { %v10014_v47 = vcombine.high %v5481_v42, %v5485_v43  ;;  %v10013_v20 = vcombine.low %v5481_v42, %v5485_v43  ;;  %v10015_v55 = vcombine.low %v5482_v1, %v5486_v34  ;;  %v10940_v42 = vld [vmem:[#allocation12 + $0xc28] sm:$0xff] }
 0x3fa   :  { %8352 = vmatpush1.bf16.msra.mxu0 %v9957_v48  ;;  %v10016_v48 = vcombine.high %v5482_v1, %v5486_v34 }
 0x3fb   :  { %8524 = vmatpush1.bf16.msra.mxu1 %v9959_v30  ;;  %8353 = vmatprep.subr.bf16.mxu0 %v9966_v51  ;;  %v5489_v30 = vld [vmem:[#allocation12 + $0xac0] sm:$0xff] }
 0x3fc   :  { %8525 = vmatprep.subr.bf16.mxu1 %v9968_v53  ;;  %v5493_v51 = vld [vmem:[#allocation12 + $0xae0] sm:$0xff]  ;;  %v5490_v53 = vld [vmem:[#allocation12 + $0xac8] sm:$0xff] }
 0x3fd   :  { %v10022_v56 = vcombine.high %v5489_v30, %v5493_v51  ;;  %v10021_v6 = vcombine.low %v5489_v30, %v5493_v51  ;;  %v10023_v13 = vcombine.low %v5490_v53, %v5494_v54 }
 0x3fe   :  { %8354 = vmatpush1.bf16.msra.mxu0 %v9965_v61  ;;  %v10024_v61 = vcombine.high %v5490_v53, %v5494_v54 }
 0x3ff   :  { %8526 = vmatpush1.bf16.msra.mxu1 %v9967_v63  ;;  %8355 = vmatprep.subr.bf16.mxu0 %v9974_v2  ;;  %v5497_v63 = vld [vmem:[#allocation12 + $0xb00] sm:$0xff] }
 0x400   :  { %8527 = vmatprep.subr.bf16.mxu1 %v9976_v3  ;;  %v5501_v2 = vld [vmem:[#allocation12 + $0xb20] sm:$0xff]  ;;  %v5498_v3 = vld [vmem:[#allocation12 + $0xb08] sm:$0xff] }
 0x401   :  { %v10030_v0 = vcombine.high %v5497_v63, %v5501_v2  ;;  %v10029_v16 = vcombine.low %v5497_v63, %v5501_v2  ;;  %v10031_v57 = vcombine.low %v5498_v3, %v5502_v5 }
 0x402   :  { %8356 = vmatpush1.bf16.msra.mxu0 %v9973_v14  ;;  %v10032_v14 = vcombine.high %v5498_v3, %v5502_v5 }
 0x403   :  { %8528 = vmatpush1.bf16.msra.mxu1 %v9975_v8  ;;  %8357 = vmatprep.subr.bf16.mxu0 %v9982_v23  ;;  %v5505_v8 = vld [vmem:[#allocation12 + $0xb40] sm:$0xff] }
 0x404   :  { %8529 = vmatprep.subr.bf16.mxu1 %v9984_v10  ;;  %v5509_v23 = vld [vmem:[#allocation12 + $0xb60] sm:$0xff]  ;;  %v5506_v10 = vld [vmem:[#allocation12 + $0xb48] sm:$0xff] }
 0x405   :  { %v10038_v60 = vcombine.high %v5505_v8, %v5509_v23  ;;  %v10037_v25 = vcombine.low %v5505_v8, %v5509_v23  ;;  %v10039_v26 = vcombine.low %v5506_v10, %v5510_v12 }
 0x406   :  { %8358 = vmatpush1.bf16.msra.mxu0 %v9981_v9  ;;  %v10040_v9 = vcombine.high %v5506_v10, %v5510_v12 }
 0x407   :  { %8530 = vmatpush1.bf16.msra.mxu1 %v9983_v17  ;;  %8359 = vmatprep.subr.bf16.mxu0 %v9990_v18  ;;  %v5513_v17 = vld [vmem:[#allocation12 + $0xb80] sm:$0xff] }
 0x408   :  { %8531 = vmatprep.subr.bf16.mxu1 %v9992_v15  ;;  %v5517_v18 = vld [vmem:[#allocation12 + $0xba0] sm:$0xff]  ;;  %v5514_v15 = vld [vmem:[#allocation12 + $0xb88] sm:$0xff] }
 0x409   :  { %v10046_v27 = vcombine.high %v5513_v17, %v5517_v18  ;;  %v10045_v35 = vcombine.low %v5513_v17, %v5517_v18  ;;  %v10047_v49 = vcombine.low %v5514_v15, %v5518_v19 }
 0x40a   :  { %8360 = vmatpush1.bf16.msra.mxu0 %v9989_v59  ;;  %v10048_v59 = vcombine.high %v5514_v15, %v5518_v19 }
 0x40b   :  { %8532 = vmatpush1.bf16.msra.mxu1 %v9991_v28  ;;  %8361 = vmatprep.subr.bf16.mxu0 %v9998_v31  ;;  %v5521_v28 = vld [vmem:[#allocation12 + $0xbc0] sm:$0xff] }
 0x40c   :  { %8533 = vmatprep.subr.bf16.mxu1 %v10000_v32  ;;  %v5525_v31 = vld [vmem:[#allocation12 + $0xbe0] sm:$0xff]  ;;  %v5522_v32 = vld [vmem:[#allocation12 + $0xbc8] sm:$0xff] }
 0x40d   :  { %v10054_v50 = vcombine.high %v5521_v28, %v5525_v31  ;;  %v10053_v43 = vcombine.low %v5521_v28, %v5525_v31  ;;  %v10055_v1 = vcombine.low %v5522_v32, %v5526_v33 }
 0x40e   :  { %8362 = vmatpush1.bf16.msra.mxu0 %v9997_v37  ;;  %v10056_v37 = vcombine.high %v5522_v32, %v5526_v33 }
 0x40f   :  { %8534 = vmatpush1.bf16.msra.mxu1 %v9999_v38  ;;  %8363 = vmatprep.subr.bf16.mxu0 %v10006_v40  ;;  %v10934_v38 = vld [vmem:[#allocation12 + $0xc00] sm:$0xff] }
 0x410   :  { %8535 = vmatprep.subr.bf16.mxu1 %v10008_v46  ;;  %v10936_v40 = vld [vmem:[#allocation12 + $0xc20] sm:$0xff]  ;;  %v10938_v46 = vld [vmem:[#allocation12 + $0xc08] sm:$0xff] }
 0x411   :  { %v10062_v34 = vcombine.high %v10934_v38, %v10936_v40  ;;  %v10061_v33 = vcombine.low %v10934_v38, %v10936_v40  ;;  %v5549_v40 = vld [vmem:[#allocation12 + $0xca0] sm:$0xff] }
 0x412   :  { %8364 = vmatpush1.bf16.msra.mxu0 %v10005_v45  ;;  %v10064_v45 = vcombine.high %v10938_v46, %v10940_v42 }
 0x413   :  { %8536 = vmatpush1.bf16.msra.mxu1 %v10007_v22  ;;  %8365 = vmatprep.subr.bf16.mxu0 %v10014_v47  ;;  %v10337_v22 = vld [vmem:[#allocation11] sm:$0xff] }
 0x414   :  { %8537 = vmatprep.subr.bf16.mxu1 %v10016_v48  ;;  %v1818_v47 = vrot.slane %v10337_v22, %v10784_v58  ;;  %v1826_v48 = vrot.slane %v10337_v22, %v10795_v41  ;;  %v1822_v30 = vrot.slane %v10337_v22, %v10787_v62  ;;  %v1830_v51 = vrot.slane %v10337_v22, %v10799_v44 }
 0x416   :  { %8366 = vmatpush1.bf16.msra.mxu0 %v10013_v20 }
 0x417   :  { %8538 = vmatpush1.bf16.msra.mxu1 %v10015_v55  ;;  %8367 = vmatprep.subr.bf16.mxu0 %v10022_v56 }
 0x418   :  { %8539 = vmatprep.subr.bf16.mxu1 %v10024_v61 }
 0x41a   :  { %8368 = vmatpush1.bf16.msra.mxu0 %v10021_v6 }
 0x41b   :  { %8540 = vmatpush1.bf16.msra.mxu1 %v10023_v13  ;;  %8369 = vmatprep.subr.bf16.mxu0 %v10030_v0 }
 0x41c   :  { %8541 = vmatprep.subr.bf16.mxu1 %v10032_v14 }
 0x41e   :  { %8370 = vmatpush1.bf16.msra.mxu0 %v10029_v16 }
 0x41f   :  { %8542 = vmatpush1.bf16.msra.mxu1 %v10031_v57  ;;  %8371 = vmatprep.subr.bf16.mxu0 %v10038_v60 }
 0x420   :  { %8543 = vmatprep.subr.bf16.mxu1 %v10040_v9 }
 0x422   :  { %8372 = vmatpush1.bf16.msra.mxu0 %v10037_v25 }
 0x423   :  { %8544 = vmatpush1.bf16.msra.mxu1 %v10039_v26  ;;  %8373 = vmatprep.subr.bf16.mxu0 %v10046_v27 }
 0x424   :  { %8545 = vmatprep.subr.bf16.mxu1 %v10048_v59  ;;  %v5537_v59 = vld [vmem:[#allocation12 + $0xc40] sm:$0xff] }
 0x426   :  { %8374 = vmatpush1.bf16.msra.mxu0 %v10045_v35  ;;  %v5541_v35 = vld [vmem:[#allocation12 + $0xc60] sm:$0xff] }
 0x427   :  { %8546 = vmatpush1.bf16.msra.mxu1 %v10047_v49  ;;  %8375 = vmatprep.subr.bf16.mxu0 %v10054_v50  ;;  %v5538_v49 = vld [vmem:[#allocation12 + $0xc48] sm:$0xff]  ;;  %v10070_v22 = vcombine.high %v5537_v59, %v5541_v35 }
 0x428   :  { %8547 = vmatprep.subr.bf16.mxu1 %v10056_v37  ;;  %v5542_v50 = vld [vmem:[#allocation12 + $0xc68] sm:$0xff] }
 0x429   :  { %v10072_v38 = vcombine.high %v5538_v49, %v5542_v50 }
 0x42a   :  { %8376 = vmatpush1.bf16.msra.mxu0 %v10053_v43 }
 0x42b   :  { %8548 = vmatpush1.bf16.msra.mxu1 %v10055_v1  ;;  %8388 = vmatprep.subr.bf16.mxu0 %v10062_v34 }
 0x42c   :  { %8560 = vmatprep.subr.bf16.mxu1 %v10064_v45  ;;  %v5545_v45 = vld [vmem:[#allocation12 + $0xc80] sm:$0xff] }
 0x440   :  { %v4906_v53 = vpop.f32.mrb[12].mxu0 }
 0x441   :  { %v10198_v54 = vadd.f32 %v4906_v53, %v1818_v47  ;;  %v5078_v20 = vpop.f32.mrb[12].mxu1  ;;  %v4908_v55 = vpop.f32.mrb[13].mxu0  ;;  %v5553_v53 = vld [vmem:[#allocation12 + $0xcc0] sm:$0xff] }
 0x442   :  { %v10202_v56 = vadd.f32 %v5078_v20, %v1826_v48  ;;  %v10199_v61 = vadd.f32 %v4908_v55, %v1822_v30  ;;  %v5080_v63 = vpop.f32.mrb[13].mxu1  ;;  %v4910_v2 = vpop.f32.mrb[14].mxu0  ;;  %v5554_v20 = vld [vmem:[#allocation12 + $0xcc8] sm:$0xff] }
 0x443   :  { %v5109_v3 = vmul.f32 %v10198_v54, %v10867_v29  ;;  %v10203_v5 = vadd.f32 %v5080_v63, %v1830_v51  ;;  %v10200_v6 = vadd.f32 %v4910_v2, %v1818_v47  ;;  %v5082_v13 = vpop.f32.mrb[14].mxu1  ;;  %v4912_v0 = vpop.f32.mrb[15].mxu0  ;;  %vm5092_vm8 = vcmp.gt.f32.partialorder %v10198_v54, 0.0  ;;  %v5546_v47 = vld [vmem:[#allocation12 + $0xc88] sm:$0xff] }
 0x444   :  { %v5084_v14 = vpop.f32.mrb[15].mxu1  ;;  %vm5094_vm9 = vcmp.gt.f32.partialorder %v10202_v56, 0.0  ;;  %v5111_v8 = vmul.f32 %v10202_v56, %v10867_v29  ;;  %vm5093_vm11 = vcmp.gt.f32.partialorder %v10199_v61, 0.0  ;;  %v5110_v23 = vmul.f32 %v10199_v61, %v10867_v29  ;;  %v5558_v55 = vld [vmem:[#allocation12 + $0xce8] sm:$0xff] }
 0x445   :  { %vm5100_vm10 = vcmp.gt.f32.partialorder %v10200_v6, 0.0  ;;  %v5117_v10 = vmul.f32 %v10200_v6, %v10867_v29  ;;  %v10204_v12 = vadd.f32 %v5082_v13, %v1826_v48  ;;  %v5125_v16 = vsel %vm5092_vm8, %v10198_v54, %v5109_v3  ;;  %v5550_v48 = vld [vmem:[#allocation12 + $0xca8] sm:$0xff]  ;;  %v5557_v54 = vld [vmem:[#allocation12 + $0xce0] sm:$0xff] }
 0x446   :  { %vm5095_vm12 = vcmp.gt.f32.partialorder %v10203_v5, 0.0  ;;  %v10201_v57 = vadd.f32 %v4912_v0, %v1822_v30  ;;  %v10205_v60 = vadd.f32 %v5084_v14, %v1830_v51  ;;  %v5112_v9 = vmul.f32 %v10203_v5, %v10867_v29  ;;  %v5561_v3 = vld [vmem:[#allocation12 + $0xd00] sm:$0xff]  ;;  %v5566_v13 = vld [vmem:[#allocation12 + $0xd28] sm:$0xff] }
 0x447   :  { %v5133_v17 = vsel %vm5100_vm10, %v10200_v6, %v5117_v10  ;;  %vm5102_vm13 = vcmp.gt.f32.partialorder %v10204_v12, 0.0  ;;  %v5119_v18 = vmul.f32 %v10204_v12, %v10867_v29  ;;  %v5127_v25 = vsel %vm5094_vm9, %v10202_v56, %v5111_v8  ;;  %v5562_v6 = vld [vmem:[#allocation12 + $0xd08] sm:$0xff]  ;;  %v5569_v10 = vld [vmem:[#allocation12 + $0xd40] sm:$0xff] }
 0x448   :  { %v10956_v15 = vpack.c.bf16 %v5133_v17, %v5125_v16  ;;  %vm5101_vm14 = vcmp.gt.f32.partialorder %v10201_v57, 0.0  ;;  %v5118_v19 = vmul.f32 %v10201_v57, %v10867_v29  ;;  %vm5103_vm15 = vcmp.gt.f32.partialorder %v10205_v60, 0.0  ;;  %v5570_v16 = vld [vmem:[#allocation12 + $0xd48] sm:$0xff] }
 0x449   :  { %v5135_v26 = vsel %vm5102_vm13, %v10204_v12, %v5119_v18  ;;  %v5120_v27 = vmul.f32 %v10205_v60, %v10867_v29  ;;  %v5126_v28 = vsel %vm5093_vm11, %v10199_v61, %v5110_v23  ;;  %v5128_v37 = vsel %vm5095_vm12, %v10203_v5, %v5112_v9  ;;  %v5565_v5 = vld [vmem:[#allocation12 + $0xd20] sm:$0xff] }
 0x44a   :  { %v10962_v31 = vpack.c.bf16 %v5135_v26, %v5127_v25  ;;  %v5134_v32 = vsel %vm5101_vm14, %v10201_v57, %v5118_v19  ;;  %v10063_v29 = vcombine.low %v10938_v46, %v10940_v42  ;;  %v10069_v30 = vcombine.low %v5537_v59, %v5541_v35  ;;  %v5573_v12 = vld [vmem:[#allocation12 + $0xd60] sm:$0xff]  ;;  %v5574_v57 = vld [vmem:[#allocation12 + $0xd68] sm:$0xff] }
 0x44b   :  { %v10967_v43 = vpack.c.bf16 %v5134_v32, %v5126_v28  ;;  %v5136_v1 = vsel %vm5103_vm15, %v10205_v60, %v5120_v27  ;;  %v10071_v46 = vcombine.low %v5538_v49, %v5542_v50  ;;  %v10078_v42 = vcombine.high %v5545_v45, %v5549_v40  ;;  %v5577_v19 = vld [vmem:[#allocation12 + $0xd80] sm:$0xff]  ;;  %v5578_v26 = vld [vmem:[#allocation12 + $0xd88] sm:$0xff] }
 0x44c   :  { %v10971_v34 = vpack.c.bf16 %v5136_v1, %v5128_v37  ;;  %v10080_v51 = vcombine.high %v5546_v47, %v5550_v48  ;;  %v10077_v56 = vcombine.low %v5545_v45, %v5549_v40  ;;  %v10079_v61 = vcombine.low %v5546_v47, %v5550_v48  ;;  %v5581_v25 = vld [vmem:[#allocation12 + $0xda0] sm:$0xff]  ;;  %v5582_v27 = vld [vmem:[#allocation12 + $0xda8] sm:$0xff] }
 0x44d   :  { %8377 = vmatprep.mubr.bf16.mxu0 %v10967_v43  ;;  %8549 = vmatprep.mubr.bf16.mxu1 %v10967_v43  ;;  %v10086_v63 = vcombine.high %v5553_v53, %v5557_v54  ;;  %v10088_v2 = vcombine.high %v5554_v20, %v5558_v55  ;;  %v10085_v0 = vcombine.low %v5553_v53, %v5557_v54  ;;  %v5585_v35 = vld [vmem:[#allocation12 + $0xdc0] sm:$0xff]  ;;  %v5586_v50 = vld [vmem:[#allocation12 + $0xdc8] sm:$0xff] }
 0x44e   :  { %8378 = vmatmul.mubr.bf16.vlgmr.msra.gmra.mrb[16].mxu0 %v10956_v15  ;;  %8550 = vmatmul.mubr.bf16.vlgmr.msra.gmra.mrb[16].mxu1 %v10956_v15  ;;  %v10087_v14 = vcombine.low %v5554_v20, %v5558_v55  ;;  %v10094_v8 = vcombine.high %v5561_v3, %v5565_v5  ;;  %v10096_v23 = vcombine.high %v5562_v6, %v5566_v13  ;;  %v5589_v49 = vld [vmem:[#allocation12 + $0xde0] sm:$0xff]  ;;  %v5590_v37 = vld [vmem:[#allocation12 + $0xde8] sm:$0xff] }
 0x44f   :  { %8389 = vmatpush1.bf16.msra.mxu0 %v10061_v33  ;;  %8561 = vmatpush1.bf16.msra.mxu1 %v10063_v29  ;;  %v10093_v60 = vcombine.low %v5561_v3, %v5565_v5  ;;  %v10095_v9 = vcombine.low %v5562_v6, %v5566_v13  ;;  %v10102_v17 = vcombine.high %v5569_v10, %v5573_v12  ;;  %v5597_v40 = vld [vmem:[#allocation12 + $0xe20] sm:$0xff]  ;;  %v5594_v47 = vld [vmem:[#allocation12 + $0xe08] sm:$0xff] }
 0x450   :  { %8420 = vmatprep.mubr.bf16.mxu0 %v10971_v34  ;;  %8592 = vmatprep.mubr.bf16.mxu1 %v10971_v34  ;;  %v10104_v18 = vcombine.high %v5570_v16, %v5574_v57  ;;  %v10101_v59 = vcombine.low %v5569_v10, %v5573_v12  ;;  %v10103_v28 = vcombine.low %v5570_v16, %v5574_v57  ;;  %v5598_v48 = vld [vmem:[#allocation12 + $0xe28] sm:$0xff]  ;;  %v5601_v53 = vld [vmem:[#allocation12 + $0xe40] sm:$0xff] }
 0x451   :  { %8390 = vmatprep.subr.bf16.mxu0 %v10070_v22  ;;  %8562 = vmatprep.subr.bf16.mxu1 %v10072_v38  ;;  %v10110_v32 = vcombine.high %v5577_v19, %v5581_v25  ;;  %v10112_v33 = vcombine.high %v5578_v26, %v5582_v27  ;;  %v10109_v1 = vcombine.low %v5577_v19, %v5581_v25  ;;  %v5593_v38 = vld [vmem:[#allocation12 + $0xe00] sm:$0xff]  ;;  %v5602_v20 = vld [vmem:[#allocation12 + $0xe48] sm:$0xff] }
 0x452   :  { %v10111_v29 = vcombine.low %v5578_v26, %v5582_v27  ;;  %v10118_v45 = vcombine.high %v5585_v35, %v5589_v49  ;;  %v10120_v22 = vcombine.high %v5586_v50, %v5590_v37  ;;  %v5605_v54 = vld [vmem:[#allocation12 + $0xe60] sm:$0xff]  ;;  %v5606_v55 = vld [vmem:[#allocation12 + $0xe68] sm:$0xff] }
 0x453   :  { %8391 = vmatpush1.bf16.msra.mxu0 %v10069_v30  ;;  %8563 = vmatpush1.bf16.msra.mxu1 %v10071_v46  ;;  %v10117_v30 = vcombine.low %v5585_v35, %v5589_v49  ;;  %v10119_v46 = vcombine.low %v5586_v50, %v5590_v37  ;;  %v5609_v3 = vld [vmem:[#allocation12 + $0xe80] sm:$0xff]  ;;  %v5610_v6 = vld [vmem:[#allocation12 + $0xe88] sm:$0xff] }
 0x454   :  { %8392 = vmatprep.subr.bf16.mxu0 %v10078_v42  ;;  %8564 = vmatprep.subr.bf16.mxu1 %v10080_v51  ;;  %v10126_v42 = vcombine.high %v5593_v38, %v5597_v40  ;;  %v10128_v51 = vcombine.high %v5594_v47, %v5598_v48  ;;  %v5613_v5 = vld [vmem:[#allocation12 + $0xea0] sm:$0xff]  ;;  %v5614_v13 = vld [vmem:[#allocation12 + $0xea8] sm:$0xff] }
 0x455   :  { %v5617_v10 = vld [vmem:[#allocation12 + $0xec0] sm:$0xff]  ;;  %v5618_v16 = vld [vmem:[#allocation12 + $0xec8] sm:$0xff] }
 0x456   :  { %v5621_v12 = vld [vmem:[#allocation12 + $0xee0] sm:$0xff]  ;;  %v5622_v57 = vld [vmem:[#allocation12 + $0xee8] sm:$0xff] }
 0x457   :  { %8393 = vmatpush1.bf16.msra.mxu0 %v10077_v56  ;;  %8565 = vmatpush1.bf16.msra.mxu1 %v10079_v61  ;;  %v10125_v56 = vcombine.low %v5593_v38, %v5597_v40  ;;  %v10127_v61 = vcombine.low %v5594_v47, %v5598_v48  ;;  %v5625_v19 = vld [vmem:[#allocation12 + $0xf00] sm:$0xff]  ;;  %v5626_v26 = vld [vmem:[#allocation12 + $0xf08] sm:$0xff] }
 0x458   :  { %8394 = vmatprep.subr.bf16.mxu0 %v10086_v63  ;;  %8566 = vmatprep.subr.bf16.mxu1 %v10088_v2  ;;  %v10134_v63 = vcombine.high %v5601_v53, %v5605_v54  ;;  %v10136_v2 = vcombine.high %v5602_v20, %v5606_v55  ;;  %v5629_v25 = vld [vmem:[#allocation12 + $0xf20] sm:$0xff]  ;;  %v5630_v27 = vld [vmem:[#allocation12 + $0xf28] sm:$0xff] }
 0x459   :  { %v5633_v35 = vld [vmem:[#allocation12 + $0xf40] sm:$0xff]  ;;  %v5634_v50 = vld [vmem:[#allocation12 + $0xf48] sm:$0xff] }
 0x45a   :  { %v5637_v49 = vld [vmem:[#allocation12 + $0xf60] sm:$0xff]  ;;  %v5638_v37 = vld [vmem:[#allocation12 + $0xf68] sm:$0xff] }
 0x45b   :  { %8395 = vmatpush1.bf16.msra.mxu0 %v10085_v0  ;;  %8567 = vmatpush1.bf16.msra.mxu1 %v10087_v14  ;;  %v10133_v0 = vcombine.low %v5601_v53, %v5605_v54  ;;  %v10135_v14 = vcombine.low %v5602_v20, %v5606_v55  ;;  %v5641_v38 = vld [vmem:[#allocation12 + $0xf80] sm:$0xff]  ;;  %v5642_v47 = vld [vmem:[#allocation12 + $0xf88] sm:$0xff] }
 0x45c   :  { %8396 = vmatprep.subr.bf16.mxu0 %v10094_v8  ;;  %8568 = vmatprep.subr.bf16.mxu1 %v10096_v23  ;;  %v10142_v8 = vcombine.high %v5609_v3, %v5613_v5  ;;  %v10144_v23 = vcombine.high %v5610_v6, %v5614_v13  ;;  %v5645_v40 = vld [vmem:[#allocation12 + $0xfa0] sm:$0xff]  ;;  %v5646_v48 = vld [vmem:[#allocation12 + $0xfa8] sm:$0xff] }
 0x45d   :  { %v5649_v53 = vld [vmem:[#allocation12 + $0xfc0] sm:$0xff]  ;;  %v5650_v20 = vld [vmem:[#allocation12 + $0xfc8] sm:$0xff] }
 0x45e   :  { %v5653_v54 = vld [vmem:[#allocation12 + $0xfe0] sm:$0xff]  ;;  %v5654_v55 = vld [vmem:[#allocation12 + $0xfe8] sm:$0xff] }
 0x45f   :  { %8397 = vmatpush1.bf16.msra.mxu0 %v10093_v60  ;;  %8569 = vmatpush1.bf16.msra.mxu1 %v10095_v9  ;;  %v10141_v60 = vcombine.low %v5609_v3, %v5613_v5  ;;  %v10143_v9 = vcombine.low %v5610_v6, %v5614_v13  ;;  %v5147_v3 = vld [vmem:[#allocation12 + $0x10] sm:$0xff]  ;;  %v5148_v6 = vld [vmem:[#allocation12 + $0x18] sm:$0xff] }
 0x460   :  { %8398 = vmatprep.subr.bf16.mxu0 %v10102_v17  ;;  %8570 = vmatprep.subr.bf16.mxu1 %v10104_v18  ;;  %v10150_v17 = vcombine.high %v5617_v10, %v5621_v12  ;;  %v10152_v18 = vcombine.high %v5618_v16, %v5622_v57  ;;  %v5151_v5 = vld [vmem:[#allocation12 + $0x30] sm:$0xff]  ;;  %v5152_v13 = vld [vmem:[#allocation12 + $0x38] sm:$0xff] }
 0x463   :  { %8399 = vmatpush1.bf16.msra.mxu0 %v10101_v59  ;;  %8571 = vmatpush1.bf16.msra.mxu1 %v10103_v28  ;;  %v10149_v59 = vcombine.low %v5617_v10, %v5621_v12  ;;  %v10151_v28 = vcombine.low %v5618_v16, %v5622_v57  ;;  %v5155_v10 = vld [vmem:[#allocation12 + $0x50] sm:$0xff]  ;;  %v5156_v16 = vld [vmem:[#allocation12 + $0x58] sm:$0xff] }
 0x464   :  { %8400 = vmatprep.subr.bf16.mxu0 %v10110_v32  ;;  %8572 = vmatprep.subr.bf16.mxu1 %v10112_v33  ;;  %v10158_v32 = vcombine.high %v5625_v19, %v5629_v25  ;;  %v10160_v33 = vcombine.high %v5626_v26, %v5630_v27  ;;  %v5159_v12 = vld [vmem:[#allocation12 + $0x70] sm:$0xff]  ;;  %v5160_v57 = vld [vmem:[#allocation12 + $0x78] sm:$0xff] }
 0x467   :  { %8401 = vmatpush1.bf16.msra.mxu0 %v10109_v1  ;;  %8573 = vmatpush1.bf16.msra.mxu1 %v10111_v29  ;;  %v10157_v1 = vcombine.low %v5625_v19, %v5629_v25  ;;  %v10159_v29 = vcombine.low %v5626_v26, %v5630_v27  ;;  %v5163_v19 = vld [vmem:[#allocation12 + $0x90] sm:$0xff]  ;;  %v5164_v26 = vld [vmem:[#allocation12 + $0x98] sm:$0xff] }
 0x468   :  { %8402 = vmatprep.subr.bf16.mxu0 %v10118_v45  ;;  %8574 = vmatprep.subr.bf16.mxu1 %v10120_v22  ;;  %v10166_v45 = vcombine.high %v5633_v35, %v5637_v49  ;;  %v10168_v22 = vcombine.high %v5634_v50, %v5638_v37  ;;  %v5167_v25 = vld [vmem:[#allocation12 + $0xb0] sm:$0xff]  ;;  %v5168_v27 = vld [vmem:[#allocation12 + $0xb8] sm:$0xff] }
 0x46b   :  { %8403 = vmatpush1.bf16.msra.mxu0 %v10117_v30  ;;  %8575 = vmatpush1.bf16.msra.mxu1 %v10119_v46  ;;  %v10165_v30 = vcombine.low %v5633_v35, %v5637_v49  ;;  %v10167_v46 = vcombine.low %v5634_v50, %v5638_v37  ;;  %v5171_v35 = vld [vmem:[#allocation12 + $0xd0] sm:$0xff]  ;;  %v5172_v50 = vld [vmem:[#allocation12 + $0xd8] sm:$0xff] }
 0x46c   :  { %8404 = vmatprep.subr.bf16.mxu0 %v10126_v42  ;;  %8576 = vmatprep.subr.bf16.mxu1 %v10128_v51  ;;  %v10174_v42 = vcombine.high %v5641_v38, %v5645_v40  ;;  %v10176_v51 = vcombine.high %v5642_v47, %v5646_v48  ;;  %v5175_v49 = vld [vmem:[#allocation12 + $0xf0] sm:$0xff]  ;;  %v5176_v37 = vld [vmem:[#allocation12 + $0xf8] sm:$0xff] }
 0x46f   :  { %8405 = vmatpush1.bf16.msra.mxu0 %v10125_v56  ;;  %8577 = vmatpush1.bf16.msra.mxu1 %v10127_v61  ;;  %v10173_v56 = vcombine.low %v5641_v38, %v5645_v40  ;;  %v10175_v61 = vcombine.low %v5642_v47, %v5646_v48  ;;  %v5179_v38 = vld [vmem:[#allocation12 + $0x110] sm:$0xff]  ;;  %v5184_v47 = vld [vmem:[#allocation12 + $0x138] sm:$0xff]  ;;  %v9705_v48 = vcombine.low %v5171_v35, %v5175_v49 }
 0x470   :  { %8406 = vmatprep.subr.bf16.mxu0 %v10134_v63  ;;  %8578 = vmatprep.subr.bf16.mxu1 %v10136_v2  ;;  %v10182_v63 = vcombine.high %v5649_v53, %v5653_v54  ;;  %v10184_v2 = vcombine.high %v5650_v20, %v5654_v55  ;;  %v5183_v40 = vld [vmem:[#allocation12 + $0x130] sm:$0xff] }
 0x473   :  { %8407 = vmatpush1.bf16.msra.mxu0 %v10133_v0  ;;  %8579 = vmatpush1.bf16.msra.mxu1 %v10135_v14  ;;  %v10181_v0 = vcombine.low %v5649_v53, %v5653_v54  ;;  %v10183_v14 = vcombine.low %v5650_v20, %v5654_v55  ;;  %v5191_v53 = vld [vmem:[#allocation12 + $0x170] sm:$0xff]  ;;  %v5188_v54 = vld [vmem:[#allocation12 + $0x158] sm:$0xff]  ;;  %v9713_v55 = vcombine.low %v5179_v38, %v5183_v40 }
 0x474   :  { %8408 = vmatprep.subr.bf16.mxu0 %v10142_v8  ;;  %8580 = vmatprep.subr.bf16.mxu1 %v10144_v23  ;;  %v9682_v8 = vcombine.high %v5147_v3, %v5151_v5  ;;  %v9684_v23 = vcombine.high %v5148_v6, %v5152_v13  ;;  %v5192_v20 = vld [vmem:[#allocation12 + $0x178] sm:$0xff] }
 0x477   :  { %8409 = vmatpush1.bf16.msra.mxu0 %v10141_v60  ;;  %8581 = vmatpush1.bf16.msra.mxu1 %v10143_v9  ;;  %v9681_v60 = vcombine.low %v5147_v3, %v5151_v5  ;;  %v9683_v9 = vcombine.low %v5148_v6, %v5152_v13  ;;  %v5199_v3 = vld [vmem:[#allocation12 + $0x1b0] sm:$0xff]  ;;  %v5196_v5 = vld [vmem:[#allocation12 + $0x198] sm:$0xff] }
 0x478   :  { %8410 = vmatprep.subr.bf16.mxu0 %v10150_v17  ;;  %8582 = vmatprep.subr.bf16.mxu1 %v10152_v18  ;;  %v9690_v17 = vcombine.high %v5155_v10, %v5159_v12  ;;  %v9692_v18 = vcombine.high %v5156_v16, %v5160_v57  ;;  %v5200_v6 = vld [vmem:[#allocation12 + $0x1b8] sm:$0xff] }
 0x47b   :  { %8411 = vmatpush1.bf16.msra.mxu0 %v10149_v59  ;;  %8583 = vmatpush1.bf16.msra.mxu1 %v10151_v28  ;;  %v9689_v59 = vcombine.low %v5155_v10, %v5159_v12  ;;  %v9691_v28 = vcombine.low %v5156_v16, %v5160_v57  ;;  %v5207_v10 = vld [vmem:[#allocation12 + $0x1f0] sm:$0xff]  ;;  %v5204_v12 = vld [vmem:[#allocation12 + $0x1d8] sm:$0xff] }
 0x47c   :  { %8412 = vmatprep.subr.bf16.mxu0 %v10158_v32  ;;  %8584 = vmatprep.subr.bf16.mxu1 %v10160_v33  ;;  %v9698_v32 = vcombine.high %v5163_v19, %v5167_v25  ;;  %v9700_v33 = vcombine.high %v5164_v26, %v5168_v27  ;;  %v5208_v16 = vld [vmem:[#allocation12 + $0x1f8] sm:$0xff] }
 0x47f   :  { %8413 = vmatpush1.bf16.msra.mxu0 %v10157_v1  ;;  %8585 = vmatpush1.bf16.msra.mxu1 %v10159_v29  ;;  %v9697_v1 = vcombine.low %v5163_v19, %v5167_v25  ;;  %v9699_v29 = vcombine.low %v5164_v26, %v5168_v27  ;;  %v5215_v19 = vld [vmem:[#allocation12 + $0x230] sm:$0xff]  ;;  %v5212_v25 = vld [vmem:[#allocation12 + $0x218] sm:$0xff] }
 0x480   :  { %8414 = vmatprep.subr.bf16.mxu0 %v10166_v45  ;;  %8586 = vmatprep.subr.bf16.mxu1 %v10168_v22  ;;  %v9706_v45 = vcombine.high %v5171_v35, %v5175_v49  ;;  %v9708_v22 = vcombine.high %v5172_v50, %v5176_v37  ;;  %v5216_v26 = vld [vmem:[#allocation12 + $0x238] sm:$0xff]  ;;  %v5223_v35 = vld [vmem:[#allocation12 + $0x270] sm:$0xff] }
 0x481   :  { %v5220_v49 = vld [vmem:[#allocation12 + $0x258] sm:$0xff] }
 0x483   :  { %8415 = vmatpush1.bf16.msra.mxu0 %v10165_v30  ;;  %8587 = vmatpush1.bf16.msra.mxu1 %v10167_v46  ;;  %v9707_v30 = vcombine.low %v5172_v50, %v5176_v37  ;;  %v9714_v46 = vcombine.high %v5179_v38, %v5183_v40  ;;  %v5224_v50 = vld [vmem:[#allocation12 + $0x278] sm:$0xff]  ;;  %v5231_v38 = vld [vmem:[#allocation12 + $0x2b0] sm:$0xff] }
 0x484   :  { %8416 = vmatprep.subr.bf16.mxu0 %v10174_v42  ;;  %8588 = vmatprep.subr.bf16.mxu1 %v10176_v51  ;;  %v5187_v51 = vld [vmem:[#allocation12 + $0x150] sm:$0xff]  ;;  %v5228_v40 = vld [vmem:[#allocation12 + $0x298] sm:$0xff] }
 0x485   :  { %v9721_v13 = vcombine.low %v5187_v51, %v5191_v53 }
 0x487   :  { %8417 = vmatpush1.bf16.msra.mxu0 %v10173_v56  ;;  %8589 = vmatpush1.bf16.msra.mxu1 %v10175_v61  ;;  %v9722_v61 = vcombine.high %v5187_v51, %v5191_v53  ;;  %v5239_v51 = vld [vmem:[#allocation12 + $0x2f0] sm:$0xff]  ;;  %v5236_v53 = vld [vmem:[#allocation12 + $0x2d8] sm:$0xff] }
 0x488   :  { %8418 = vmatprep.subr.bf16.mxu0 %v10182_v63  ;;  %8590 = vmatprep.subr.bf16.mxu1 %v10184_v2  ;;  %v9724_v63 = vcombine.high %v5188_v54, %v5192_v20  ;;  %v5195_v2 = vld [vmem:[#allocation12 + $0x190] sm:$0xff] }
 0x489   :  { %v9729_v57 = vcombine.low %v5195_v2, %v5199_v3 }
 0x48b   :  { %8419 = vmatpush1.bf16.msra.mxu0 %v10181_v0  ;;  %8591 = vmatpush1.bf16.msra.mxu1 %v10183_v14  ;;  %v9723_v0 = vcombine.low %v5188_v54, %v5192_v20  ;;  %v9730_v14 = vcombine.high %v5195_v2, %v5199_v3  ;;  %v5240_v54 = vld [vmem:[#allocation12 + $0x2f8] sm:$0xff]  ;;  %v5247_v2 = vld [vmem:[#allocation12 + $0x330] sm:$0xff] }
 0x48c   :  { %8603 = vmatprep.subr.bf16.mxu0 %v9682_v8  ;;  %8775 = vmatprep.subr.bf16.mxu1 %v9684_v23  ;;  %v9732_v8 = vcombine.high %v5196_v5, %v5200_v6  ;;  %v5203_v23 = vld [vmem:[#allocation12 + $0x1d0] sm:$0xff]  ;;  %v5244_v3 = vld [vmem:[#allocation12 + $0x318] sm:$0xff] }
 0x48d   :  { %v9737_v27 = vcombine.low %v5203_v23, %v5207_v10 }
 0x48e   :  { %8421 = vmatmul.mubr.bf16.vlgmr.msra.gmra.mrb[16].mxu0 %v10962_v31  ;;  %8593 = vmatmul.mubr.bf16.vlgmr.msra.gmra.mrb[16].mxu1 %v10962_v31 }
 0x48f   :  { %8604 = vmatpush1.bf16.msra.mxu0 %v9681_v60  ;;  %8635 = vmatprep.mubr.bf16.mxu0 %v10920_v7  ;;  %v9731_v60 = vcombine.low %v5196_v5, %v5200_v6  ;;  %v5248_v5 = vld [vmem:[#allocation12 + $0x338] sm:$0xff] }
 0x490   :  { %8776 = vmatpush1.bf16.msra.mxu1 %v9683_v9  ;;  %8807 = vmatprep.mubr.bf16.mxu1 %v10920_v7  ;;  %v5180_v7 = vld [vmem:[#allocation12 + $0x118] sm:$0xff]  ;;  %v9738_v9 = vcombine.high %v5203_v23, %v5207_v10  ;;  %v5255_v23 = vld [vmem:[#allocation12 + $0x370] sm:$0xff] }
 0x491   :  { %8605 = vmatprep.subr.bf16.mxu0 %v9690_v17  ;;  %8777 = vmatprep.subr.bf16.mxu1 %v9692_v18  ;;  %v9716_v42 = vcombine.high %v5180_v7, %v5184_v47  ;;  %v9715_v56 = vcombine.low %v5180_v7, %v5184_v47  ;;  %v9740_v17 = vcombine.high %v5204_v12, %v5208_v16  ;;  %v5211_v18 = vld [vmem:[#allocation12 + $0x210] sm:$0xff]  ;;  %v5232_v7 = vld [vmem:[#allocation12 + $0x2b8] sm:$0xff] }
 0x492   :  { %v9745_v37 = vcombine.low %v5211_v18, %v5215_v19  ;;  %v5252_v10 = vld [vmem:[#allocation12 + $0x358] sm:$0xff] }
 0x493   :  { %8606 = vmatpush1.bf16.msra.mxu0 %v9689_v59  ;;  %v9739_v59 = vcombine.low %v5204_v12, %v5208_v16  ;;  %v5256_v12 = vld [vmem:[#allocation12 + $0x378] sm:$0xff] }
 0x494   :  { %8778 = vmatpush1.bf16.msra.mxu1 %v9691_v28  ;;  %8607 = vmatprep.subr.bf16.mxu0 %v9698_v32  ;;  %v9746_v28 = vcombine.high %v5211_v18, %v5215_v19  ;;  %v9748_v32 = vcombine.high %v5212_v25, %v5216_v26  ;;  %v5263_v18 = vld [vmem:[#allocation12 + $0x3b0] sm:$0xff]  ;;  %v5260_v19 = vld [vmem:[#allocation12 + $0x398] sm:$0xff] }
 0x495   :  { %8779 = vmatprep.subr.bf16.mxu1 %v9700_v33  ;;  %v5219_v33 = vld [vmem:[#allocation12 + $0x250] sm:$0xff] }
 0x496   :  { %v9753_v47 = vcombine.low %v5219_v33, %v5223_v35 }
 0x497   :  { %8608 = vmatpush1.bf16.msra.mxu0 %v9697_v1  ;;  %v9747_v1 = vcombine.low %v5212_v25, %v5216_v26  ;;  %v5264_v25 = vld [vmem:[#allocation12 + $0x3b8] sm:$0xff] }
 0x498   :  { %8780 = vmatpush1.bf16.msra.mxu1 %v9699_v29  ;;  %8609 = vmatprep.subr.bf16.mxu0 %v9706_v45  ;;  %v9754_v29 = vcombine.high %v5219_v33, %v5223_v35  ;;  %v9756_v45 = vcombine.high %v5220_v49, %v5224_v50  ;;  %v5271_v33 = vld [vmem:[#allocation12 + $0x3f0] sm:$0xff]  ;;  %v5268_v35 = vld [vmem:[#allocation12 + $0x3d8] sm:$0xff] }
 0x499   :  { %8781 = vmatprep.subr.bf16.mxu1 %v9708_v22  ;;  %v5227_v22 = vld [vmem:[#allocation12 + $0x290] sm:$0xff] }
 0x49a   :  { %v9761_v20 = vcombine.low %v5227_v22, %v5231_v38 }
 0x49b   :  { %8610 = vmatpush1.bf16.msra.mxu0 %v9705_v48  ;;  %v9755_v48 = vcombine.low %v5220_v49, %v5224_v50  ;;  %v5272_v49 = vld [vmem:[#allocation12 + $0x3f8] sm:$0xff] }
 0x49c   :  { %8782 = vmatpush1.bf16.msra.mxu1 %v9707_v30  ;;  %8611 = vmatprep.subr.bf16.mxu0 %v9714_v46  ;;  %v9762_v30 = vcombine.high %v5227_v22, %v5231_v38  ;;  %v9764_v46 = vcombine.high %v5228_v40, %v5232_v7  ;;  %v5279_v22 = vld [vmem:[#allocation12 + $0x430] sm:$0xff]  ;;  %v5276_v38 = vld [vmem:[#allocation12 + $0x418] sm:$0xff] }
 0x49d   :  { %8783 = vmatprep.subr.bf16.mxu1 %v9716_v42  ;;  %v5235_v42 = vld [vmem:[#allocation12 + $0x2d0] sm:$0xff] }
 0x49e   :  { %v9769_v6 = vcombine.low %v5235_v42, %v5239_v51 }
 0x49f   :  { %8612 = vmatpush1.bf16.msra.mxu0 %v9713_v55  ;;  %v9763_v55 = vcombine.low %v5228_v40, %v5232_v7  ;;  %v5280_v40 = vld [vmem:[#allocation12 + $0x438] sm:$0xff] }
 0x4a0   :  { %8784 = vmatpush1.bf16.msra.mxu1 %v9715_v56  ;;  %8613 = vmatprep.subr.bf16.mxu0 %v9722_v61  ;;  %v9770_v56 = vcombine.high %v5235_v42, %v5239_v51  ;;  %v9772_v61 = vcombine.high %v5236_v53, %v5240_v54  ;;  %v5287_v42 = vld [vmem:[#allocation12 + $0x470] sm:$0xff] }
 0x4a1   :  { %8785 = vmatprep.subr.bf16.mxu1 %v9724_v63  ;;  %v5243_v63 = vld [vmem:[#allocation12 + $0x310] sm:$0xff] }
 0x4a2   :  { %v9777_v16 = vcombine.low %v5243_v63, %v5247_v2 }
 0x4a3   :  { %8614 = vmatpush1.bf16.msra.mxu0 %v9721_v13  ;;  %v9771_v13 = vcombine.low %v5236_v53, %v5240_v54  ;;  %v5284_v53 = vld [vmem:[#allocation12 + $0x458] sm:$0xff] }
 0x4a4   :  { %8786 = vmatpush1.bf16.msra.mxu1 %v9723_v0  ;;  %8615 = vmatprep.subr.bf16.mxu0 %v9730_v14  ;;  %v9778_v0 = vcombine.high %v5243_v63, %v5247_v2  ;;  %v9780_v14 = vcombine.high %v5244_v3, %v5248_v5  ;;  %v5288_v54 = vld [vmem:[#allocation12 + $0x478] sm:$0xff] }
 0x4a5   :  { %8787 = vmatprep.subr.bf16.mxu1 %v9732_v8  ;;  %v5251_v8 = vld [vmem:[#allocation12 + $0x350] sm:$0xff]  ;;  %v9820_v63 = vcombine.high %v5284_v53, %v5288_v54  ;;  %v5292_v2 = vld [vmem:[#allocation12 + $0x498] sm:$0xff] }
 0x4a6   :  { %v9785_v26 = vcombine.low %v5251_v8, %v5255_v23 }
 0x4a7   :  { %8616 = vmatpush1.bf16.msra.mxu0 %v9729_v57  ;;  %v9779_v57 = vcombine.low %v5244_v3, %v5248_v5  ;;  %v5296_v3 = vld [vmem:[#allocation12 + $0x4b8] sm:$0xff] }
 0x4a8   :  { %8788 = vmatpush1.bf16.msra.mxu1 %v9731_v60  ;;  %8617 = vmatprep.subr.bf16.mxu0 %v9738_v9  ;;  %v9786_v60 = vcombine.high %v5251_v8, %v5255_v23  ;;  %v9788_v9 = vcombine.high %v5252_v10, %v5256_v12  ;;  %v5303_v8 = vld [vmem:[#allocation12 + $0x4f0] sm:$0xff]  ;;  %v5300_v23 = vld [vmem:[#allocation12 + $0x4d8] sm:$0xff] }
 0x4a9   :  { %8789 = vmatprep.subr.bf16.mxu1 %v9740_v17  ;;  %v5259_v17 = vld [vmem:[#allocation12 + $0x390] sm:$0xff] }
 0x4aa   :  { %v9793_v50 = vcombine.low %v5259_v17, %v5263_v18 }
 0x4ab   :  { %8618 = vmatpush1.bf16.msra.mxu0 %v9737_v27  ;;  %v9787_v27 = vcombine.low %v5252_v10, %v5256_v12  ;;  %v5304_v10 = vld [vmem:[#allocation12 + $0x4f8] sm:$0xff] }
 0x4ac   :  { %8790 = vmatpush1.bf16.msra.mxu1 %v9739_v59  ;;  %8619 = vmatprep.subr.bf16.mxu0 %v9746_v28  ;;  %v9794_v59 = vcombine.high %v5259_v17, %v5263_v18  ;;  %v9796_v28 = vcombine.high %v5260_v19, %v5264_v25  ;;  %v5308_v17 = vld [vmem:[#allocation12 + $0x518] sm:$0xff] }
 0x4ad   :  { %8791 = vmatprep.subr.bf16.mxu1 %v9748_v32  ;;  %v5267_v32 = vld [vmem:[#allocation12 + $0x3d0] sm:$0xff]  ;;  %v5312_v18 = vld [vmem:[#allocation12 + $0x538] sm:$0xff] }
 0x4ae   :  { %v9801_v7 = vcombine.low %v5267_v32, %v5271_v33 }
 0x4af   :  { %8620 = vmatpush1.bf16.msra.mxu0 %v9745_v37  ;;  %v9795_v37 = vcombine.low %v5260_v19, %v5264_v25  ;;  %v9835_v19 = vcombine.low %v5300_v23, %v5304_v10 }
 0x4b0   :  { %8792 = vmatpush1.bf16.msra.mxu1 %v9747_v1  ;;  %8621 = vmatprep.subr.bf16.mxu0 %v9754_v29  ;;  %v9802_v1 = vcombine.high %v5267_v32, %v5271_v33  ;;  %v9804_v29 = vcombine.high %v5268_v35, %v5272_v49  ;;  %v5320_v32 = vld [vmem:[#allocation12 + $0x578] sm:$0xff] }
 0x4b1   :  { %8793 = vmatprep.subr.bf16.mxu1 %v9756_v45  ;;  %v5275_v45 = vld [vmem:[#allocation12 + $0x410] sm:$0xff] }
 0x4b2   :  { %v9809_v51 = vcombine.low %v5275_v45, %v5279_v22 }
 0x4b3   :  { %8622 = vmatpush1.bf16.msra.mxu0 %v9753_v47  ;;  %v9803_v47 = vcombine.low %v5268_v35, %v5272_v49  ;;  %v9843_v35 = vcombine.low %v5308_v17, %v5312_v18 }
 0x4b4   :  { %8794 = vmatpush1.bf16.msra.mxu1 %v9755_v48  ;;  %8623 = vmatprep.subr.bf16.mxu0 %v9762_v30  ;;  %v9810_v48 = vcombine.high %v5275_v45, %v5279_v22  ;;  %v9812_v30 = vcombine.high %v5276_v38, %v5280_v40  ;;  %v5328_v45 = vld [vmem:[#allocation12 + $0x5b8] sm:$0xff] }
 0x4b5   :  { %8795 = vmatprep.subr.bf16.mxu1 %v9764_v46  ;;  %v5283_v46 = vld [vmem:[#allocation12 + $0x450] sm:$0xff] }
 0x4b6   :  { %v9817_v5 = vcombine.low %v5283_v46, %v5287_v42 }
 0x4b7   :  { %8624 = vmatpush1.bf16.msra.mxu0 %v9761_v20  ;;  %v9811_v20 = vcombine.low %v5276_v38, %v5280_v40 }
 0x4b8   :  { %8796 = vmatpush1.bf16.msra.mxu1 %v9763_v55  ;;  %8625 = vmatprep.subr.bf16.mxu0 %v9770_v56  ;;  %v9818_v55 = vcombine.high %v5283_v46, %v5287_v42  ;;  %v5291_v56 = vld [vmem:[#allocation12 + $0x490] sm:$0xff]  ;;  %v5336_v46 = vld [vmem:[#allocation12 + $0x5f8] sm:$0xff] }
 0x4b9   :  { %8797 = vmatprep.subr.bf16.mxu1 %v9772_v61  ;;  %v5295_v61 = vld [vmem:[#allocation12 + $0x4b0] sm:$0xff] }
 0x4ba   :  { %v9825_v12 = vcombine.low %v5291_v56, %v5295_v61 }
 0x4bb   :  { %8626 = vmatpush1.bf16.msra.mxu0 %v9769_v6  ;;  %v9819_v6 = vcombine.low %v5284_v53, %v5288_v54 }
 0x4bc   :  { %8798 = vmatpush1.bf16.msra.mxu1 %v9771_v13  ;;  %8627 = vmatprep.subr.bf16.mxu0 %v9778_v0  ;;  %v9826_v13 = vcombine.high %v5291_v56, %v5295_v61  ;;  %v9828_v0 = vcombine.high %v5292_v2, %v5296_v3  ;;  %v5340_v56 = vld [vmem:[#allocation12 + $0x618] sm:$0xff] }
 0x4bd   :  { %8799 = vmatprep.subr.bf16.mxu1 %v9780_v14  ;;  %v5299_v14 = vld [vmem:[#allocation12 + $0x4d0] sm:$0xff]  ;;  %v5344_v61 = vld [vmem:[#allocation12 + $0x638] sm:$0xff] }
 0x4bf   :  { %8628 = vmatpush1.bf16.msra.mxu0 %v9777_v16  ;;  %v9834_v16 = vcombine.high %v5299_v14, %v5303_v8 }
 0x4c0   :  { %8800 = vmatpush1.bf16.msra.mxu1 %v9779_v57  ;;  %8629 = vmatprep.subr.bf16.mxu0 %v9786_v60  ;;  %v9836_v57 = vcombine.high %v5300_v23, %v5304_v10  ;;  %v5307_v60 = vld [vmem:[#allocation12 + $0x510] sm:$0xff]  ;;  %v9875_v23 = vcombine.low %v5340_v56, %v5344_v61 }
 0x4c1   :  { %8801 = vmatprep.subr.bf16.mxu1 %v9788_v9  ;;  %v5311_v9 = vld [vmem:[#allocation12 + $0x530] sm:$0xff] }
 0x4c2   :  { %v9842_v25 = vcombine.high %v5307_v60, %v5311_v9  ;;  %v9841_v33 = vcombine.low %v5307_v60, %v5311_v9  ;;  %v5360_v60 = vld [vmem:[#allocation12 + $0x6b8] sm:$0xff] }
 0x4c3   :  { %8630 = vmatpush1.bf16.msra.mxu0 %v9785_v26  ;;  %v9844_v26 = vcombine.high %v5308_v17, %v5312_v18 }
 0x4c4   :  { %8802 = vmatpush1.bf16.msra.mxu1 %v9787_v27  ;;  %8631 = vmatprep.subr.bf16.mxu0 %v9794_v59  ;;  %v5315_v27 = vld [vmem:[#allocation12 + $0x550] sm:$0xff] }
 0x4c5   :  { %8803 = vmatprep.subr.bf16.mxu1 %v9796_v28  ;;  %v5319_v59 = vld [vmem:[#allocation12 + $0x570] sm:$0xff]  ;;  %v5316_v28 = vld [vmem:[#allocation12 + $0x558] sm:$0xff] }
 0x4c6   :  { %v9850_v49 = vcombine.high %v5315_v27, %v5319_v59  ;;  %v9849_v22 = vcombine.low %v5315_v27, %v5319_v59  ;;  %v9851_v38 = vcombine.low %v5316_v28, %v5320_v32  ;;  %v5368_v27 = vld [vmem:[#allocation12 + $0x6f8] sm:$0xff] }
 0x4c7   :  { %8632 = vmatpush1.bf16.msra.mxu0 %v9793_v50  ;;  %v9852_v50 = vcombine.high %v5316_v28, %v5320_v32 }
 0x4c8   :  { %8804 = vmatpush1.bf16.msra.mxu1 %v9795_v37  ;;  %8633 = vmatprep.subr.bf16.mxu0 %v9802_v1  ;;  %v5323_v37 = vld [vmem:[#allocation12 + $0x590] sm:$0xff] }
 0x4c9   :  { %8805 = vmatprep.subr.bf16.mxu1 %v9804_v29  ;;  %v5327_v1 = vld [vmem:[#allocation12 + $0x5b0] sm:$0xff]  ;;  %v5324_v29 = vld [vmem:[#allocation12 + $0x598] sm:$0xff] }
 0x4ca   :  { %v9858_v40 = vcombine.high %v5323_v37, %v5327_v1  ;;  %v9857_v42 = vcombine.low %v5323_v37, %v5327_v1  ;;  %v5376_v37 = vld [vmem:[#allocation12 + $0x738] sm:$0xff] }
 0x4cb   :  { %8634 = vmatpush1.bf16.msra.mxu0 %v9801_v7  ;;  %v9860_v7 = vcombine.high %v5324_v29, %v5328_v45 }
 0x4cc   :  { %8806 = vmatpush1.bf16.msra.mxu1 %v9803_v47  ;;  %8646 = vmatprep.subr.bf16.mxu0 %v9810_v48  ;;  %v5331_v47 = vld [vmem:[#allocation12 + $0x5d0] sm:$0xff] }
 0x4cd   :  { %8818 = vmatprep.subr.bf16.mxu1 %v9812_v30  ;;  %v5335_v48 = vld [vmem:[#allocation12 + $0x5f0] sm:$0xff]  ;;  %v5332_v30 = vld [vmem:[#allocation12 + $0x5d8] sm:$0xff] }
 0x4ce   :  { %8636 = vmatmul.mubr.bf16.vlgmr.msra.gmra.mrb[20].mxu0 %v10913_v4  ;;  %v9866_v53 = vcombine.high %v5331_v47, %v5335_v48  ;;  %v9868_v54 = vcombine.high %v5332_v30, %v5336_v46 }
 0x4cf   :  { %8808 = vmatmul.mubr.bf16.vlgmr.msra.gmra.mrb[20].mxu1 %v10913_v4  ;;  %8647 = vmatpush1.bf16.msra.mxu0 %v9809_v51  ;;  %v9827_v4 = vcombine.low %v5292_v2, %v5296_v3  ;;  %v9859_v51 = vcombine.low %v5324_v29, %v5328_v45  ;;  %v9867_v2 = vcombine.low %v5332_v30, %v5336_v46 }
 0x4d0   :  { %8678 = vmatprep.mubr.bf16.mxu0 %v10922_v11  ;;  %8819 = vmatpush1.bf16.msra.mxu1 %v9811_v20  ;;  %v5339_v20 = vld [vmem:[#allocation12 + $0x610] sm:$0xff] }
 0x4d1   :  { %8850 = vmatprep.mubr.bf16.mxu1 %v10922_v11  ;;  %8648 = vmatprep.subr.bf16.mxu0 %v9818_v55  ;;  %v9833_v11 = vcombine.low %v5299_v14, %v5303_v8  ;;  %v5343_v55 = vld [vmem:[#allocation12 + $0x630] sm:$0xff]  ;;  %v5352_v14 = vld [vmem:[#allocation12 + $0x678] sm:$0xff] }
 0x4d2   :  { %8820 = vmatprep.subr.bf16.mxu1 %v9820_v63  ;;  %v9865_v63 = vcombine.low %v5331_v47, %v5335_v48  ;;  %v9874_v3 = vcombine.high %v5339_v20, %v5343_v55  ;;  %v9873_v8 = vcombine.low %v5339_v20, %v5343_v55  ;;  %v5384_v47 = vld [vmem:[#allocation12 + $0x778] sm:$0xff] }
 0x4d3   :  { %8649 = vmatpush1.bf16.msra.mxu0 %v9817_v5  ;;  %v9876_v5 = vcombine.high %v5340_v56, %v5344_v61  ;;  %v5392_v20 = vld [vmem:[#allocation12 + $0x7b8] sm:$0xff] }
 0x4d4   :  { %8821 = vmatpush1.bf16.msra.mxu1 %v9819_v6  ;;  %8650 = vmatprep.subr.bf16.mxu0 %v9826_v13  ;;  %v5347_v6 = vld [vmem:[#allocation12 + $0x650] sm:$0xff] }
 0x4d5   :  { %8822 = vmatprep.subr.bf16.mxu1 %v9828_v0  ;;  %v5351_v13 = vld [vmem:[#allocation12 + $0x670] sm:$0xff]  ;;  %v5348_v0 = vld [vmem:[#allocation12 + $0x658] sm:$0xff] }
 0x4d6   :  { %v9882_v10 = vcombine.high %v5347_v6, %v5351_v13  ;;  %v9881_v9 = vcombine.low %v5347_v6, %v5351_v13  ;;  %v9883_v17 = vcombine.low %v5348_v0, %v5352_v14  ;;  %v5400_v6 = vld [vmem:[#allocation12 + $0x7f8] sm:$0xff] }
 0x4d7   :  { %8651 = vmatpush1.bf16.msra.mxu0 %v9825_v12  ;;  %v9884_v12 = vcombine.high %v5348_v0, %v5352_v14 }
 0x4d8   :  { %8823 = vmatpush1.bf16.msra.mxu1 %v9827_v4  ;;  %8652 = vmatprep.subr.bf16.mxu0 %v9834_v16  ;;  %v5355_v4 = vld [vmem:[#allocation12 + $0x690] sm:$0xff] }
 0x4d9   :  { %8824 = vmatprep.subr.bf16.mxu1 %v9836_v57  ;;  %v5359_v16 = vld [vmem:[#allocation12 + $0x6b0] sm:$0xff]  ;;  %v5356_v57 = vld [vmem:[#allocation12 + $0x698] sm:$0xff] }
 0x4da   :  { %v9890_v18 = vcombine.high %v5355_v4, %v5359_v16  ;;  %v9889_v59 = vcombine.low %v5355_v4, %v5359_v16  ;;  %v9891_v28 = vcombine.low %v5356_v57, %v5360_v60  ;;  %v5408_v4 = vld [vmem:[#allocation12 + $0x838] sm:$0xff] }
 0x4db   :  { %8653 = vmatpush1.bf16.msra.mxu0 %v9833_v11  ;;  %v9892_v11 = vcombine.high %v5356_v57, %v5360_v60 }
 0x4dc   :  { %8825 = vmatpush1.bf16.msra.mxu1 %v9835_v19  ;;  %8654 = vmatprep.subr.bf16.mxu0 %v9842_v25  ;;  %v5363_v19 = vld [vmem:[#allocation12 + $0x6d0] sm:$0xff] }
 0x4dd   :  { %8826 = vmatprep.subr.bf16.mxu1 %v9844_v26  ;;  %v5367_v25 = vld [vmem:[#allocation12 + $0x6f0] sm:$0xff]  ;;  %v5364_v26 = vld [vmem:[#allocation12 + $0x6d8] sm:$0xff] }
 0x4de   :  { %v9898_v32 = vcombine.high %v5363_v19, %v5367_v25  ;;  %v9897_v1 = vcombine.low %v5363_v19, %v5367_v25  ;;  %v9899_v29 = vcombine.low %v5364_v26, %v5368_v27  ;;  %v5412_v19 = vld [vmem:[#allocation12 + $0x858] sm:$0xff] }
 0x4df   :  { %8655 = vmatpush1.bf16.msra.mxu0 %v9841_v33  ;;  %v9900_v33 = vcombine.high %v5364_v26, %v5368_v27  ;;  %v5416_v25 = vld [vmem:[#allocation12 + $0x878] sm:$0xff] }
 0x4e0   :  { %8827 = vmatpush1.bf16.msra.mxu1 %v9843_v35  ;;  %8656 = vmatprep.subr.bf16.mxu0 %v9850_v49  ;;  %v5371_v35 = vld [vmem:[#allocation12 + $0x710] sm:$0xff] }
 0x4e1   :  { %8828 = vmatprep.subr.bf16.mxu1 %v9852_v50  ;;  %v5375_v49 = vld [vmem:[#allocation12 + $0x730] sm:$0xff]  ;;  %v5372_v50 = vld [vmem:[#allocation12 + $0x718] sm:$0xff] }
 0x4e2   :  { %v9906_v45 = vcombine.high %v5371_v35, %v5375_v49  ;;  %v9905_v48 = vcombine.low %v5371_v35, %v5375_v49  ;;  %v9907_v30 = vcombine.low %v5372_v50, %v5376_v37  ;;  %v5424_v35 = vld [vmem:[#allocation12 + $0x8b8] sm:$0xff] }
 0x4e3   :  { %8657 = vmatpush1.bf16.msra.mxu0 %v9849_v22  ;;  %v9908_v22 = vcombine.high %v5372_v50, %v5376_v37  ;;  %v9947_v50 = vcombine.low %v5412_v19, %v5416_v25 }
 0x4e4   :  { %8829 = vmatpush1.bf16.msra.mxu1 %v9851_v38  ;;  %8658 = vmatprep.subr.bf16.mxu0 %v9858_v40  ;;  %v5379_v38 = vld [vmem:[#allocation12 + $0x750] sm:$0xff] }
 0x4e5   :  { %8830 = vmatprep.subr.bf16.mxu1 %v9860_v7  ;;  %v5383_v40 = vld [vmem:[#allocation12 + $0x770] sm:$0xff]  ;;  %v5380_v7 = vld [vmem:[#allocation12 + $0x758] sm:$0xff] }
 0x4e6   :  { %v9914_v46 = vcombine.high %v5379_v38, %v5383_v40  ;;  %v9913_v55 = vcombine.low %v5379_v38, %v5383_v40  ;;  %v9915_v56 = vcombine.low %v5380_v7, %v5384_v47  ;;  %v5432_v38 = vld [vmem:[#allocation12 + $0x8f8] sm:$0xff] }
 0x4e7   :  { %8659 = vmatpush1.bf16.msra.mxu0 %v9857_v42  ;;  %v9916_v42 = vcombine.high %v5380_v7, %v5384_v47 }
 0x4e8   :  { %8831 = vmatpush1.bf16.msra.mxu1 %v9859_v51  ;;  %8660 = vmatprep.subr.bf16.mxu0 %v9866_v53  ;;  %v5387_v51 = vld [vmem:[#allocation12 + $0x790] sm:$0xff] }
 0x4e9   :  { %8832 = vmatprep.subr.bf16.mxu1 %v9868_v54  ;;  %v5391_v53 = vld [vmem:[#allocation12 + $0x7b0] sm:$0xff]  ;;  %v5388_v54 = vld [vmem:[#allocation12 + $0x798] sm:$0xff] }
 0x4ea   :  { %v9922_v61 = vcombine.high %v5387_v51, %v5391_v53  ;;  %v9921_v13 = vcombine.low %v5387_v51, %v5391_v53  ;;  %v9923_v0 = vcombine.low %v5388_v54, %v5392_v20 }
 0x4eb   :  { %8661 = vmatpush1.bf16.msra.mxu0 %v9865_v63  ;;  %v9924_v63 = vcombine.high %v5388_v54, %v5392_v20  ;;  %v5443_v20 = vld [vmem:[#allocation12 + $0x950] sm:$0xff] }
 0x4ec   :  { %8833 = vmatpush1.bf16.msra.mxu1 %v9867_v2  ;;  %8662 = vmatprep.subr.bf16.mxu0 %v9874_v3  ;;  %v5395_v2 = vld [vmem:[#allocation12 + $0x7d0] sm:$0xff] }
 0x4ed   :  { %8834 = vmatprep.subr.bf16.mxu1 %v9876_v5  ;;  %v5399_v3 = vld [vmem:[#allocation12 + $0x7f0] sm:$0xff]  ;;  %v5396_v5 = vld [vmem:[#allocation12 + $0x7d8] sm:$0xff] }
 0x4ee   :  { %v9930_v14 = vcombine.high %v5395_v2, %v5399_v3  ;;  %v9929_v16 = vcombine.low %v5395_v2, %v5399_v3  ;;  %v9931_v57 = vcombine.low %v5396_v5, %v5400_v6 }
 0x4ef   :  { %8663 = vmatpush1.bf16.msra.mxu0 %v9873_v8  ;;  %v9932_v8 = vcombine.high %v5396_v5, %v5400_v6  ;;  %v5451_v6 = vld [vmem:[#allocation12 + $0x990] sm:$0xff] }
 0x4f0   :  { %8835 = vmatpush1.bf16.msra.mxu1 %v9875_v23  ;;  %8664 = vmatprep.subr.bf16.mxu0 %v9882_v10  ;;  %v5403_v23 = vld [vmem:[#allocation12 + $0x810] sm:$0xff] }
 0x4f1   :  { %8836 = vmatprep.subr.bf16.mxu1 %v9884_v12  ;;  %v5407_v10 = vld [vmem:[#allocation12 + $0x830] sm:$0xff]  ;;  %v5404_v12 = vld [vmem:[#allocation12 + $0x818] sm:$0xff] }
 0x4f2   :  { %v9938_v60 = vcombine.high %v5403_v23, %v5407_v10  ;;  %v9939_v26 = vcombine.low %v5404_v12, %v5408_v4 }
 0x4f3   :  { %8665 = vmatpush1.bf16.msra.mxu0 %v9881_v9  ;;  %v9940_v9 = vcombine.high %v5404_v12, %v5408_v4  ;;  %v5459_v4 = vld [vmem:[#allocation12 + $0x9d0] sm:$0xff] }
 0x4f4   :  { %8837 = vmatpush1.bf16.msra.mxu1 %v9883_v17  ;;  %8666 = vmatprep.subr.bf16.mxu0 %v9890_v18  ;;  %v5411_v17 = vld [vmem:[#allocation12 + $0x850] sm:$0xff] }
 0x4f5   :  { %8838 = vmatprep.subr.bf16.mxu1 %v9892_v11  ;;  %v5415_v18 = vld [vmem:[#allocation12 + $0x870] sm:$0xff]  ;;  %v9937_v11 = vcombine.low %v5403_v23, %v5407_v10 }
 0x4f6   :  { %v9946_v27 = vcombine.high %v5411_v17, %v5415_v18  ;;  %v9945_v49 = vcombine.low %v5411_v17, %v5415_v18 }
 0x4f7   :  { %8667 = vmatpush1.bf16.msra.mxu0 %v9889_v59  ;;  %v5419_v59 = vld [vmem:[#allocation12 + $0x890] sm:$0xff] }
 0x4f8   :  { %8839 = vmatpush1.bf16.msra.mxu1 %v9891_v28  ;;  %8668 = vmatprep.subr.bf16.mxu0 %v9898_v32  ;;  %v5423_v28 = vld [vmem:[#allocation12 + $0x8b0] sm:$0xff]  ;;  %v9948_v32 = vcombine.high %v5412_v19, %v5416_v25 }
 0x4f9   :  { %8840 = vmatprep.subr.bf16.mxu1 %v9900_v33  ;;  %v5420_v33 = vld [vmem:[#allocation12 + $0x898] sm:$0xff]  ;;  %v9954_v37 = vcombine.high %v5419_v59, %v5423_v28  ;;  %v9953_v40 = vcombine.low %v5419_v59, %v5423_v28  ;;  %v5467_v19 = vld [vmem:[#allocation12 + $0xa10] sm:$0xff] }
 0x4fa   :  { %v5471_v25 = vld [vmem:[#allocation12 + $0xa30] sm:$0xff] }
 0x4fb   :  { %8669 = vmatpush1.bf16.msra.mxu0 %v9897_v1  ;;  %v9956_v1 = vcombine.high %v5420_v33, %v5424_v35 }
 0x4fc   :  { %8841 = vmatpush1.bf16.msra.mxu1 %v9899_v29  ;;  %8670 = vmatprep.subr.bf16.mxu0 %v9906_v45  ;;  %v5427_v29 = vld [vmem:[#allocation12 + $0x8d0] sm:$0xff] }
 0x4fd   :  { %8842 = vmatprep.subr.bf16.mxu1 %v9908_v22  ;;  %v5431_v45 = vld [vmem:[#allocation12 + $0x8f0] sm:$0xff]  ;;  %v5428_v22 = vld [vmem:[#allocation12 + $0x8d8] sm:$0xff] }
 0x4fe   :  { %v9962_v7 = vcombine.high %v5427_v29, %v5431_v45  ;;  %v9964_v47 = vcombine.high %v5428_v22, %v5432_v38  ;;  %v9963_v51 = vcombine.low %v5428_v22, %v5432_v38  ;;  %v5483_v38 = vld [vmem:[#allocation12 + $0xa90] sm:$0xff] }
 0x4ff   :  { %8671 = vmatpush1.bf16.msra.mxu0 %v9905_v48  ;;  %v5435_v48 = vld [vmem:[#allocation12 + $0x910] sm:$0xff] }
 0x500   :  { %8843 = vmatpush1.bf16.msra.mxu1 %v9907_v30  ;;  %8672 = vmatprep.subr.bf16.mxu0 %v9914_v46  ;;  %v5439_v30 = vld [vmem:[#allocation12 + $0x930] sm:$0xff]  ;;  %v5436_v46 = vld [vmem:[#allocation12 + $0x918] sm:$0xff] }
 0x501   :  { %8844 = vmatprep.subr.bf16.mxu1 %v9916_v42  ;;  %v5440_v42 = vld [vmem:[#allocation12 + $0x938] sm:$0xff]  ;;  %v9970_v53 = vcombine.high %v5435_v48, %v5439_v30 }
 0x502   :  { %v9972_v54 = vcombine.high %v5436_v46, %v5440_v42  ;;  %v9971_v2 = vcombine.low %v5436_v46, %v5440_v42  ;;  %v5491_v42 = vld [vmem:[#allocation12 + $0xad0] sm:$0xff] }
 0x503   :  { %8673 = vmatpush1.bf16.msra.mxu0 %v9913_v55  ;;  %v5447_v55 = vld [vmem:[#allocation12 + $0x970] sm:$0xff] }
 0x504   :  { %8845 = vmatpush1.bf16.msra.mxu1 %v9915_v56  ;;  %8674 = vmatprep.subr.bf16.mxu0 %v9922_v61  ;;  %v5444_v56 = vld [vmem:[#allocation12 + $0x958] sm:$0xff]  ;;  %v9978_v3 = vcombine.high %v5443_v20, %v5447_v55 }
 0x505   :  { %8846 = vmatprep.subr.bf16.mxu1 %v9924_v63  ;;  %v5448_v61 = vld [vmem:[#allocation12 + $0x978] sm:$0xff]  ;;  %v9969_v63 = vcombine.low %v5435_v48, %v5439_v30 }
 0x506   :  { %v9980_v5 = vcombine.high %v5444_v56, %v5448_v61  ;;  %v9979_v23 = vcombine.low %v5444_v56, %v5448_v61  ;;  %v5499_v61 = vld [vmem:[#allocation12 + $0xb10] sm:$0xff] }
 0x507   :  { %8675 = vmatpush1.bf16.msra.mxu0 %v9921_v13  ;;  %v5455_v13 = vld [vmem:[#allocation12 + $0x9b0] sm:$0xff] }
 0x508   :  { %8847 = vmatpush1.bf16.msra.mxu1 %v9923_v0  ;;  %8676 = vmatprep.subr.bf16.mxu0 %v9930_v14  ;;  %v5452_v0 = vld [vmem:[#allocation12 + $0x998] sm:$0xff]  ;;  %v9986_v10 = vcombine.high %v5451_v6, %v5455_v13 }
 0x509   :  { %8848 = vmatprep.subr.bf16.mxu1 %v9932_v8  ;;  %v5456_v14 = vld [vmem:[#allocation12 + $0x9b8] sm:$0xff]  ;;  %v9977_v8 = vcombine.low %v5443_v20, %v5447_v55 }
 0x50a   :  { %v9988_v12 = vcombine.high %v5452_v0, %v5456_v14  ;;  %v9987_v17 = vcombine.low %v5452_v0, %v5456_v14  ;;  %v5507_v14 = vld [vmem:[#allocation12 + $0xb50] sm:$0xff] }
 0x50b   :  { %8677 = vmatpush1.bf16.msra.mxu0 %v9929_v16  ;;  %v5463_v16 = vld [vmem:[#allocation12 + $0x9f0] sm:$0xff] }
 0x50c   :  { %8849 = vmatpush1.bf16.msra.mxu1 %v9931_v57  ;;  %8689 = vmatprep.subr.bf16.mxu0 %v9938_v60  ;;  %v5460_v57 = vld [vmem:[#allocation12 + $0x9d8] sm:$0xff]  ;;  %v9994_v18 = vcombine.high %v5459_v4, %v5463_v16  ;;  %v9993_v59 = vcombine.low %v5459_v4, %v5463_v16 }
 0x50d   :  { %8861 = vmatprep.subr.bf16.mxu1 %v9940_v9  ;;  %v5464_v60 = vld [vmem:[#allocation12 + $0x9f8] sm:$0xff]  ;;  %v9985_v9 = vcombine.low %v5451_v6, %v5455_v13 }
 0x50e   :  { %8679 = vmatmul.mubr.bf16.vlgmr.msra.gmra.mrb[20].mxu0 %v10915_v52  ;;  %v9995_v28 = vcombine.low %v5460_v57, %v5464_v60 }
 0x50f   :  { %8851 = vmatmul.mubr.bf16.vlgmr.msra.gmra.mrb[20].mxu1 %v10915_v52  ;;  %8690 = vmatpush1.bf16.msra.mxu0 %v9937_v11  ;;  %v9955_v52 = vcombine.low %v5420_v33, %v5424_v35  ;;  %v9996_v11 = vcombine.high %v5460_v57, %v5464_v60  ;;  %v5475_v35 = vld [vmem:[#allocation12 + $0xa50] sm:$0xff] }
 0x510   :  { %8721 = vmatprep.mubr.bf16.mxu0 %v10967_v43  ;;  %8862 = vmatpush1.bf16.msra.mxu1 %v9939_v26  ;;  %v5468_v26 = vld [vmem:[#allocation12 + $0xa18] sm:$0xff]  ;;  %v5515_v60 = vld [vmem:[#allocation12 + $0xb90] sm:$0xff] }
 0x511   :  { %8893 = vmatprep.mubr.bf16.mxu1 %v10967_v43  ;;  %8691 = vmatprep.subr.bf16.mxu0 %v9946_v27  ;;  %v9961_v43 = vcombine.low %v5427_v29, %v5431_v45  ;;  %v5472_v27 = vld [vmem:[#allocation12 + $0xa38] sm:$0xff] }
 0x512   :  { %8863 = vmatprep.subr.bf16.mxu1 %v9948_v32  ;;  %v10002_v32 = vcombine.high %v5467_v19, %v5471_v25  ;;  %v10004_v33 = vcombine.high %v5468_v26, %v5472_v27  ;;  %v10003_v29 = vcombine.low %v5468_v26, %v5472_v27  ;;  %v5523_v27 = vld [vmem:[#allocation12 + $0xbd0] sm:$0xff] }
 0x513   :  { %8692 = vmatpush1.bf16.msra.mxu0 %v9945_v49  ;;  %v5479_v49 = vld [vmem:[#allocation12 + $0xa70] sm:$0xff] }
 0x514   :  { %8864 = vmatpush1.bf16.msra.mxu1 %v9947_v50  ;;  %8693 = vmatprep.subr.bf16.mxu0 %v9954_v37  ;;  %v5476_v50 = vld [vmem:[#allocation12 + $0xa58] sm:$0xff]  ;;  %v10010_v45 = vcombine.high %v5475_v35, %v5479_v49 }
 0x515   :  { %8865 = vmatprep.subr.bf16.mxu1 %v9956_v1  ;;  %v5480_v37 = vld [vmem:[#allocation12 + $0xa78] sm:$0xff]  ;;  %v10001_v1 = vcombine.low %v5467_v19, %v5471_v25 }
 0x516   :  { %v10012_v22 = vcombine.high %v5476_v50, %v5480_v37  ;;  %v10011_v48 = vcombine.low %v5476_v50, %v5480_v37  ;;  %v5531_v37 = vld [vmem:[#allocation12 + $0xc10] sm:$0xff] }
 0x517   :  { %8694 = vmatpush1.bf16.msra.mxu0 %v9953_v40  ;;  %v5487_v40 = vld [vmem:[#allocation12 + $0xab0] sm:$0xff] }
 0x518   :  { %8866 = vmatpush1.bf16.msra.mxu1 %v9955_v52  ;;  %8695 = vmatprep.subr.bf16.mxu0 %v9962_v7  ;;  %v5484_v52 = vld [vmem:[#allocation12 + $0xa98] sm:$0xff]  ;;  %v10018_v30 = vcombine.high %v5483_v38, %v5487_v40 }
 0x519   :  { %8867 = vmatprep.subr.bf16.mxu1 %v9964_v47  ;;  %v5488_v7 = vld [vmem:[#allocation12 + $0xab8] sm:$0xff]  ;;  %v10009_v47 = vcombine.low %v5475_v35, %v5479_v49 }
 0x51a   :  { %v10020_v46 = vcombine.high %v5484_v52, %v5488_v7  ;;  %v10019_v20 = vcombine.low %v5484_v52, %v5488_v7  ;;  %v5539_v7 = vld [vmem:[#allocation12 + $0xc50] sm:$0xff] }
 0x51b   :  { %8696 = vmatpush1.bf16.msra.mxu0 %v9961_v43  ;;  %v5495_v43 = vld [vmem:[#allocation12 + $0xaf0] sm:$0xff] }
 0x51c   :  { %8868 = vmatpush1.bf16.msra.mxu1 %v9963_v51  ;;  %8697 = vmatprep.subr.bf16.mxu0 %v9970_v53  ;;  %v5492_v51 = vld [vmem:[#allocation12 + $0xad8] sm:$0xff]  ;;  %v10026_v55 = vcombine.high %v5491_v42, %v5495_v43 }
 0x51d   :  { %8869 = vmatprep.subr.bf16.mxu1 %v9972_v54  ;;  %v5496_v53 = vld [vmem:[#allocation12 + $0xaf8] sm:$0xff]  ;;  %v10017_v54 = vcombine.low %v5483_v38, %v5487_v40 }
 0x51e   :  { %v10028_v56 = vcombine.high %v5492_v51, %v5496_v53  ;;  %v10027_v6 = vcombine.low %v5492_v51, %v5496_v53  ;;  %v5547_v51 = vld [vmem:[#allocation12 + $0xc90] sm:$0xff] }
 0x51f   :  { %8698 = vmatpush1.bf16.msra.mxu0 %v9969_v63  ;;  %v5503_v63 = vld [vmem:[#allocation12 + $0xb30] sm:$0xff] }
 0x520   :  { %8870 = vmatpush1.bf16.msra.mxu1 %v9971_v2  ;;  %8699 = vmatprep.subr.bf16.mxu0 %v9978_v3  ;;  %v5500_v2 = vld [vmem:[#allocation12 + $0xb18] sm:$0xff]  ;;  %v10034_v13 = vcombine.high %v5499_v61, %v5503_v63  ;;  %v5551_v53 = vld [vmem:[#allocation12 + $0xcb0] sm:$0xff] }
 0x521   :  { %8871 = vmatprep.subr.bf16.mxu1 %v9980_v5  ;;  %v5504_v3 = vld [vmem:[#allocation12 + $0xb38] sm:$0xff]  ;;  %v10025_v5 = vcombine.low %v5491_v42, %v5495_v43 }
 0x522   :  { %v10036_v0 = vcombine.high %v5500_v2, %v5504_v3  ;;  %v10035_v4 = vcombine.low %v5500_v2, %v5504_v3  ;;  %v5555_v3 = vld [vmem:[#allocation12 + $0xcd0] sm:$0xff] }
 0x523   :  { %8700 = vmatpush1.bf16.msra.mxu0 %v9977_v8  ;;  %v5511_v8 = vld [vmem:[#allocation12 + $0xb70] sm:$0xff] }
 0x524   :  { %8872 = vmatpush1.bf16.msra.mxu1 %v9979_v23  ;;  %8701 = vmatprep.subr.bf16.mxu0 %v9986_v10  ;;  %v5508_v23 = vld [vmem:[#allocation12 + $0xb58] sm:$0xff]  ;;  %v10042_v16 = vcombine.high %v5507_v14, %v5511_v8 }
 0x525   :  { %8873 = vmatprep.subr.bf16.mxu1 %v9988_v12  ;;  %v5512_v10 = vld [vmem:[#allocation12 + $0xb78] sm:$0xff]  ;;  %v10033_v12 = vcombine.low %v5499_v61, %v5503_v63  ;;  %v10082_v63 = vcombine.high %v5547_v51, %v5551_v53 }
 0x526   :  { %v10044_v57 = vcombine.high %v5508_v23, %v5512_v10  ;;  %v10043_v19 = vcombine.low %v5508_v23, %v5512_v10  ;;  %v5563_v23 = vld [vmem:[#allocation12 + $0xd10] sm:$0xff] }
 0x527   :  { %8702 = vmatpush1.bf16.msra.mxu0 %v9985_v9  ;;  %v5519_v9 = vld [vmem:[#allocation12 + $0xbb0] sm:$0xff] }
 0x528   :  { %8874 = vmatpush1.bf16.msra.mxu1 %v9987_v17  ;;  %8703 = vmatprep.subr.bf16.mxu0 %v9994_v18  ;;  %v5516_v17 = vld [vmem:[#allocation12 + $0xb98] sm:$0xff]  ;;  %v10050_v25 = vcombine.high %v5515_v60, %v5519_v9  ;;  %v5567_v10 = vld [vmem:[#allocation12 + $0xd30] sm:$0xff] }
 0x529   :  { %8875 = vmatprep.subr.bf16.mxu1 %v9996_v11  ;;  %v5520_v18 = vld [vmem:[#allocation12 + $0xbb8] sm:$0xff]  ;;  %v10041_v11 = vcombine.low %v5507_v14, %v5511_v8 }
 0x52a   :  { %v10052_v26 = vcombine.high %v5516_v17, %v5520_v18  ;;  %v10051_v35 = vcombine.low %v5516_v17, %v5520_v18  ;;  %v5575_v17 = vld [vmem:[#allocation12 + $0xd70] sm:$0xff]  ;;  %v5572_v18 = vld [vmem:[#allocation12 + $0xd58] sm:$0xff] }
 0x52b   :  { %8704 = vmatpush1.bf16.msra.mxu0 %v9993_v59  ;;  %v5527_v59 = vld [vmem:[#allocation12 + $0xbf0] sm:$0xff] }
 0x52c   :  { %8876 = vmatpush1.bf16.msra.mxu1 %v9995_v28  ;;  %8705 = vmatprep.subr.bf16.mxu0 %v10002_v32  ;;  %v5524_v28 = vld [vmem:[#allocation12 + $0xbd8] sm:$0xff]  ;;  %v10058_v49 = vcombine.high %v5523_v27, %v5527_v59 }
 0x52d   :  { %8877 = vmatprep.subr.bf16.mxu1 %v10004_v33  ;;  %v5528_v32 = vld [vmem:[#allocation12 + $0xbf8] sm:$0xff]  ;;  %v10049_v33 = vcombine.low %v5515_v60, %v5519_v9  ;;  %v5571_v9 = vld [vmem:[#allocation12 + $0xd50] sm:$0xff] }
 0x52e   :  { %v10060_v50 = vcombine.high %v5524_v28, %v5528_v32  ;;  %v10059_v38 = vcombine.low %v5524_v28, %v5528_v32  ;;  %v10999_v28 = vld [vmem:[#allocation12 + $0xd90] sm:$0xff] }
 0x52f   :  { %8706 = vmatpush1.bf16.msra.mxu0 %v10001_v1  ;;  %v5535_v1 = vld [vmem:[#allocation12 + $0xc30] sm:$0xff] }
 0x530   :  { %8878 = vmatpush1.bf16.msra.mxu1 %v10003_v29  ;;  %8707 = vmatprep.subr.bf16.mxu0 %v10010_v45  ;;  %v5532_v29 = vld [vmem:[#allocation12 + $0xc18] sm:$0xff]  ;;  %v10066_v40 = vcombine.high %v5531_v37, %v5535_v1  ;;  %v11001_v32 = vld [vmem:[#allocation12 + $0xdb0] sm:$0xff] }
 0x531   :  { %8879 = vmatprep.subr.bf16.mxu1 %v10012_v22  ;;  %v5536_v45 = vld [vmem:[#allocation12 + $0xc38] sm:$0xff]  ;;  %v10057_v22 = vcombine.low %v5523_v27, %v5527_v59  ;;  %v10106_v27 = vcombine.high %v5571_v9, %v5575_v17 }
 0x532   :  { %v10068_v52 = vcombine.high %v5532_v29, %v5536_v45  ;;  %v10067_v42 = vcombine.low %v5532_v29, %v5536_v45 }
 0x533   :  { %8708 = vmatpush1.bf16.msra.mxu0 %v10009_v47  ;;  %v5543_v47 = vld [vmem:[#allocation12 + $0xc70] sm:$0xff] }
 0x534   :  { %8880 = vmatpush1.bf16.msra.mxu1 %v10011_v48  ;;  %8709 = vmatprep.subr.bf16.mxu0 %v10018_v30  ;;  %v10065_v48 = vcombine.low %v5531_v37, %v5535_v1  ;;  %v5540_v30 = vld [vmem:[#allocation12 + $0xc58] sm:$0xff]  ;;  %v10074_v43 = vcombine.high %v5539_v7, %v5543_v47  ;;  %v11011_v37 = vld [vmem:[#allocation12 + $0xdd0] sm:$0xff] }
 0x535   :  { %8881 = vmatprep.subr.bf16.mxu1 %v10020_v46  ;;  %v5544_v46 = vld [vmem:[#allocation12 + $0xc78] sm:$0xff]  ;;  %v11013_v1 = vld [vmem:[#allocation12 + $0xdf0] sm:$0xff] }
 0x536   :  { %v10075_v61 = vcombine.low %v5540_v30, %v5544_v46 }
 0x537   :  { %8710 = vmatpush1.bf16.msra.mxu0 %v10017_v54  ;;  %v10076_v54 = vcombine.high %v5540_v30, %v5544_v46 }
 0x538   :  { %8882 = vmatpush1.bf16.msra.mxu1 %v10019_v20  ;;  %8711 = vmatprep.subr.bf16.mxu0 %v10026_v55  ;;  %v5548_v20 = vld [vmem:[#allocation12 + $0xc98] sm:$0xff] }
 0x539   :  { %8883 = vmatprep.subr.bf16.mxu1 %v10028_v56  ;;  %v5552_v55 = vld [vmem:[#allocation12 + $0xcb8] sm:$0xff]  ;;  %v10073_v56 = vcombine.low %v5539_v7, %v5543_v47  ;;  %v10113_v7 = vcombine.low %v10999_v28, %v11001_v32  ;;  %v11032_v47 = vld [vmem:[#allocation12 + $0xe30] sm:$0xff] }
 0x53a   :  { %v10084_v2 = vcombine.high %v5548_v20, %v5552_v55 }
 0x53b   :  { %8712 = vmatpush1.bf16.msra.mxu0 %v10025_v5  ;;  %v5559_v5 = vld [vmem:[#allocation12 + $0xcf0] sm:$0xff] }
 0x53c   :  { %8884 = vmatpush1.bf16.msra.mxu1 %v10027_v6  ;;  %8713 = vmatprep.subr.bf16.mxu0 %v10034_v13  ;;  %v5556_v6 = vld [vmem:[#allocation12 + $0xcd8] sm:$0xff]  ;;  %v10090_v14 = vcombine.high %v5555_v3, %v5559_v5 }
 0x53d   :  { %8885 = vmatprep.subr.bf16.mxu1 %v10036_v0  ;;  %v5560_v13 = vld [vmem:[#allocation12 + $0xcf8] sm:$0xff]  ;;  %v10081_v0 = vcombine.low %v5547_v51, %v5551_v53  ;;  %v10121_v51 = vcombine.low %v11011_v37, %v11013_v1  ;;  %v10122_v53 = vcombine.high %v11011_v37, %v11013_v1 }
 0x53e   :  { %v10092_v8 = vcombine.high %v5556_v6, %v5560_v13 }
 0x53f   :  { %8714 = vmatpush1.bf16.msra.mxu0 %v10033_v12  ;;  %v5564_v12 = vld [vmem:[#allocation12 + $0xd18] sm:$0xff] }
 0x540   :  { %8886 = vmatpush1.bf16.msra.mxu1 %v10035_v4  ;;  %8715 = vmatprep.subr.bf16.mxu0 %v10042_v16  ;;  %v5568_v4 = vld [vmem:[#allocation12 + $0xd38] sm:$0xff]  ;;  %v10091_v16 = vcombine.low %v5556_v6, %v5560_v13 }
 0x541   :  { %8887 = vmatprep.subr.bf16.mxu1 %v10044_v57  ;;  %v10098_v57 = vcombine.high %v5563_v23, %v5567_v10  ;;  %v10100_v60 = vcombine.high %v5564_v12, %v5568_v4 }
 0x543   :  { %8716 = vmatpush1.bf16.msra.mxu0 %v10041_v11  ;;  %v5576_v11 = vld [vmem:[#allocation12 + $0xd78] sm:$0xff] }
 0x544   :  { %8888 = vmatpush1.bf16.msra.mxu1 %v10043_v19  ;;  %8717 = vmatprep.subr.bf16.mxu0 %v10050_v25  ;;  %v10097_v19 = vcombine.low %v5563_v23, %v5567_v10  ;;  %v10997_v25 = vld [vmem:[#allocation14] sm:$0xff]  ;;  %v10108_v59 = vcombine.high %v5572_v18, %v5576_v11 }
 0x545   :  { %8889 = vmatprep.subr.bf16.mxu1 %v10052_v26  ;;  %v10099_v26 = vcombine.low %v5564_v12, %v5568_v4  ;;  %v5666_v29 = vrot.slane %v10997_v25, %v10737_v24  ;;  %v5674_v45 = vrot.slane %v10997_v25, %v10751_v39  ;;  %v10114_v24 = vcombine.high %v10999_v28, %v11001_v32  ;;  %v11034_v39 = vld [vmem:[#allocation12 + $0xe18] sm:$0xff]  ;;  %v5607_v28 = vld [vmem:[#allocation12 + $0xe70] sm:$0xff] }
 0x547   :  { %8718 = vmatpush1.bf16.msra.mxu0 %v10049_v33  ;;  %v11003_v33 = vld [vmem:[#allocation12 + $0xd98] sm:$0xff] }
 0x548   :  { %8890 = vmatpush1.bf16.msra.mxu1 %v10051_v35  ;;  %8719 = vmatprep.subr.bf16.mxu0 %v10058_v49  ;;  %v5662_v35 = vrot.slane %v10997_v25, %v10732_v21  ;;  %v5670_v49 = vrot.slane %v10997_v25, %v10747_v36  ;;  %v11021_v21 = vld [vmem:[#allocation12 + $0xdf8] sm:$0xff]  ;;  %v11026_v36 = vstv %s10995_s29 }
 0x549   :  { %8891 = vmatprep.subr.bf16.mxu1 %v10060_v50  ;;  %v11009_v50 = vld [vmem:[#allocation12 + $0xdb8] sm:$0xff] }
 0x54b   :  { %8720 = vmatpush1.bf16.msra.mxu0 %v10057_v22  ;;  %v10105_v22 = vcombine.low %v5571_v9, %v5575_v17 }
 0x54c   :  { %8892 = vmatpush1.bf16.msra.mxu1 %v10059_v38  ;;  %8732 = vmatprep.subr.bf16.mxu0 %v10066_v40  ;;  %v11019_v38 = vld [vmem:[#allocation12 + $0xdd8] sm:$0xff]  ;;  %v11023_v40 = vld [vmem:[#allocation12 + $0xe10] sm:$0xff] }
 0x54d   :  { %8904 = vmatprep.subr.bf16.mxu1 %v10068_v52  ;;  %v10107_v52 = vcombine.low %v5572_v18, %v5576_v11  ;;  %v10130_v13 = vcombine.high %v11023_v40, %v11032_v47 }
 0x54e   :  { %8722 = vmatmul.mubr.bf16.vlgmr.msra.gmra.mrb[20].mxu0 %v10956_v15 }
 0x54f   :  { %8894 = vmatmul.mubr.bf16.vlgmr.msra.gmra.mrb[20].mxu1 %v10956_v15  ;;  %8733 = vmatpush1.bf16.msra.mxu0 %v10065_v48  ;;  %v10083_v15 = vcombine.low %v5548_v20, %v5552_v55  ;;  %v11036_v48 = vld [vmem:[#allocation12 + $0xe38] sm:$0xff] }
 0x550   :  { %8764 = vmatprep.mubr.bf16.mxu0 %v10971_v34  ;;  %8905 = vmatpush1.bf16.msra.mxu1 %v10067_v42  ;;  %v10115_v42 = vcombine.low %v11003_v33, %v11009_v50 }
 0x551   :  { %8936 = vmatprep.mubr.bf16.mxu1 %v10971_v34  ;;  %8734 = vmatprep.subr.bf16.mxu0 %v10074_v43  ;;  %v10089_v34 = vcombine.low %v5555_v3, %v5559_v5  ;;  %v10116_v43 = vcombine.high %v11003_v33, %v11009_v50 }
 0x552   :  { %8906 = vmatprep.subr.bf16.mxu1 %v10076_v54 }
 0x553   :  { %8735 = vmatpush1.bf16.msra.mxu0 %v10073_v56 }
 0x554   :  { %8907 = vmatpush1.bf16.msra.mxu1 %v10075_v61  ;;  %8736 = vmatprep.subr.bf16.mxu0 %v10082_v63  ;;  %v10123_v61 = vcombine.low %v11019_v38, %v11021_v21  ;;  %v10124_v63 = vcombine.high %v11019_v38, %v11021_v21 }
 0x555   :  { %8908 = vmatprep.subr.bf16.mxu1 %v10084_v2 }
 0x557   :  { %8737 = vmatpush1.bf16.msra.mxu0 %v10081_v0  ;;  %v10132_v0 = vcombine.high %v11034_v39, %v11036_v48 }
 0x558   :  { %8909 = vmatpush1.bf16.msra.mxu1 %v10083_v15  ;;  %8738 = vmatprep.subr.bf16.mxu0 %v10090_v14 }
 0x559   :  { %8910 = vmatprep.subr.bf16.mxu1 %v10092_v8 }
 0x55b   :  { %8739 = vmatpush1.bf16.msra.mxu0 %v10089_v34 }
 0x55c   :  { %8911 = vmatpush1.bf16.msra.mxu1 %v10091_v16  ;;  %8740 = vmatprep.subr.bf16.mxu0 %v10098_v57 }
 0x55d   :  { %8912 = vmatprep.subr.bf16.mxu1 %v10100_v60 }
 0x55f   :  { %8741 = vmatpush1.bf16.msra.mxu0 %v10097_v19 }
 0x560   :  { %8913 = vmatpush1.bf16.msra.mxu1 %v10099_v26  ;;  %8742 = vmatprep.subr.bf16.mxu0 %v10106_v27 }
 0x561   :  { %v8422_v30 = vpop.f32.mrb[16].mxu0  ;;  %v8594_v46 = vpop.f32.mrb[16].mxu1  ;;  %8914 = vmatprep.subr.bf16.mxu1 %v10108_v59  ;;  %v5603_v59 = vld [vmem:[#allocation12 + $0xe50] sm:$0xff] }
 0x562   :  { %v10206_v54 = vadd.f32 %v8422_v30, %v5662_v35  ;;  %v10210_v20 = vadd.f32 %v8594_v46, %v5670_v49  ;;  %v8424_v55 = vpop.f32.mrb[17].mxu0  ;;  %v8596_v56 = vpop.f32.mrb[17].mxu1  ;;  %v10138_v38 = vcombine.high %v5603_v59, %v5607_v28  ;;  %v5616_v30 = vld [vmem:[#allocation12 + $0xeb8] sm:$0xff]  ;;  %v10137_v37 = vcombine.low %v5603_v59, %v5607_v28  ;;  %v5619_v46 = vld [vmem:[#allocation12 + $0xed0] sm:$0xff] }
 0x563   :  { %v10207_v2 = vadd.f32 %v8424_v55, %v5666_v29  ;;  %v10211_v3 = vadd.f32 %v8596_v56, %v5674_v45  ;;  %v8426_v5 = vpop.f32.mrb[18].mxu0  ;;  %v8598_v6 = vpop.f32.mrb[18].mxu1  ;;  %8743 = vmatpush1.bf16.msra.mxu0 %v10105_v22  ;;  %v10131_v22 = vcombine.low %v11034_v39, %v11036_v48  ;;  %v5631_v55 = vld [vmem:[#allocation12 + $0xf30] sm:$0xff]  ;;  %v5628_v56 = vld [vmem:[#allocation12 + $0xf18] sm:$0xff] }
 0x564   :  { %vm8948_vm0 = vcmp.gt.f32.partialorder %v10206_v54, 0.0  ;;  %v8965_v15 = vmul.f32 %v10206_v54, %v11026_v36  ;;  %vm8950_vm1 = vcmp.gt.f32.partialorder %v10210_v20, 0.0  ;;  %v8967_v14 = vmul.f32 %v10210_v20, %v11026_v36  ;;  %8915 = vmatpush1.bf16.msra.mxu1 %v10107_v52  ;;  %v8428_v8 = vpop.f32.mrb[19].mxu0  ;;  %v8600_v23 = vpop.f32.mrb[19].mxu1  ;;  %8744 = vmatprep.subr.bf16.mxu0 %v10114_v24  ;;  %v5611_v52 = vld [vmem:[#allocation12 + $0xe90] sm:$0xff]  ;;  %v5612_v24 = vld [vmem:[#allocation12 + $0xe98] sm:$0xff] }
 0x565   :  { %vm8949_vm2 = vcmp.gt.f32.partialorder %v10207_v2, 0.0  ;;  %v8966_v10 = vmul.f32 %v10207_v2, %v11026_v36  ;;  %vm8951_vm3 = vcmp.gt.f32.partialorder %v10211_v3, 0.0  ;;  %v8968_v12 = vmul.f32 %v10211_v3, %v11026_v36  ;;  %8916 = vmatprep.subr.bf16.mxu1 %v10116_v43  ;;  %v5620_v43 = vld [vmem:[#allocation12 + $0xed8] sm:$0xff] }
 0x566   :  { %v8981_v4 = vsel %vm8948_vm0, %v10206_v54, %v8965_v15  ;;  %v8983_v34 = vsel %vm8950_vm1, %v10210_v20, %v8967_v14  ;;  %v10208_v16 = vadd.f32 %v8426_v5, %v5662_v35  ;;  %v10212_v57 = vadd.f32 %v8598_v6, %v5670_v49  ;;  %v5604_v35 = vld [vmem:[#allocation12 + $0xe58] sm:$0xff]  ;;  %v5627_v20 = vld [vmem:[#allocation12 + $0xf10] sm:$0xff] }
 0x567   :  { %8997 = vst [vmem:[#allocation16] sm:$0xff] %v8981_v4  ;;  %8999 = vst [vmem:[#allocation16 + $0x10] sm:$0xff] %v8983_v34  ;;  %v8982_v60 = vsel %vm8949_vm2, %v10207_v2, %v8966_v10  ;;  %v8984_v9 = vsel %vm8951_vm3, %v10211_v3, %v8968_v12  ;;  %v10209_v17 = vadd.f32 %v8428_v8, %v5666_v29  ;;  %8745 = vmatpush1.bf16.msra.mxu0 %v10113_v7  ;;  %v5608_v49 = vld [vmem:[#allocation12 + $0xe78] sm:$0xff]  ;;  %v5615_v7 = vld [vmem:[#allocation12 + $0xeb0] sm:$0xff] }
 0x568   :  { %v10213_v18 = vadd.f32 %v8600_v23, %v5674_v45  ;;  %8998 = vst [vmem:[#allocation16 + $0x8] sm:$0xff] %v8982_v60  ;;  %9000 = vst [vmem:[#allocation16 + $0x18] sm:$0xff] %v8984_v9  ;;  %vm8956_vm4 = vcmp.gt.f32.partialorder %v10208_v16, 0.0  ;;  %v8973_v11 = vmul.f32 %v10208_v16, %v11026_v36  ;;  %vm8958_vm5 = vcmp.gt.f32.partialorder %v10212_v57, 0.0  ;;  %8917 = vmatpush1.bf16.msra.mxu1 %v10115_v42  ;;  %v5623_v42 = vld [vmem:[#allocation12 + $0xef0] sm:$0xff]  ;;  %v5640_v15 = vld [vmem:[#allocation12 + $0xf78] sm:$0xff] }
 0x569   :  { %v8975_v19 = vmul.f32 %v10212_v57, %v11026_v36  ;;  %8746 = vmatprep.subr.bf16.mxu0 %v10122_v53  ;;  %vm8957_vm6 = vcmp.gt.f32.partialorder %v10209_v17, 0.0  ;;  %v8974_v26 = vmul.f32 %v10209_v17, %v11026_v36  ;;  %8918 = vmatprep.subr.bf16.mxu1 %v10124_v63  ;;  %v10129_v45 = vcombine.low %v11023_v40, %v11032_v47  ;;  %v5635_v6 = vld [vmem:[#allocation12 + $0xf50] sm:$0xff]  ;;  %v5644_v34 = vld [vmem:[#allocation12 + $0xf98] sm:$0xff] }
 0x56a   :  { %vm8959_vm7 = vcmp.gt.f32.partialorder %v10213_v18, 0.0  ;;  %v8976_v27 = vmul.f32 %v10213_v18, %v11026_v36  ;;  %v8989_v32 = vsel %vm8956_vm4, %v10208_v16, %v8973_v11  ;;  %v10140_v21 = vcombine.high %v5604_v35, %v5608_v49  ;;  %v5643_v12 = vld [vmem:[#allocation12 + $0xf90] sm:$0xff]  ;;  %v5648_v16 = vld [vmem:[#allocation12 + $0xfb8] sm:$0xff] }
 0x56b   :  { %v8991_v33 = vsel %vm8958_vm5, %v10212_v57, %v8975_v19  ;;  %9005 = vst [vmem:[#allocation16 + $0x40] sm:$0xff] %v8989_v32  ;;  %v8990_v50 = vsel %vm8957_vm6, %v10209_v17, %v8974_v26  ;;  %8747 = vmatpush1.bf16.msra.mxu0 %v10121_v51  ;;  %v10139_v1 = vcombine.low %v5604_v35, %v5608_v49  ;;  %v5624_v51 = vld [vmem:[#allocation12 + $0xef8] sm:$0xff]  ;;  %v5647_v4 = vld [vmem:[#allocation12 + $0xfb0] sm:$0xff] }
 0x56c   :  { %9007 = vst [vmem:[#allocation16 + $0x50] sm:$0xff] %v8991_v33  ;;  %v8992_v29 = vsel %vm8959_vm7, %v10213_v18, %v8976_v27  ;;  %9006 = vst [vmem:[#allocation16 + $0x48] sm:$0xff] %v8990_v50  ;;  %8919 = vmatpush1.bf16.msra.mxu1 %v10123_v61  ;;  %8748 = vmatprep.subr.bf16.mxu0 %v10130_v13  ;;  %v10146_v40 = vcombine.high %v5611_v52, %v5615_v7  ;;  %v5632_v61 = vld [vmem:[#allocation12 + $0xf38] sm:$0xff]  ;;  %v5639_v13 = vld [vmem:[#allocation12 + $0xf70] sm:$0xff] }
 0x56d   :  { %9008 = vst [vmem:[#allocation16 + $0x58] sm:$0xff] %v8992_v29  ;;  %8920 = vmatprep.subr.bf16.mxu1 %v10132_v0  ;;  %v10148_v47 = vcombine.high %v5612_v24, %v5616_v30  ;;  %v10145_v39 = vcombine.low %v5611_v52, %v5615_v7  ;;  %v10147_v48 = vcombine.low %v5612_v24, %v5616_v30  ;;  %v5636_v0 = vld [vmem:[#allocation12 + $0xf58] sm:$0xff]  ;;  %v5651_v18 = vld [vmem:[#allocation12 + $0xfd0] sm:$0xff] }
 0x56e   :  { %v10154_v53 = vcombine.high %v5619_v46, %v5623_v42  ;;  %v10156_v54 = vcombine.high %v5620_v43, %v5624_v51  ;;  %v10153_v63 = vcombine.low %v5619_v46, %v5623_v42  ;;  %v10155_v2 = vcombine.low %v5620_v43, %v5624_v51  ;;  %v5655_v11 = vld [vmem:[#allocation12 + $0xff0] sm:$0xff]  ;;  %v5652_v19 = vld [vmem:[#allocation12 + $0xfd8] sm:$0xff] }
 0x56f   :  { %8749 = vmatpush1.bf16.msra.mxu0 %v10129_v45  ;;  %v10162_v3 = vcombine.high %v5627_v20, %v5631_v55  ;;  %v10164_v5 = vcombine.high %v5628_v56, %v5632_v61  ;;  %v10161_v14 = vcombine.low %v5627_v20, %v5631_v55  ;;  %v10163_v8 = vcombine.low %v5628_v56, %v5632_v61  ;;  %v5656_v26 = vld [vmem:[#allocation12 + $0xff8] sm:$0xff] }
 0x570   :  { %8921 = vmatpush1.bf16.msra.mxu1 %v10131_v22  ;;  %8750 = vmatprep.subr.bf16.mxu0 %v10138_v38  ;;  %v10170_v23 = vcombine.high %v5635_v6, %v5639_v13  ;;  %v10172_v10 = vcombine.high %v5636_v0, %v5640_v15  ;;  %v10169_v57 = vcombine.low %v5635_v6, %v5639_v13 }
 0x571   :  { %8922 = vmatprep.subr.bf16.mxu1 %v10140_v21  ;;  %v10171_v60 = vcombine.low %v5636_v0, %v5640_v15  ;;  %v10178_v9 = vcombine.high %v5643_v12, %v5647_v4  ;;  %v10180_v17 = vcombine.high %v5644_v34, %v5648_v16  ;;  %v10177_v27 = vcombine.low %v5643_v12, %v5647_v4 }
 0x572   :  { %v10179_v59 = vcombine.low %v5644_v34, %v5648_v16  ;;  %v10186_v28 = vcombine.high %v5651_v18, %v5655_v11  ;;  %v10188_v32 = vcombine.high %v5652_v19, %v5656_v26  ;;  %v10185_v33 = vcombine.low %v5651_v18, %v5655_v11 }
 0x573   :  { %8751 = vmatpush1.bf16.msra.mxu0 %v10137_v37  ;;  %v10187_v35 = vcombine.low %v5652_v19, %v5656_v26  ;;  %v5678_v49 = vrot.slane %v10997_v25, %v10784_v58  ;;  %v5686_v50 = vrot.slane %v10997_v25, %v10795_v41  ;;  %v5682_v29 = vrot.slane %v10997_v25, %v10787_v62 }
 0x574   :  { %8923 = vmatpush1.bf16.msra.mxu1 %v10139_v1  ;;  %8752 = vmatprep.subr.bf16.mxu0 %v10146_v40  ;;  %v5690_v45 = vrot.slane %v10997_v25, %v10799_v44 }
 0x575   :  { %8924 = vmatprep.subr.bf16.mxu1 %v10148_v47 }
 0x577   :  { %8753 = vmatpush1.bf16.msra.mxu0 %v10145_v39 }
 0x578   :  { %8925 = vmatpush1.bf16.msra.mxu1 %v10147_v48  ;;  %8754 = vmatprep.subr.bf16.mxu0 %v10154_v53 }
 0x579   :  { %8926 = vmatprep.subr.bf16.mxu1 %v10156_v54 }
 0x57b   :  { %8755 = vmatpush1.bf16.msra.mxu0 %v10153_v63 }
 0x57c   :  { %8927 = vmatpush1.bf16.msra.mxu1 %v10155_v2  ;;  %8756 = vmatprep.subr.bf16.mxu0 %v10162_v3 }
 0x57d   :  { %8928 = vmatprep.subr.bf16.mxu1 %v10164_v5 }
 0x57f   :  { %8757 = vmatpush1.bf16.msra.mxu0 %v10161_v14 }
 0x580   :  { %8929 = vmatpush1.bf16.msra.mxu1 %v10163_v8  ;;  %8758 = vmatprep.subr.bf16.mxu0 %v10170_v23 }
 0x581   :  { %8930 = vmatprep.subr.bf16.mxu1 %v10172_v10 }
 0x583   :  { %8759 = vmatpush1.bf16.msra.mxu0 %v10169_v57 }
 0x584   :  { %8931 = vmatpush1.bf16.msra.mxu1 %v10171_v60  ;;  %8760 = vmatprep.subr.bf16.mxu0 %v10178_v9 }
 0x585   :  { %8932 = vmatprep.subr.bf16.mxu1 %v10180_v17 }
 0x587   :  { %8761 = vmatpush1.bf16.msra.mxu0 %v10177_v27 }
 0x588   :  { %8933 = vmatpush1.bf16.msra.mxu1 %v10179_v59  ;;  %8762 = vmatprep.subr.bf16.mxu0 %v10186_v28 }
 0x589   :  { %8934 = vmatprep.subr.bf16.mxu1 %v10188_v32 }
 0x58b   :  { %8763 = vmatpush1.bf16.msra.mxu0 %v10185_v33 }
 0x58c   :  { %8935 = vmatpush1.bf16.msra.mxu1 %v10187_v35 }
 0x58e   :  { %8765 = vmatmul.mubr.bf16.vlgmr.msra.gmra.mrb[20].mxu0 %v10962_v31 }
 0x58f   :  { %8937 = vmatmul.mubr.bf16.vlgmr.msra.gmra.mrb[20].mxu1 %v10962_v31 }
 0x661   :  { %v8766_v22 = vpop.f32.mrb[20].mxu0 }
 0x662   :  { %v10214_v38 = vadd.f32 %v8766_v22, %v5678_v49  ;;  %v8938_v21 = vpop.f32.mrb[20].mxu1  ;;  %v8768_v52 = vpop.f32.mrb[21].mxu0 }
 0x663   :  { %v10218_v7 = vadd.f32 %v8938_v21, %v5686_v50  ;;  %v10215_v24 = vadd.f32 %v8768_v52, %v5682_v29  ;;  %v8940_v30 = vpop.f32.mrb[21].mxu1  ;;  %v8770_v31 = vpop.f32.mrb[22].mxu0 }
 0x664   :  { %vm8952_vm8 = vcmp.gt.f32.partialorder %v10214_v38, 0.0  ;;  %v8969_v58 = vmul.f32 %v10214_v38, %v11026_v36  ;;  %v10219_v37 = vadd.f32 %v8940_v30, %v5690_v45  ;;  %v10216_v1 = vadd.f32 %v8770_v31, %v5678_v49  ;;  %v8942_v41 = vpop.f32.mrb[22].mxu1  ;;  %v8772_v40 = vpop.f32.mrb[23].mxu0 }
 0x665   :  { %vm8954_vm9 = vcmp.gt.f32.partialorder %v10218_v7, 0.0  ;;  %v8971_v62 = vmul.f32 %v10218_v7, %v11026_v36  ;;  %vm8953_vm10 = vcmp.gt.f32.partialorder %v10215_v24, 0.0  ;;  %v8970_v44 = vmul.f32 %v10215_v24, %v11026_v36  ;;  %v8944_v25 = vpop.f32.mrb[23].mxu1 }
 0x666   :  { %v8985_v47 = vsel %vm8952_vm8, %v10214_v38, %v8969_v58  ;;  %vm8955_vm11 = vcmp.gt.f32.partialorder %v10219_v37, 0.0  ;;  %v8972_v46 = vmul.f32 %v10219_v37, %v11026_v36  ;;  %vm8960_vm12 = vcmp.gt.f32.partialorder %v10216_v1, 0.0 }
 0x667   :  { %9001 = vst [vmem:[#allocation16 + $0x20] sm:$0xff] %v8985_v47  ;;  %v8987_v42 = vsel %vm8954_vm9, %v10218_v7, %v8971_v62  ;;  %v8986_v43 = vsel %vm8953_vm10, %v10215_v24, %v8970_v44  ;;  %v8977_v51 = vmul.f32 %v10216_v1, %v11026_v36  ;;  %v10220_v39 = vadd.f32 %v8942_v41, %v5686_v50 }
 0x668   :  { %9003 = vst [vmem:[#allocation16 + $0x30] sm:$0xff] %v8987_v42  ;;  %9002 = vst [vmem:[#allocation16 + $0x28] sm:$0xff] %v8986_v43  ;;  %v8988_v48 = vsel %vm8955_vm11, %v10219_v37, %v8972_v46  ;;  %v10217_v53 = vadd.f32 %v8772_v40, %v5682_v29  ;;  %v10221_v54 = vadd.f32 %v8944_v25, %v5690_v45 }
 0x669   :  { %9004 = vst [vmem:[#allocation16 + $0x38] sm:$0xff] %v8988_v48  ;;  %v8993_v20 = vsel %vm8960_vm12, %v10216_v1, %v8977_v51  ;;  %vm8962_vm13 = vcmp.gt.f32.partialorder %v10220_v39, 0.0  ;;  %v8979_v55 = vmul.f32 %v10220_v39, %v11026_v36 }
 0x66a   :  { %9009 = vst [vmem:[#allocation16 + $0x60] sm:$0xff] %v8993_v20  ;;  %vm8961_vm14 = vcmp.gt.f32.partialorder %v10217_v53, 0.0  ;;  %v8978_v56 = vmul.f32 %v10217_v53, %v11026_v36  ;;  %vm8963_vm15 = vcmp.gt.f32.partialorder %v10221_v54, 0.0  ;;  %v8980_v61 = vmul.f32 %v10221_v54, %v11026_v36 }
 0x66b   :  { %v8995_v63 = vsel %vm8962_vm13, %v10220_v39, %v8979_v55 }
 0x66c   :  { %9011 = vst [vmem:[#allocation16 + $0x70] sm:$0xff] %v8995_v63  ;;  %v8994_v2 = vsel %vm8961_vm14, %v10217_v53, %v8978_v56  ;;  %v8996_v3 = vsel %vm8963_vm15, %v10221_v54, %v8980_v61 }
 0x66d   :  { %9010 = vst [vmem:[#allocation16 + $0x68] sm:$0xff] %v8994_v2  ;;  %9012 = vst [vmem:[#allocation16 + $0x78] sm:$0xff] %v8996_v3 }
 0x66e   :  { %10513 = shalt.err (!%p10510_p7)
}
 0x66f   :  { %s10514_s15 = scalar_lea.hbm %s11107_s8, 2048 }
 0x670   :  { %p10515_p8 = scmp.ne.s32.totalorder %s11107_s8, %s10514_s15  ;;  %p10518_p9 = scmp.lt.u32.totalorder %s10514_s15, %s11107_s8 }
 0x672   :  { %p10520_p10 = pnand %p10518_p9, %p10515_p8 }
 0x674   :  { %10523 = shalt.err (!%p10520_p10)
}
 0x675   :  { %s10549_s11 = smov 1024   ;;  %s10550_s13 = smov 64  }
 0x676   :  { %9024 = dma.vmem_to_hbm [thread:$0]  %s9019_s1, 2048, %s11107_s8, [#allocation4], %s10549_s11, %s10549_s11, %s10550_s13  }
 0x677   :  { %10534 = dma.done.wait [#allocation4], 2048  }
 0x678   :  { %10535 = vsyncadd [#allocation4], 4294965248 }
 0x679   :  { %9028 = vsyncpa [#allocation3], 1 }
 0x67a   :  { %9029 = vsyncpa [#allocation7], 1 }
 0x67b   :  { %9030 = vsyncpa [#allocation10], 1 }
 0x67c   :  { %9031 = vsyncpa [#allocation13], 1 }
 0x67d   :  { %9032 = vsyncpa [#allocation4], 1 }
 0x67e   :  { %9033 = vsyncpa [#allocation5], 1 }

</bundles_post_ra>
